<compile_context>
chip_gen: v7x
topology: tpu7x:2x2x1
jax: 0.10.0
libtpu: 0.0.40
codegen_flags: <defaults>
</compile_context>

<pallas_src>
import functools
import math

import jax
import jax.numpy as jnp
from jax.experimental import pallas as pl
from jax.experimental.pallas import tpu as pltpu

# ----------------------------- configuration (small, module-consistent) -----------------
DEPTH = 2          # nn.Module default 24 -> shrunk for the demo
EMBED = 32         # embed_dim
QUERIES_DIM = 32   # queries_dim
LATENT_DIM = 16    # latent_dim
HEADS = 2
DIM_HEAD = 16
INNER = HEADS * DIM_HEAD
OUTPUT_DIM = 1     # the fused to_outputs path below assumes OUTPUT_DIM == 1
PE_HIDDEN = 48     # PointEmbed hidden_dim (must be divisible by 6)
FF_MULT = 4
LN_EPS = 1e-5

B, M, N = 2, 8, 16  # batch, #latent tokens, #query points

assert OUTPUT_DIM == 1


# ----------------------------- shared math helpers ---------------------------------------
def _layernorm(x, gamma, beta):
    mu = jnp.mean(x, axis=-1, keepdims=True)
    var = jnp.mean(jnp.square(x - mu), axis=-1, keepdims=True)
    return (x - mu) * jax.lax.rsqrt(var + LN_EPS) * gamma + beta


def _gelu_tanh(x):
    # tanh-form GELU: the transcendental runs on the EUP slot (vs a long VALU poly
    # + divide for the erf form).  Max deviation from torch's exact-erf gelu is ~1e-3
    # at |x|~2 and far smaller at the |x|<1 activations seen here — well inside 5e-3.
    c = math.sqrt(2.0 / math.pi)
    return 0.5 * x * (1.0 + jnp.tanh(c * (x + 0.044715 * x * x * x)))


def _softmax_rows(s):
    s = s - jnp.max(s, axis=-1, keepdims=True)
    p = jnp.exp(s)
    # approx reciprocal runs on the EUP slot (free next to the exp), ~2^-12 rel err
    return p * pl.reciprocal(jnp.sum(p, axis=-1, keepdims=True), approx=True)


# ----------------------------- host-side weight packing ----------------------------------
def _pack_slab(entries, width):
    """Pack (name, 2-D array) entries into one (rows, width) f32 slab.

    Each entry is zero-padded to `width` lanes and its row count rounded up to a
    multiple of 8 so every in-kernel static slice starts on a sublane-tile boundary.
    Returns (slab, {name: (row_offset, rows, cols)}).
    """
    offsets, blocks, row = {}, [], 0
    for name, arr in entries:
        arr = jnp.asarray(arr, jnp.float32)
        assert arr.ndim == 2 and arr.shape[1] <= width, (name, arr.shape)
        r, c = arr.shape
        offsets[name] = (row, r, c)
        arr = jnp.pad(arr, ((0, (-r) % 8), (0, width - c)))
        blocks.append(arr)
        row += arr.shape[0]
    return jnp.concatenate(blocks, axis=0), offsets


def _pack_params(params):
    """Split / fuse weights host-side and pack them into two slabs (32- and 128-lane)."""
    d_ff = FF_MULT * EMBED
    e32, e128 = [], []

    e32 += [("proj_w", params["proj_w"]), ("proj_b", params["proj_b"])]

    for l, lyr in enumerate(params["layers"]):
        p = f"l{l}_"
        e32 += [(p + "ln1_g", lyr["ln1_g"]), (p + "ln1_b", lyr["ln1_b"])]
        wq, wkv, wo = lyr["wq"], lyr["wkv"], lyr["wo"]
        for h in range(HEADS):
            lo = h * DIM_HEAD
            e32 += [(p + f"wq{h}", wq[:, lo:lo + DIM_HEAD]),
                    (p + f"wk{h}", wkv[:, lo:lo + DIM_HEAD]),
                    (p + f"wv{h}", wkv[:, INNER + lo:INNER + lo + DIM_HEAD]),
                    (p + f"wo{h}", wo[lo:lo + DIM_HEAD, :])]
        e32 += [(p + "bo", lyr["bo"]),
                (p + "ln2_g", lyr["ln2_g"]), (p + "ln2_b", lyr["ln2_b"]),
                (p + "w2", lyr["w2"]), (p + "b2", lyr["b2"])]
        # GEGLU value / gate halves split host-side (no in-kernel chunk)
        e128 += [(p + "w1v", lyr["w1"][:, :d_ff]), (p + "w1g", lyr["w1"][:, d_ff:]),
                 (p + "b1v", lyr["b1"][:, :d_ff]), (p + "b1g", lyr["b1"][:, d_ff:])]

    e32 += [("pe_basis", params["pe_basis"]),
            ("pe_wsin", params["pe_wsin"]), ("pe_wcos", params["pe_wcos"]),
            ("pe_wxyz", params["pe_wxyz"]), ("pe_b", params["pe_b"]),
            ("ca_lnq_g", params["ca_lnq_g"]), ("ca_lnq_b", params["ca_lnq_b"]),
            ("ca_lnc_g", params["ca_lnc_g"]), ("ca_lnc_b", params["ca_lnc_b"]),
            ("ca_wq", params["ca_wq"]),
            ("ca_wk", params["ca_wkv"][:, :EMBED]),
            ("ca_wv", params["ca_wkv"][:, EMBED:]),
            # to_outputs folded into the cross-attn output projection (exact):
            ("wout", (params["ca_wo"] @ params["out_w"]).reshape(1, EMBED)),
            ("bout", (params["ca_bo"] @ params["out_w"] + params["out_b"]).reshape(1, 1))]

    # Block-diagonal additive attention masks, shipped as constants in the slab.
    r = jnp.arange(B * HEADS * M)
    self_mask = jnp.where((r[:, None] // M) == (r[None, :] // M), 0.0, -1e9)
    qr, cr = jnp.arange(B * N), jnp.arange(B * M)
    cross_mask = jnp.where((qr[:, None] // N) == (cr[None, :] // M), 0.0, -1e9)
    e32 += [("self_mask", self_mask.astype(jnp.float32)),
            ("cross_mask", cross_mask.astype(jnp.float32))]

    slab32, off32 = _pack_slab(e32, 32)
    slab128, off128 = _pack_slab(e128, 128)
    return slab32, off32, slab128, off128


# ----------------------------- fused Pallas kernel ---------------------------------------
def shape_decoder_kernel(off32, off128, x_ref, q_ref, w32_ref, w128_ref, o_ref):
    f32 = jnp.float32

    def g32(name):
        row, r, c = off32[name]
        return w32_ref[row:row + r, :c]

    def g128(name):
        row, r, c = off128[name]
        return w128_ref[row:row + r, :c]

    def dot(a, b):
        return jnp.dot(a, b, preferred_element_type=f32)

    def dot_nt(a, b):  # a @ b.T  (contraction on the last dim of both operands)
        return jax.lax.dot_general(a, b, (((1,), (1,)), ((), ())),
                                   preferred_element_type=f32)

    bm = B * M
    scale = DIM_HEAD ** -0.5
    self_mask = g32("self_mask")          # (B*H*M, B*H*M), 0 / -1e9

    # ---- proj: Linear(latent_dim, embed_dim); batch pre-folded into rows ----------------
    xt = dot(x_ref[...], g32("proj_w")) + g32("proj_b")          # (B*M, E)

    for l in range(DEPTH):                                       # static unroll
        p = f"l{l}_"
        # -- pre-norm self-attention (+ residual); batch & heads folded into rows --------
        xn = _layernorm(xt, g32(p + "ln1_g"), g32(p + "ln1_b"))
        qf = jnp.concatenate([dot(xn, g32(p + f"wq{h}")) for h in range(HEADS)], axis=0)
        kf = jnp.concatenate([dot(xn, g32(p + f"wk{h}")) for h in range(HEADS)], axis=0)
        vf = jnp.concatenate([dot(xn, g32(p + f"wv{h}")) for h in range(HEADS)], axis=0)
        s = dot_nt(qf * scale, kf) + self_mask                   # (B*H*M, B*H*M)
        probs = _softmax_rows(s)
        of = dot(probs, vf)                                      # (B*H*M, D)
        att = None
        for h in range(HEADS):                                   # per-head out-proj + sum
            piece = dot(of[h * bm:(h + 1) * bm, :], g32(p + f"wo{h}"))
            att = piece if att is None else att + piece
        xt = xt + att + g32(p + "bo")

        # -- pre-norm GEGLU feed-forward (+ residual) -------------------------------------
        xn = _layernorm(xt, g32(p + "ln2_g"), g32(p + "ln2_b"))
        hv = dot(xn, g128(p + "w1v")) + g128(p + "b1v")
        hg = dot(xn, g128(p + "w1g")) + g128(p + "b1g")
        xt = xt + dot(hv * _gelu_tanh(hg), g32(p + "w2")) + g32(p + "b2")

    # ---- PointEmbed(queries); batch pre-folded into rows --------------------------------
    qp = q_ref[...]                                              # (B*N, 3)
    proj = dot(qp, g32("pe_basis"))                              # (B*N, PE_HIDDEN/2)
    qe = (dot(jnp.sin(proj), g32("pe_wsin"))
          + dot(jnp.cos(proj), g32("pe_wcos"))
          + dot(qp, g32("pe_wxyz"))
          + g32("pe_b"))                                         # (B*N, Qd)

    # ---- decoder cross-attention (1 head, dim_head = E), batch folded into rows ---------
    qn = _layernorm(qe, g32("ca_lnq_g"), g32("ca_lnq_b"))
    cn = _layernorm(xt, g32("ca_lnc_g"), g32("ca_lnc_b"))
    qc = dot(qn, g32("ca_wq")) * (EMBED ** -0.5)                 # (B*N, E)
    k = dot(cn, g32("ca_wk"))                                    # (B*M, E)
    v = dot(cn, g32("ca_wv"))                                    # (B*M, E)
    s = dot_nt(qc, k) + g32("cross_mask")                        # (B*N, B*M)
    probs = _softmax_rows(s)
    attn = dot(probs, v)                                         # (B*N, E)

    # fused to_outputs (OUTPUT_DIM == 1): lane reduce against the fused weight row
    out = jnp.sum(attn * g32("wout"), axis=-1, keepdims=True) + g32("bout")   # (B*N, 1)
    o_ref[...] = out.astype(o_ref.dtype)


# ----------------------------- pallas_call plumbing --------------------------------------
def make_shape_decoder(params):
    """Pack weights once (host side) and return a jitted fwd(x, queries)."""
    slab32, off32, slab128, off128 = _pack_params(params)
    kernel = functools.partial(shape_decoder_kernel, off32, off128)
    vmem = pl.BlockSpec(memory_space=pltpu.MemorySpace.VMEM)

    @jax.jit
    def fwd(x, queries):
        bsz, m, ldim = x.shape
        n = queries.shape[1]
        x2 = x.reshape(bsz * m, ldim)            # fold batch into rows in the wrapper
        q2 = queries.reshape(bsz * n, 3)
        out = pl.pallas_call(
            kernel,
            out_shape=jax.ShapeDtypeStruct((bsz * n, 1), jnp.float32),
            in_specs=[vmem, vmem, vmem, vmem],
            out_specs=vmem,
        )(x2, q2, slab32, slab128)
        return out.reshape(bsz, n, OUTPUT_DIM)

    return fwd


# ----------------------------- deterministic parameter init ------------------------------
def init_params(key):
    keys = iter(jax.random.split(key, 64))

    def nrm(shape, scale=0.05):
        return jax.random.normal(next(keys), shape, jnp.float32) * scale

    params = {
        "proj_w": nrm((LATENT_DIM, EMBED)),
        "proj_b": nrm((1, EMBED)),
    }
    layers = []
    for _ in range(DEPTH):
        layers.append(dict(
            ln1_g=1.0 + nrm((1, EMBED)), ln1_b=nrm((1, EMBED)),
            wq=nrm((EMBED, INNER)), wkv=nrm((EMBED, 2 * INNER)),
            wo=nrm((INNER, EMBED)), bo=nrm((1, EMBED)),
            ln2_g=1.0 + nrm((1, EMBED)), ln2_b=nrm((1, EMBED)),
            w1=nrm((EMBED, 2 * FF_MULT * EMBED)), b1=nrm((1, 2 * FF_MULT * EMBED)),
            w2=nrm((FF_MULT * EMBED, EMBED)), b2=nrm((1, EMBED)),
        ))
    params["layers"] = layers

    # PointEmbed fourier basis (matches the PyTorch buffer construction)
    nfreq = PE_HIDDEN // 6
    e = (2.0 ** jnp.arange(nfreq, dtype=jnp.float32)) * math.pi
    z = jnp.zeros((nfreq,), jnp.float32)
    params["pe_basis"] = jnp.stack([jnp.concatenate([e, z, z]),
                                    jnp.concatenate([z, e, z]),
                                    jnp.concatenate([z, z, e])], axis=0)  # (3, PE_HIDDEN/2)
    params["pe_wsin"] = nrm((PE_HIDDEN // 2, QUERIES_DIM))
    params["pe_wcos"] = nrm((PE_HIDDEN // 2, QUERIES_DIM))
    params["pe_wxyz"] = nrm((3, QUERIES_DIM))
    params["pe_b"] = nrm((1, QUERIES_DIM))

    params["ca_lnq_g"] = 1.0 + nrm((1, QUERIES_DIM))
    params["ca_lnq_b"] = nrm((1, QUERIES_DIM))
    params["ca_lnc_g"] = 1.0 + nrm((1, EMBED))
    params["ca_lnc_b"] = nrm((1, EMBED))
    params["ca_wq"] = nrm((QUERIES_DIM, EMBED))
    params["ca_wkv"] = nrm((EMBED, 2 * EMBED))
    params["ca_wo"] = nrm((EMBED, QUERIES_DIM))
    params["ca_bo"] = nrm((1, QUERIES_DIM))
    params["out_w"] = nrm((QUERIES_DIM, OUTPUT_DIM))
    params["out_b"] = nrm((1, OUTPUT_DIM))
    return params


# ----------------------------- pure-JAX reference (for correctness check) ----------------
def reference_forward(params, x, queries):
    def ln(t, g, b):
        mu = t.mean(-1, keepdims=True)
        var = ((t - mu) ** 2).mean(-1, keepdims=True)
        return (t - mu) / jnp.sqrt(var + LN_EPS) * g[0] + b[0]

    x = jnp.einsum("bmd,de->bme", x, params["proj_w"]) + params["proj_b"][0]
    bsz, m, _ = x.shape
    for layer in params["layers"]:
        xn = ln(x, layer["ln1_g"], layer["ln1_b"])
        q = xn @ layer["wq"]
        kv = xn @ layer["wkv"]
        k, v = kv[..., :INNER], kv[..., INNER:]
        qh = q.reshape(bsz, m, HEADS, DIM_HEAD).transpose(0, 2, 1, 3)
        kh = k.reshape(bsz, m, HEADS, DIM_HEAD).transpose(0, 2, 1, 3)
        vh = v.reshape(bsz, m, HEADS, DIM_HEAD).transpose(0, 2, 1, 3)
        s = jnp.einsum("bhqd,bhkd->bhqk", qh, kh) * (DIM_HEAD ** -0.5)
        p = jax.nn.softmax(s, axis=-1)
        o = jnp.einsum("bhqk,bhkd->bhqd", p, vh).transpose(0, 2, 1, 3).reshape(bsz, m, INNER)
        x = o @ layer["wo"] + layer["bo"][0] + x
        xn = ln(x, layer["ln2_g"], layer["ln2_b"])
        h = xn @ layer["w1"] + layer["b1"][0]
        a, gates = h[..., :FF_MULT * EMBED], h[..., FF_MULT * EMBED:]
        x = (a * jax.nn.gelu(gates, approximate=False)) @ layer["w2"] + layer["b2"][0] + x

    proj = jnp.einsum("bnd,de->bne", queries, params["pe_basis"])
    w_mlp = jnp.concatenate([params["pe_wsin"], params["pe_wcos"], params["pe_wxyz"]], axis=0)
    emb = jnp.concatenate([jnp.sin(proj), jnp.cos(proj), queries], axis=-1)
    qe = emb @ w_mlp + params["pe_b"][0]

    qn = ln(qe, params["ca_lnq_g"], params["ca_lnq_b"])
    cn = ln(x, params["ca_lnc_g"], params["ca_lnc_b"])
    q = qn @ params["ca_wq"]
    kv = cn @ params["ca_wkv"]
    k, v = kv[..., :EMBED], kv[..., EMBED:]
    s = jnp.einsum("bnd,bmd->bnm", q, k) * (EMBED ** -0.5)
    p = jax.nn.softmax(s, axis=-1)
    lat = jnp.einsum("bnm,bmd->bnd", p, v) @ params["ca_wo"] + params["ca_bo"][0]
    return lat @ params["out_w"] + params["out_b"][0]


# ----------------------------- main -------------------------------------------------------
if __name__ == "__main__":
    # Full-precision matmuls on both sides so the kernel-vs-reference check is tight.
    jax.config.update("jax_default_matmul_precision", "highest")

    key = jax.random.PRNGKey(0)
    kp, kx, kq = jax.random.split(key, 3)
    params = init_params(kp)
    x = jax.random.normal(kx, (B, M, LATENT_DIM), jnp.float32)
    queries = jax.random.uniform(kq, (B, N, 3), jnp.float32, minval=-1.0, maxval=1.0)

    fwd = make_shape_decoder(params)
    out = jax.block_until_ready(fwd(x, queries))
    assert out.shape == (B, N, OUTPUT_DIM)

    ref = jax.block_until_ready(reference_forward(params, x, queries))
    max_err = float(jnp.max(jnp.abs(out - ref)))
    if max_err > 5e-3:
        raise AssertionError(f"Pallas output mismatch vs reference: max abs err {max_err}")

    print("KERNEL_OK")
</pallas_src>

<mosaic_0001>
module attributes {stable_mosaic.version = 11 : i64} {
  func.func @shape_decoder_kernel(%arg0: memref<16x16xf32, #tpu.memory_space<vmem>>, %arg1: memref<32x3xf32, #tpu.memory_space<vmem>>, %arg2: memref<1104x32xf32, #tpu.memory_space<vmem>>, %arg3: memref<160x128xf32, #tpu.memory_space<vmem>>, %arg4: memref<32x1xf32, #tpu.memory_space<vmem>>) attributes {dimension_semantics = [], scalar_prefetch = 0 : i64, scratch_operands = 0 : i64, tpu.core_type = #tpu.core_type<tc>} {
    %c1040 = arith.constant 1040 : index
    %c0 = arith.constant 0 : index
    %0 = vector.load %arg2[%c1040, %c0] : memref<1104x32xf32, #tpu.memory_space<vmem>>, vector<32x32xf32>
    %c0_0 = arith.constant 0 : index
    %c0_1 = arith.constant 0 : index
    %1 = vector.load %arg0[%c0_0, %c0_1] : memref<16x16xf32, #tpu.memory_space<vmem>>, vector<16x16xf32>
    %c0_2 = arith.constant 0 : index
    %c0_3 = arith.constant 0 : index
    %2 = vector.load %arg2[%c0_2, %c0_3] : memref<1104x32xf32, #tpu.memory_space<vmem>>, vector<16x32xf32>
    %cst = arith.constant dense<0.000000e+00> : vector<16x32xf32>
    %3 = tpu.matmul %1, %2, %cst {dimension_numbers = #tpu.dot_dimension_numbers<[1], [0], [0], [1], [0, 0, 1, 1], [], []>, precision = #tpu.contract_precision<fp32>} : vector<16x16xf32>, vector<16x32xf32>, vector<16x32xf32> -> vector<16x32xf32>
    %c16 = arith.constant 16 : index
    %c0_4 = arith.constant 0 : index
    %4 = vector.load %arg2[%c16, %c0_4] : memref<1104x32xf32, #tpu.memory_space<vmem>>, vector<1x32xf32>
    %5 = vector.broadcast %4 : vector<1x32xf32> to vector<16x32xf32>
    %6 = arith.addf %3, %5 : vector<16x32xf32>
    %c24 = arith.constant 24 : index
    %c0_5 = arith.constant 0 : index
    %7 = vector.load %arg2[%c24, %c0_5] : memref<1104x32xf32, #tpu.memory_space<vmem>>, vector<1x32xf32>
    %c32 = arith.constant 32 : index
    %c0_6 = arith.constant 0 : index
    %8 = vector.load %arg2[%c32, %c0_6] : memref<1104x32xf32, #tpu.memory_space<vmem>>, vector<1x32xf32>
    %cst_7 = arith.constant dense<0.000000e+00> : vector<16xf32>
    %9 = vector.multi_reduction <add>, %6, %cst_7 [1] : vector<16x32xf32> to vector<16xf32>
    %10 = vector.shape_cast %9 : vector<16xf32> to vector<16x1xf32>
    %cst_8 = arith.constant 3.200000e+01 : f32
    %11 = vector.broadcast %cst_8 : f32 to vector<16x1xf32>
    %12 = arith.divf %10, %11 : vector<16x1xf32>
    %13 = vector.broadcast %12 : vector<16x1xf32> to vector<16x32xf32>
    %14 = arith.subf %6, %13 : vector<16x32xf32>
    %15 = arith.mulf %14, %14 : vector<16x32xf32>
    %cst_9 = arith.constant dense<0.000000e+00> : vector<16xf32>
    %16 = vector.multi_reduction <add>, %15, %cst_9 [1] : vector<16x32xf32> to vector<16xf32>
    %17 = vector.shape_cast %16 : vector<16xf32> to vector<16x1xf32>
    %cst_10 = arith.constant 3.200000e+01 : f32
    %18 = vector.broadcast %cst_10 : f32 to vector<16x1xf32>
    %19 = arith.divf %17, %18 : vector<16x1xf32>
    %20 = vector.broadcast %12 : vector<16x1xf32> to vector<16x32xf32>
    %21 = arith.subf %6, %20 : vector<16x32xf32>
    %cst_11 = arith.constant 9.99999974E-6 : f32
    %22 = vector.broadcast %cst_11 : f32 to vector<16x1xf32>
    %23 = arith.addf %19, %22 : vector<16x1xf32>
    %24 = math.rsqrt %23 : vector<16x1xf32>
    %25 = vector.broadcast %24 : vector<16x1xf32> to vector<16x32xf32>
    %26 = arith.mulf %21, %25 : vector<16x32xf32>
    %27 = vector.broadcast %7 : vector<1x32xf32> to vector<16x32xf32>
    %28 = arith.mulf %26, %27 : vector<16x32xf32>
    %29 = vector.broadcast %8 : vector<1x32xf32> to vector<16x32xf32>
    %30 = arith.addf %28, %29 : vector<16x32xf32>
    %c40 = arith.constant 40 : index
    %c0_12 = arith.constant 0 : index
    %31 = vector.load %arg2[%c40, %c0_12] : memref<1104x32xf32, #tpu.memory_space<vmem>>, vector<32x16xf32>
    %cst_13 = arith.constant dense<0.000000e+00> : vector<16x16xf32>
    %32 = tpu.matmul %30, %31, %cst_13 {dimension_numbers = #tpu.dot_dimension_numbers<[1], [0], [0], [1], [0, 0, 1, 1], [], []>, precision = #tpu.contract_precision<fp32>} : vector<16x32xf32>, vector<32x16xf32>, vector<16x16xf32> -> vector<16x16xf32>
    %c152 = arith.constant 152 : index
    %c0_14 = arith.constant 0 : index
    %33 = vector.load %arg2[%c152, %c0_14] : memref<1104x32xf32, #tpu.memory_space<vmem>>, vector<32x16xf32>
    %cst_15 = arith.constant dense<0.000000e+00> : vector<16x16xf32>
    %34 = tpu.matmul %30, %33, %cst_15 {dimension_numbers = #tpu.dot_dimension_numbers<[1], [0], [0], [1], [0, 0, 1, 1], [], []>, precision = #tpu.contract_precision<fp32>} : vector<16x32xf32>, vector<32x16xf32>, vector<16x16xf32> -> vector<16x16xf32>
    %35 = tpu.concatenate %32, %34 in 0 : vector<16x16xf32>, vector<16x16xf32> -> vector<32x16xf32>
    %c72 = arith.constant 72 : index
    %c0_16 = arith.constant 0 : index
    %36 = vector.load %arg2[%c72, %c0_16] : memref<1104x32xf32, #tpu.memory_space<vmem>>, vector<32x16xf32>
    %cst_17 = arith.constant dense<0.000000e+00> : vector<16x16xf32>
    %37 = tpu.matmul %30, %36, %cst_17 {dimension_numbers = #tpu.dot_dimension_numbers<[1], [0], [0], [1], [0, 0, 1, 1], [], []>, precision = #tpu.contract_precision<fp32>} : vector<16x32xf32>, vector<32x16xf32>, vector<16x16xf32> -> vector<16x16xf32>
    %c184 = arith.constant 184 : index
    %c0_18 = arith.constant 0 : index
    %38 = vector.load %arg2[%c184, %c0_18] : memref<1104x32xf32, #tpu.memory_space<vmem>>, vector<32x16xf32>
    %cst_19 = arith.constant dense<0.000000e+00> : vector<16x16xf32>
    %39 = tpu.matmul %30, %38, %cst_19 {dimension_numbers = #tpu.dot_dimension_numbers<[1], [0], [0], [1], [0, 0, 1, 1], [], []>, precision = #tpu.contract_precision<fp32>} : vector<16x32xf32>, vector<32x16xf32>, vector<16x16xf32> -> vector<16x16xf32>
    %40 = tpu.concatenate %37, %39 in 0 : vector<16x16xf32>, vector<16x16xf32> -> vector<32x16xf32>
    %c104 = arith.constant 104 : index
    %c0_20 = arith.constant 0 : index
    %41 = vector.load %arg2[%c104, %c0_20] : memref<1104x32xf32, #tpu.memory_space<vmem>>, vector<32x16xf32>
    %cst_21 = arith.constant dense<0.000000e+00> : vector<16x16xf32>
    %42 = tpu.matmul %30, %41, %cst_21 {dimension_numbers = #tpu.dot_dimension_numbers<[1], [0], [0], [1], [0, 0, 1, 1], [], []>, precision = #tpu.contract_precision<fp32>} : vector<16x32xf32>, vector<32x16xf32>, vector<16x16xf32> -> vector<16x16xf32>
    %c216 = arith.constant 216 : index
    %c0_22 = arith.constant 0 : index
    %43 = vector.load %arg2[%c216, %c0_22] : memref<1104x32xf32, #tpu.memory_space<vmem>>, vector<32x16xf32>
    %cst_23 = arith.constant dense<0.000000e+00> : vector<16x16xf32>
    %44 = tpu.matmul %30, %43, %cst_23 {dimension_numbers = #tpu.dot_dimension_numbers<[1], [0], [0], [1], [0, 0, 1, 1], [], []>, precision = #tpu.contract_precision<fp32>} : vector<16x32xf32>, vector<32x16xf32>, vector<16x16xf32> -> vector<16x16xf32>
    %45 = tpu.concatenate %42, %44 in 0 : vector<16x16xf32>, vector<16x16xf32> -> vector<32x16xf32>
    %cst_24 = arith.constant 2.500000e-01 : f32
    %46 = vector.broadcast %cst_24 : f32 to vector<32x16xf32>
    %47 = arith.mulf %35, %46 : vector<32x16xf32>
    %cst_25 = arith.constant dense<0.000000e+00> : vector<32x32xf32>
    %48 = tpu.matmul %47, %40, %cst_25 {dimension_numbers = #tpu.dot_dimension_numbers<[1], [1], [0], [0], [0, 0, 1, 0], [], []>, precision = #tpu.contract_precision<fp32>} : vector<32x16xf32>, vector<32x16xf32>, vector<32x32xf32> -> vector<32x32xf32>
    %49 = arith.addf %48, %0 : vector<32x32xf32>
    %cst_26 = arith.constant dense<0xFF800000> : vector<32xf32>
    %50 = vector.multi_reduction <maximumf>, %49, %cst_26 [1] : vector<32x32xf32> to vector<32xf32>
    %51 = vector.shape_cast %50 : vector<32xf32> to vector<32x1xf32>
    %52 = vector.broadcast %51 : vector<32x1xf32> to vector<32x32xf32>
    %53 = arith.subf %49, %52 : vector<32x32xf32>
    %54 = math.exp %53 : vector<32x32xf32>
    %cst_27 = arith.constant dense<0.000000e+00> : vector<32xf32>
    %55 = vector.multi_reduction <add>, %54, %cst_27 [1] : vector<32x32xf32> to vector<32xf32>
    %56 = vector.shape_cast %55 : vector<32xf32> to vector<32x1xf32>
    %57 = tpu.reciprocal %56 {approx = true} : vector<32x1xf32> -> vector<32x1xf32>
    %58 = vector.broadcast %57 : vector<32x1xf32> to vector<32x32xf32>
    %59 = arith.mulf %54, %58 : vector<32x32xf32>
    %cst_28 = arith.constant dense<0.000000e+00> : vector<32x16xf32>
    %60 = tpu.matmul %59, %45, %cst_28 {dimension_numbers = #tpu.dot_dimension_numbers<[1], [0], [0], [1], [0, 0, 1, 1], [], []>, precision = #tpu.contract_precision<fp32>} : vector<32x32xf32>, vector<32x16xf32>, vector<32x16xf32> -> vector<32x16xf32>
    %61 = vector.extract_strided_slice %60 {offsets = [0, 0], sizes = [16, 16], strides = [1, 1]} : vector<32x16xf32> to vector<16x16xf32>
    %c136 = arith.constant 136 : index
    %c0_29 = arith.constant 0 : index
    %62 = vector.load %arg2[%c136, %c0_29] : memref<1104x32xf32, #tpu.memory_space<vmem>>, vector<16x32xf32>
    %cst_30 = arith.constant dense<0.000000e+00> : vector<16x32xf32>
    %63 = tpu.matmul %61, %62, %cst_30 {dimension_numbers = #tpu.dot_dimension_numbers<[1], [0], [0], [1], [0, 0, 1, 1], [], []>, precision = #tpu.contract_precision<fp32>} : vector<16x16xf32>, vector<16x32xf32>, vector<16x32xf32> -> vector<16x32xf32>
    %64 = vector.extract_strided_slice %60 {offsets = [16, 0], sizes = [16, 16], strides = [1, 1]} : vector<32x16xf32> to vector<16x16xf32>
    %c248 = arith.constant 248 : index
    %c0_31 = arith.constant 0 : index
    %65 = vector.load %arg2[%c248, %c0_31] : memref<1104x32xf32, #tpu.memory_space<vmem>>, vector<16x32xf32>
    %cst_32 = arith.constant dense<0.000000e+00> : vector<16x32xf32>
    %66 = tpu.matmul %64, %65, %cst_32 {dimension_numbers = #tpu.dot_dimension_numbers<[1], [0], [0], [1], [0, 0, 1, 1], [], []>, precision = #tpu.contract_precision<fp32>} : vector<16x16xf32>, vector<16x32xf32>, vector<16x32xf32> -> vector<16x32xf32>
    %67 = arith.addf %63, %66 : vector<16x32xf32>
    %68 = arith.addf %6, %67 : vector<16x32xf32>
    %c264 = arith.constant 264 : index
    %c0_33 = arith.constant 0 : index
    %69 = vector.load %arg2[%c264, %c0_33] : memref<1104x32xf32, #tpu.memory_space<vmem>>, vector<1x32xf32>
    %70 = vector.broadcast %69 : vector<1x32xf32> to vector<16x32xf32>
    %71 = arith.addf %68, %70 : vector<16x32xf32>
    %c272 = arith.constant 272 : index
    %c0_34 = arith.constant 0 : index
    %72 = vector.load %arg2[%c272, %c0_34] : memref<1104x32xf32, #tpu.memory_space<vmem>>, vector<1x32xf32>
    %c280 = arith.constant 280 : index
    %c0_35 = arith.constant 0 : index
    %73 = vector.load %arg2[%c280, %c0_35] : memref<1104x32xf32, #tpu.memory_space<vmem>>, vector<1x32xf32>
    %cst_36 = arith.constant dense<0.000000e+00> : vector<16xf32>
    %74 = vector.multi_reduction <add>, %71, %cst_36 [1] : vector<16x32xf32> to vector<16xf32>
    %75 = vector.shape_cast %74 : vector<16xf32> to vector<16x1xf32>
    %cst_37 = arith.constant 3.200000e+01 : f32
    %76 = vector.broadcast %cst_37 : f32 to vector<16x1xf32>
    %77 = arith.divf %75, %76 : vector<16x1xf32>
    %78 = vector.broadcast %77 : vector<16x1xf32> to vector<16x32xf32>
    %79 = arith.subf %71, %78 : vector<16x32xf32>
    %80 = arith.mulf %79, %79 : vector<16x32xf32>
    %cst_38 = arith.constant dense<0.000000e+00> : vector<16xf32>
    %81 = vector.multi_reduction <add>, %80, %cst_38 [1] : vector<16x32xf32> to vector<16xf32>
    %82 = vector.shape_cast %81 : vector<16xf32> to vector<16x1xf32>
    %cst_39 = arith.constant 3.200000e+01 : f32
    %83 = vector.broadcast %cst_39 : f32 to vector<16x1xf32>
    %84 = arith.divf %82, %83 : vector<16x1xf32>
    %85 = vector.broadcast %77 : vector<16x1xf32> to vector<16x32xf32>
    %86 = arith.subf %71, %85 : vector<16x32xf32>
    %cst_40 = arith.constant 9.99999974E-6 : f32
    %87 = vector.broadcast %cst_40 : f32 to vector<16x1xf32>
    %88 = arith.addf %84, %87 : vector<16x1xf32>
    %89 = math.rsqrt %88 : vector<16x1xf32>
    %90 = vector.broadcast %89 : vector<16x1xf32> to vector<16x32xf32>
    %91 = arith.mulf %86, %90 : vector<16x32xf32>
    %92 = vector.broadcast %72 : vector<1x32xf32> to vector<16x32xf32>
    %93 = arith.mulf %91, %92 : vector<16x32xf32>
    %94 = vector.broadcast %73 : vector<1x32xf32> to vector<16x32xf32>
    %95 = arith.addf %93, %94 : vector<16x32xf32>
    %c0_41 = arith.constant 0 : index
    %c0_42 = arith.constant 0 : index
    %96 = vector.load %arg3[%c0_41, %c0_42] : memref<160x128xf32, #tpu.memory_space<vmem>>, vector<32x128xf32>
    %cst_43 = arith.constant dense<0.000000e+00> : vector<16x128xf32>
    %97 = tpu.matmul %95, %96, %cst_43 {dimension_numbers = #tpu.dot_dimension_numbers<[1], [0], [0], [1], [0, 0, 1, 1], [], []>, precision = #tpu.contract_precision<fp32>} : vector<16x32xf32>, vector<32x128xf32>, vector<16x128xf32> -> vector<16x128xf32>
    %c64 = arith.constant 64 : index
    %c0_44 = arith.constant 0 : index
    %98 = vector.load %arg3[%c64, %c0_44] : memref<160x128xf32, #tpu.memory_space<vmem>>, vector<1x128xf32>
    %99 = vector.broadcast %98 : vector<1x128xf32> to vector<16x128xf32>
    %100 = arith.addf %97, %99 : vector<16x128xf32>
    %c32_45 = arith.constant 32 : index
    %c0_46 = arith.constant 0 : index
    %101 = vector.load %arg3[%c32_45, %c0_46] : memref<160x128xf32, #tpu.memory_space<vmem>>, vector<32x128xf32>
    %cst_47 = arith.constant dense<0.000000e+00> : vector<16x128xf32>
    %102 = tpu.matmul %95, %101, %cst_47 {dimension_numbers = #tpu.dot_dimension_numbers<[1], [0], [0], [1], [0, 0, 1, 1], [], []>, precision = #tpu.contract_precision<fp32>} : vector<16x32xf32>, vector<32x128xf32>, vector<16x128xf32> -> vector<16x128xf32>
    %c72_48 = arith.constant 72 : index
    %c0_49 = arith.constant 0 : index
    %103 = vector.load %arg3[%c72_48, %c0_49] : memref<160x128xf32, #tpu.memory_space<vmem>>, vector<1x128xf32>
    %104 = vector.broadcast %103 : vector<1x128xf32> to vector<16x128xf32>
    %105 = arith.addf %102, %104 : vector<16x128xf32>
    %cst_50 = arith.constant 5.000000e-01 : f32
    %106 = vector.broadcast %cst_50 : f32 to vector<16x128xf32>
    %107 = arith.mulf %106, %105 : vector<16x128xf32>
    %cst_51 = arith.constant 4.471500e-02 : f32
    %108 = vector.broadcast %cst_51 : f32 to vector<16x128xf32>
    %109 = arith.mulf %108, %105 : vector<16x128xf32>
    %110 = arith.mulf %109, %105 : vector<16x128xf32>
    %111 = arith.mulf %110, %105 : vector<16x128xf32>
    %112 = arith.addf %105, %111 : vector<16x128xf32>
    %cst_52 = arith.constant 0.797884583 : f32
    %113 = vector.broadcast %cst_52 : f32 to vector<16x128xf32>
    %114 = arith.mulf %113, %112 : vector<16x128xf32>
    %115 = math.tanh %114 : vector<16x128xf32>
    %cst_53 = arith.constant 1.000000e+00 : f32
    %116 = vector.broadcast %cst_53 : f32 to vector<16x128xf32>
    %117 = arith.addf %116, %115 : vector<16x128xf32>
    %118 = arith.mulf %107, %117 : vector<16x128xf32>
    %119 = arith.mulf %100, %118 : vector<16x128xf32>
    %c288 = arith.constant 288 : index
    %c0_54 = arith.constant 0 : index
    %120 = vector.load %arg2[%c288, %c0_54] : memref<1104x32xf32, #tpu.memory_space<vmem>>, vector<128x32xf32>
    %cst_55 = arith.constant dense<0.000000e+00> : vector<16x32xf32>
    %121 = tpu.matmul %119, %120, %cst_55 {dimension_numbers = #tpu.dot_dimension_numbers<[1], [0], [0], [1], [0, 0, 1, 1], [], []>, precision = #tpu.contract_precision<fp32>} : vector<16x128xf32>, vector<128x32xf32>, vector<16x32xf32> -> vector<16x32xf32>
    %122 = arith.addf %71, %121 : vector<16x32xf32>
    %c416 = arith.constant 416 : index
    %c0_56 = arith.constant 0 : index
    %123 = vector.load %arg2[%c416, %c0_56] : memref<1104x32xf32, #tpu.memory_space<vmem>>, vector<1x32xf32>
    %124 = vector.broadcast %123 : vector<1x32xf32> to vector<16x32xf32>
    %125 = arith.addf %122, %124 : vector<16x32xf32>
    %c424 = arith.constant 424 : index
    %c0_57 = arith.constant 0 : index
    %126 = vector.load %arg2[%c424, %c0_57] : memref<1104x32xf32, #tpu.memory_space<vmem>>, vector<1x32xf32>
    %c432 = arith.constant 432 : index
    %c0_58 = arith.constant 0 : index
    %127 = vector.load %arg2[%c432, %c0_58] : memref<1104x32xf32, #tpu.memory_space<vmem>>, vector<1x32xf32>
    %cst_59 = arith.constant dense<0.000000e+00> : vector<16xf32>
    %128 = vector.multi_reduction <add>, %125, %cst_59 [1] : vector<16x32xf32> to vector<16xf32>
    %129 = vector.shape_cast %128 : vector<16xf32> to vector<16x1xf32>
    %cst_60 = arith.constant 3.200000e+01 : f32
    %130 = vector.broadcast %cst_60 : f32 to vector<16x1xf32>
    %131 = arith.divf %129, %130 : vector<16x1xf32>
    %132 = vector.broadcast %131 : vector<16x1xf32> to vector<16x32xf32>
    %133 = arith.subf %125, %132 : vector<16x32xf32>
    %134 = arith.mulf %133, %133 : vector<16x32xf32>
    %cst_61 = arith.constant dense<0.000000e+00> : vector<16xf32>
    %135 = vector.multi_reduction <add>, %134, %cst_61 [1] : vector<16x32xf32> to vector<16xf32>
    %136 = vector.shape_cast %135 : vector<16xf32> to vector<16x1xf32>
    %cst_62 = arith.constant 3.200000e+01 : f32
    %137 = vector.broadcast %cst_62 : f32 to vector<16x1xf32>
    %138 = arith.divf %136, %137 : vector<16x1xf32>
    %139 = vector.broadcast %131 : vector<16x1xf32> to vector<16x32xf32>
    %140 = arith.subf %125, %139 : vector<16x32xf32>
    %cst_63 = arith.constant 9.99999974E-6 : f32
    %141 = vector.broadcast %cst_63 : f32 to vector<16x1xf32>
    %142 = arith.addf %138, %141 : vector<16x1xf32>
    %143 = math.rsqrt %142 : vector<16x1xf32>
    %144 = vector.broadcast %143 : vector<16x1xf32> to vector<16x32xf32>
    %145 = arith.mulf %140, %144 : vector<16x32xf32>
    %146 = vector.broadcast %126 : vector<1x32xf32> to vector<16x32xf32>
    %147 = arith.mulf %145, %146 : vector<16x32xf32>
    %148 = vector.broadcast %127 : vector<1x32xf32> to vector<16x32xf32>
    %149 = arith.addf %147, %148 : vector<16x32xf32>
    %c440 = arith.constant 440 : index
    %c0_64 = arith.constant 0 : index
    %150 = vector.load %arg2[%c440, %c0_64] : memref<1104x32xf32, #tpu.memory_space<vmem>>, vector<32x16xf32>
    %cst_65 = arith.constant dense<0.000000e+00> : vector<16x16xf32>
    %151 = tpu.matmul %149, %150, %cst_65 {dimension_numbers = #tpu.dot_dimension_numbers<[1], [0], [0], [1], [0, 0, 1, 1], [], []>, precision = #tpu.contract_precision<fp32>} : vector<16x32xf32>, vector<32x16xf32>, vector<16x16xf32> -> vector<16x16xf32>
    %c552 = arith.constant 552 : index
    %c0_66 = arith.constant 0 : index
    %152 = vector.load %arg2[%c552, %c0_66] : memref<1104x32xf32, #tpu.memory_space<vmem>>, vector<32x16xf32>
    %cst_67 = arith.constant dense<0.000000e+00> : vector<16x16xf32>
    %153 = tpu.matmul %149, %152, %cst_67 {dimension_numbers = #tpu.dot_dimension_numbers<[1], [0], [0], [1], [0, 0, 1, 1], [], []>, precision = #tpu.contract_precision<fp32>} : vector<16x32xf32>, vector<32x16xf32>, vector<16x16xf32> -> vector<16x16xf32>
    %154 = tpu.concatenate %151, %153 in 0 : vector<16x16xf32>, vector<16x16xf32> -> vector<32x16xf32>
    %c472 = arith.constant 472 : index
    %c0_68 = arith.constant 0 : index
    %155 = vector.load %arg2[%c472, %c0_68] : memref<1104x32xf32, #tpu.memory_space<vmem>>, vector<32x16xf32>
    %cst_69 = arith.constant dense<0.000000e+00> : vector<16x16xf32>
    %156 = tpu.matmul %149, %155, %cst_69 {dimension_numbers = #tpu.dot_dimension_numbers<[1], [0], [0], [1], [0, 0, 1, 1], [], []>, precision = #tpu.contract_precision<fp32>} : vector<16x32xf32>, vector<32x16xf32>, vector<16x16xf32> -> vector<16x16xf32>
    %c584 = arith.constant 584 : index
    %c0_70 = arith.constant 0 : index
    %157 = vector.load %arg2[%c584, %c0_70] : memref<1104x32xf32, #tpu.memory_space<vmem>>, vector<32x16xf32>
    %cst_71 = arith.constant dense<0.000000e+00> : vector<16x16xf32>
    %158 = tpu.matmul %149, %157, %cst_71 {dimension_numbers = #tpu.dot_dimension_numbers<[1], [0], [0], [1], [0, 0, 1, 1], [], []>, precision = #tpu.contract_precision<fp32>} : vector<16x32xf32>, vector<32x16xf32>, vector<16x16xf32> -> vector<16x16xf32>
    %159 = tpu.concatenate %156, %158 in 0 : vector<16x16xf32>, vector<16x16xf32> -> vector<32x16xf32>
    %c504 = arith.constant 504 : index
    %c0_72 = arith.constant 0 : index
    %160 = vector.load %arg2[%c504, %c0_72] : memref<1104x32xf32, #tpu.memory_space<vmem>>, vector<32x16xf32>
    %cst_73 = arith.constant dense<0.000000e+00> : vector<16x16xf32>
    %161 = tpu.matmul %149, %160, %cst_73 {dimension_numbers = #tpu.dot_dimension_numbers<[1], [0], [0], [1], [0, 0, 1, 1], [], []>, precision = #tpu.contract_precision<fp32>} : vector<16x32xf32>, vector<32x16xf32>, vector<16x16xf32> -> vector<16x16xf32>
    %c616 = arith.constant 616 : index
    %c0_74 = arith.constant 0 : index
    %162 = vector.load %arg2[%c616, %c0_74] : memref<1104x32xf32, #tpu.memory_space<vmem>>, vector<32x16xf32>
    %cst_75 = arith.constant dense<0.000000e+00> : vector<16x16xf32>
    %163 = tpu.matmul %149, %162, %cst_75 {dimension_numbers = #tpu.dot_dimension_numbers<[1], [0], [0], [1], [0, 0, 1, 1], [], []>, precision = #tpu.contract_precision<fp32>} : vector<16x32xf32>, vector<32x16xf32>, vector<16x16xf32> -> vector<16x16xf32>
    %164 = tpu.concatenate %161, %163 in 0 : vector<16x16xf32>, vector<16x16xf32> -> vector<32x16xf32>
    %cst_76 = arith.constant 2.500000e-01 : f32
    %165 = vector.broadcast %cst_76 : f32 to vector<32x16xf32>
    %166 = arith.mulf %154, %165 : vector<32x16xf32>
    %cst_77 = arith.constant dense<0.000000e+00> : vector<32x32xf32>
    %167 = tpu.matmul %166, %159, %cst_77 {dimension_numbers = #tpu.dot_dimension_numbers<[1], [1], [0], [0], [0, 0, 1, 0], [], []>, precision = #tpu.contract_precision<fp32>} : vector<32x16xf32>, vector<32x16xf32>, vector<32x32xf32> -> vector<32x32xf32>
    %168 = arith.addf %167, %0 : vector<32x32xf32>
    %cst_78 = arith.constant dense<0xFF800000> : vector<32xf32>
    %169 = vector.multi_reduction <maximumf>, %168, %cst_78 [1] : vector<32x32xf32> to vector<32xf32>
    %170 = vector.shape_cast %169 : vector<32xf32> to vector<32x1xf32>
    %171 = vector.broadcast %170 : vector<32x1xf32> to vector<32x32xf32>
    %172 = arith.subf %168, %171 : vector<32x32xf32>
    %173 = math.exp %172 : vector<32x32xf32>
    %cst_79 = arith.constant dense<0.000000e+00> : vector<32xf32>
    %174 = vector.multi_reduction <add>, %173, %cst_79 [1] : vector<32x32xf32> to vector<32xf32>
    %175 = vector.shape_cast %174 : vector<32xf32> to vector<32x1xf32>
    %176 = tpu.reciprocal %175 {approx = true} : vector<32x1xf32> -> vector<32x1xf32>
    %177 = vector.broadcast %176 : vector<32x1xf32> to vector<32x32xf32>
    %178 = arith.mulf %173, %177 : vector<32x32xf32>
    %cst_80 = arith.constant dense<0.000000e+00> : vector<32x16xf32>
    %179 = tpu.matmul %178, %164, %cst_80 {dimension_numbers = #tpu.dot_dimension_numbers<[1], [0], [0], [1], [0, 0, 1, 1], [], []>, precision = #tpu.contract_precision<fp32>} : vector<32x32xf32>, vector<32x16xf32>, vector<32x16xf32> -> vector<32x16xf32>
    %180 = vector.extract_strided_slice %179 {offsets = [0, 0], sizes = [16, 16], strides = [1, 1]} : vector<32x16xf32> to vector<16x16xf32>
    %c536 = arith.constant 536 : index
    %c0_81 = arith.constant 0 : index
    %181 = vector.load %arg2[%c536, %c0_81] : memref<1104x32xf32, #tpu.memory_space<vmem>>, vector<16x32xf32>
    %cst_82 = arith.constant dense<0.000000e+00> : vector<16x32xf32>
    %182 = tpu.matmul %180, %181, %cst_82 {dimension_numbers = #tpu.dot_dimension_numbers<[1], [0], [0], [1], [0, 0, 1, 1], [], []>, precision = #tpu.contract_precision<fp32>} : vector<16x16xf32>, vector<16x32xf32>, vector<16x32xf32> -> vector<16x32xf32>
    %183 = vector.extract_strided_slice %179 {offsets = [16, 0], sizes = [16, 16], strides = [1, 1]} : vector<32x16xf32> to vector<16x16xf32>
    %c648 = arith.constant 648 : index
    %c0_83 = arith.constant 0 : index
    %184 = vector.load %arg2[%c648, %c0_83] : memref<1104x32xf32, #tpu.memory_space<vmem>>, vector<16x32xf32>
    %cst_84 = arith.constant dense<0.000000e+00> : vector<16x32xf32>
    %185 = tpu.matmul %183, %184, %cst_84 {dimension_numbers = #tpu.dot_dimension_numbers<[1], [0], [0], [1], [0, 0, 1, 1], [], []>, precision = #tpu.contract_precision<fp32>} : vector<16x16xf32>, vector<16x32xf32>, vector<16x32xf32> -> vector<16x32xf32>
    %186 = arith.addf %182, %185 : vector<16x32xf32>
    %187 = arith.addf %125, %186 : vector<16x32xf32>
    %c664 = arith.constant 664 : index
    %c0_85 = arith.constant 0 : index
    %188 = vector.load %arg2[%c664, %c0_85] : memref<1104x32xf32, #tpu.memory_space<vmem>>, vector<1x32xf32>
    %189 = vector.broadcast %188 : vector<1x32xf32> to vector<16x32xf32>
    %190 = arith.addf %187, %189 : vector<16x32xf32>
    %c672 = arith.constant 672 : index
    %c0_86 = arith.constant 0 : index
    %191 = vector.load %arg2[%c672, %c0_86] : memref<1104x32xf32, #tpu.memory_space<vmem>>, vector<1x32xf32>
    %c680 = arith.constant 680 : index
    %c0_87 = arith.constant 0 : index
    %192 = vector.load %arg2[%c680, %c0_87] : memref<1104x32xf32, #tpu.memory_space<vmem>>, vector<1x32xf32>
    %cst_88 = arith.constant dense<0.000000e+00> : vector<16xf32>
    %193 = vector.multi_reduction <add>, %190, %cst_88 [1] : vector<16x32xf32> to vector<16xf32>
    %194 = vector.shape_cast %193 : vector<16xf32> to vector<16x1xf32>
    %cst_89 = arith.constant 3.200000e+01 : f32
    %195 = vector.broadcast %cst_89 : f32 to vector<16x1xf32>
    %196 = arith.divf %194, %195 : vector<16x1xf32>
    %197 = vector.broadcast %196 : vector<16x1xf32> to vector<16x32xf32>
    %198 = arith.subf %190, %197 : vector<16x32xf32>
    %199 = arith.mulf %198, %198 : vector<16x32xf32>
    %cst_90 = arith.constant dense<0.000000e+00> : vector<16xf32>
    %200 = vector.multi_reduction <add>, %199, %cst_90 [1] : vector<16x32xf32> to vector<16xf32>
    %201 = vector.shape_cast %200 : vector<16xf32> to vector<16x1xf32>
    %cst_91 = arith.constant 3.200000e+01 : f32
    %202 = vector.broadcast %cst_91 : f32 to vector<16x1xf32>
    %203 = arith.divf %201, %202 : vector<16x1xf32>
    %204 = vector.broadcast %196 : vector<16x1xf32> to vector<16x32xf32>
    %205 = arith.subf %190, %204 : vector<16x32xf32>
    %cst_92 = arith.constant 9.99999974E-6 : f32
    %206 = vector.broadcast %cst_92 : f32 to vector<16x1xf32>
    %207 = arith.addf %203, %206 : vector<16x1xf32>
    %208 = math.rsqrt %207 : vector<16x1xf32>
    %209 = vector.broadcast %208 : vector<16x1xf32> to vector<16x32xf32>
    %210 = arith.mulf %205, %209 : vector<16x32xf32>
    %211 = vector.broadcast %191 : vector<1x32xf32> to vector<16x32xf32>
    %212 = arith.mulf %210, %211 : vector<16x32xf32>
    %213 = vector.broadcast %192 : vector<1x32xf32> to vector<16x32xf32>
    %214 = arith.addf %212, %213 : vector<16x32xf32>
    %c80 = arith.constant 80 : index
    %c0_93 = arith.constant 0 : index
    %215 = vector.load %arg3[%c80, %c0_93] : memref<160x128xf32, #tpu.memory_space<vmem>>, vector<32x128xf32>
    %cst_94 = arith.constant dense<0.000000e+00> : vector<16x128xf32>
    %216 = tpu.matmul %214, %215, %cst_94 {dimension_numbers = #tpu.dot_dimension_numbers<[1], [0], [0], [1], [0, 0, 1, 1], [], []>, precision = #tpu.contract_precision<fp32>} : vector<16x32xf32>, vector<32x128xf32>, vector<16x128xf32> -> vector<16x128xf32>
    %c144 = arith.constant 144 : index
    %c0_95 = arith.constant 0 : index
    %217 = vector.load %arg3[%c144, %c0_95] : memref<160x128xf32, #tpu.memory_space<vmem>>, vector<1x128xf32>
    %218 = vector.broadcast %217 : vector<1x128xf32> to vector<16x128xf32>
    %219 = arith.addf %216, %218 : vector<16x128xf32>
    %c112 = arith.constant 112 : index
    %c0_96 = arith.constant 0 : index
    %220 = vector.load %arg3[%c112, %c0_96] : memref<160x128xf32, #tpu.memory_space<vmem>>, vector<32x128xf32>
    %cst_97 = arith.constant dense<0.000000e+00> : vector<16x128xf32>
    %221 = tpu.matmul %214, %220, %cst_97 {dimension_numbers = #tpu.dot_dimension_numbers<[1], [0], [0], [1], [0, 0, 1, 1], [], []>, precision = #tpu.contract_precision<fp32>} : vector<16x32xf32>, vector<32x128xf32>, vector<16x128xf32> -> vector<16x128xf32>
    %c152_98 = arith.constant 152 : index
    %c0_99 = arith.constant 0 : index
    %222 = vector.load %arg3[%c152_98, %c0_99] : memref<160x128xf32, #tpu.memory_space<vmem>>, vector<1x128xf32>
    %223 = vector.broadcast %222 : vector<1x128xf32> to vector<16x128xf32>
    %224 = arith.addf %221, %223 : vector<16x128xf32>
    %cst_100 = arith.constant 5.000000e-01 : f32
    %225 = vector.broadcast %cst_100 : f32 to vector<16x128xf32>
    %226 = arith.mulf %225, %224 : vector<16x128xf32>
    %cst_101 = arith.constant 4.471500e-02 : f32
    %227 = vector.broadcast %cst_101 : f32 to vector<16x128xf32>
    %228 = arith.mulf %227, %224 : vector<16x128xf32>
    %229 = arith.mulf %228, %224 : vector<16x128xf32>
    %230 = arith.mulf %229, %224 : vector<16x128xf32>
    %231 = arith.addf %224, %230 : vector<16x128xf32>
    %cst_102 = arith.constant 0.797884583 : f32
    %232 = vector.broadcast %cst_102 : f32 to vector<16x128xf32>
    %233 = arith.mulf %232, %231 : vector<16x128xf32>
    %234 = math.tanh %233 : vector<16x128xf32>
    %cst_103 = arith.constant 1.000000e+00 : f32
    %235 = vector.broadcast %cst_103 : f32 to vector<16x128xf32>
    %236 = arith.addf %235, %234 : vector<16x128xf32>
    %237 = arith.mulf %226, %236 : vector<16x128xf32>
    %238 = arith.mulf %219, %237 : vector<16x128xf32>
    %c688 = arith.constant 688 : index
    %c0_104 = arith.constant 0 : index
    %239 = vector.load %arg2[%c688, %c0_104] : memref<1104x32xf32, #tpu.memory_space<vmem>>, vector<128x32xf32>
    %cst_105 = arith.constant dense<0.000000e+00> : vector<16x32xf32>
    %240 = tpu.matmul %238, %239, %cst_105 {dimension_numbers = #tpu.dot_dimension_numbers<[1], [0], [0], [1], [0, 0, 1, 1], [], []>, precision = #tpu.contract_precision<fp32>} : vector<16x128xf32>, vector<128x32xf32>, vector<16x32xf32> -> vector<16x32xf32>
    %241 = arith.addf %190, %240 : vector<16x32xf32>
    %c816 = arith.constant 816 : index
    %c0_106 = arith.constant 0 : index
    %242 = vector.load %arg2[%c816, %c0_106] : memref<1104x32xf32, #tpu.memory_space<vmem>>, vector<1x32xf32>
    %243 = vector.broadcast %242 : vector<1x32xf32> to vector<16x32xf32>
    %244 = arith.addf %241, %243 : vector<16x32xf32>
    %c0_107 = arith.constant 0 : index
    %c0_108 = arith.constant 0 : index
    %245 = vector.load %arg1[%c0_107, %c0_108] : memref<32x3xf32, #tpu.memory_space<vmem>>, vector<32x3xf32>
    %c824 = arith.constant 824 : index
    %c0_109 = arith.constant 0 : index
    %246 = vector.load %arg2[%c824, %c0_109] : memref<1104x32xf32, #tpu.memory_space<vmem>>, vector<3x24xf32>
    %cst_110 = arith.constant dense<0.000000e+00> : vector<32x24xf32>
    %247 = tpu.matmul %245, %246, %cst_110 {dimension_numbers = #tpu.dot_dimension_numbers<[1], [0], [0], [1], [0, 0, 1, 1], [], []>, precision = #tpu.contract_precision<fp32>} : vector<32x3xf32>, vector<3x24xf32>, vector<32x24xf32> -> vector<32x24xf32>
    %248 = math.sin %247 : vector<32x24xf32>
    %c832 = arith.constant 832 : index
    %c0_111 = arith.constant 0 : index
    %249 = vector.load %arg2[%c832, %c0_111] : memref<1104x32xf32, #tpu.memory_space<vmem>>, vector<24x32xf32>
    %cst_112 = arith.constant dense<0.000000e+00> : vector<32x32xf32>
    %250 = tpu.matmul %248, %249, %cst_112 {dimension_numbers = #tpu.dot_dimension_numbers<[1], [0], [0], [1], [0, 0, 1, 1], [], []>, precision = #tpu.contract_precision<fp32>} : vector<32x24xf32>, vector<24x32xf32>, vector<32x32xf32> -> vector<32x32xf32>
    %251 = math.cos %247 : vector<32x24xf32>
    %c856 = arith.constant 856 : index
    %c0_113 = arith.constant 0 : index
    %252 = vector.load %arg2[%c856, %c0_113] : memref<1104x32xf32, #tpu.memory_space<vmem>>, vector<24x32xf32>
    %cst_114 = arith.constant dense<0.000000e+00> : vector<32x32xf32>
    %253 = tpu.matmul %251, %252, %cst_114 {dimension_numbers = #tpu.dot_dimension_numbers<[1], [0], [0], [1], [0, 0, 1, 1], [], []>, precision = #tpu.contract_precision<fp32>} : vector<32x24xf32>, vector<24x32xf32>, vector<32x32xf32> -> vector<32x32xf32>
    %254 = arith.addf %250, %253 : vector<32x32xf32>
    %c880 = arith.constant 880 : index
    %c0_115 = arith.constant 0 : index
    %255 = vector.load %arg2[%c880, %c0_115] : memref<1104x32xf32, #tpu.memory_space<vmem>>, vector<3x32xf32>
    %cst_116 = arith.constant dense<0.000000e+00> : vector<32x32xf32>
    %256 = tpu.matmul %245, %255, %cst_116 {dimension_numbers = #tpu.dot_dimension_numbers<[1], [0], [0], [1], [0, 0, 1, 1], [], []>, precision = #tpu.contract_precision<fp32>} : vector<32x3xf32>, vector<3x32xf32>, vector<32x32xf32> -> vector<32x32xf32>
    %257 = arith.addf %254, %256 : vector<32x32xf32>
    %c888 = arith.constant 888 : index
    %c0_117 = arith.constant 0 : index
    %258 = vector.load %arg2[%c888, %c0_117] : memref<1104x32xf32, #tpu.memory_space<vmem>>, vector<1x32xf32>
    %259 = vector.broadcast %258 : vector<1x32xf32> to vector<32x32xf32>
    %260 = arith.addf %257, %259 : vector<32x32xf32>
    %c896 = arith.constant 896 : index
    %c0_118 = arith.constant 0 : index
    %261 = vector.load %arg2[%c896, %c0_118] : memref<1104x32xf32, #tpu.memory_space<vmem>>, vector<1x32xf32>
    %c904 = arith.constant 904 : index
    %c0_119 = arith.constant 0 : index
    %262 = vector.load %arg2[%c904, %c0_119] : memref<1104x32xf32, #tpu.memory_space<vmem>>, vector<1x32xf32>
    %cst_120 = arith.constant dense<0.000000e+00> : vector<32xf32>
    %263 = vector.multi_reduction <add>, %260, %cst_120 [1] : vector<32x32xf32> to vector<32xf32>
    %264 = vector.shape_cast %263 : vector<32xf32> to vector<32x1xf32>
    %cst_121 = arith.constant 3.200000e+01 : f32
    %265 = vector.broadcast %cst_121 : f32 to vector<32x1xf32>
    %266 = arith.divf %264, %265 : vector<32x1xf32>
    %267 = vector.broadcast %266 : vector<32x1xf32> to vector<32x32xf32>
    %268 = arith.subf %260, %267 : vector<32x32xf32>
    %269 = arith.mulf %268, %268 : vector<32x32xf32>
    %cst_122 = arith.constant dense<0.000000e+00> : vector<32xf32>
    %270 = vector.multi_reduction <add>, %269, %cst_122 [1] : vector<32x32xf32> to vector<32xf32>
    %271 = vector.shape_cast %270 : vector<32xf32> to vector<32x1xf32>
    %cst_123 = arith.constant 3.200000e+01 : f32
    %272 = vector.broadcast %cst_123 : f32 to vector<32x1xf32>
    %273 = arith.divf %271, %272 : vector<32x1xf32>
    %274 = vector.broadcast %266 : vector<32x1xf32> to vector<32x32xf32>
    %275 = arith.subf %260, %274 : vector<32x32xf32>
    %cst_124 = arith.constant 9.99999974E-6 : f32
    %276 = vector.broadcast %cst_124 : f32 to vector<32x1xf32>
    %277 = arith.addf %273, %276 : vector<32x1xf32>
    %278 = math.rsqrt %277 : vector<32x1xf32>
    %279 = vector.broadcast %278 : vector<32x1xf32> to vector<32x32xf32>
    %280 = arith.mulf %275, %279 : vector<32x32xf32>
    %281 = vector.broadcast %261 : vector<1x32xf32> to vector<32x32xf32>
    %282 = arith.mulf %280, %281 : vector<32x32xf32>
    %283 = vector.broadcast %262 : vector<1x32xf32> to vector<32x32xf32>
    %284 = arith.addf %282, %283 : vector<32x32xf32>
    %c912 = arith.constant 912 : index
    %c0_125 = arith.constant 0 : index
    %285 = vector.load %arg2[%c912, %c0_125] : memref<1104x32xf32, #tpu.memory_space<vmem>>, vector<1x32xf32>
    %c920 = arith.constant 920 : index
    %c0_126 = arith.constant 0 : index
    %286 = vector.load %arg2[%c920, %c0_126] : memref<1104x32xf32, #tpu.memory_space<vmem>>, vector<1x32xf32>
    %cst_127 = arith.constant dense<0.000000e+00> : vector<16xf32>
    %287 = vector.multi_reduction <add>, %244, %cst_127 [1] : vector<16x32xf32> to vector<16xf32>
    %288 = vector.shape_cast %287 : vector<16xf32> to vector<16x1xf32>
    %cst_128 = arith.constant 3.200000e+01 : f32
    %289 = vector.broadcast %cst_128 : f32 to vector<16x1xf32>
    %290 = arith.divf %288, %289 : vector<16x1xf32>
    %291 = vector.broadcast %290 : vector<16x1xf32> to vector<16x32xf32>
    %292 = arith.subf %244, %291 : vector<16x32xf32>
    %293 = arith.mulf %292, %292 : vector<16x32xf32>
    %cst_129 = arith.constant dense<0.000000e+00> : vector<16xf32>
    %294 = vector.multi_reduction <add>, %293, %cst_129 [1] : vector<16x32xf32> to vector<16xf32>
    %295 = vector.shape_cast %294 : vector<16xf32> to vector<16x1xf32>
    %cst_130 = arith.constant 3.200000e+01 : f32
    %296 = vector.broadcast %cst_130 : f32 to vector<16x1xf32>
    %297 = arith.divf %295, %296 : vector<16x1xf32>
    %298 = vector.broadcast %290 : vector<16x1xf32> to vector<16x32xf32>
    %299 = arith.subf %244, %298 : vector<16x32xf32>
    %cst_131 = arith.constant 9.99999974E-6 : f32
    %300 = vector.broadcast %cst_131 : f32 to vector<16x1xf32>
    %301 = arith.addf %297, %300 : vector<16x1xf32>
    %302 = math.rsqrt %301 : vector<16x1xf32>
    %303 = vector.broadcast %302 : vector<16x1xf32> to vector<16x32xf32>
    %304 = arith.mulf %299, %303 : vector<16x32xf32>
    %305 = vector.broadcast %285 : vector<1x32xf32> to vector<16x32xf32>
    %306 = arith.mulf %304, %305 : vector<16x32xf32>
    %307 = vector.broadcast %286 : vector<1x32xf32> to vector<16x32xf32>
    %308 = arith.addf %306, %307 : vector<16x32xf32>
    %c928 = arith.constant 928 : index
    %c0_132 = arith.constant 0 : index
    %309 = vector.load %arg2[%c928, %c0_132] : memref<1104x32xf32, #tpu.memory_space<vmem>>, vector<32x32xf32>
    %cst_133 = arith.constant dense<0.000000e+00> : vector<32x32xf32>
    %310 = tpu.matmul %284, %309, %cst_133 {dimension_numbers = #tpu.dot_dimension_numbers<[1], [0], [0], [1], [0, 0, 1, 1], [], []>, precision = #tpu.contract_precision<fp32>} : vector<32x32xf32>, vector<32x32xf32>, vector<32x32xf32> -> vector<32x32xf32>
    %cst_134 = arith.constant 0.176776692 : f32
    %311 = vector.broadcast %cst_134 : f32 to vector<32x32xf32>
    %312 = arith.mulf %310, %311 : vector<32x32xf32>
    %c960 = arith.constant 960 : index
    %c0_135 = arith.constant 0 : index
    %313 = vector.load %arg2[%c960, %c0_135] : memref<1104x32xf32, #tpu.memory_space<vmem>>, vector<32x32xf32>
    %cst_136 = arith.constant dense<0.000000e+00> : vector<16x32xf32>
    %314 = tpu.matmul %308, %313, %cst_136 {dimension_numbers = #tpu.dot_dimension_numbers<[1], [0], [0], [1], [0, 0, 1, 1], [], []>, precision = #tpu.contract_precision<fp32>} : vector<16x32xf32>, vector<32x32xf32>, vector<16x32xf32> -> vector<16x32xf32>
    %c992 = arith.constant 992 : index
    %c0_137 = arith.constant 0 : index
    %315 = vector.load %arg2[%c992, %c0_137] : memref<1104x32xf32, #tpu.memory_space<vmem>>, vector<32x32xf32>
    %cst_138 = arith.constant dense<0.000000e+00> : vector<16x32xf32>
    %316 = tpu.matmul %308, %315, %cst_138 {dimension_numbers = #tpu.dot_dimension_numbers<[1], [0], [0], [1], [0, 0, 1, 1], [], []>, precision = #tpu.contract_precision<fp32>} : vector<16x32xf32>, vector<32x32xf32>, vector<16x32xf32> -> vector<16x32xf32>
    %cst_139 = arith.constant dense<0.000000e+00> : vector<32x16xf32>
    %317 = tpu.matmul %312, %314, %cst_139 {dimension_numbers = #tpu.dot_dimension_numbers<[1], [1], [0], [0], [0, 0, 1, 0], [], []>, precision = #tpu.contract_precision<fp32>} : vector<32x32xf32>, vector<16x32xf32>, vector<32x16xf32> -> vector<32x16xf32>
    %c1072 = arith.constant 1072 : index
    %c0_140 = arith.constant 0 : index
    %318 = vector.load %arg2[%c1072, %c0_140] : memref<1104x32xf32, #tpu.memory_space<vmem>>, vector<32x16xf32>
    %319 = arith.addf %317, %318 : vector<32x16xf32>
    %cst_141 = arith.constant dense<0xFF800000> : vector<32xf32>
    %320 = vector.multi_reduction <maximumf>, %319, %cst_141 [1] : vector<32x16xf32> to vector<32xf32>
    %321 = vector.shape_cast %320 : vector<32xf32> to vector<32x1xf32>
    %322 = vector.broadcast %321 : vector<32x1xf32> to vector<32x16xf32>
    %323 = arith.subf %319, %322 : vector<32x16xf32>
    %324 = math.exp %323 : vector<32x16xf32>
    %cst_142 = arith.constant dense<0.000000e+00> : vector<32xf32>
    %325 = vector.multi_reduction <add>, %324, %cst_142 [1] : vector<32x16xf32> to vector<32xf32>
    %326 = vector.shape_cast %325 : vector<32xf32> to vector<32x1xf32>
    %327 = tpu.reciprocal %326 {approx = true} : vector<32x1xf32> -> vector<32x1xf32>
    %328 = vector.broadcast %327 : vector<32x1xf32> to vector<32x16xf32>
    %329 = arith.mulf %324, %328 : vector<32x16xf32>
    %cst_143 = arith.constant dense<0.000000e+00> : vector<32x32xf32>
    %330 = tpu.matmul %329, %316, %cst_143 {dimension_numbers = #tpu.dot_dimension_numbers<[1], [0], [0], [1], [0, 0, 1, 1], [], []>, precision = #tpu.contract_precision<fp32>} : vector<32x16xf32>, vector<16x32xf32>, vector<32x32xf32> -> vector<32x32xf32>
    %c1024 = arith.constant 1024 : index
    %c0_144 = arith.constant 0 : index
    %331 = vector.load %arg2[%c1024, %c0_144] : memref<1104x32xf32, #tpu.memory_space<vmem>>, vector<1x32xf32>
    %332 = vector.broadcast %331 : vector<1x32xf32> to vector<32x32xf32>
    %333 = arith.mulf %330, %332 : vector<32x32xf32>
    %cst_145 = arith.constant dense<0.000000e+00> : vector<32xf32>
    %334 = vector.multi_reduction <add>, %333, %cst_145 [1] : vector<32x32xf32> to vector<32xf32>
    %335 = vector.shape_cast %334 : vector<32xf32> to vector<32x1xf32>
    %c1032 = arith.constant 1032 : index
    %c0_146 = arith.constant 0 : index
    %336 = vector.load %arg2[%c1032, %c0_146] : memref<1104x32xf32, #tpu.memory_space<vmem>>, vector<1x1xf32>
    %337 = vector.broadcast %336 : vector<1x1xf32> to vector<32x1xf32>
    %338 = arith.addf %335, %337 : vector<32x1xf32>
    %c0_147 = arith.constant 0 : index
    %c0_148 = arith.constant 0 : index
    %339 = vector.load %arg4[%c0_147, %c0_148] : memref<32x1xf32, #tpu.memory_space<vmem>>, vector<32x1xf32>
    tpu.vector_store %arg4[%c0_147, %c0_148], %338 {strides = array<i32>} : memref<32x1xf32, #tpu.memory_space<vmem>>, vector<32x1xf32>,
    return
  }
}

</mosaic_0001>

<bundles_post_ra>
// kernel: fwd.1
= control target key start
LH: loop header
LB: loop body
LE: loop exit
PB: predicated region body
PF: predicated region fallthrough
CT: control target
= control target key end

     0   :  { %9 = vsyncpa [#allocation3], 0  ;;  %s31214_s0 = inlined_call_operand.vmem [shape: f32[16,16], index: 0, kind: input, shape index: {}]   ;;  %s31215_s1 = inlined_call_operand.vmem [shape: f32[32,3], index: 1, kind: input, shape index: {}]   ;;  %s31216_s2 = inlined_call_operand.hbm [shape: f32[1104,32], index: 2, kind: input, shape index: {}]   ;;  %s31217_s3 = inlined_call_operand.hbm [shape: f32[160,128], index: 3, kind: input, shape index: {}]   ;;  %s31218_s4 = inlined_call_operand.vmem [shape: f32[32,1], index: 4, kind: output, shape index: {}]  }
   0x1   :  { %10 = vsyncpa [#allocation5], 0  ;;  %s28264_s15 = smov [#allocation2]   ;;  %s28216_s19 = scalar_lea.hbm %s31216_s2, 17664 }
   0x2   :  { %s20_s16 = sshll.u32 %s28264_s15, 4  ;;  %p28217_p0 = scmp.ne.s32.totalorder %s31216_s2, %s28216_s19  ;;  %s21_s16 = int_to_ptr.vmem [resolvable:$true] %s20_s16 }
   0x3   :  { %p28220_p1 = scmp.lt.u32.totalorder %s28216_s19, %s31216_s2 }
   0x5   :  { %p28222_p2 = pnand %p28220_p1, %p28217_p0 }
   0x7   :  { %28225 = shalt.err (!%p28222_p2)
}
   0x8   :  { %s28226_s24 = scalar_lea.vmem %s21_s16, 17664  ;;  %p28231_p4 = scmp.lt.s32.totalorder %s21_s16, %s21_s16 }
   0x9   :  { %p28227_p3 = scmp.ne.s32.totalorder %s21_s16, %s28226_s24  ;;  %p28232_p5 = scmp.lt.s32.totalorder %s28226_s24, %s28226_s24 }
   0xb   :  { %p28233_p6 = por %p28232_p5, %p28231_p4 }
   0xd   :  { %p28234_p7 = pnand %p28233_p6, %p28227_p3 }
   0xf   :  { %28237 = shalt.err (!%p28234_p7)
}
  0x10   :  { %s28265_s25 = smov 128   ;;  %s28266_s26 = smov 8  }
  0x11   :  { %26 = dma.hbm_to_vmem [thread:$0]  %s31216_s2, 17664, %s21_s16, [#allocation3], %s28265_s25, %s28265_s25, %s28266_s26  }
  0x12   :  { %s28267_s29 = smov [#allocation4]   ;;  %s28238_s7 = scalar_lea.hbm %s31217_s3, 2560 }
  0x13   :  { %s32_s30 = sshll.u32 %s28267_s29, 4  ;;  %p28239_p8 = scmp.ne.s32.totalorder %s31217_s3, %s28238_s7  ;;  %s33_s30 = int_to_ptr.vmem [resolvable:$true] %s32_s30 }
  0x14   :  { %p28242_p9 = scmp.lt.u32.totalorder %s28238_s7, %s31217_s3 }
  0x16   :  { %p28244_p10 = pnand %p28242_p9, %p28239_p8 }
  0x18   :  { %28247 = shalt.err (!%p28244_p10)
}
  0x19   :  { %s28248_s12 = scalar_lea.vmem %s33_s30, 2560  ;;  %p28253_p12 = scmp.lt.s32.totalorder %s33_s30, %s33_s30 }
  0x1a   :  { %p28249_p11 = scmp.ne.s32.totalorder %s33_s30, %s28248_s12  ;;  %p28254_p13 = scmp.lt.s32.totalorder %s28248_s12, %s28248_s12 }
  0x1c   :  { %p28255_p0 = por %p28254_p13, %p28253_p12 }
  0x1e   :  { %p28256_p1 = pnand %p28255_p0, %p28249_p11 }
  0x20   :  { %28259 = shalt.err (!%p28256_p1)
}
  0x21   :  { %38 = dma.hbm_to_vmem [thread:$0]  %s31217_s3, 2560, %s33_s30, [#allocation5], %s28265_s25, %s28265_s25, %s28266_s26  }
  0x22   :  { %28260 = dma.done.wait [#allocation3], 17664  }
  0x23   :  { %28261 = vsyncadd [#allocation3], 4294949632 }
  0x24   :  { %28262 = dma.done.wait [#allocation5], 2560  }
  0x25   :  { %28263 = vsyncadd [#allocation5], 4294964736  ;;  %vm31312_vm0 = vcmask 130048   ;;  %v51_v0 = vld [vmem:[#allocation2] sm:$0xff]  ;;  %v52_v1 = vld [vmem:[#allocation2 + $0x8] sm:$0xff]  ;;  %vm31313_vm1 = vcmask 261120  }
  0x26   :  { %v49_v2 = vld [vmem:[%s31214_s0] sm:$0xff]  ;;  %v66_v3 = vand.u32 4294901760, %v51_v0  ;;  %v69_v4 = vand.u32 4294901760, %v52_v1  ;;  %v50_v6 = vld [vmem:[%s31214_s0 + $0x8] sm:$0xff]  ;;  %v21784_v30 = vld [vmem:[#allocation2 + $0x10] ss:$0 sm:$0xff] }
  0x27   :  { %v60_v5 = vsel %vm31312_vm0, %v49_v2, 0  ;;  %v63_v8 = vsel %vm31312_vm0, %v50_v6, 0  ;;  %v609_v47 = vld [vmem:[#allocation2 + $0x28] sm:$0xff]  ;;  %v610_v48 = vld [vmem:[#allocation2 + $0x30] sm:$0xff]  ;;  %v611_v53 = vld [vmem:[#allocation2 + $0x38] sm:$0xff]  ;;  %vm15430_vm2 = vcmask 23552  }
  0x28   :  { %v132_v7 = vand.u32 4294901760, %v60_v5  ;;  %v25878_v9 = vpack.c.bf16 %v69_v4, %v66_v3  ;;  %v142_v10 = vand.u32 4294901760, %v63_v8  ;;  %v154_v11 = vsub.f32 %v51_v0, %v66_v3  ;;  %v612_v54 = vld [vmem:[#allocation2 + $0x40] sm:$0xff] }
  0x29   :  { %v161_v12 = vsub.f32 %v52_v1, %v69_v4  ;;  %v620_v49 = vand.u32 4294901760, %v609_v47  ;;  %v623_v50 = vand.u32 4294901760, %v610_v48  ;;  %v626_v57 = vand.u32 4294901760, %v611_v53 }
  0x2a   :  { %v133_v13 = vsub.f32 %v60_v5, %v132_v7  ;;  %25879 = vmatprep.subr.bf16.mxu0 %v25878_v9  ;;  %v143_v14 = vsub.f32 %v63_v8, %v142_v10  ;;  %v155_v15 = vand.u32 4294901760, %v154_v11  ;;  %v629_v58 = vand.u32 4294901760, %v612_v54 }
  0x2b   :  { %v162_v16 = vand.u32 4294901760, %v161_v12  ;;  %25881 = vmatpush3.bf16.msra.mxu0 %v25878_v9  ;;  %v25886_v28 = vpack.c.bf16 %v161_v12, %v154_v11  ;;  %v710_v51 = vsub.f32 %v609_v47, %v620_v49  ;;  %v717_v52 = vsub.f32 %v610_v48, %v623_v50 }
  0x2c   :  { %v134_v17 = vand.u32 4294901760, %v133_v13  ;;  %v144_v18 = vand.u32 4294901760, %v143_v14  ;;  %v156_v19 = vsub.f32 %v154_v11, %v155_v15  ;;  %v724_v61 = vsub.f32 %v611_v53, %v626_v57 }
  0x2d   :  { %v163_v20 = vsub.f32 %v161_v12, %v162_v16  ;;  %v25894_v29 = vpack.c.bf16 %v162_v16, %v155_v15  ;;  %v711_v55 = vand.u32 4294901760, %v710_v51  ;;  %v718_v56 = vand.u32 4294901760, %v717_v52 }
  0x2e   :  { %v135_v21 = vsub.f32 %v133_v13, %v134_v17  ;;  %v145_v22 = vsub.f32 %v143_v14, %v144_v18  ;;  %v157_v23 = vand.u32 4294901760, %v156_v19  ;;  %v731_v62 = vsub.f32 %v612_v54, %v629_v58 }
  0x2f   :  { %v164_v24 = vand.u32 4294901760, %v163_v20  ;;  %v712_v59 = vsub.f32 %v710_v51, %v711_v55  ;;  %v719_v60 = vsub.f32 %v717_v52, %v718_v56  ;;  %v725_v1 = vand.u32 4294901760, %v724_v61 }
  0x30   :  { %v136_v25 = vand.u32 4294901760, %v135_v21  ;;  %v146_v26 = vand.u32 4294901760, %v145_v22  ;;  %v732_v2 = vand.u32 4294901760, %v731_v62  ;;  %v28354_v11 = vpack.c.bf16 %v629_v58, %v626_v57 }
  0x31   :  { %v25882_v27 = vpack.c.bf16 %v164_v24, %v157_v23  ;;  %v713_v63 = vand.u32 4294901760, %v712_v59  ;;  %v720_v0 = vand.u32 4294901760, %v719_v60  ;;  %v726_v4 = vsub.f32 %v724_v61, %v725_v1 }
  0x32   :  { %23284 = vmatprep.mubr.f32.mxu0 %v136_v25  ;;  %v733_v5 = vsub.f32 %v731_v62, %v732_v2  ;;  %v28357_v12 = vpack.c.bf16 %v731_v62, %v724_v61  ;;  %vm31314_vm3 = vcmask 1042432  }
  0x33   :  { %23285 = vmatmul.mubr.f32.vlgmr.msra.gmra.mrb[0].mxu0 %v146_v26  ;;  %25883 = vmatprep.subr.bf16.mxu0 %v25882_v27  ;;  %v25910_v3 = vpack.c.bf16 %v720_v0, %v713_v63  ;;  %v727_v6 = vand.u32 4294901760, %v726_v4  ;;  %v28364_v26 = vpack.c.bf16 %v718_v56, %v711_v55 }
  0x34   :  { %25885 = vmatpush3.bf16.msra.mxu0 %v25882_v27  ;;  %23291 = vmatprep.mubr.f32.mxu0 %v132_v7 }
  0x35   :  { %25887 = vmatprep.subr.bf16.mxu0 %v25886_v28  ;;  %25911 = vmatprep.subr.bf16.mxu1 %v25910_v3 }
  0x36   :  { %25913 = vmatpush3.bf16.msra.mxu1 %v25910_v3 }
  0x3b   :  { %23292 = vmatmul.mubr.f32.vlgmr.msra.gmra.mrb[0].mxu0 %v142_v10 }
  0x3c   :  { %25889 = vmatpush3.bf16.msra.mxu0 %v25886_v28  ;;  %23298 = vmatprep.mubr.f32.mxu0 %v133_v13  ;;  %v1147_v13 = vld [vmem:[#allocation2 + $0x98] sm:$0xff]  ;;  %v28368_v28 = vpack.c.bf16 %v732_v2, %v725_v1 }
  0x3d   :  { %25891 = vmatprep.subr.bf16.mxu0 %v25878_v9  ;;  %v1152_v15 = vand.u32 4294901760, %v1147_v13 }
  0x43   :  { %23299 = vmatmul.mubr.f32.vlgmr.msra.gmra.mrb[0].mxu0 %v143_v14  ;;  %v1148_v14 = vld [vmem:[#allocation2 + $0xa0] sm:$0xff] }
  0x44   :  { %25893 = vmatpush3.bf16.msra.mxu0 %v25878_v9  ;;  %23305 = vmatprep.mubr.f32.mxu0 %v134_v17  ;;  %v1155_v16 = vand.u32 4294901760, %v1148_v14 }
  0x45   :  { %25895 = vmatprep.subr.bf16.mxu0 %v25894_v29 }
  0x46   :  { %v28361_v17 = vpack.c.bf16 %v1155_v16, %v1152_v15  ;;  %v1249_v19 = vsub.f32 %v1148_v14, %v1155_v16 }
  0x48   :  { %v1250_v21 = vand.u32 4294901760, %v1249_v19 }
  0x4a   :  { %v1251_v23 = vsub.f32 %v1249_v19, %v1250_v21 }
  0x4b   :  { %23306 = vmatmul.mubr.f32.vlgmr.msra.gmra.mrb[0].mxu0 %v144_v18  ;;  %v1242_v18 = vsub.f32 %v1147_v13, %v1152_v15  ;;  %v1680_v13 = vld [vmem:[#allocation2 + $0x50] sm:$0xff] }
  0x4c   :  { %25897 = vmatpush3.bf16.msra.mxu0 %v25894_v29  ;;  %23312 = vmatprep.mubr.f32.mxu0 %v132_v7  ;;  %v1252_v25 = vand.u32 4294901760, %v1251_v23  ;;  %v1687_v16 = vand.u32 4294901760, %v1680_v13 }
  0x4d   :  { %25899 = vmatprep.subr.bf16.mxu0 %v25878_v9  ;;  %v1243_v20 = vand.u32 4294901760, %v1242_v18  ;;  %v28370_v29 = vpack.c.bf16 %v1249_v19, %v1242_v18  ;;  %v1682_v19 = vld [vmem:[#allocation2 + $0x60] sm:$0xff] }
  0x4e   :  { %v1693_v23 = vand.u32 4294901760, %v1682_v19 }
  0x4f   :  { %v1244_v22 = vsub.f32 %v1242_v18, %v1243_v20  ;;  %v1681_v18 = vld [vmem:[#allocation2 + $0x58] sm:$0xff] }
  0x51   :  { %v1245_v24 = vand.u32 4294901760, %v1244_v22  ;;  %v1690_v22 = vand.u32 4294901760, %v1681_v18 }
  0x53   :  { %23313 = vmatmul.mubr.f32.vlgmr.msra.gmra.mrb[0].mxu0 %v142_v10  ;;  %v28366_v27 = vpack.c.bf16 %v1252_v25, %v1245_v24 }
  0x54   :  { %25901 = vmatpush3.bf16.msra.mxu0 %v25878_v9  ;;  %23319 = vmatprep.mubr.f32.mxu0 %v132_v7  ;;  %v734_v7 = vand.u32 4294901760, %v733_v5  ;;  %v28351_v9 = vpack.c.bf16 %v623_v50, %v620_v49  ;;  %v1149_v49 = vld [vmem:[#allocation2 + $0xa8] sm:$0xff]  ;;  %v1150_v50 = vld [vmem:[#allocation2 + $0xb0] sm:$0xff] }
  0x55   :  { %v1158_v55 = vand.u32 4294901760, %v1149_v49  ;;  %v1161_v56 = vand.u32 4294901760, %v1150_v50 }
  0x56   :  { %v25914_v8 = vpack.c.bf16 %v734_v7, %v727_v6  ;;  %25903 = vmatprep.subr.bf16.mxu0 %v28351_v9 }
  0x57   :  { %v28389_v59 = vsub.f32 %v1149_v49, %v1158_v55  ;;  %v28391_v60 = vsub.f32 %v1150_v50, %v1161_v56  ;;  %v28415_v5 = vpack.c.bf16 %v1161_v56, %v1158_v55 }
  0x58   :  { %25915 = vmatprep.subr.bf16.mxu1 %v25914_v8 }
  0x59   :  { %25917 = vmatpush3.bf16.msra.mxu1 %v25914_v8  ;;  %v1257_v1 = vand.u32 4294901760, %v28389_v59  ;;  %v1264_v2 = vand.u32 4294901760, %v28391_v60  ;;  %v25970_v24 = vpack.c.bf16 %v28391_v60, %v28389_v59 }
  0x5b   :  { %23320 = vmatmul.mubr.f32.vlgmr.msra.gmra.mrb[0].mxu0 %v142_v10  ;;  %v25918_v10 = vpack.c.bf16 %v717_v52, %v710_v51  ;;  %v1258_v6 = vsub.f32 %v28389_v59, %v1257_v1  ;;  %v1265_v7 = vsub.f32 %v28391_v60, %v1264_v2  ;;  %v25986_v49 = vpack.c.bf16 %v1264_v2, %v1257_v1 }
  0x5c   :  { %25905 = vmatpush3.bf16.msra.mxu0 %v28351_v9 }
  0x5d   :  { %25919 = vmatprep.subr.bf16.mxu1 %v25918_v10  ;;  %25907 = vmatprep.subr.bf16.mxu0 %v28354_v11  ;;  %v1259_v8 = vand.u32 4294901760, %v1258_v6 }
  0x60   :  { %25909 = vmatpush3.bf16.msra.mxu0 %v28354_v11 }
  0x61   :  { %25951 = vmatprep.subr.bf16.mxu0 %v28361_v17 }
 0x12e   :  { %v23321_v31 = vpop.f32.mrb[0].mxu0 }
 0x12f   :  { %v557_v32 = vpop.f32.mrb[1].mxu0  ;;  %v28333_v34 = vadd.f32 %v23321_v31, %v21784_v30 }
 0x130   :  { %v28331_v33 = vadd.f32 %v21784_v30, %v557_v32  ;;  %v28372_v30 = vpack.c.bf16 %v1250_v21, %v1243_v20  ;;  %v28444_v21 = vsub.f32 %v1680_v13, %v1687_v16 }
 0x131   :  { %v573_v36 = vsel %vm31313_vm1, %v28333_v34, 0.0 }
 0x132   :  { %v570_v35 = vsel %vm31313_vm1, %v28331_v33, 0.0 }
 0x133   :  { %571 = vadd.xlane.f32.xlu0 %v570_v35 }
 0x137   :  { %574 = vadd.xlane.f32.xlu0 %v573_v36 }
 0x1c0   :  { %v572_v37 = vpop.xlane.xlu0 %571 }
 0x1c1   :  { %v577_v38 = vmul.f32 0.03125, %v572_v37 }
 0x1c3   :  { %v28340_v39 = vsub.f32 %v28331_v33, %v577_v38 }
 0x1c4   :  { %v575_v40 = vpop.xlane.xlu0 %574 }
 0x1c5   :  { %v578_v41 = vmul.f32 0.03125, %v575_v40  ;;  %v581_v42 = vmul.f32 %v28340_v39, %v28340_v39 }
 0x1c7   :  { %v28345_v43 = vsub.f32 %v28333_v34, %v578_v41  ;;  %v583_v44 = vsel %vm31313_vm1, %v581_v42, 0.0  ;;  %v21785_v41 = vld [vmem:[#allocation2 + $0x18] ss:$0 sm:$0xff] }
 0x1c8   :  { %584 = vadd.xlane.f32.xlu1 %v583_v44  ;;  %v21786_v44 = vld [vmem:[#allocation2 + $0x20] ss:$0 sm:$0xff] }
 0x1c9   :  { %v582_v45 = vmul.f32 %v28345_v43, %v28345_v43 }
 0x1cb   :  { %v586_v46 = vsel %vm31313_vm1, %v582_v45, 0.0 }
 0x1cc   :  { %587 = vadd.xlane.f32.xlu1 %v586_v46 }
 0x255   :  { %v585_v31 = vpop.xlane.xlu1 %584 }
 0x256   :  { %v589_v32 = vmul.f32 0.03125, %v585_v31  ;;  %v28457_v31 = vsub.f32 %v1682_v19, %v1693_v23 }
 0x258   :  { %v591_v35 = vadd.f32 1e-05, %v589_v32 }
 0x259   :  { %v588_v36 = vpop.xlane.xlu1 %587 }
 0x25a   :  { %28112 = vrsqrt.f32 %v591_v35  ;;  %v590_v37 = vmul.f32 0.03125, %v588_v36  ;;  %v28477_v36 = vpack.c.bf16 %v1693_v23, %v1690_v22  ;;  %v2744_v23 = vld [vmem:[#allocation2 + $0x70] sm:$0xff] }
 0x25c   :  { %v592_v38 = vadd.f32 1e-05, %v590_v37 }
 0x25e   :  { %28114 = vrsqrt.f32 %v592_v38 }
 0x264   :  { %v28113_v40 = vpop.eup %28112 }
 0x265   :  { %v595_v42 = vmul.f32 %v28113_v40, %v28340_v39 }
 0x267   :  { %v601_v45 = vmul.f32 %v21785_v41, %v595_v42  ;;  %v2211_v42 = vld [vmem:[#allocation2 + $0xb8] sm:$0xff] }
 0x268   :  { %v28115_v46 = vpop.eup %28114 }
 0x269   :  { %v607_v47 = vadd.f32 %v21786_v44, %v601_v45  ;;  %v596_v48 = vmul.f32 %v28115_v46, %v28345_v43 }
 0x26b   :  { %v614_v51 = vsel %vm31313_vm1, %v607_v47, 0  ;;  %v602_v52 = vmul.f32 %v21785_v41, %v596_v48  ;;  %v2216_v47 = vand.u32 4294901760, %v2211_v42 }
 0x26c   :  { %v28377_v53 = vand.u32 4294901760, %v614_v51 }
 0x26d   :  { %v608_v54 = vadd.f32 %v21786_v44, %v602_v52  ;;  %v2212_v44 = vld [vmem:[#allocation2 + $0xc0] sm:$0xff]  ;;  %v2214_v52 = vld [vmem:[#allocation2 + $0xd0] sm:$0xff] }
 0x26e   :  { %v28380_v57 = vsub.f32 %v614_v51, %v28377_v53  ;;  %23341 = vmatprep.mubr.f32.mxu1 %v28377_v53  ;;  %v2219_v48 = vand.u32 4294901760, %v2212_v44  ;;  %v2213_v51 = vld [vmem:[#allocation2 + $0xc8] sm:$0xff]  ;;  %v2225_v59 = vand.u32 4294901760, %v2214_v52 }
 0x26f   :  { %v617_v39 = vsel %vm31313_vm1, %v608_v54, 0  ;;  %v28504_v54 = vsub.f32 %v2211_v42, %v2216_v47 }
 0x270   :  { %v28384_v58 = vand.u32 4294901760, %v617_v39  ;;  %v28387_v43 = vand.u32 4294901760, %v28380_v57  ;;  %v28506_v55 = vsub.f32 %v2212_v44, %v2219_v48  ;;  %v28519_v2 = vsub.f32 %v2214_v52, %v2225_v59 }
 0x272   :  { %v28394_v61 = vsub.f32 %v617_v39, %v28384_v58  ;;  %23342 = vmatmul.mubr.f32.vlgmr.msra.gmra.mrb[0].mxu1 %v28384_v58  ;;  %v691_v62 = vsub.f32 %v28380_v57, %v28387_v43  ;;  %v2222_v39 = vand.u32 4294901760, %v2213_v51  ;;  %v2314_v60 = vand.u32 4294901760, %v28506_v55 }
 0x273   :  { %25921 = vmatpush3.bf16.msra.mxu1 %v25918_v10  ;;  %23352 = vmatprep.mubr.f32.mxu1 %v28380_v57  ;;  %v1266_v10 = vand.u32 4294901760, %v1265_v7 }
 0x274   :  { %25923 = vmatprep.subr.bf16.mxu1 %v28357_v12  ;;  %v28401_v63 = vand.u32 4294901760, %v691_v62  ;;  %v28404_v0 = vand.u32 4294901760, %v28394_v61  ;;  %v28517_v1 = vsub.f32 %v2213_v51, %v2222_v39  ;;  %v2315_v7 = vsub.f32 %v28506_v55, %v2314_v60 }
 0x275   :  { %v25962_v14 = vpack.c.bf16 %v1266_v10, %v1259_v8  ;;  %v2328_v8 = vand.u32 4294901760, %v28519_v2  ;;  %v28540_v13 = vpack.c.bf16 %v2225_v59, %v2222_v39  ;;  %v3276_v39 = vld [vmem:[#allocation2 + $0xe0] sm:$0xff] }
 0x276   :  { %23330 = vmatprep.mubr.f32.mxu0 %v28401_v63  ;;  %v701_v3 = vsub.f32 %v28394_v61, %v28404_v0 }
 0x277   :  { %25925 = vmatpush3.bf16.msra.mxu1 %v28357_v12  ;;  %v1679_v12 = vld [vmem:[#allocation2 + $0x48] sm:$0xff] }
 0x278   :  { %25927 = vmatprep.subr.bf16.mxu1 %v28351_v9  ;;  %v28413_v4 = vand.u32 4294901760, %v701_v3  ;;  %v1684_v15 = vand.u32 4294901760, %v1679_v12  ;;  %v28524_v3 = vpack.c.bf16 %v2219_v48, %v2216_v47 }
 0x27a   :  { %23331 = vmatmul.mubr.f32.vlgmr.msra.gmra.mrb[2].mxu0 %v28413_v4  ;;  %23353 = vmatmul.mubr.f32.vlgmr.msra.gmra.mrb[0].mxu1 %v28394_v61  ;;  %v28442_v20 = vsub.f32 %v1679_v12, %v1684_v15  ;;  %v2316_v12 = vand.u32 4294901760, %v2315_v7  ;;  %v3278_v7 = vld [vmem:[#allocation2 + $0xf0] sm:$0xff] }
 0x27b   :  { %25929 = vmatpush3.bf16.msra.mxu1 %v28351_v9  ;;  %25953 = vmatpush3.bf16.msra.mxu0 %v28361_v17 }
 0x27c   :  { %23363 = vmatprep.mubr.f32.mxu1 %v28387_v43  ;;  %23396 = vmatprep.mubr.f32.mxu0 %v28401_v63  ;;  %v1775_v25 = vand.u32 4294901760, %v28442_v20  ;;  %v26014_v56 = vpack.c.bf16 %v28444_v21, %v28442_v20 }
 0x27d   :  { %25931 = vmatprep.subr.bf16.mxu1 %v28354_v11  ;;  %25955 = vmatprep.subr.bf16.mxu0 %v28415_v5 }
 0x27e   :  { %v1776_v32 = vsub.f32 %v28442_v20, %v1775_v25 }
 0x27f   :  { %25933 = vmatpush3.bf16.msra.mxu1 %v28354_v11  ;;  %25957 = vmatpush3.bf16.msra.mxu0 %v28415_v5 }
 0x280   :  { %25935 = vmatprep.subr.bf16.mxu1 %v28364_v26  ;;  %25959 = vmatprep.subr.bf16.mxu0 %v28366_v27  ;;  %v1777_v37 = vand.u32 4294901760, %v1776_v32  ;;  %v2746_v32 = vld [vmem:[#allocation2 + $0x80] sm:$0xff] }
 0x282   :  { %23397 = vmatmul.mubr.f32.vlgmr.msra.gmra.mrb[4].mxu0 %v28413_v4  ;;  %23364 = vmatmul.mubr.f32.vlgmr.msra.gmra.mrb[0].mxu1 %v28404_v0 }
 0x283   :  { %25937 = vmatpush3.bf16.msra.mxu1 %v28364_v26  ;;  %25961 = vmatpush3.bf16.msra.mxu0 %v28366_v27  ;;  %v1782_v26 = vand.u32 4294901760, %v28444_v21  ;;  %v28455_v27 = vsub.f32 %v1681_v18, %v1690_v22  ;;  %v2743_v22 = vld [vmem:[#allocation2 + $0x68] sm:$0xff] }
 0x284   :  { %23407 = vmatprep.mubr.f32.mxu0 %v28377_v53  ;;  %23374 = vmatprep.mubr.f32.mxu1 %v28377_v53 }
 0x285   :  { %25939 = vmatprep.subr.bf16.mxu1 %v28368_v28  ;;  %25963 = vmatprep.subr.bf16.mxu0 %v25962_v14  ;;  %v1783_v35 = vsub.f32 %v28444_v21, %v1782_v26  ;;  %v26018_v62 = vpack.c.bf16 %v28457_v31, %v28455_v27  ;;  %v2751_v21 = vand.u32 4294901760, %v2744_v23 }
 0x287   :  { %25941 = vmatpush3.bf16.msra.mxu1 %v28368_v28  ;;  %25965 = vmatpush3.bf16.msra.mxu0 %v25962_v14  ;;  %v28463_v28 = vpack.c.bf16 %v1687_v16, %v1684_v15  ;;  %v1784_v38 = vand.u32 4294901760, %v1783_v35  ;;  %v2329_v15 = vsub.f32 %v28519_v2, %v2328_v8  ;;  %v26030_v16 = vpack.c.bf16 %v1782_v26, %v1775_v25  ;;  %v2745_v26 = vld [vmem:[#allocation2 + $0x78] sm:$0xff] }
 0x288   :  { %25943 = vmatprep.subr.bf16.mxu1 %v28351_v9  ;;  %25967 = vmatprep.subr.bf16.mxu0 %v28370_v29  ;;  %v26062_v35 = vpack.c.bf16 %v28506_v55, %v28504_v54 }
 0x289   :  { %v26006_v41 = vpack.c.bf16 %v1784_v38, %v1777_v37  ;;  %v2330_v19 = vand.u32 4294901760, %v2329_v15 }
 0x28a   :  { %23408 = vmatmul.mubr.f32.vlgmr.msra.gmra.mrb[4].mxu0 %v28384_v58  ;;  %23375 = vmatmul.mubr.f32.vlgmr.msra.gmra.mrb[0].mxu1 %v28384_v58 }
 0x28b   :  { %25945 = vmatpush3.bf16.msra.mxu1 %v28351_v9  ;;  %25969 = vmatpush3.bf16.msra.mxu0 %v28370_v29  ;;  %v1789_v9 = vand.u32 4294901760, %v28455_v27  ;;  %v1796_v29 = vand.u32 4294901760, %v28457_v31 }
 0x28c   :  { %23418 = vmatprep.mubr.f32.mxu0 %v28380_v57  ;;  %23385 = vmatprep.mubr.f32.mxu1 %v28377_v53 }
 0x28d   :  { %25947 = vmatprep.subr.bf16.mxu1 %v28354_v11  ;;  %25971 = vmatprep.subr.bf16.mxu0 %v25970_v24  ;;  %v1790_v40 = vsub.f32 %v28455_v27, %v1789_v9  ;;  %v26034_v20 = vpack.c.bf16 %v1796_v29, %v1789_v9  ;;  %v2754_v9 = vand.u32 4294901760, %v2745_v26 }
 0x28f   :  { %25949 = vmatpush3.bf16.msra.mxu1 %v28354_v11  ;;  %25973 = vmatpush3.bf16.msra.mxu0 %v25970_v24  ;;  %v1797_v11 = vsub.f32 %v28457_v31, %v1796_v29  ;;  %v1791_v45 = vand.u32 4294901760, %v1790_v40  ;;  %v2748_v24 = vand.u32 4294901760, %v2743_v22  ;;  %v28573_v31 = vsub.f32 %v2744_v23, %v2751_v21 }
 0x290   :  { %25975 = vmatprep.subr.bf16.mxu0 %v28361_v17  ;;  %25999 = vmatprep.subr.bf16.mxu1 %v28463_v28  ;;  %v2757_v29 = vand.u32 4294901760, %v2746_v32  ;;  %v26066_v40 = vpack.c.bf16 %v28519_v2, %v28517_v1 }
 0x291   :  { %v1798_v46 = vand.u32 4294901760, %v1797_v11  ;;  %v28571_v27 = vsub.f32 %v2743_v22, %v2748_v24  ;;  %v2846_v38 = vand.u32 4294901760, %v28573_v31  ;;  %v28581_v11 = vsub.f32 %v2745_v26, %v2754_v9 }
 0x292   :  { %23419 = vmatmul.mubr.f32.vlgmr.msra.gmra.mrb[4].mxu0 %v28394_v61  ;;  %23386 = vmatmul.mubr.f32.vlgmr.msra.gmra.mrb[0].mxu1 %v28384_v58  ;;  %v28590_v42 = vpack.c.bf16 %v2751_v21, %v2748_v24 }
 0x293   :  { %25977 = vmatpush3.bf16.msra.mxu0 %v28361_v17  ;;  %23429 = vmatprep.mubr.f32.mxu0 %v28387_v43  ;;  %v26010_v50 = vpack.c.bf16 %v1798_v46, %v1791_v45  ;;  %v2839_v37 = vand.u32 4294901760, %v28571_v27  ;;  %v2847_v45 = vsub.f32 %v28573_v31, %v2846_v38  ;;  %v2853_v46 = vand.u32 4294901760, %v28581_v11 }
 0x294   :  { %26001 = vmatpush3.bf16.msra.mxu1 %v28463_v28  ;;  %23462 = vmatprep.mubr.f32.mxu1 %v28401_v63 }
 0x295   :  { %25979 = vmatprep.subr.bf16.mxu0 %v28415_v5  ;;  %26003 = vmatprep.subr.bf16.mxu1 %v28477_v36  ;;  %v2840_v44 = vsub.f32 %v28571_v27, %v2839_v37  ;;  %v2848_v48 = vand.u32 4294901760, %v2847_v45 }
 0x297   :  { %25981 = vmatpush3.bf16.msra.mxu0 %v28415_v5  ;;  %v2841_v47 = vand.u32 4294901760, %v2840_v44 }
 0x298   :  { %26005 = vmatpush3.bf16.msra.mxu1 %v28477_v36  ;;  %25983 = vmatprep.subr.bf16.mxu0 %v28372_v30 }
 0x299   :  { %26007 = vmatprep.subr.bf16.mxu1 %v26006_v41  ;;  %v26102_v52 = vpack.c.bf16 %v2848_v48, %v2841_v47 }
 0x29a   :  { %23430 = vmatmul.mubr.f32.vlgmr.msra.gmra.mrb[4].mxu0 %v28404_v0 }
 0x29b   :  { %23463 = vmatmul.mubr.f32.vlgmr.msra.gmra.mrb[2].mxu1 %v28413_v4  ;;  %25985 = vmatpush3.bf16.msra.mxu0 %v28372_v30  ;;  %v2307_v30 = vand.u32 4294901760, %v28504_v54 }
 0x29c   :  { %23440 = vmatprep.mubr.f32.mxu0 %v28377_v53  ;;  %26009 = vmatpush3.bf16.msra.mxu1 %v26006_v41  ;;  %v28583_v41 = vsub.f32 %v2746_v32, %v2757_v29  ;;  %v26126_v32 = vpack.c.bf16 %v2846_v38, %v2839_v37 }
 0x29d   :  { %23473 = vmatprep.mubr.f32.mxu1 %v28377_v53  ;;  %25987 = vmatprep.subr.bf16.mxu0 %v25986_v49  ;;  %v2308_v6 = vsub.f32 %v28504_v54, %v2307_v30 }
 0x29e   :  { %26011 = vmatprep.subr.bf16.mxu1 %v26010_v50  ;;  %v26114_v15 = vpack.c.bf16 %v28583_v41, %v28581_v11 }
 0x29f   :  { %25989 = vmatpush3.bf16.msra.mxu0 %v25986_v49  ;;  %v2309_v10 = vand.u32 4294901760, %v2308_v6  ;;  %v28604_v49 = vpack.c.bf16 %v2757_v29, %v2754_v9  ;;  %v3283_v6 = vand.u32 4294901760, %v3276_v39 }
 0x2a0   :  { %26013 = vmatpush3.bf16.msra.mxu1 %v26010_v50  ;;  %25991 = vmatprep.subr.bf16.mxu0 %v28361_v17  ;;  %v2854_v50 = vsub.f32 %v28581_v11, %v2853_v46 }
 0x2a1   :  { %26015 = vmatprep.subr.bf16.mxu1 %v26014_v56 }
 0x2a2   :  { %23441 = vmatmul.mubr.f32.vlgmr.msra.gmra.mrb[4].mxu0 %v28384_v58  ;;  %v2855_v59 = vand.u32 4294901760, %v2854_v50 }
 0x2a3   :  { %23474 = vmatmul.mubr.f32.vlgmr.msra.gmra.mrb[2].mxu1 %v28384_v58  ;;  %25993 = vmatpush3.bf16.msra.mxu0 %v28361_v17  ;;  %v2321_v17 = vand.u32 4294901760, %v28517_v1 }
 0x2a4   :  { %23451 = vmatprep.mubr.f32.mxu0 %v28377_v53  ;;  %26017 = vmatpush3.bf16.msra.mxu1 %v26014_v56  ;;  %v3275_v56 = vld [vmem:[#allocation2 + $0xd8] sm:$0xff] }
 0x2a5   :  { %23484 = vmatprep.mubr.f32.mxu1 %v28380_v57  ;;  %25995 = vmatprep.subr.bf16.mxu0 %v28415_v5  ;;  %v2322_v14 = vsub.f32 %v28517_v1, %v2321_v17  ;;  %v3280_v54 = vand.u32 4294901760, %v3275_v56  ;;  %v26082_v55 = vpack.c.bf16 %v2328_v8, %v2321_v17  ;;  %v26110_v1 = vpack.c.bf16 %v28573_v31, %v28571_v27 }
 0x2a6   :  { %26019 = vmatprep.subr.bf16.mxu1 %v26018_v62  ;;  %v3289_v17 = vand.u32 4294901760, %v3278_v7 }
 0x2a7   :  { %25997 = vmatpush3.bf16.msra.mxu0 %v28415_v5  ;;  %v26054_v5 = vpack.c.bf16 %v2316_v12, %v2309_v10  ;;  %v2323_v18 = vand.u32 4294901760, %v2322_v14  ;;  %v28632_v10 = vsub.f32 %v3275_v56, %v3280_v54  ;;  %v28634_v12 = vsub.f32 %v3276_v39, %v3283_v6 }
 0x2a8   :  { %26021 = vmatpush3.bf16.msra.mxu1 %v26018_v62  ;;  %26047 = vmatprep.subr.bf16.mxu0 %v28524_v3 }
 0x2a9   :  { %26023 = vmatprep.subr.bf16.mxu1 %v28463_v28  ;;  %v26058_v25 = vpack.c.bf16 %v2330_v19, %v2323_v18  ;;  %v3371_v8 = vand.u32 4294901760, %v28632_v10  ;;  %v3378_v14 = vand.u32 4294901760, %v28634_v12  ;;  %v28652_v18 = vpack.c.bf16 %v3283_v6, %v3280_v54 }
 0x2aa   :  { %23452 = vmatmul.mubr.f32.vlgmr.msra.gmra.mrb[4].mxu0 %v28384_v58  ;;  %v26158_v31 = vpack.c.bf16 %v28634_v12, %v28632_v10 }
 0x2ab   :  { %23485 = vmatmul.mubr.f32.vlgmr.msra.gmra.mrb[2].mxu1 %v28394_v61  ;;  %26049 = vmatpush3.bf16.msra.mxu0 %v28524_v3  ;;  %v3372_v19 = vsub.f32 %v28632_v10, %v3371_v8  ;;  %v3379_v22 = vsub.f32 %v28634_v12, %v3378_v14 }
 0x2ac   :  { %26025 = vmatpush3.bf16.msra.mxu1 %v28463_v28  ;;  %23495 = vmatprep.mubr.f32.mxu1 %v28387_v43 }
 0x2ad   :  { %23528 = vmatprep.mubr.f32.mxu0 %v28401_v63  ;;  %26027 = vmatprep.subr.bf16.mxu1 %v28477_v36  ;;  %v3380_v24 = vand.u32 4294901760, %v3379_v22 }
 0x2ae   :  { %26051 = vmatprep.subr.bf16.mxu0 %v28540_v13 }
 0x2af   :  { %26053 = vmatpush3.bf16.msra.mxu0 %v28540_v13 }
 0x2b0   :  { %26029 = vmatpush3.bf16.msra.mxu1 %v28477_v36  ;;  %26055 = vmatprep.subr.bf16.mxu0 %v26054_v5 }
 0x2b1   :  { %26031 = vmatprep.subr.bf16.mxu1 %v26030_v16 }
 0x2b2   :  { %23529 = vmatmul.mubr.f32.vlgmr.msra.gmra.mrb[6].mxu0 %v28413_v4 }
 0x2b3   :  { %23496 = vmatmul.mubr.f32.vlgmr.msra.gmra.mrb[2].mxu1 %v28404_v0  ;;  %26057 = vmatpush3.bf16.msra.mxu0 %v26054_v5 }
 0x2b4   :  { %26033 = vmatpush3.bf16.msra.mxu1 %v26030_v16  ;;  %23506 = vmatprep.mubr.f32.mxu1 %v28377_v53  ;;  %v28647_v16 = vsub.f32 %v3278_v7, %v3289_v17 }
 0x2b5   :  { %23539 = vmatprep.mubr.f32.mxu0 %v28377_v53  ;;  %26035 = vmatprep.subr.bf16.mxu1 %v26034_v20 }
 0x2b6   :  { %26059 = vmatprep.subr.bf16.mxu0 %v26058_v25  ;;  %v3392_v23 = vand.u32 4294901760, %v28647_v16 }
 0x2b7   :  { %26061 = vmatpush3.bf16.msra.mxu0 %v26058_v25 }
 0x2b8   :  { %26037 = vmatpush3.bf16.msra.mxu1 %v26034_v20  ;;  %26063 = vmatprep.subr.bf16.mxu0 %v26062_v35  ;;  %v3373_v20 = vand.u32 4294901760, %v3372_v19  ;;  %v3393_v26 = vsub.f32 %v28647_v16, %v3392_v23 }
 0x2b9   :  { %26039 = vmatprep.subr.bf16.mxu1 %v28463_v28 }
 0x2ba   :  { %23540 = vmatmul.mubr.f32.vlgmr.msra.gmra.mrb[6].mxu0 %v28384_v58  ;;  %v3394_v9 = vand.u32 4294901760, %v3393_v26 }
 0x2bb   :  { %23507 = vmatmul.mubr.f32.vlgmr.msra.gmra.mrb[2].mxu1 %v28384_v58  ;;  %26065 = vmatpush3.bf16.msra.mxu0 %v26062_v35 }
 0x2bc   :  { %26041 = vmatpush3.bf16.msra.mxu1 %v28463_v28  ;;  %23517 = vmatprep.mubr.f32.mxu1 %v28377_v53  ;;  %v2860_v28 = vand.u32 4294901760, %v28583_v41 }
 0x2bd   :  { %23550 = vmatprep.mubr.f32.mxu0 %v28380_v57  ;;  %26043 = vmatprep.subr.bf16.mxu1 %v28477_v36 }
 0x2be   :  { %26067 = vmatprep.subr.bf16.mxu0 %v26066_v40  ;;  %v2861_v51 = vsub.f32 %v28583_v41, %v2860_v28 }
 0x2bf   :  { %26069 = vmatpush3.bf16.msra.mxu0 %v26066_v40 }
 0x2c0   :  { %26045 = vmatpush3.bf16.msra.mxu1 %v28477_v36  ;;  %26071 = vmatprep.subr.bf16.mxu0 %v28524_v3  ;;  %v26078_v36 = vpack.c.bf16 %v2314_v60, %v2307_v30  ;;  %v2862_v62 = vand.u32 4294901760, %v2861_v51  ;;  %v3277_v60 = vld [vmem:[#allocation2 + $0xe8] sm:$0xff] }
 0x2c1   :  { %26095 = vmatprep.subr.bf16.mxu1 %v28590_v42  ;;  %v3286_v2 = vand.u32 4294901760, %v3277_v60 }
 0x2c2   :  { %23551 = vmatmul.mubr.f32.vlgmr.msra.gmra.mrb[6].mxu0 %v28394_v61  ;;  %v26106_v30 = vpack.c.bf16 %v2862_v62, %v2855_v59 }
 0x2c3   :  { %23518 = vmatmul.mubr.f32.vlgmr.msra.gmra.mrb[2].mxu1 %v28384_v58  ;;  %26073 = vmatpush3.bf16.msra.mxu0 %v28524_v3  ;;  %v28645_v5 = vsub.f32 %v3277_v60, %v3286_v2  ;;  %v28668_v21 = vpack.c.bf16 %v3289_v17, %v3286_v2 }
 0x2c4   :  { %23561 = vmatprep.mubr.f32.mxu0 %v28387_v43  ;;  %26097 = vmatpush3.bf16.msra.mxu1 %v28590_v42 }
 0x2c5   :  { %23594 = vmatprep.mubr.f32.mxu1 %v28401_v63  ;;  %26075 = vmatprep.subr.bf16.mxu0 %v28540_v13 }
 0x2c6   :  { %26099 = vmatprep.subr.bf16.mxu1 %v28604_v49 }
 0x2c7   :  { %26077 = vmatpush3.bf16.msra.mxu0 %v28540_v13 }
 0x2c8   :  { %26101 = vmatpush3.bf16.msra.mxu1 %v28604_v49  ;;  %26079 = vmatprep.subr.bf16.mxu0 %v26078_v36 }
 0x2c9   :  { %26103 = vmatprep.subr.bf16.mxu1 %v26102_v52 }
 0x2ca   :  { %23562 = vmatmul.mubr.f32.vlgmr.msra.gmra.mrb[6].mxu0 %v28404_v0 }
 0x2cb   :  { %23595 = vmatmul.mubr.f32.vlgmr.msra.gmra.mrb[4].mxu1 %v28413_v4  ;;  %26081 = vmatpush3.bf16.msra.mxu0 %v26078_v36 }
 0x2cc   :  { %23572 = vmatprep.mubr.f32.mxu0 %v28377_v53  ;;  %26105 = vmatpush3.bf16.msra.mxu1 %v26102_v52 }
 0x2cd   :  { %23605 = vmatprep.mubr.f32.mxu1 %v28377_v53  ;;  %26083 = vmatprep.subr.bf16.mxu0 %v26082_v55 }
 0x2ce   :  { %26107 = vmatprep.subr.bf16.mxu1 %v26106_v30 }
 0x2cf   :  { %26085 = vmatpush3.bf16.msra.mxu0 %v26082_v55 }
 0x2d0   :  { %26109 = vmatpush3.bf16.msra.mxu1 %v26106_v30  ;;  %26087 = vmatprep.subr.bf16.mxu0 %v28524_v3 }
 0x2d1   :  { %26111 = vmatprep.subr.bf16.mxu1 %v26110_v1 }
 0x2d2   :  { %23573 = vmatmul.mubr.f32.vlgmr.msra.gmra.mrb[6].mxu0 %v28384_v58 }
 0x2d3   :  { %23606 = vmatmul.mubr.f32.vlgmr.msra.gmra.mrb[4].mxu1 %v28384_v58  ;;  %26089 = vmatpush3.bf16.msra.mxu0 %v28524_v3  ;;  %v3385_v3 = vand.u32 4294901760, %v28645_v5 }
 0x2d4   :  { %23583 = vmatprep.mubr.f32.mxu0 %v28377_v53  ;;  %26113 = vmatpush3.bf16.msra.mxu1 %v26110_v1 }
 0x2d5   :  { %23616 = vmatprep.mubr.f32.mxu1 %v28380_v57  ;;  %26091 = vmatprep.subr.bf16.mxu0 %v28540_v13  ;;  %v3386_v25 = vsub.f32 %v28645_v5, %v3385_v3  ;;  %v26178_v29 = vpack.c.bf16 %v3392_v23, %v3385_v3 }
 0x2d6   :  { %26115 = vmatprep.subr.bf16.mxu1 %v26114_v15 }
 0x2d7   :  { %26093 = vmatpush3.bf16.msra.mxu0 %v28540_v13  ;;  %v26150_v13 = vpack.c.bf16 %v3380_v24, %v3373_v20  ;;  %v3387_v35 = vand.u32 4294901760, %v3386_v25 }
 0x2d8   :  { %26117 = vmatpush3.bf16.msra.mxu1 %v26114_v15  ;;  %26143 = vmatprep.subr.bf16.mxu0 %v28652_v18 }
 0x2d9   :  { %26119 = vmatprep.subr.bf16.mxu1 %v28590_v42  ;;  %v26154_v27 = vpack.c.bf16 %v3394_v9, %v3387_v35 }
 0x2da   :  { %23584 = vmatmul.mubr.f32.vlgmr.msra.gmra.mrb[6].mxu0 %v28384_v58 }
 0x2db   :  { %23617 = vmatmul.mubr.f32.vlgmr.msra.gmra.mrb[4].mxu1 %v28394_v61  ;;  %26145 = vmatpush3.bf16.msra.mxu0 %v28652_v18 }
 0x2dc   :  { %26121 = vmatpush3.bf16.msra.mxu1 %v28590_v42  ;;  %23627 = vmatprep.mubr.f32.mxu1 %v28387_v43 }
 0x2dd   :  { %23660 = vmatprep.mubr.f32.mxu0 %v28401_v63  ;;  %26123 = vmatprep.subr.bf16.mxu1 %v28604_v49  ;;  %v26130_v63 = vpack.c.bf16 %v2860_v28, %v2853_v46 }
 0x2de   :  { %26147 = vmatprep.subr.bf16.mxu0 %v28668_v21 }
 0x2df   :  { %26149 = vmatpush3.bf16.msra.mxu0 %v28668_v21 }
 0x2e0   :  { %26125 = vmatpush3.bf16.msra.mxu1 %v28604_v49  ;;  %26151 = vmatprep.subr.bf16.mxu0 %v26150_v13 }
 0x2e1   :  { %26127 = vmatprep.subr.bf16.mxu1 %v26126_v32 }
 0x2e2   :  { %23661 = vmatmul.mubr.f32.vlgmr.msra.gmra.mrb[8].mxu0 %v28413_v4  ;;  %v26162_v4 = vpack.c.bf16 %v28647_v16, %v28645_v5 }
 0x2e3   :  { %23628 = vmatmul.mubr.f32.vlgmr.msra.gmra.mrb[4].mxu1 %v28404_v0  ;;  %26153 = vmatpush3.bf16.msra.mxu0 %v26150_v13 }
 0x2e4   :  { %26129 = vmatpush3.bf16.msra.mxu1 %v26126_v32  ;;  %23638 = vmatprep.mubr.f32.mxu1 %v28377_v53 }
 0x2e5   :  { %23671 = vmatprep.mubr.f32.mxu0 %v28377_v53  ;;  %26131 = vmatprep.subr.bf16.mxu1 %v26130_v63 }
 0x2e6   :  { %26155 = vmatprep.subr.bf16.mxu0 %v26154_v27 }
 0x2e7   :  { %26157 = vmatpush3.bf16.msra.mxu0 %v26154_v27 }
 0x2e8   :  { %26133 = vmatpush3.bf16.msra.mxu1 %v26130_v63  ;;  %26159 = vmatprep.subr.bf16.mxu0 %v26158_v31 }
 0x2e9   :  { %26135 = vmatprep.subr.bf16.mxu1 %v28590_v42 }
 0x2ea   :  { %23672 = vmatmul.mubr.f32.vlgmr.msra.gmra.mrb[8].mxu0 %v28384_v58 }
 0x2eb   :  { %23639 = vmatmul.mubr.f32.vlgmr.msra.gmra.mrb[4].mxu1 %v28384_v58  ;;  %26161 = vmatpush3.bf16.msra.mxu0 %v26158_v31 }
 0x2ec   :  { %26137 = vmatpush3.bf16.msra.mxu1 %v28590_v42  ;;  %23649 = vmatprep.mubr.f32.mxu1 %v28377_v53 }
 0x2ed   :  { %23682 = vmatprep.mubr.f32.mxu0 %v28380_v57  ;;  %26139 = vmatprep.subr.bf16.mxu1 %v28604_v49  ;;  %v26174_v57 = vpack.c.bf16 %v3378_v14, %v3371_v8 }
 0x2ee   :  { %26163 = vmatprep.subr.bf16.mxu0 %v26162_v4 }
 0x2ef   :  { %26165 = vmatpush3.bf16.msra.mxu0 %v26162_v4 }
 0x2f0   :  { %26141 = vmatpush3.bf16.msra.mxu1 %v28604_v49  ;;  %26167 = vmatprep.subr.bf16.mxu0 %v28652_v18 }
 0x2f2   :  { %23683 = vmatmul.mubr.f32.vlgmr.msra.gmra.mrb[8].mxu0 %v28394_v61 }
 0x2f3   :  { %23650 = vmatmul.mubr.f32.vlgmr.msra.gmra.mrb[4].mxu1 %v28384_v58  ;;  %26169 = vmatpush3.bf16.msra.mxu0 %v28652_v18 }
 0x2f4   :  { %23693 = vmatprep.mubr.f32.mxu0 %v28387_v43  ;;  %26171 = vmatprep.subr.bf16.mxu0 %v28668_v21 }
 0x2f7   :  { %26173 = vmatpush3.bf16.msra.mxu0 %v28668_v21 }
 0x2f8   :  { %26175 = vmatprep.subr.bf16.mxu0 %v26174_v57 }
 0x2fa   :  { %23694 = vmatmul.mubr.f32.vlgmr.msra.gmra.mrb[8].mxu0 %v28404_v0 }
 0x2fb   :  { %26177 = vmatpush3.bf16.msra.mxu0 %v26174_v57  ;;  %23704 = vmatprep.mubr.f32.mxu0 %v28377_v53 }
 0x2fc   :  { %26179 = vmatprep.subr.bf16.mxu0 %v26178_v29 }
 0x2ff   :  { %26181 = vmatpush3.bf16.msra.mxu0 %v26178_v29 }
 0x300   :  { %26183 = vmatprep.subr.bf16.mxu0 %v28652_v18 }
 0x302   :  { %23705 = vmatmul.mubr.f32.vlgmr.msra.gmra.mrb[8].mxu0 %v28384_v58 }
 0x303   :  { %26185 = vmatpush3.bf16.msra.mxu0 %v28652_v18  ;;  %23715 = vmatprep.mubr.f32.mxu0 %v28377_v53 }
 0x304   :  { %26187 = vmatprep.subr.bf16.mxu0 %v28668_v21 }
 0x307   :  { %26189 = vmatpush3.bf16.msra.mxu0 %v28668_v21 }
 0x30a   :  { %23716 = vmatmul.mubr.f32.vlgmr.msra.gmra.mrb[8].mxu0 %v28384_v58 }
 0x34d   :  { %v23332_v43 = vpop.f32.mrb[2].mxu0 }
 0x34e   :  { %v694_v61 = vpop.f32.mrb[3].mxu0 }
 0x365   :  { %v23387_v0 = vpop.f32.mrb[0].mxu1 }
 0x366   :  { %v27584_v37 = vadd.f32 %v23387_v0, %v23332_v43  ;;  %v1137_v38 = vpop.f32.mrb[1].mxu1 }
 0x367   :  { %v27585_v40 = vadd.f32 %v1137_v38, %v694_v61 }
 0x368   :  { %v3808_v10 = vmul.f32 0.25, %v27584_v37 }
 0x369   :  { %v3807_v11 = vmul.f32 0.25, %v27585_v40 }
 0x36a   :  { %v3815_v2 = vsel %vm31312_vm0, %v3808_v10, 0 }
 0x36b   :  { %v3812_v41 = vsel %vm31312_vm0, %v3807_v11, 0  ;;  %v28747_v14 = vand.u32 4294901760, %v3815_v2 }
 0x36c   :  { %v28726_v42 = vand.u32 4294901760, %v3812_v41 }
 0x36d   :  { %v28753_v18 = vsub.f32 %v3815_v2, %v28747_v14 }
 0x36e   :  { %v28729_v44 = vsub.f32 %v3812_v41, %v28726_v42 }
 0x36f   :  { %v3916_v26 = vand.u32 4294901760, %v28753_v18 }
 0x370   :  { %v3906_v53 = vand.u32 4294901760, %v28729_v44 }
 0x371   :  { %v3917_v29 = vsub.f32 %v28753_v18, %v3916_v26 }
 0x372   :  { %v3907_v58 = vsub.f32 %v28729_v44, %v3906_v53 }
 0x373   :  { %v3918_v40 = vand.u32 4294901760, %v3917_v29 }
 0x374   :  { %v3908_v45 = vand.u32 4294901760, %v3907_v58 }
 0x376   :  { %23726 = vmatprep.mubr.f32.mxu1 %v3908_v45 }
 0x37d   :  { %v23453_v46 = vpop.f32.mrb[4].mxu0 }
 0x37e   :  { %v1669_v28 = vpop.f32.mrb[5].mxu0  ;;  %v3810_v17 = vmul.f32 0.25, %v23453_v46 }
 0x37f   :  { %v3809_v1 = vmul.f32 0.25, %v1669_v28 }
 0x380   :  { %v3821_v15 = vsel %vm31312_vm0, %v3810_v17, 0 }
 0x381   :  { %v3818_v8 = vsel %vm31312_vm0, %v3809_v1, 0  ;;  %v28755_v19 = vand.u32 4294901760, %v3821_v15 }
 0x382   :  { %v28750_v5 = vand.u32 4294901760, %v3818_v8 }
 0x383   :  { %v28764_v13 = vsub.f32 %v3821_v15, %v28755_v19 }
 0x384   :  { %v28759_v23 = vsub.f32 %v3818_v8, %v28750_v5 }
 0x385   :  { %v3936_v43 = vand.u32 4294901760, %v28764_v13 }
 0x386   :  { %v3926_v63 = vand.u32 4294901760, %v28759_v23 }
 0x387   :  { %v3937_v41 = vsub.f32 %v28764_v13, %v3936_v43 }
 0x388   :  { %v3927_v0 = vsub.f32 %v28759_v23, %v3926_v63 }
 0x389   :  { %v3938_v45 = vand.u32 4294901760, %v3937_v41 }
 0x38a   :  { %v3928_v58 = vand.u32 4294901760, %v3927_v0 }
 0x396   :  { %v23519_v47 = vpop.f32.mrb[2].mxu1 }
 0x397   :  { %v3827_v48 = vsel %vm31312_vm0, %v23519_v47, 0  ;;  %v2201_v49 = vpop.f32.mrb[3].mxu1 }
 0x398   :  { %v3839_v50 = vand.u32 4294901760, %v3827_v48  ;;  %v3824_v51 = vsel %vm31312_vm0, %v2201_v49, 0 }
 0x399   :  { %v3836_v36 = vand.u32 4294901760, %v3824_v51 }
 0x39a   :  { %v3953_v52 = vsub.f32 %v3827_v48, %v3839_v50 }
 0x39b   :  { %v28737_v56 = vpack.c.bf16 %v3839_v50, %v3836_v36  ;;  %v3946_v39 = vsub.f32 %v3824_v51, %v3836_v36 }
 0x39c   :  { %v3954_v59 = vand.u32 4294901760, %v3953_v52 }
 0x39d   :  { %v3947_v62 = vand.u32 4294901760, %v3946_v39  ;;  %26191 = vmatprep.subr.bf16.mxu1 %v28737_v56  ;;  %v28740_v54 = vpack.c.bf16 %v3953_v52, %v3946_v39 }
 0x39e   :  { %v3955_v6 = vsub.f32 %v3953_v52, %v3954_v59  ;;  %26193 = vmatpush3.bf16.xpose.msra.mxu1 %v28737_v56 }
 0x39f   :  { %v3948_v55 = vsub.f32 %v3946_v39, %v3947_v62  ;;  %v28743_v30 = vpack.c.bf16 %v3954_v59, %v3947_v62 }
 0x3a0   :  { %v3956_v60 = vand.u32 4294901760, %v3955_v6 }
 0x3a1   :  { %v3949_v7 = vand.u32 4294901760, %v3948_v55 }
 0x3a3   :  { %v26198_v12 = vpack.c.bf16 %v3956_v60, %v3949_v7 }
 0x3ad   :  { %v23585_v16 = vpop.f32.mrb[6].mxu0 }
 0x3ae   :  { %v3833_v22 = vsel %vm31312_vm0, %v23585_v16, 0  ;;  %v2733_v3 = vpop.f32.mrb[7].mxu0 }
 0x3af   :  { %v3845_v20 = vand.u32 4294901760, %v3833_v22  ;;  %v3830_v24 = vsel %vm31312_vm0, %v2733_v3, 0 }
 0x3b0   :  { %v3842_v21 = vand.u32 4294901760, %v3830_v24 }
 0x3b1   :  { %v3967_v25 = vsub.f32 %v3833_v22, %v3845_v20 }
 0x3b2   :  { %v28766_v32 = vpack.c.bf16 %v3845_v20, %v3842_v21  ;;  %v3960_v35 = vsub.f32 %v3830_v24, %v3842_v21 }
 0x3b3   :  { %v3968_v9 = vand.u32 4294901760, %v3967_v25 }
 0x3b4   :  { %v3961_v27 = vand.u32 4294901760, %v3960_v35  ;;  %26195 = vmatprep.subr.bf16.mxu1 %v28766_v32  ;;  %v26210_v31 = vpack.c.bf16 %v3967_v25, %v3960_v35 }
 0x3b5   :  { %v3969_v4 = vsub.f32 %v3967_v25, %v3968_v9  ;;  %26197 = vmatpush3.bf16.xpose.msra.mxu1 %v28766_v32 }
 0x3b6   :  { %v3962_v57 = vsub.f32 %v3960_v35, %v3961_v27  ;;  %26199 = vmatprep.subr.bf16.mxu1 %v26198_v12  ;;  %v28775_v61 = vpack.c.bf16 %v3968_v9, %v3961_v27  ;;  %v47_v9 = vld [vmem:[#allocation2 + $0x420] sm:$0xff] }
 0x3b7   :  { %v3970_v37 = vand.u32 4294901760, %v3969_v4 }
 0x3b8   :  { %v3963_v38 = vand.u32 4294901760, %v3962_v57 }
 0x3ba   :  { %v26202_v11 = vpack.c.bf16 %v3970_v37, %v3963_v38 }
 0x3bc   :  { %23727 = vmatmul.mubr.f32.vlgmr.msra.gmra.mrb[6].mxu1 %v3918_v40 }
 0x3bd   :  { %23729 = vmatprep.mubr.f32.mxu1 %v3928_v58  ;;  %26201 = vmatpush3.bf16.xpose.msra.mxu1 %v26198_v12 }
 0x3be   :  { %26203 = vmatprep.subr.bf16.mxu1 %v26202_v11 }
 0x3c0   :  { %23730 = vmatmul.mubr.f32.gmra.mrb[8].mxu1 %v3938_v45 }
 0x3c1   :  { %23740 = vmatprep.mubr.f32.mxu1 %v28726_v42 }
 0x3c5   :  { %26205 = vmatpush3.bf16.xpose.msra.mxu1 %v26202_v11 }
 0x3c6   :  { %v23651_v46 = vpop.f32.mrb[4].mxu1  ;;  %26207 = vmatprep.subr.bf16.mxu1 %v28740_v54 }
 0x3c7   :  { %v4509_v28 = vand.u32 4294901760, %v23651_v46  ;;  %v3265_v47 = vpop.f32.mrb[5].mxu1 }
 0x3c8   :  { %v4506_v48 = vand.u32 4294901760, %v3265_v47 }
 0x3c9   :  { %v4623_v49 = vsub.f32 %v23651_v46, %v4509_v28 }
 0x3ca   :  { %v28785_v50 = vpack.c.bf16 %v4509_v28, %v4506_v48  ;;  %v4616_v51 = vsub.f32 %v3265_v47, %v4506_v48 }
 0x3cb   :  { %v4624_v36 = vand.u32 4294901760, %v4623_v49 }
 0x3cc   :  { %v4617_v52 = vand.u32 4294901760, %v4616_v51  ;;  %26239 = vmatprep.subr.bf16.mxu0 %v28785_v50  ;;  %23741 = vmatmul.mubr.f32.vlgmr.msra.gmra.mrb[6].mxu1 %v28747_v14  ;;  %v28789_v39 = vpack.c.bf16 %v4623_v49, %v4616_v51 }
 0x3cd   :  { %v4625_v59 = vsub.f32 %v4623_v49, %v4624_v36  ;;  %26241 = vmatpush3.bf16.msra.mxu0 %v28785_v50  ;;  %23743 = vmatprep.mubr.f32.mxu1 %v28750_v5 }
 0x3ce   :  { %v4618_v62 = vsub.f32 %v4616_v51, %v4617_v52  ;;  %26209 = vmatpush3.bf16.xpose.msra.mxu1 %v28740_v54  ;;  %v28794_v6 = vpack.c.bf16 %v4624_v36, %v4617_v52 }
 0x3cf   :  { %26211 = vmatprep.subr.bf16.mxu1 %v26210_v31  ;;  %v4626_v55 = vand.u32 4294901760, %v4625_v59 }
 0x3d0   :  { %23744 = vmatmul.mubr.f32.gmra.mrb[8].mxu1 %v28755_v19  ;;  %v4619_v60 = vand.u32 4294901760, %v4618_v62 }
 0x3d1   :  { %23754 = vmatprep.mubr.f32.mxu1 %v28729_v44 }
 0x3d2   :  { %v28798_v7 = vpack.c.bf16 %v4626_v55, %v4619_v60 }
 0x3d6   :  { %26213 = vmatpush3.bf16.xpose.msra.mxu1 %v26210_v31 }
 0x3d7   :  { %26215 = vmatprep.subr.bf16.mxu1 %v28737_v56 }
 0x3dd   :  { %23755 = vmatmul.mubr.f32.vlgmr.msra.gmra.mrb[6].mxu1 %v28753_v18  ;;  %v23717_v10 = vpop.f32.mrb[8].mxu0  ;;  %v45_v18 = vld [vmem:[#allocation2 + $0x410] sm:$0xff] }
 0x3de   :  { %v4515_v12 = vand.u32 4294901760, %v23717_v10  ;;  %23757 = vmatprep.mubr.f32.mxu1 %v28759_v23  ;;  %26217 = vmatpush3.bf16.xpose.msra.mxu1 %v28737_v56  ;;  %v3797_v54 = vpop.f32.mrb[9].mxu0 }
 0x3df   :  { %v4512_v1 = vand.u32 4294901760, %v3797_v54  ;;  %26219 = vmatprep.subr.bf16.mxu1 %v28766_v32 }
 0x3e0   :  { %v4637_v2 = vsub.f32 %v23717_v10, %v4515_v12 }
 0x3e1   :  { %v28805_v17 = vpack.c.bf16 %v4515_v12, %v4512_v1  ;;  %v4630_v8 = vsub.f32 %v3797_v54, %v4512_v1  ;;  %23758 = vmatmul.mubr.f32.gmra.mrb[8].mxu1 %v28764_v13  ;;  %v48_v13 = vld [vmem:[#allocation2 + $0x428] sm:$0xff] }
 0x3e2   :  { %v4638_v15 = vand.u32 4294901760, %v4637_v2  ;;  %23768 = vmatprep.mubr.f32.mxu1 %v3906_v53 }
 0x3e3   :  { %v4631_v16 = vand.u32 4294901760, %v4630_v8  ;;  %26243 = vmatprep.subr.bf16.mxu0 %v28805_v17  ;;  %v28811_v22 = vpack.c.bf16 %v4637_v2, %v4630_v8 }
 0x3e4   :  { %v4639_v3 = vsub.f32 %v4637_v2, %v4638_v15  ;;  %26245 = vmatpush3.bf16.msra.mxu0 %v28805_v17 }
 0x3e5   :  { %v4632_v20 = vsub.f32 %v4630_v8, %v4631_v16  ;;  %26247 = vmatprep.subr.bf16.mxu0 %v28798_v7  ;;  %v28815_v24 = vpack.c.bf16 %v4638_v15, %v4631_v16 }
 0x3e6   :  { %26221 = vmatpush3.bf16.xpose.msra.mxu1 %v28766_v32  ;;  %v4640_v21 = vand.u32 4294901760, %v4639_v3 }
 0x3e7   :  { %26223 = vmatprep.subr.bf16.mxu1 %v28743_v30  ;;  %v4633_v44 = vand.u32 4294901760, %v4632_v20 }
 0x3e9   :  { %v28819_v53 = vpack.c.bf16 %v4640_v21, %v4633_v44 }
 0x3ed   :  { %23769 = vmatmul.mubr.f32.vlgmr.msra.gmra.mrb[6].mxu1 %v3916_v26 }
 0x3ee   :  { %23771 = vmatprep.mubr.f32.mxu1 %v3926_v63  ;;  %26225 = vmatpush3.bf16.xpose.msra.mxu1 %v28743_v30  ;;  %v46_v30 = vld [vmem:[#allocation2 + $0x418] sm:$0xff] }
 0x3ef   :  { %26227 = vmatprep.subr.bf16.mxu1 %v28775_v61 }
 0x3f1   :  { %23772 = vmatmul.mubr.f32.gmra.mrb[8].mxu1 %v3936_v43 }
 0x3f2   :  { %23782 = vmatprep.mubr.f32.mxu1 %v28726_v42 }
 0x3f6   :  { %26229 = vmatpush3.bf16.xpose.msra.mxu1 %v28775_v61 }
 0x3f7   :  { %26231 = vmatprep.subr.bf16.mxu1 %v28737_v56 }
 0x3fd   :  { %23783 = vmatmul.mubr.f32.vlgmr.msra.gmra.mrb[6].mxu1 %v28747_v14 }
 0x3fe   :  { %23785 = vmatprep.mubr.f32.mxu1 %v28750_v5  ;;  %26233 = vmatpush3.bf16.xpose.msra.mxu1 %v28737_v56 }
 0x3ff   :  { %26235 = vmatprep.subr.bf16.mxu1 %v28766_v32 }
 0x401   :  { %23786 = vmatmul.mubr.f32.gmra.mrb[8].mxu1 %v28755_v19 }
 0x402   :  { %23796 = vmatprep.mubr.f32.mxu1 %v28726_v42 }
 0x406   :  { %26237 = vmatpush3.bf16.xpose.msra.mxu1 %v28766_v32 }
 0x40d   :  { %23797 = vmatmul.mubr.f32.vlgmr.msra.gmra.mrb[6].mxu1 %v28747_v14 }
 0x40e   :  { %23799 = vmatprep.mubr.f32.mxu1 %v28750_v5 }
 0x411   :  { %23800 = vmatmul.mubr.f32.gmra.mrb[8].mxu1 %v28755_v19 }
 0x4e0   :  { %v23798_v23 = vpop.f32.mrb[6].mxu1 }
 0x4e1   :  { %v27586_v25 = vadd.f32 %v23798_v23, %v46_v30  ;;  %v4427_v26 = vpop.f32.mrb[7].mxu1 }
 0x4e2   :  { %v27587_v56 = vadd.f32 %v4427_v26, %v45_v18 }
 0x4e3   :  { %v4452_v35 = vsel %vm31313_vm1, %v27586_v25, -inf }
 0x4e4   :  { %v23801_v63 = vpop.f32.mrb[8].mxu1  ;;  %4453 = vmax.xlane.f32.xlu1 %v4452_v35  ;;  %v4449_v42 = vsel %vm31313_vm1, %v27587_v56, -inf }
 0x4e5   :  { %v27588_v32 = vadd.f32 %v23801_v63, %v48_v13  ;;  %v4439_v14 = vpop.f32.mrb[9].mxu1  ;;  %4450 = vmax.xlane.f32.xlu0 %v4449_v42 }
 0x4e6   :  { %v27589_v5 = vadd.f32 %v4439_v14, %v47_v9 }
 0x4e7   :  { %v4458_v19 = vsel %vm31313_vm1, %v27588_v32, -inf }
 0x4e8   :  { %4459 = vmax.xlane.f32.xlu1 %v4458_v19  ;;  %v4455_v27 = vsel %vm31313_vm1, %v27589_v5, -inf }
 0x4e9   :  { %4456 = vmax.xlane.f32.xlu0 %v4455_v27 }
 0x571   :  { %v4454_v31 = vpop.xlane.xlu1 %4453 }
 0x572   :  { %v4462_v4 = vsub.f32 %v27586_v25, %v4454_v31  ;;  %v4451_v57 = vpop.xlane.xlu0 %4450 }
 0x573   :  { %v4461_v29 = vsub.f32 %v27587_v56, %v4451_v57 }
 0x574   :  { %v4467_v43 = vmul.f32 1.442695, %v4462_v4 }
 0x575   :  { %v4465_v61 = vmul.f32 1.442695, %v4461_v29  ;;  %v4460_v0 = vpop.xlane.xlu1 %4459 }
 0x576   :  { %28116 = vpow2.f32 %v4467_v43  ;;  %v4464_v37 = vsub.f32 %v27588_v32, %v4460_v0  ;;  %v4457_v38 = vpop.xlane.xlu0 %4456 }
 0x577   :  { %28118 = vpow2.f32 %v4465_v61  ;;  %v4463_v40 = vsub.f32 %v27589_v5, %v4457_v38 }
 0x578   :  { %v4471_v11 = vmul.f32 1.442695, %v4464_v37 }
 0x579   :  { %v4469_v41 = vmul.f32 1.442695, %v4463_v40 }
 0x57a   :  { %28120 = vpow2.f32 %v4471_v11 }
 0x57b   :  { %28122 = vpow2.f32 %v4469_v41 }
 0x580   :  { %v28117_v58 = vpop.eup %28116 }
 0x581   :  { %v28119_v45 = vpop.eup %28118  ;;  %v4476_v46 = vsel %vm31313_vm1, %v28117_v58, 0.0 }
 0x582   :  { %4477 = vadd.xlane.f32.xlu1 %v4476_v46  ;;  %v4473_v28 = vsel %vm31313_vm1, %v28119_v45, 0.0 }
 0x583   :  { %4474 = vadd.xlane.f32.xlu0 %v4473_v28 }
 0x584   :  { %v28121_v47 = vpop.eup %28120 }
 0x585   :  { %v28123_v48 = vpop.eup %28122  ;;  %v4482_v49 = vsel %vm31313_vm1, %v28121_v47, 0.0 }
 0x586   :  { %4483 = vadd.xlane.f32.xlu1 %v4482_v49  ;;  %v4479_v51 = vsel %vm31313_vm1, %v28123_v48, 0.0 }
 0x587   :  { %4480 = vadd.xlane.f32.xlu0 %v4479_v51 }
 0x60f   :  { %v4478_v36 = vpop.xlane.xlu1 %4477 }
 0x610   :  { %28124 = vrcp.f32 %v4478_v36  ;;  %v4475_v52 = vpop.xlane.xlu0 %4474 }
 0x611   :  { %28126 = vrcp.f32 %v4475_v52 }
 0x613   :  { %v4484_v59 = vpop.xlane.xlu1 %4483 }
 0x614   :  { %28128 = vrcp.f32 %v4484_v59  ;;  %v4481_v62 = vpop.xlane.xlu0 %4480 }
 0x615   :  { %28130 = vrcp.f32 %v4481_v62 }
 0x61a   :  { %v28125_v55 = vpop.eup %28124 }
 0x61b   :  { %v28127_v60 = vpop.eup %28126  ;;  %v4490_v10 = vmul.f32 %v28125_v55, %v28117_v58 }
 0x61c   :  { %v4489_v12 = vmul.f32 %v28127_v60, %v28119_v45 }
 0x61d   :  { %v4497_v54 = vsel %vm31313_vm1, %v4490_v10, 0  ;;  %v5119_v10 = vld [vmem:[#allocation2 + $0x88] sm:$0xff] }
 0x61e   :  { %v28129_v1 = vpop.eup %28128  ;;  %v4494_v2 = vsel %vm31313_vm1, %v4489_v12, 0  ;;  %v28852_v8 = vand.u32 4294901760, %v4497_v54  ;;  %v5120_v12 = vld [vmem:[#allocation2 + $0x90] sm:$0xff] }
 0x61f   :  { %v28131_v15 = vpop.eup %28130  ;;  %v4492_v16 = vmul.f32 %v28129_v1, %v28121_v47  ;;  %v4574_v3 = vand.u32 4294901760, %v4494_v2  ;;  %v5641_v1 = vand.u32 4294901760, %v5120_v12 }
 0x620   :  { %v4491_v20 = vmul.f32 %v28131_v15, %v28123_v48  ;;  %v4585_v21 = vsub.f32 %v4497_v54, %v28852_v8  ;;  %v5638_v54 = vand.u32 4294901760, %v5119_v10 }
 0x621   :  { %v4575_v44 = vsub.f32 %v4494_v2, %v4574_v3  ;;  %v4503_v30 = vsel %vm31313_vm1, %v4492_v16, 0  ;;  %v5733_v15 = vsub.f32 %v5120_v12, %v5641_v1 }
 0x622   :  { %v4586_v18 = vand.u32 4294901760, %v4585_v21  ;;  %v4500_v23 = vsel %vm31313_vm1, %v4491_v20, 0  ;;  %v4604_v25 = vand.u32 4294901760, %v4503_v30 }
 0x623   :  { %v4576_v26 = vand.u32 4294901760, %v4575_v44  ;;  %v4594_v56 = vand.u32 4294901760, %v4500_v23  ;;  %v5734_v20 = vand.u32 4294901760, %v5733_v15 }
 0x624   :  { %v4587_v13 = vsub.f32 %v4585_v21, %v4586_v18  ;;  %v4605_v35 = vsub.f32 %v4503_v30, %v4604_v25 }
 0x625   :  { %v4577_v9 = vsub.f32 %v4575_v44, %v4576_v26  ;;  %v4595_v63 = vsub.f32 %v4500_v23, %v4594_v56 }
 0x626   :  { %v4606_v42 = vand.u32 4294901760, %v4605_v35  ;;  %v4588_v5 = vand.u32 4294901760, %v4587_v13 }
 0x627   :  { %v4578_v32 = vand.u32 4294901760, %v4577_v9  ;;  %v4596_v14 = vand.u32 4294901760, %v4595_v63 }
 0x628   :  { %v4607_v19 = vsub.f32 %v4605_v35, %v4606_v42 }
 0x629   :  { %23810 = vmatprep.mubr.f32.mxu0 %v4578_v32  ;;  %v4597_v27 = vsub.f32 %v4595_v63, %v4596_v14 }
 0x62a   :  { %23811 = vmatmul.mubr.f32.vlgmr.msra.gmra.mrb[10].mxu0 %v4588_v5  ;;  %v4608_v4 = vand.u32 4294901760, %v4607_v19 }
 0x62b   :  { %26249 = vmatpush3.bf16.msra.mxu0 %v28798_v7  ;;  %v4598_v31 = vand.u32 4294901760, %v4597_v27 }
 0x62c   :  { %26251 = vmatprep.subr.bf16.mxu0 %v28819_v53 }
 0x62d   :  { %23813 = vmatprep.mubr.f32.mxu0 %v4598_v31 }
 0x62e   :  { %23814 = vmatmul.mubr.f32.gmra.mrb[12].mxu0 %v4608_v4  ;;  %v21787_v4 = vld [vmem:[#allocation2 + $0x108] ss:$0 sm:$0xff] }
 0x62f   :  { %26253 = vmatpush3.bf16.msra.mxu0 %v28819_v53  ;;  %23824 = vmatprep.mubr.f32.mxu0 %v4574_v3 }
 0x630   :  { %26255 = vmatprep.subr.bf16.mxu0 %v28789_v39 }
 0x632   :  { %23825 = vmatmul.mubr.f32.vlgmr.msra.gmra.mrb[10].mxu0 %v28852_v8 }
 0x633   :  { %26257 = vmatpush3.bf16.msra.mxu0 %v28789_v39  ;;  %23827 = vmatprep.mubr.f32.mxu0 %v4594_v56  ;;  %v5121_v39 = vld [vmem:[#allocation2 + $0xf8] sm:$0xff] }
 0x634   :  { %26259 = vmatprep.subr.bf16.mxu0 %v28811_v22  ;;  %v5130_v7 = vand.u32 4294901760, %v5121_v39 }
 0x636   :  { %23828 = vmatmul.mubr.f32.gmra.mrb[12].mxu0 %v4604_v25  ;;  %v5218_v53 = vsub.f32 %v5121_v39, %v5130_v7 }
 0x637   :  { %26261 = vmatpush3.bf16.msra.mxu0 %v28811_v22  ;;  %23838 = vmatprep.mubr.f32.mxu0 %v4575_v44 }
 0x638   :  { %26263 = vmatprep.subr.bf16.mxu0 %v28785_v50 }
 0x63a   :  { %23839 = vmatmul.mubr.f32.vlgmr.msra.gmra.mrb[10].mxu0 %v4585_v21 }
 0x63b   :  { %26265 = vmatpush3.bf16.msra.mxu0 %v28785_v50  ;;  %23841 = vmatprep.mubr.f32.mxu0 %v4595_v63 }
 0x63c   :  { %26267 = vmatprep.subr.bf16.mxu0 %v28805_v17 }
 0x63e   :  { %23842 = vmatmul.mubr.f32.gmra.mrb[12].mxu0 %v4605_v35 }
 0x63f   :  { %26269 = vmatpush3.bf16.msra.mxu0 %v28805_v17  ;;  %23852 = vmatprep.mubr.f32.mxu0 %v4576_v26 }
 0x640   :  { %26271 = vmatprep.subr.bf16.mxu0 %v28794_v6 }
 0x642   :  { %23853 = vmatmul.mubr.f32.vlgmr.msra.gmra.mrb[10].mxu0 %v4586_v18  ;;  %v26310_v18 = vpack.c.bf16 %v5641_v1, %v5638_v54 }
 0x643   :  { %26273 = vmatpush3.bf16.msra.mxu0 %v28794_v6  ;;  %23855 = vmatprep.mubr.f32.mxu0 %v4596_v14  ;;  %v5122_v6 = vld [vmem:[#allocation2 + $0x100] sm:$0xff] }
 0x644   :  { %26275 = vmatprep.subr.bf16.mxu0 %v28815_v24  ;;  %v5133_v22 = vand.u32 4294901760, %v5122_v6 }
 0x646   :  { %23856 = vmatmul.mubr.f32.gmra.mrb[12].mxu0 %v4606_v42  ;;  %v5225_v57 = vsub.f32 %v5122_v6, %v5133_v22 }
 0x647   :  { %26277 = vmatpush3.bf16.msra.mxu0 %v28815_v24  ;;  %23866 = vmatprep.mubr.f32.mxu0 %v4574_v3  ;;  %v28879_v24 = vpack.c.bf16 %v5133_v22, %v5130_v7 }
 0x648   :  { %26279 = vmatprep.subr.bf16.mxu0 %v28785_v50  ;;  %v5226_v29 = vand.u32 4294901760, %v5225_v57  ;;  %v26294_v38 = vpack.c.bf16 %v5225_v57, %v5218_v53 }
 0x64a   :  { %23867 = vmatmul.mubr.f32.vlgmr.msra.gmra.mrb[10].mxu0 %v28852_v8  ;;  %v5227_v43 = vsub.f32 %v5225_v57, %v5226_v29 }
 0x64b   :  { %26281 = vmatpush3.bf16.msra.mxu0 %v28785_v50  ;;  %23869 = vmatprep.mubr.f32.mxu0 %v4594_v56  ;;  %v5219_v50 = vand.u32 4294901760, %v5218_v53 }
 0x64c   :  { %26283 = vmatprep.subr.bf16.mxu0 %v28805_v17  ;;  %v5228_v0 = vand.u32 4294901760, %v5227_v43 }
 0x64d   :  { %v26302_v40 = vpack.c.bf16 %v5226_v29, %v5219_v50 }
 0x64e   :  { %23870 = vmatmul.mubr.f32.gmra.mrb[12].mxu0 %v4604_v25 }
 0x64f   :  { %26285 = vmatpush3.bf16.msra.mxu0 %v28805_v17  ;;  %23880 = vmatprep.mubr.f32.mxu0 %v4574_v3  ;;  %v5220_v17 = vsub.f32 %v5218_v53, %v5219_v50 }
 0x650   :  { %26287 = vmatprep.subr.bf16.mxu0 %v28879_v24 }
 0x651   :  { %v5221_v61 = vand.u32 4294901760, %v5220_v17 }
 0x652   :  { %23881 = vmatmul.mubr.f32.vlgmr.msra.gmra.mrb[10].mxu0 %v28852_v8  ;;  %v5726_v8 = vsub.f32 %v5119_v10, %v5638_v54 }
 0x653   :  { %23883 = vmatprep.mubr.f32.mxu0 %v4594_v56  ;;  %26289 = vmatpush3.bf16.msra.mxu0 %v28879_v24  ;;  %v26290_v37 = vpack.c.bf16 %v5228_v0, %v5221_v61 }
 0x654   :  { %v5727_v3 = vand.u32 4294901760, %v5726_v8  ;;  %v26318_v19 = vpack.c.bf16 %v5733_v15, %v5726_v8 }
 0x655   :  { %26291 = vmatprep.subr.bf16.mxu0 %v26290_v37 }
 0x656   :  { %23884 = vmatmul.mubr.f32.gmra.mrb[12].mxu0 %v4604_v25  ;;  %v5728_v23 = vsub.f32 %v5726_v8, %v5727_v3  ;;  %v5735_v25 = vsub.f32 %v5733_v15, %v5734_v20  ;;  %v26326_v27 = vpack.c.bf16 %v5734_v20, %v5727_v3 }
 0x658   :  { %v5729_v13 = vand.u32 4294901760, %v5728_v23  ;;  %v5736_v35 = vand.u32 4294901760, %v5735_v25 }
 0x65a   :  { %v26314_v42 = vpack.c.bf16 %v5736_v35, %v5729_v13 }
 0x725   :  { %v23882_v11 = vpop.f32.mrb[10].mxu0 }
 0x726   :  { %v5097_v41 = vpop.f32.mrb[11].mxu0  ;;  %v5635_v21 = vsel %vm31312_vm0, %v23882_v11, 0  ;;  %v6189_v11 = vld [vmem:[#allocation4 + $0x8] sm:$0xff] }
 0x727   :  { %v5632_v2 = vsel %vm31312_vm0, %v5097_v41, 0  ;;  %v5714_v30 = vand.u32 4294901760, %v5635_v21  ;;  %v6731_v41 = vld [vmem:[#allocation4 + $0x20] sm:$0xff] }
 0x728   :  { %v5704_v16 = vand.u32 4294901760, %v5632_v2 }
 0x729   :  { %v23885_v58 = vpop.f32.mrb[12].mxu0  ;;  %v5715_v56 = vsub.f32 %v5635_v21, %v5714_v30 }
 0x72a   :  { %v5127_v45 = vsel %vm31312_vm0, %v23885_v58, 0  ;;  %v5109_v46 = vpop.f32.mrb[13].mxu0  ;;  %v5705_v44 = vsub.f32 %v5632_v2, %v5704_v16 }
 0x72b   :  { %v5206_v28 = vand.u32 4294901760, %v5127_v45  ;;  %v5124_v47 = vsel %vm31312_vm0, %v5109_v46, 0  ;;  %v5716_v63 = vand.u32 4294901760, %v5715_v56  ;;  %v6732_v46 = vld [vmem:[#allocation4 + $0x28] sm:$0xff] }
 0x72c   :  { %v5196_v48 = vand.u32 4294901760, %v5124_v47  ;;  %v5706_v26 = vand.u32 4294901760, %v5705_v44 }
 0x72d   :  { %v5207_v49 = vsub.f32 %v5127_v45, %v5206_v28  ;;  %v5717_v14 = vsub.f32 %v5715_v56, %v5716_v63  ;;  %v6207_v45 = vand.u32 4294901760, %v6189_v11 }
 0x72e   :  { %v5197_v51 = vsub.f32 %v5124_v47, %v5196_v48  ;;  %v5707_v9 = vsub.f32 %v5705_v44, %v5706_v26  ;;  %v6744_v47 = vand.u32 4294901760, %v6732_v46 }
 0x72f   :  { %v5208_v36 = vand.u32 4294901760, %v5207_v49  ;;  %v5718_v5 = vand.u32 4294901760, %v5717_v14  ;;  %v6301_v54 = vsub.f32 %v6189_v11, %v6207_v45 }
 0x730   :  { %v5198_v52 = vand.u32 4294901760, %v5197_v51  ;;  %v5708_v32 = vand.u32 4294901760, %v5707_v9  ;;  %v6838_v8 = vsub.f32 %v6732_v46, %v6744_v47 }
 0x731   :  { %v5209_v59 = vsub.f32 %v5207_v49, %v5208_v36  ;;  %v6302_v3 = vand.u32 4294901760, %v6301_v54 }
 0x732   :  { %v5199_v62 = vsub.f32 %v5197_v51, %v5198_v52  ;;  %v6839_v21 = vand.u32 4294901760, %v6838_v8 }
 0x733   :  { %v5210_v60 = vand.u32 4294901760, %v5209_v59  ;;  %v6303_v23 = vsub.f32 %v6301_v54, %v6302_v3 }
 0x734   :  { %v5200_v55 = vand.u32 4294901760, %v5199_v62  ;;  %v6734_v62 = vld [vmem:[#allocation4 + $0x38] sm:$0xff]  ;;  %v6840_v13 = vsub.f32 %v6838_v8, %v6839_v21 }
 0x735   :  { %v6750_v10 = vand.u32 4294901760, %v6734_v62 }
 0x736   :  { %23890 = vmatprep.mubr.f32.mxu0 %v5200_v55 }
 0x737   :  { %23891 = vmatmul.mubr.f32.vlgmr.msra.gmra.mrb[14].mxu0 %v5210_v60 }
 0x738   :  { %26293 = vmatpush3.bf16.msra.mxu0 %v26290_v37  ;;  %23897 = vmatprep.mubr.f32.mxu0 %v5196_v48 }
 0x739   :  { %26295 = vmatprep.subr.bf16.mxu0 %v26294_v38 }
 0x73f   :  { %23898 = vmatmul.mubr.f32.vlgmr.msra.gmra.mrb[14].mxu0 %v5206_v28 }
 0x740   :  { %26297 = vmatpush3.bf16.msra.mxu0 %v26294_v38  ;;  %23904 = vmatprep.mubr.f32.mxu0 %v5197_v51  ;;  %v6733_v51 = vld [vmem:[#allocation4 + $0x30] sm:$0xff] }
 0x741   :  { %26299 = vmatprep.subr.bf16.mxu0 %v28879_v24  ;;  %v6747_v55 = vand.u32 4294901760, %v6733_v51 }
 0x743   :  { %v28922_v15 = vpack.c.bf16 %v6750_v10, %v6747_v55  ;;  %v6845_v25 = vsub.f32 %v6733_v51, %v6747_v55  ;;  %v21789_v55 = vld [vmem:[#allocation2 + $0x118] ss:$0 sm:$0xff] }
 0x747   :  { %23905 = vmatmul.mubr.f32.vlgmr.msra.gmra.mrb[14].mxu0 %v5207_v49  ;;  %v6191_v49 = vld [vmem:[#allocation4 + $0x18] sm:$0xff] }
 0x748   :  { %26301 = vmatpush3.bf16.msra.mxu0 %v28879_v24  ;;  %23911 = vmatprep.mubr.f32.mxu0 %v5198_v52  ;;  %v6213_v59 = vand.u32 4294901760, %v6191_v49 }
 0x749   :  { %26303 = vmatprep.subr.bf16.mxu0 %v26302_v40 }
 0x74f   :  { %23912 = vmatmul.mubr.f32.vlgmr.msra.gmra.mrb[14].mxu0 %v5208_v36 }
 0x750   :  { %26305 = vmatpush3.bf16.msra.mxu0 %v26302_v40  ;;  %23918 = vmatprep.mubr.f32.mxu0 %v5196_v48  ;;  %v6188_v40 = vld [vmem:[#allocation4] sm:$0xff] }
 0x751   :  { %26307 = vmatprep.subr.bf16.mxu0 %v28879_v24  ;;  %v6204_v58 = vand.u32 4294901760, %v6188_v40 }
 0x753   :  { %v28913_v36 = vpack.c.bf16 %v6207_v45, %v6204_v58  ;;  %v6294_v12 = vsub.f32 %v6188_v40, %v6204_v58 }
 0x755   :  { %26335 = vmatprep.subr.bf16.mxu1 %v28913_v36 }
 0x756   :  { %26337 = vmatpush3.bf16.msra.mxu1 %v28913_v36 }
 0x757   :  { %23919 = vmatmul.mubr.f32.vlgmr.msra.gmra.mrb[14].mxu0 %v5206_v28 }
 0x758   :  { %26309 = vmatpush3.bf16.msra.mxu0 %v28879_v24  ;;  %23925 = vmatprep.mubr.f32.mxu0 %v5196_v48  ;;  %v6190_v48 = vld [vmem:[#allocation4 + $0x10] sm:$0xff] }
 0x759   :  { %26311 = vmatprep.subr.bf16.mxu0 %v26310_v18  ;;  %v6210_v52 = vand.u32 4294901760, %v6190_v48 }
 0x75b   :  { %v28918_v1 = vpack.c.bf16 %v6213_v59, %v6210_v52 }
 0x75d   :  { %26339 = vmatprep.subr.bf16.mxu1 %v28918_v1 }
 0x75e   :  { %26341 = vmatpush3.bf16.msra.mxu1 %v28918_v1 }
 0x75f   :  { %23926 = vmatmul.mubr.f32.vlgmr.msra.gmra.mrb[14].mxu0 %v5206_v28  ;;  %v6741_v28 = vand.u32 4294901760, %v6731_v41 }
 0x760   :  { %26313 = vmatpush3.bf16.msra.mxu0 %v26310_v18  ;;  %23932 = vmatprep.mubr.f32.mxu0 %v5708_v32  ;;  %v6846_v32 = vand.u32 4294901760, %v6845_v25 }
 0x761   :  { %26315 = vmatprep.subr.bf16.mxu0 %v26314_v42  ;;  %v28915_v60 = vpack.c.bf16 %v6744_v47, %v6741_v28  ;;  %v6831_v2 = vsub.f32 %v6731_v41, %v6741_v28 }
 0x763   :  { %v6832_v20 = vand.u32 4294901760, %v6831_v2 }
 0x765   :  { %v28931_v11 = vpack.c.bf16 %v6839_v21, %v6832_v20 }
 0x767   :  { %23933 = vmatmul.mubr.f32.vlgmr.msra.gmra.mrb[14].mxu0 %v5718_v5 }
 0x768   :  { %26317 = vmatpush3.bf16.msra.mxu0 %v26314_v42  ;;  %23939 = vmatprep.mubr.f32.mxu0 %v5704_v16  ;;  %v6304_v42 = vand.u32 4294901760, %v6303_v23 }
 0x769   :  { %26319 = vmatprep.subr.bf16.mxu0 %v26318_v19 }
 0x76f   :  { %23940 = vmatmul.mubr.f32.vlgmr.msra.gmra.mrb[14].mxu0 %v5714_v30 }
 0x770   :  { %26321 = vmatpush3.bf16.msra.mxu0 %v26318_v19  ;;  %23946 = vmatprep.mubr.f32.mxu0 %v5705_v44  ;;  %v6308_v44 = vsub.f32 %v6190_v48, %v6210_v52  ;;  %v6841_v19 = vand.u32 4294901760, %v6840_v13  ;;  %v21788_v52 = vld [vmem:[#allocation2 + $0x110] ss:$0 sm:$0xff] }
 0x771   :  { %26323 = vmatprep.subr.bf16.mxu0 %v26310_v18 }
 0x772   :  { %v6309_v35 = vand.u32 4294901760, %v6308_v44 }
 0x777   :  { %23947 = vmatmul.mubr.f32.vlgmr.msra.gmra.mrb[14].mxu0 %v5715_v56  ;;  %v6833_v56 = vsub.f32 %v6831_v2, %v6832_v20 }
 0x778   :  { %26325 = vmatpush3.bf16.msra.mxu0 %v26310_v18  ;;  %23953 = vmatprep.mubr.f32.mxu0 %v5706_v26  ;;  %v6852_v26 = vsub.f32 %v6734_v62, %v6750_v10 }
 0x779   :  { %26327 = vmatprep.subr.bf16.mxu0 %v26326_v27  ;;  %v6834_v5 = vand.u32 4294901760, %v6833_v56  ;;  %v7288_v56 = vld [vmem:[#allocation2 + $0x120] sm:$0xff] }
 0x77a   :  { %v6853_v14 = vand.u32 4294901760, %v6852_v26  ;;  %v7305_v13 = vand.u32 4294901760, %v7288_v56 }
 0x77c   :  { %v28935_v58 = vpack.c.bf16 %v6853_v14, %v6846_v32 }
 0x77f   :  { %23954 = vmatmul.mubr.f32.vlgmr.msra.gmra.mrb[14].mxu0 %v5716_v63 }
 0x780   :  { %26329 = vmatpush3.bf16.msra.mxu0 %v26326_v27  ;;  %23960 = vmatprep.mubr.f32.mxu0 %v5704_v16  ;;  %v6310_v27 = vsub.f32 %v6308_v44, %v6309_v35 }
 0x781   :  { %26331 = vmatprep.subr.bf16.mxu0 %v26310_v18 }
 0x787   :  { %23961 = vmatmul.mubr.f32.vlgmr.msra.gmra.mrb[14].mxu0 %v5714_v30 }
 0x788   :  { %26333 = vmatpush3.bf16.msra.mxu0 %v26310_v18  ;;  %23967 = vmatprep.mubr.f32.mxu0 %v5704_v16  ;;  %v6295_v16 = vand.u32 4294901760, %v6294_v12 }
 0x789   :  { %26383 = vmatprep.subr.bf16.mxu0 %v28915_v60 }
 0x78a   :  { %v6296_v18 = vsub.f32 %v6294_v12, %v6295_v16  ;;  %v28929_v40 = vpack.c.bf16 %v6302_v3, %v6295_v16 }
 0x78c   :  { %v6297_v63 = vand.u32 4294901760, %v6296_v18 }
 0x78f   :  { %23968 = vmatmul.mubr.f32.vlgmr.msra.gmra.mrb[14].mxu0 %v5714_v30  ;;  %v6315_v30 = vsub.f32 %v6191_v49, %v6213_v59 }
 0x790   :  { %26385 = vmatpush3.bf16.msra.mxu0 %v28915_v60 }
 0x791   :  { %26387 = vmatprep.subr.bf16.mxu0 %v28922_v15  ;;  %v6316_v9 = vand.u32 4294901760, %v6315_v30 }
 0x793   :  { %v28933_v41 = vpack.c.bf16 %v6316_v9, %v6309_v35 }
 0x794   :  { %26389 = vmatpush3.bf16.msra.mxu0 %v28922_v15 }
 0x862   :  { %v23969_v31 = vpop.f32.mrb[14].mxu0 }
 0x863   :  { %v6140_v39 = vadd.f32 %v28333_v34, %v23969_v31  ;;  %v6129_v6 = vpop.f32.mrb[15].mxu0  ;;  %v6317_v31 = vsub.f32 %v6315_v30, %v6316_v9 }
 0x864   :  { %v6139_v7 = vadd.f32 %v28331_v33, %v6129_v6  ;;  %v6854_v6 = vsub.f32 %v6852_v26, %v6853_v14  ;;  %v7293_v14 = vld [vmem:[#allocation2 + $0x148] sm:$0xff] }
 0x865   :  { %v28893_v22 = vadd.f32 %v21787_v4, %v6140_v39  ;;  %v6847_v39 = vsub.f32 %v6845_v25, %v6846_v32 }
 0x866   :  { %v28895_v24 = vadd.f32 %v21787_v4, %v6139_v7  ;;  %v26342_v4 = vpack.c.bf16 %v6304_v42, %v6297_v63  ;;  %v26390_v7 = vpack.c.bf16 %v6841_v19, %v6834_v5  ;;  %v7291_v63 = vld [vmem:[#allocation2 + $0x138] sm:$0xff]  ;;  %v7320_v19 = vand.u32 4294901760, %v7293_v14 }
 0x867   :  { %31315 = vst [vmem:[#allocation8_spill] sm:$0xff] %v28893_v22  ;;  %v6153_v53 = vsel %vm31313_vm1, %v28893_v22, 0.0  ;;  %v7314_v32 = vand.u32 4294901760, %v7291_v63 }
 0x868   :  { %31316 = vst [vmem:[#allocation9_spill] sm:$0xff] %v28895_v24  ;;  %6154 = vadd.xlane.f32.xlu1 %v6153_v53  ;;  %v6150_v57 = vsel %vm31313_vm1, %v28895_v24, 0.0  ;;  %v6311_v53 = vand.u32 4294901760, %v6310_v27  ;;  %26343 = vmatprep.subr.bf16.mxu1 %v26342_v4 }
 0x869   :  { %6151 = vadd.xlane.f32.xlu0 %v6150_v57  ;;  %v6318_v57 = vand.u32 4294901760, %v6317_v31  ;;  %26391 = vmatprep.subr.bf16.mxu0 %v26390_v7  ;;  %v7294_v31 = vld [vmem:[#allocation2 + $0x150] sm:$0xff] }
 0x8f5   :  { %v6155_v50 = vpop.xlane.xlu1 %6154 }
 0x8f6   :  { %v6157_v29 = vmul.f32 0.03125, %v6155_v50  ;;  %v6152_v17 = vpop.xlane.xlu0 %6151  ;;  %v6848_v50 = vand.u32 4294901760, %v6847_v39  ;;  %v7323_v39 = vand.u32 4294901760, %v7294_v31 }
 0x8f7   :  { %v6156_v43 = vmul.f32 0.03125, %v6152_v17  ;;  %v26346_v17 = vpack.c.bf16 %v6318_v57, %v6311_v53  ;;  %v28997_v53 = vld [vmem:[#allocation2 + $0x160] sm:$0xff]  ;;  %v28999_v57 = vld [vmem:[#allocation2 + $0x168] sm:$0xff] }
 0x8f8   :  { %v28902_v34 = vsub.f32 %v28893_v22, %v6157_v29  ;;  %v6855_v29 = vand.u32 4294901760, %v6854_v6 }
 0x8f9   :  { %v28905_v33 = vsub.f32 %v28895_v24, %v6156_v43 }
 0x8fa   :  { %v6161_v61 = vmul.f32 %v28902_v34, %v28902_v34  ;;  %v26394_v43 = vpack.c.bf16 %v6855_v29, %v6848_v50  ;;  %v7329_v50 = vand.u32 4294901760, %v28997_v53  ;;  %v7332_v29 = vand.u32 4294901760, %v28999_v57 }
 0x8fb   :  { %v6160_v0 = vmul.f32 %v28905_v33, %v28905_v33 }
 0x8fc   :  { %v6165_v37 = vsel %vm31313_vm1, %v6161_v61, 0.0  ;;  %v26350_v61 = vpack.c.bf16 %v6301_v54, %v6294_v12 }
 0x8fd   :  { %6166 = vadd.xlane.f32.xlu1 %v6165_v37  ;;  %v6162_v38 = vsel %vm31313_vm1, %v6160_v0, 0.0  ;;  %v26398_v0 = vpack.c.bf16 %v6838_v8, %v6831_v2  ;;  %v26354_v37 = vpack.c.bf16 %v6315_v30, %v6308_v44 }
 0x8fe   :  { %6163 = vadd.xlane.f32.xlu0 %v6162_v38  ;;  %v26402_v38 = vpack.c.bf16 %v6852_v26, %v6845_v25 }
 0x98a   :  { %v6167_v45 = vpop.xlane.xlu1 %6166 }
 0x98b   :  { %v6169_v46 = vmul.f32 0.03125, %v6167_v45  ;;  %v6164_v28 = vpop.xlane.xlu0 %6163  ;;  %v29023_v45 = vld [vmem:[#allocation2 + $0x198] sm:$0xff] }
 0x98c   :  { %v6168_v47 = vmul.f32 0.03125, %v6164_v28 }
 0x98d   :  { %v6171_v48 = vadd.f32 1e-05, %v6169_v46 }
 0x98e   :  { %v6170_v49 = vadd.f32 1e-05, %v6168_v47  ;;  %v7350_v47 = vand.u32 4294901760, %v29023_v45 }
 0x98f   :  { %28132 = vrsqrt.f32 %v6171_v48 }
 0x990   :  { %28134 = vrsqrt.f32 %v6170_v49 }
 0x999   :  { %v28133_v51 = vpop.eup %28132 }
 0x99a   :  { %v28135_v59 = vpop.eup %28134  ;;  %v6175_v62 = vmul.f32 %v28133_v51, %v28902_v34  ;;  %v29048_v51 = vsub.f32 %v7288_v56, %v7305_v13 }
 0x99b   :  { %v6174_v10 = vmul.f32 %v28135_v59, %v28905_v33 }
 0x99c   :  { %v6181_v12 = vmul.f32 %v21788_v52, %v6175_v62  ;;  %v31234_v59 = vand.u32 4294901760, %v29048_v51 }
 0x99d   :  { %v6180_v54 = vmul.f32 %v21788_v52, %v6174_v10 }
 0x99e   :  { %v6187_v2 = vadd.f32 %v21789_v55, %v6181_v12 }
 0x99f   :  { %v6186_v8 = vadd.f32 %v21789_v55, %v6180_v54  ;;  %v7409_v55 = vsub.f32 %v29048_v51, %v31234_v59  ;;  %v29064_v54 = vsub.f32 %v7291_v63, %v7314_v32 }
 0x9a0   :  { %v6201_v16 = vsel %vm31313_vm1, %v6187_v2, 0 }
 0x9a1   :  { %v28940_v3 = vand.u32 4294901760, %v6201_v16  ;;  %v6198_v20 = vsel %vm31313_vm1, %v6186_v8, 0  ;;  %v7410_v2 = vand.u32 4294901760, %v7409_v55 }
 0x9a2   :  { %v28943_v21 = vand.u32 4294901760, %v6198_v20 }
 0x9a3   :  { %v6283_v44 = vsub.f32 %v6201_v16, %v28940_v3 }
 0x9a4   :  { %v6273_v30 = vsub.f32 %v6198_v20, %v28943_v21 }
 0x9a5   :  { %v6284_v34 = vand.u32 4294901760, %v6283_v44 }
 0x9a6   :  { %v6274_v18 = vand.u32 4294901760, %v6273_v30 }
 0x9a7   :  { %v6285_v23 = vsub.f32 %v6283_v44, %v6284_v34 }
 0x9a8   :  { %v6275_v33 = vsub.f32 %v6273_v30, %v6274_v18 }
 0x9a9   :  { %v6286_v26 = vand.u32 4294901760, %v6285_v23 }
 0x9aa   :  { %v6276_v25 = vand.u32 4294901760, %v6275_v33 }
 0x9ac   :  { %23978 = vmatprep.mubr.f32.mxu1 %v6276_v25  ;;  %24044 = vmatprep.mubr.f32.mxu0 %v6276_v25 }
 0x9ad   :  { %23979 = vmatmul.mubr.f32.vlgmr.msra.gmra.mrb[10].mxu1 %v6286_v26  ;;  %24045 = vmatmul.mubr.f32.vlgmr.msra.gmra.mrb[16].mxu0 %v6286_v26 }
 0x9ae   :  { %26345 = vmatpush3.bf16.msra.mxu1 %v26342_v4  ;;  %23989 = vmatprep.mubr.f32.mxu1 %v28943_v21  ;;  %v7295_v4 = vld [vmem:[#allocation2 + $0x158] sm:$0xff] }
 0x9af   :  { %26393 = vmatpush3.bf16.msra.mxu0 %v26390_v7  ;;  %24055 = vmatprep.mubr.f32.mxu0 %v28943_v21  ;;  %v7326_v6 = vand.u32 4294901760, %v7295_v4 }
 0x9b0   :  { %26347 = vmatprep.subr.bf16.mxu1 %v26346_v17  ;;  %26395 = vmatprep.subr.bf16.mxu0 %v26394_v43 }
 0x9b1   :  { %v28995_v7 = vpack.c.bf16 %v7326_v6, %v7323_v39 }
 0x9b2   :  { %26349 = vmatpush3.bf16.msra.mxu1 %v26346_v17  ;;  %v29005_v17 = vpack.c.bf16 %v7332_v29, %v7329_v50 }
 0x9b3   :  { %26397 = vmatpush3.bf16.msra.mxu0 %v26394_v43  ;;  %26351 = vmatprep.subr.bf16.mxu1 %v26350_v61  ;;  %v29007_v43 = vld [vmem:[#allocation2 + $0x170] sm:$0xff] }
 0x9b4   :  { %26399 = vmatprep.subr.bf16.mxu0 %v26398_v0 }
 0x9b5   :  { %23990 = vmatmul.mubr.f32.vlgmr.msra.gmra.mrb[10].mxu1 %v28940_v3 }
 0x9b6   :  { %24056 = vmatmul.mubr.f32.vlgmr.msra.gmra.mrb[16].mxu0 %v28940_v3  ;;  %26353 = vmatpush3.bf16.msra.mxu1 %v26350_v61  ;;  %v29009_v61 = vld [vmem:[#allocation2 + $0x178] sm:$0xff] }
 0x9b7   :  { %24000 = vmatprep.mubr.f32.mxu1 %v6273_v30  ;;  %26401 = vmatpush3.bf16.msra.mxu0 %v26398_v0  ;;  %v7335_v0 = vand.u32 4294901760, %v29007_v43 }
 0x9b8   :  { %24066 = vmatprep.mubr.f32.mxu0 %v6273_v30  ;;  %26355 = vmatprep.subr.bf16.mxu1 %v26354_v37 }
 0x9b9   :  { %26403 = vmatprep.subr.bf16.mxu0 %v26402_v38 }
 0x9ba   :  { %26357 = vmatpush3.bf16.msra.mxu1 %v26354_v37  ;;  %v7338_v37 = vand.u32 4294901760, %v29009_v61 }
 0x9bb   :  { %26405 = vmatpush3.bf16.msra.mxu0 %v26402_v38  ;;  %26359 = vmatprep.subr.bf16.mxu1 %v28913_v36  ;;  %v29014_v38 = vld [vmem:[#allocation2 + $0x180] sm:$0xff] }
 0x9bc   :  { %26407 = vmatprep.subr.bf16.mxu0 %v28915_v60  ;;  %v29029_v46 = vpack.c.bf16 %v7338_v37, %v7335_v0 }
 0x9bd   :  { %24001 = vmatmul.mubr.f32.vlgmr.msra.gmra.mrb[10].mxu1 %v6283_v44 }
 0x9be   :  { %24067 = vmatmul.mubr.f32.vlgmr.msra.gmra.mrb[16].mxu0 %v6283_v44  ;;  %26361 = vmatpush3.bf16.msra.mxu1 %v28913_v36 }
 0x9bf   :  { %24011 = vmatprep.mubr.f32.mxu1 %v6274_v18  ;;  %26409 = vmatpush3.bf16.msra.mxu0 %v28915_v60 }
 0x9c0   :  { %24077 = vmatprep.mubr.f32.mxu0 %v6274_v18  ;;  %26363 = vmatprep.subr.bf16.mxu1 %v28918_v1 }
 0x9c1   :  { %26411 = vmatprep.subr.bf16.mxu0 %v28922_v15 }
 0x9c2   :  { %26365 = vmatpush3.bf16.msra.mxu1 %v28918_v1 }
 0x9c3   :  { %26413 = vmatpush3.bf16.msra.mxu0 %v28922_v15  ;;  %26367 = vmatprep.subr.bf16.mxu1 %v28929_v40 }
 0x9c4   :  { %26415 = vmatprep.subr.bf16.mxu0 %v28931_v11 }
 0x9c5   :  { %24012 = vmatmul.mubr.f32.vlgmr.msra.gmra.mrb[10].mxu1 %v6284_v34 }
 0x9c6   :  { %24078 = vmatmul.mubr.f32.vlgmr.msra.gmra.mrb[16].mxu0 %v6284_v34  ;;  %26369 = vmatpush3.bf16.msra.mxu1 %v28929_v40  ;;  %v29016_v40 = vld [vmem:[#allocation2 + $0x188] sm:$0xff]  ;;  %v29079_v34 = vsub.f32 %v7293_v14, %v7320_v19 }
 0x9c7   :  { %24022 = vmatprep.mubr.f32.mxu1 %v28943_v21  ;;  %26417 = vmatpush3.bf16.msra.mxu0 %v28931_v11  ;;  %v29018_v11 = vld [vmem:[#allocation2 + $0x190] sm:$0xff] }
 0x9c8   :  { %24088 = vmatprep.mubr.f32.mxu0 %v28943_v21  ;;  %26371 = vmatprep.subr.bf16.mxu1 %v28933_v41  ;;  %v7347_v28 = vand.u32 4294901760, %v29018_v11  ;;  %v31229_v25 = vand.u32 4294901760, %v29079_v34 }
 0x9c9   :  { %26419 = vmatprep.subr.bf16.mxu0 %v28935_v58 }
 0x9ca   :  { %26373 = vmatpush3.bf16.msra.mxu1 %v28933_v41  ;;  %v7341_v41 = vand.u32 4294901760, %v29014_v38  ;;  %v29046_v49 = vpack.c.bf16 %v7350_v47, %v7347_v28 }
 0x9cb   :  { %26421 = vmatpush3.bf16.msra.mxu0 %v28935_v58  ;;  %26375 = vmatprep.subr.bf16.mxu1 %v28913_v36  ;;  %v7344_v58 = vand.u32 4294901760, %v29016_v40 }
 0x9cc   :  { %26423 = vmatprep.subr.bf16.mxu0 %v28915_v60 }
 0x9cd   :  { %24023 = vmatmul.mubr.f32.vlgmr.msra.gmra.mrb[10].mxu1 %v28940_v3  ;;  %v29037_v48 = vpack.c.bf16 %v7344_v58, %v7341_v41 }
 0x9ce   :  { %24089 = vmatmul.mubr.f32.vlgmr.msra.gmra.mrb[16].mxu0 %v28940_v3  ;;  %26377 = vmatpush3.bf16.msra.mxu1 %v28913_v36  ;;  %v7289_v36 = vld [vmem:[#allocation2 + $0x128] sm:$0xff] }
 0x9cf   :  { %24033 = vmatprep.mubr.f32.mxu1 %v28943_v21  ;;  %26425 = vmatpush3.bf16.msra.mxu0 %v28915_v60  ;;  %v7308_v35 = vand.u32 4294901760, %v7289_v36  ;;  %v7290_v60 = vld [vmem:[#allocation2 + $0x130] sm:$0xff] }
 0x9d0   :  { %24099 = vmatprep.mubr.f32.mxu0 %v28943_v21  ;;  %26379 = vmatprep.subr.bf16.mxu1 %v28918_v1  ;;  %v7311_v42 = vand.u32 4294901760, %v7290_v60 }
 0x9d1   :  { %26427 = vmatprep.subr.bf16.mxu0 %v28922_v15  ;;  %v28983_v9 = vpack.c.bf16 %v7308_v35, %v7305_v13  ;;  %v29050_v52 = vsub.f32 %v7289_v36, %v7308_v35  ;;  %v29089_v36 = vsub.f32 %v7294_v31, %v7323_v39  ;;  %v29091_v13 = vsub.f32 %v7295_v4, %v7326_v6 }
 0x9d2   :  { %26381 = vmatpush3.bf16.msra.mxu1 %v28918_v1  ;;  %v28987_v1 = vpack.c.bf16 %v7314_v32, %v7311_v42  ;;  %v29062_v12 = vsub.f32 %v7290_v60, %v7311_v42  ;;  %v7444_v35 = vsub.f32 %v29079_v34, %v31229_v25 }
 0x9d3   :  { %26429 = vmatpush3.bf16.msra.mxu0 %v28922_v15  ;;  %26431 = vmatprep.subr.bf16.mxu1 %v28983_v9  ;;  %v7292_v15 = vld [vmem:[#allocation2 + $0x140] sm:$0xff]  ;;  %v31233_v62 = vand.u32 4294901760, %v29050_v52  ;;  %v31228_v63 = vand.u32 4294901760, %v29089_v36  ;;  %v31227_v42 = vand.u32 4294901760, %v29091_v13 }
 0x9d4   :  { %v7317_v5 = vand.u32 4294901760, %v7292_v15  ;;  %v31232_v16 = vand.u32 4294901760, %v29062_v12  ;;  %v7445_v32 = vand.u32 4294901760, %v7444_v35 }
 0x9d5   :  { %24034 = vmatmul.mubr.f32.vlgmr.msra.gmra.mrb[10].mxu1 %v28940_v3  ;;  %v7416_v10 = vsub.f32 %v29050_v52, %v31233_v62  ;;  %v7458_v14 = vsub.f32 %v29091_v13, %v31227_v42 }
 0x9d6   :  { %24100 = vmatmul.mubr.f32.vlgmr.msra.gmra.mrb[16].mxu0 %v28940_v3  ;;  %26433 = vmatpush3.bf16.msra.mxu1 %v28983_v9  ;;  %v28991_v27 = vpack.c.bf16 %v7320_v19, %v7317_v5  ;;  %v31231_v3 = vand.u32 4294901760, %v29064_v54  ;;  %v7423_v21 = vsub.f32 %v29062_v12, %v31232_v16  ;;  %v29077_v30 = vsub.f32 %v7292_v15, %v7317_v5 }
 0x9d7   :  { %26435 = vmatprep.subr.bf16.mxu1 %v28987_v1  ;;  %v7417_v8 = vand.u32 4294901760, %v7416_v10  ;;  %v7451_v15 = vsub.f32 %v29089_v36, %v31228_v63  ;;  %v29105_v5 = vsub.f32 %v28997_v53, %v7329_v50  ;;  %v29108_v19 = vsub.f32 %v28999_v57, %v7332_v29 }
 0x9d8   :  { %v7430_v44 = vsub.f32 %v29064_v54, %v31231_v3  ;;  %v7424_v18 = vand.u32 4294901760, %v7423_v21  ;;  %v31230_v33 = vand.u32 4294901760, %v29077_v30  ;;  %v7459_v39 = vand.u32 4294901760, %v7458_v14  ;;  %v21790_v3 = vld [vmem:[#allocation4 + $0x40] ss:$0 sm:$0xff] }
 0x9d9   :  { %v29069_v20 = vpack.c.bf16 %v7417_v8, %v7410_v2  ;;  %v7452_v4 = vand.u32 4294901760, %v7451_v15  ;;  %v31226_v6 = vand.u32 4294901760, %v29105_v5  ;;  %v31225_v55 = vand.u32 4294901760, %v29108_v19 }
 0x9da   :  { %26437 = vmatpush3.bf16.msra.mxu1 %v28987_v1  ;;  %v7431_v23 = vand.u32 4294901760, %v7430_v44  ;;  %v7437_v56 = vsub.f32 %v29077_v30, %v31230_v33  ;;  %v29125_v57 = vsub.f32 %v29007_v43, %v7335_v0  ;;  %v29130_v50 = vsub.f32 %v29009_v61, %v7338_v37 }
 0x9db   :  { %26439 = vmatprep.subr.bf16.mxu1 %v28991_v27  ;;  %v29114_v10 = vpack.c.bf16 %v7459_v39, %v7452_v4  ;;  %v7465_v2 = vsub.f32 %v29105_v5, %v31226_v6  ;;  %v7472_v53 = vsub.f32 %v29108_v19, %v31225_v55  ;;  %v29142_v43 = vsub.f32 %v29014_v38, %v7341_v41 }
 0x9dc   :  { %v29084_v26 = vpack.c.bf16 %v7431_v23, %v7424_v18  ;;  %v7438_v60 = vand.u32 4294901760, %v7437_v56  ;;  %v31224_v21 = vand.u32 4294901760, %v29125_v57  ;;  %v31223_v44 = vand.u32 4294901760, %v29130_v50 }
 0x9dd   :  { %v7466_v29 = vand.u32 4294901760, %v7465_v2  ;;  %v7473_v8 = vand.u32 4294901760, %v7472_v53  ;;  %v29147_v61 = vsub.f32 %v29016_v40, %v7344_v58  ;;  %v31222_v56 = vand.u32 4294901760, %v29142_v43 }
 0x9de   :  { %26441 = vmatpush3.bf16.msra.mxu1 %v28991_v27  ;;  %v29110_v31 = vpack.c.bf16 %v7445_v32, %v7438_v60  ;;  %v7479_v23 = vsub.f32 %v29125_v57, %v31224_v21  ;;  %v7486_v0 = vsub.f32 %v29130_v50, %v31223_v44  ;;  %v29163_v40 = vsub.f32 %v29018_v11, %v7347_v28 }
 0x9df   :  { %26443 = vmatprep.subr.bf16.mxu1 %v28995_v7  ;;  %v29134_v18 = vpack.c.bf16 %v7473_v8, %v7466_v29  ;;  %v31221_v35 = vand.u32 4294901760, %v29147_v61  ;;  %v7493_v38 = vsub.f32 %v29142_v43, %v31222_v56  ;;  %v29168_v58 = vsub.f32 %v29023_v45, %v7350_v47 }
 0x9e0   :  { %v7480_v37 = vand.u32 4294901760, %v7479_v23  ;;  %v7487_v60 = vand.u32 4294901760, %v7486_v0  ;;  %v31220_v4 = vand.u32 4294901760, %v29163_v40  ;;  %v29186_v29 = vpack.c.bf16 %v29050_v52, %v29048_v51 }
 0x9e1   :  { %v7500_v41 = vsub.f32 %v29147_v61, %v31221_v35  ;;  %v7494_v15 = vand.u32 4294901760, %v7493_v38  ;;  %v31219_v39 = vand.u32 4294901760, %v29168_v58  ;;  %v29190_v8 = vpack.c.bf16 %v29064_v54, %v29062_v12 }
 0x9e2   :  { %26445 = vmatpush3.bf16.msra.mxu1 %v28995_v7  ;;  %v29170_v32 = vpack.c.bf16 %v7487_v60, %v7480_v37  ;;  %v7507_v11 = vsub.f32 %v29163_v40, %v31220_v4  ;;  %v29194_v23 = vpack.c.bf16 %v29079_v34, %v29077_v30  ;;  %v29198_v0 = vpack.c.bf16 %v29091_v13, %v29089_v36 }
 0x9e3   :  { %26447 = vmatprep.subr.bf16.mxu1 %v29005_v17  ;;  %v7501_v14 = vand.u32 4294901760, %v7500_v41  ;;  %v7514_v28 = vsub.f32 %v29168_v58, %v31219_v39  ;;  %v29202_v37 = vpack.c.bf16 %v29108_v19, %v29105_v5  ;;  %v29206_v60 = vpack.c.bf16 %v29130_v50, %v29125_v57 }
 0x9e4   :  { %v7508_v45 = vand.u32 4294901760, %v7507_v11  ;;  %v29210_v38 = vpack.c.bf16 %v29147_v61, %v29142_v43  ;;  %v29214_v41 = vpack.c.bf16 %v29168_v58, %v29163_v40 }
 0x9e5   :  { %v29174_v2 = vpack.c.bf16 %v7501_v14, %v7494_v15  ;;  %v7515_v47 = vand.u32 4294901760, %v7514_v28  ;;  %v21791_v15 = vld [vmem:[#allocation4 + $0x48] ss:$0 sm:$0xff] }
 0x9e6   :  { %26449 = vmatpush3.bf16.msra.mxu1 %v29005_v17 }
 0x9e7   :  { %26451 = vmatprep.subr.bf16.mxu1 %v29029_v46  ;;  %v29182_v53 = vpack.c.bf16 %v7515_v47, %v7508_v45 }
 0x9ea   :  { %26453 = vmatpush3.bf16.msra.mxu1 %v29029_v46 }
 0x9eb   :  { %26455 = vmatprep.subr.bf16.mxu1 %v29037_v48 }
 0x9ee   :  { %26457 = vmatpush3.bf16.msra.mxu1 %v29037_v48 }
 0x9ef   :  { %26459 = vmatprep.subr.bf16.mxu1 %v29046_v49 }
 0x9f2   :  { %26461 = vmatpush3.bf16.msra.mxu1 %v29046_v49 }
 0x9f3   :  { %26463 = vmatprep.subr.bf16.mxu1 %v29069_v20 }
 0xaa8   :  { %v24035_v14 = vpop.f32.mrb[10].mxu1 }
 0xaa9   :  { %v24101_v11 = vpop.f32.mrb[16].mxu0  ;;  %v6721_v28 = vpop.f32.mrb[11].mxu1 }
 0xaaa   :  { %v27592_v45 = vadd.f32 %v24101_v11, %v21791_v15  ;;  %v7258_v47 = vpop.f32.mrb[17].mxu0  ;;  %v27591_v22 = vadd.f32 %v21790_v3, %v6721_v28  ;;  %v8038_v28 = vld [vmem:[#allocation2 + $0x1c0] sm:$0xff] }
 0xaab   :  { %v27593_v39 = vadd.f32 %v21791_v15, %v7258_v47  ;;  %v27590_v15 = vadd.f32 %v24035_v14, %v21790_v3  ;;  %v31318_v3 = vand.u32 4294901760, %v29050_v52  ;;  %v31322_v52 = vand.u32 4294901760, %v29079_v34  ;;  %v8037_v14 = vld [vmem:[#allocation2 + $0x1b8] sm:$0xff] }
 0xaac   :  { %v7271_v4 = vmul.f32 0.044715, %v27592_v45  ;;  %v7269_v62 = vmul.f32 0.5, %v27592_v45  ;;  %v31328_v34 = vand.u32 4294901760, %v29130_v50 }
 0xaad   :  { %v7270_v35 = vmul.f32 0.044715, %v27593_v39  ;;  %v7268_v11 = vmul.f32 0.5, %v27593_v39 }
 0xaae   :  { %v7273_v56 = vmul.f32 %v27592_v45, %v7271_v4 }
 0xaaf   :  { %v7272_v44 = vmul.f32 %v27593_v39, %v7270_v35 }
 0xab0   :  { %v7275_v21 = vmul.f32 %v27592_v45, %v7273_v56 }
 0xab1   :  { %v7274_v55 = vmul.f32 %v27593_v39, %v7272_v44 }
 0xab2   :  { %v7277_v6 = vadd.f32 %v27592_v45, %v7275_v21  ;;  %v31323_v21 = vand.u32 4294901760, %v29089_v36  ;;  %v31329_v36 = vand.u32 4294901760, %v29142_v43  ;;  %v8048_v45 = vand.u32 4294901760, %v8037_v14 }
 0xab3   :  { %v7276_v42 = vadd.f32 %v27593_v39, %v7274_v55 }
 0xab4   :  { %v7279_v63 = vmul.f32 0.7978846, %v7277_v6 }
 0xab5   :  { %v7278_v25 = vmul.f32 0.7978846, %v7276_v42 }
 0xab6   :  { %28136 = vtanh.f32 %v7279_v63 }
 0xab7   :  { %28138 = vtanh.f32 %v7278_v25 }
 0xac0   :  { %v28137_v33 = vpop.eup %28136 }
 0xac1   :  { %v28139_v16 = vpop.eup %28138  ;;  %v7283_v59 = vadd.f32 1.0, %v28137_v33 }
 0xac2   :  { %v7282_v24 = vadd.f32 1.0, %v28139_v16 }
 0xac3   :  { %v7285_v47 = vmul.f32 %v7283_v59, %v7269_v62 }
 0xac4   :  { %v7284_v4 = vmul.f32 %v7282_v24, %v7268_v11  ;;  %v8051_v11 = vand.u32 4294901760, %v8038_v28 }
 0xac5   :  { %v7287_v35 = vmul.f32 %v27590_v15, %v7285_v47  ;;  %v10171_v15 = vld [vmem:[#allocation2 + $0x1f8] sm:$0xff]  ;;  %v10172_v47 = vld [vmem:[#allocation2 + $0x200] sm:$0xff] }
 0xac6   :  { %v7286_v56 = vmul.f32 %v27591_v22, %v7284_v4  ;;  %v31317_v22 = vand.u32 4294901760, %v29048_v51  ;;  %v31321_v51 = vand.u32 4294901760, %v29077_v30  ;;  %v31327_v30 = vand.u32 4294901760, %v29125_v57 }
 0xac7   :  { %v29216_v44 = vand.u32 4294901760, %v7287_v35  ;;  %v10176_v4 = vand.u32 4294901760, %v10171_v15 }
 0xac8   :  { %v29218_v55 = vand.u32 4294901760, %v7286_v56 }
 0xac9   :  { %v29221_v63 = vsub.f32 %v7287_v35, %v29216_v44  ;;  %v10179_v35 = vand.u32 4294901760, %v10172_v47 }
 0xaca   :  { %v7386_v25 = vsub.f32 %v7286_v56, %v29218_v55  ;;  %v29354_v56 = vpack.c.bf16 %v8051_v11, %v8048_v45 }
 0xacb   :  { %v7397_v42 = vand.u32 4294901760, %v29221_v63 }
 0xacc   :  { %v7387_v33 = vand.u32 4294901760, %v7386_v25  ;;  %26623 = vmatprep.subr.bf16.mxu0 %v29354_v56 }
 0xacd   :  { %v7398_v59 = vsub.f32 %v29221_v63, %v7397_v42  ;;  %26625 = vmatpush3.bf16.msra.mxu0 %v29354_v56 }
 0xace   :  { %v7388_v62 = vsub.f32 %v7386_v25, %v7387_v33 }
 0xacf   :  { %v7399_v16 = vand.u32 4294901760, %v7398_v59 }
 0xad0   :  { %v7389_v24 = vand.u32 4294901760, %v7388_v62  ;;  %v10173_v62 = vld [vmem:[#allocation2 + $0x208] sm:$0xff] }
 0xad2   :  { %24134 = vmatprep.mubr.f32.mxu1 %v7389_v24  ;;  %v10174_v24 = vld [vmem:[#allocation2 + $0x210] sm:$0xff] }
 0xad3   :  { %24135 = vmatmul.mubr.f32.vlgmr.msra.gmra.mrb[12].mxu1 %v7399_v16 }
 0xad4   :  { %26465 = vmatpush3.bf16.msra.mxu1 %v29069_v20  ;;  %24169 = vmatprep.mubr.f32.mxu1 %v29218_v55  ;;  %v26558_v20 = vpack.c.bf16 %v31318_v3, %v31317_v22  ;;  %v10182_v3 = vand.u32 4294901760, %v10173_v62 }
 0xad5   :  { %26467 = vmatprep.subr.bf16.mxu1 %v29084_v26 }
 0xad8   :  { %26469 = vmatpush3.bf16.msra.mxu1 %v29084_v26  ;;  %v31319_v26 = vand.u32 4294901760, %v29062_v12  ;;  %v31324_v12 = vand.u32 4294901760, %v29091_v13  ;;  %v31330_v13 = vand.u32 4294901760, %v29147_v61 }
 0xad9   :  { %26471 = vmatprep.subr.bf16.mxu1 %v29110_v31 }
 0xadc   :  { %26473 = vmatpush3.bf16.msra.mxu1 %v29110_v31  ;;  %v31320_v31 = vand.u32 4294901760, %v29064_v54  ;;  %v26570_v54 = vpack.c.bf16 %v31324_v12, %v31323_v21 }
 0xadd   :  { %26475 = vmatprep.subr.bf16.mxu1 %v29114_v10 }
 0xade   :  { %v26562_v6 = vpack.c.bf16 %v31320_v31, %v31319_v26  ;;  %v10266_v26 = vsub.f32 %v10171_v15, %v10176_v4  ;;  %v10273_v31 = vsub.f32 %v10172_v47, %v10179_v35 }
 0xae0   :  { %26477 = vmatpush3.bf16.msra.mxu1 %v29114_v10  ;;  %v26566_v10 = vpack.c.bf16 %v31322_v52, %v31321_v51  ;;  %v10267_v21 = vand.u32 4294901760, %v10266_v26  ;;  %v10274_v12 = vand.u32 4294901760, %v10273_v31 }
 0xae1   :  { %26479 = vmatprep.subr.bf16.mxu1 %v29134_v18 }
 0xae4   :  { %26481 = vmatpush3.bf16.msra.mxu1 %v29134_v18  ;;  %v31325_v18 = vand.u32 4294901760, %v29105_v5  ;;  %v31331_v5 = vand.u32 4294901760, %v29163_v40 }
 0xae5   :  { %26483 = vmatprep.subr.bf16.mxu1 %v29170_v32 }
 0xae8   :  { %26485 = vmatpush3.bf16.msra.mxu1 %v29170_v32  ;;  %v31326_v32 = vand.u32 4294901760, %v29108_v19  ;;  %v31332_v19 = vand.u32 4294901760, %v29168_v58 }
 0xae9   :  { %26487 = vmatprep.subr.bf16.mxu1 %v29174_v2 }
 0xaea   :  { %v26574_v39 = vpack.c.bf16 %v31326_v32, %v31325_v18 }
 0xaec   :  { %26489 = vmatpush3.bf16.msra.mxu1 %v29174_v2  ;;  %v26578_v2 = vpack.c.bf16 %v31328_v34, %v31327_v30  ;;  %v10280_v30 = vsub.f32 %v10173_v62, %v10182_v3  ;;  %v10268_v34 = vsub.f32 %v10266_v26, %v10267_v21  ;;  %v21794_v62 = vld [vmem:[#allocation2 + $0x1b0] ss:$0 sm:$0xff] }
 0xaed   :  { %26491 = vmatprep.subr.bf16.mxu1 %v29182_v53 }
 0xaf0   :  { %26493 = vmatpush3.bf16.msra.mxu1 %v29182_v53  ;;  %v26582_v53 = vpack.c.bf16 %v31330_v13, %v31329_v36 }
 0xaf1   :  { %26495 = vmatprep.subr.bf16.mxu1 %v29186_v29 }
 0xaf3   :  { %24170 = vmatmul.mubr.f32.vlgmr.msra.gmra.mrb[12].mxu1 %v29216_v44 }
 0xaf4   :  { %26497 = vmatpush3.bf16.msra.mxu1 %v29186_v29  ;;  %24204 = vmatprep.mubr.f32.mxu1 %v7386_v25  ;;  %v26586_v29 = vpack.c.bf16 %v31332_v19, %v31331_v5  ;;  %v8039_v25 = vld [vmem:[#allocation2 + $0x1c8] sm:$0xff]  ;;  %v10281_v19 = vand.u32 4294901760, %v10280_v30 }
 0xaf5   :  { %26499 = vmatprep.subr.bf16.mxu1 %v29190_v8 }
 0xaf8   :  { %26501 = vmatpush3.bf16.msra.mxu1 %v29190_v8 }
 0xaf9   :  { %26503 = vmatprep.subr.bf16.mxu1 %v29194_v23 }
 0xafc   :  { %26505 = vmatpush3.bf16.msra.mxu1 %v29194_v23 }
 0xafd   :  { %26507 = vmatprep.subr.bf16.mxu1 %v29198_v0 }
 0xb00   :  { %26509 = vmatpush3.bf16.msra.mxu1 %v29198_v0 }
 0xb01   :  { %26511 = vmatprep.subr.bf16.mxu1 %v29202_v37 }
 0xb04   :  { %26513 = vmatpush3.bf16.msra.mxu1 %v29202_v37 }
 0xb05   :  { %26515 = vmatprep.subr.bf16.mxu1 %v29206_v60 }
 0xb08   :  { %26517 = vmatpush3.bf16.msra.mxu1 %v29206_v60 }
 0xb09   :  { %26519 = vmatprep.subr.bf16.mxu1 %v29210_v38 }
 0xb0c   :  { %26521 = vmatpush3.bf16.msra.mxu1 %v29210_v38 }
 0xb0d   :  { %26523 = vmatprep.subr.bf16.mxu1 %v29214_v41 }
 0xb10   :  { %26525 = vmatpush3.bf16.msra.mxu1 %v29214_v41 }
 0xb11   :  { %26527 = vmatprep.subr.bf16.mxu1 %v28983_v9 }
 0xb13   :  { %24205 = vmatmul.mubr.f32.vlgmr.msra.gmra.mrb[12].mxu1 %v29221_v63  ;;  %v29356_v63 = vpack.c.bf16 %v10179_v35, %v10176_v4 }
 0xb14   :  { %26529 = vmatpush3.bf16.msra.mxu1 %v28983_v9  ;;  %24239 = vmatprep.mubr.f32.mxu1 %v7387_v33  ;;  %v8054_v33 = vand.u32 4294901760, %v8039_v25 }
 0xb15   :  { %26531 = vmatprep.subr.bf16.mxu1 %v28987_v1 }
 0xb18   :  { %26533 = vmatpush3.bf16.msra.mxu1 %v28987_v1 }
 0xb19   :  { %26535 = vmatprep.subr.bf16.mxu1 %v28991_v27 }
 0xb1c   :  { %26537 = vmatpush3.bf16.msra.mxu1 %v28991_v27 }
 0xb1d   :  { %26539 = vmatprep.subr.bf16.mxu1 %v28995_v7 }
 0xb20   :  { %26541 = vmatpush3.bf16.msra.mxu1 %v28995_v7 }
 0xb21   :  { %26543 = vmatprep.subr.bf16.mxu1 %v29005_v17 }
 0xb24   :  { %26545 = vmatpush3.bf16.msra.mxu1 %v29005_v17 }
 0xb25   :  { %26547 = vmatprep.subr.bf16.mxu1 %v29029_v46 }
 0xb28   :  { %26549 = vmatpush3.bf16.msra.mxu1 %v29029_v46 }
 0xb29   :  { %26551 = vmatprep.subr.bf16.mxu1 %v29037_v48 }
 0xb2c   :  { %26553 = vmatpush3.bf16.msra.mxu1 %v29037_v48 }
 0xb2d   :  { %26555 = vmatprep.subr.bf16.mxu1 %v29046_v49 }
 0xb30   :  { %26557 = vmatpush3.bf16.msra.mxu1 %v29046_v49 }
 0xb31   :  { %26559 = vmatprep.subr.bf16.mxu1 %v26558_v20 }
 0xb33   :  { %24240 = vmatmul.mubr.f32.vlgmr.msra.gmra.mrb[12].mxu1 %v7397_v42  ;;  %v8040_v42 = vld [vmem:[#allocation2 + $0x1d0] sm:$0xff] }
 0xb34   :  { %26561 = vmatpush3.bf16.msra.mxu1 %v26558_v20  ;;  %24274 = vmatprep.mubr.f32.mxu1 %v29218_v55  ;;  %v8057_v59 = vand.u32 4294901760, %v8040_v42  ;;  %v10185_v20 = vand.u32 4294901760, %v10174_v24 }
 0xb35   :  { %26563 = vmatprep.subr.bf16.mxu1 %v26562_v6 }
 0xb36   :  { %v10287_v13 = vsub.f32 %v10174_v24, %v10185_v20 }
 0xb38   :  { %26565 = vmatpush3.bf16.msra.mxu1 %v26562_v6  ;;  %v29362_v6 = vpack.c.bf16 %v8057_v59, %v8054_v33 }
 0xb39   :  { %26567 = vmatprep.subr.bf16.mxu1 %v26566_v10 }
 0xb3a   :  { %26627 = vmatprep.subr.bf16.mxu0 %v29362_v6 }
 0xb3b   :  { %26629 = vmatpush3.bf16.msra.mxu0 %v29362_v6 }
 0xb3c   :  { %26569 = vmatpush3.bf16.msra.mxu1 %v26566_v10  ;;  %v29364_v10 = vpack.c.bf16 %v10185_v20, %v10182_v3 }
 0xb3d   :  { %26571 = vmatprep.subr.bf16.mxu1 %v26570_v54 }
 0xb40   :  { %26573 = vmatpush3.bf16.msra.mxu1 %v26570_v54  ;;  %v8152_v54 = vsub.f32 %v8039_v25, %v8054_v33 }
 0xb41   :  { %26575 = vmatprep.subr.bf16.mxu1 %v26574_v39 }
 0xb42   :  { %v8153_v36 = vand.u32 4294901760, %v8152_v54 }
 0xb44   :  { %26577 = vmatpush3.bf16.msra.mxu1 %v26574_v39  ;;  %v8159_v39 = vsub.f32 %v8040_v42, %v8057_v59 }
 0xb45   :  { %26579 = vmatprep.subr.bf16.mxu1 %v26578_v2 }
 0xb46   :  { %v8160_v5 = vand.u32 4294901760, %v8159_v39 }
 0xb48   :  { %26581 = vmatpush3.bf16.msra.mxu1 %v26578_v2  ;;  %v10275_v2 = vsub.f32 %v10273_v31, %v10274_v12 }
 0xb49   :  { %26583 = vmatprep.subr.bf16.mxu1 %v26582_v53 }
 0xb4c   :  { %26585 = vmatpush3.bf16.msra.mxu1 %v26582_v53 }
 0xb4d   :  { %26587 = vmatprep.subr.bf16.mxu1 %v26586_v29 }
 0xb50   :  { %26589 = vmatpush3.bf16.msra.mxu1 %v26586_v29  ;;  %v10269_v29 = vand.u32 4294901760, %v10268_v34  ;;  %v8576_v34 = vld [vmem:[#allocation2 + $0x230] sm:$0xff] }
 0xb51   :  { %26591 = vmatprep.subr.bf16.mxu1 %v28983_v9 }
 0xb53   :  { %24275 = vmatmul.mubr.f32.vlgmr.msra.gmra.mrb[12].mxu1 %v29216_v44 }
 0xb54   :  { %26593 = vmatpush3.bf16.msra.mxu1 %v28983_v9  ;;  %24309 = vmatprep.mubr.f32.mxu1 %v29218_v55  ;;  %v8145_v55 = vsub.f32 %v8038_v28, %v8051_v11  ;;  %v29372_v28 = vpack.c.bf16 %v10274_v12, %v10267_v21 }
 0xb55   :  { %26595 = vmatprep.subr.bf16.mxu1 %v28987_v1 }
 0xb56   :  { %v8146_v22 = vand.u32 4294901760, %v8145_v55 }
 0xb58   :  { %26597 = vmatpush3.bf16.msra.mxu1 %v28987_v1  ;;  %v21792_v1 = vld [vmem:[#allocation2 + $0x1a0] ss:$0 sm:$0xff]  ;;  %v8147_v52 = vsub.f32 %v8145_v55, %v8146_v22 }
 0xb59   :  { %26599 = vmatprep.subr.bf16.mxu1 %v28991_v27 }
 0xb5a   :  { %v8148_v32 = vand.u32 4294901760, %v8147_v52 }
 0xb5c   :  { %26601 = vmatpush3.bf16.msra.mxu1 %v28991_v27  ;;  %v31333_v27 = vld [vmem:[#allocation8_spill] sm:$0xff] }
 0xb5d   :  { %26603 = vmatprep.subr.bf16.mxu1 %v28995_v7 }
 0xb60   :  { %26605 = vmatpush3.bf16.msra.mxu1 %v28995_v7 }
 0xb61   :  { %26607 = vmatprep.subr.bf16.mxu1 %v29005_v17 }
 0xb64   :  { %26609 = vmatpush3.bf16.msra.mxu1 %v29005_v17  ;;  %v31334_v17 = vld [vmem:[#allocation9_spill] sm:$0xff] }
 0xb65   :  { %26611 = vmatprep.subr.bf16.mxu1 %v29029_v46 }
 0xb68   :  { %26613 = vmatpush3.bf16.msra.mxu1 %v29029_v46 }
 0xb69   :  { %26615 = vmatprep.subr.bf16.mxu1 %v29037_v48 }
 0xb6c   :  { %26617 = vmatpush3.bf16.msra.mxu1 %v29037_v48 }
 0xb6d   :  { %26619 = vmatprep.subr.bf16.mxu1 %v29046_v49 }
 0xb70   :  { %26621 = vmatpush3.bf16.msra.mxu1 %v29046_v49 }
 0xb71   :  { %26815 = vmatprep.subr.bf16.mxu1 %v29356_v63 }
 0xb73   :  { %24310 = vmatmul.mubr.f32.vlgmr.msra.gmra.mrb[12].mxu1 %v29216_v44  ;;  %v8138_v44 = vsub.f32 %v8037_v14, %v8048_v45  ;;  %v29374_v45 = vpack.c.bf16 %v8160_v5, %v8153_v36 }
 0xb74   :  { %26817 = vmatpush3.bf16.msra.mxu1 %v29356_v63 }
 0xb75   :  { %v8139_v16 = vand.u32 4294901760, %v8138_v44  ;;  %26819 = vmatprep.subr.bf16.mxu1 %v29364_v10 }
 0xb77   :  { %v8140_v51 = vsub.f32 %v8138_v44, %v8139_v16  ;;  %v29370_v14 = vpack.c.bf16 %v8146_v22, %v8139_v16 }
 0xb78   :  { %26821 = vmatpush3.bf16.msra.mxu1 %v29364_v10 }
 0xb79   :  { %v8141_v18 = vand.u32 4294901760, %v8140_v51 }
 0xb7b   :  { %v26630_v53 = vpack.c.bf16 %v8148_v32, %v8141_v18 }
 0xb7d   :  { %26631 = vmatprep.subr.bf16.mxu0 %v26630_v53 }
 0xc46   :  { %v24311_v9 = vpop.f32.mrb[12].mxu1 }
 0xc47   :  { %v7989_v7 = vadd.f32 %v24311_v9, %v31333_v27  ;;  %v7978_v57 = vpop.f32.mrb[13].mxu1  ;;  %v10276_v9 = vand.u32 4294901760, %v10275_v2  ;;  %v10288_v27 = vand.u32 4294901760, %v10287_v13 }
 0xc48   :  { %v7988_v50 = vadd.f32 %v7978_v57, %v31334_v17  ;;  %v10282_v57 = vsub.f32 %v10280_v30, %v10281_v19 }
 0xc49   :  { %v29334_v43 = vadd.f32 %v21792_v1, %v7989_v7  ;;  %v8161_v7 = vsub.f32 %v8159_v39, %v8160_v5  ;;  %v26822_v17 = vpack.c.bf16 %v10276_v9, %v10269_v29  ;;  %v29376_v11 = vpack.c.bf16 %v10288_v27, %v10281_v19 }
 0xc4a   :  { %v29336_v46 = vadd.f32 %v21792_v1, %v7988_v50  ;;  %v8154_v1 = vsub.f32 %v8152_v54, %v8153_v36  ;;  %v8583_v36 = vand.u32 4294901760, %v8576_v34 }
 0xc4b   :  { %v8002_v48 = vsel %vm31313_vm1, %v29334_v43, 0.0  ;;  %26823 = vmatprep.subr.bf16.mxu1 %v26822_v17 }
 0xc4c   :  { %8003 = vadd.xlane.f32.xlu1 %v8002_v48  ;;  %v7999_v49 = vsel %vm31313_vm1, %v29336_v46, 0.0  ;;  %v8155_v50 = vand.u32 4294901760, %v8154_v1  ;;  %v10289_v48 = vsub.f32 %v10287_v13, %v10288_v27  ;;  %v29437_v9 = vsub.f32 %v8576_v34, %v8583_v36 }
 0xc4d   :  { %8000 = vadd.xlane.f32.xlu0 %v7999_v49  ;;  %v8162_v49 = vand.u32 4294901760, %v8161_v7 }
 0xc4e   :  { %v8678_v27 = vand.u32 4294901760, %v29437_v9 }
 0xcd9   :  { %v8004_v61 = vpop.xlane.xlu1 %8003 }
 0xcda   :  { %v8006_v40 = vmul.f32 0.03125, %v8004_v61  ;;  %v8001_v58 = vpop.xlane.xlu0 %8000  ;;  %v10283_v61 = vand.u32 4294901760, %v10282_v57 }
 0xcdb   :  { %v8005_v8 = vmul.f32 0.03125, %v8001_v58  ;;  %v26634_v58 = vpack.c.bf16 %v8162_v49, %v8155_v50 }
 0xcdc   :  { %v29343_v23 = vsub.f32 %v29334_v43, %v8006_v40  ;;  %v10290_v40 = vand.u32 4294901760, %v10289_v48  ;;  %v8679_v48 = vsub.f32 %v29437_v9, %v8678_v27 }
 0xcdd   :  { %v29346_v0 = vsub.f32 %v29336_v46, %v8005_v8 }
 0xcde   :  { %v8010_v37 = vmul.f32 %v29343_v23, %v29343_v23  ;;  %v26826_v8 = vpack.c.bf16 %v10290_v40, %v10283_v61  ;;  %v8680_v40 = vand.u32 4294901760, %v8679_v48 }
 0xcdf   :  { %v8009_v60 = vmul.f32 %v29346_v0, %v29346_v0 }
 0xce0   :  { %v8014_v38 = vsel %vm31313_vm1, %v8010_v37, 0.0  ;;  %v26638_v37 = vpack.c.bf16 %v8145_v55, %v8138_v44  ;;  %v21793_v55 = vld [vmem:[#allocation2 + $0x1a8] ss:$0 sm:$0xff] }
 0xce1   :  { %8015 = vadd.xlane.f32.xlu1 %v8014_v38  ;;  %v8011_v41 = vsel %vm31313_vm1, %v8009_v60, 0.0  ;;  %v26830_v60 = vpack.c.bf16 %v10273_v31, %v10266_v26  ;;  %v26642_v38 = vpack.c.bf16 %v8159_v39, %v8152_v54 }
 0xce2   :  { %8012 = vadd.xlane.f32.xlu0 %v8011_v41  ;;  %v26834_v41 = vpack.c.bf16 %v10287_v13, %v10280_v30  ;;  %v8575_v30 = vld [vmem:[#allocation2 + $0x228] sm:$0xff]  ;;  %v8577_v13 = vld [vmem:[#allocation2 + $0x238] sm:$0xff] }
 0xce3   :  { %v8580_v2 = vand.u32 4294901760, %v8575_v30  ;;  %v8586_v5 = vand.u32 4294901760, %v8577_v13 }
 0xce5   :  { %v29435_v29 = vsub.f32 %v8575_v30, %v8580_v2  ;;  %v8684_v7 = vsub.f32 %v8577_v13, %v8586_v5 }
 0xce7   :  { %v8671_v1 = vand.u32 4294901760, %v29435_v29  ;;  %v8685_v49 = vand.u32 4294901760, %v8684_v7 }
 0xce9   :  { %v8672_v50 = vsub.f32 %v29435_v29, %v8671_v1 }
 0xd6e   :  { %v8016_v15 = vpop.xlane.xlu1 %8015 }
 0xd6f   :  { %v8018_v47 = vmul.f32 0.03125, %v8016_v15  ;;  %v8013_v4 = vpop.xlane.xlu0 %8012 }
 0xd70   :  { %v8017_v35 = vmul.f32 0.03125, %v8013_v4  ;;  %v9109_v4 = vld [vmem:[#allocation2 + $0x1e8] sm:$0xff] }
 0xd71   :  { %v8020_v25 = vadd.f32 1e-05, %v8018_v47 }
 0xd72   :  { %v8019_v42 = vadd.f32 1e-05, %v8017_v35  ;;  %v9110_v35 = vld [vmem:[#allocation2 + $0x1f0] sm:$0xff] }
 0xd73   :  { %28140 = vrsqrt.f32 %v8020_v25  ;;  %v9118_v25 = vand.u32 4294901760, %v9109_v4 }
 0xd74   :  { %28142 = vrsqrt.f32 %v8019_v42  ;;  %v9121_v42 = vand.u32 4294901760, %v9110_v35 }
 0xd7d   :  { %v28141_v44 = vpop.eup %28140 }
 0xd7e   :  { %v28143_v33 = vpop.eup %28142  ;;  %v8024_v59 = vmul.f32 %v28141_v44, %v29343_v23 }
 0xd7f   :  { %v8023_v24 = vmul.f32 %v28143_v33, %v29346_v0 }
 0xd80   :  { %v8030_v16 = vmul.f32 %v21793_v55, %v8024_v59 }
 0xd81   :  { %v8029_v22 = vmul.f32 %v21793_v55, %v8023_v24  ;;  %v9223_v24 = vsub.f32 %v9110_v35, %v9121_v42 }
 0xd82   :  { %v8036_v3 = vadd.f32 %v21794_v62, %v8030_v16 }
 0xd83   :  { %v8035_v20 = vadd.f32 %v21794_v62, %v8029_v22  ;;  %v9216_v62 = vsub.f32 %v9109_v4, %v9118_v25 }
 0xd84   :  { %v8045_v26 = vsel %vm31313_vm1, %v8036_v3, 0 }
 0xd85   :  { %v29381_v31 = vand.u32 4294901760, %v8045_v26  ;;  %v8042_v51 = vsel %vm31313_vm1, %v8035_v20, 0  ;;  %v9217_v20 = vand.u32 4294901760, %v9216_v62 }
 0xd86   :  { %v29384_v52 = vand.u32 4294901760, %v8042_v51 }
 0xd87   :  { %v29387_v21 = vsub.f32 %v8045_v26, %v29381_v31  ;;  %v9224_v26 = vand.u32 4294901760, %v9223_v24  ;;  %v9218_v30 = vsub.f32 %v9216_v62, %v9217_v20 }
 0xd88   :  { %v29390_v23 = vsub.f32 %v8042_v51, %v29384_v52  ;;  %v29493_v51 = vpack.c.bf16 %v9121_v42, %v9118_v25 }
 0xd89   :  { %v29393_v0 = vand.u32 4294901760, %v29387_v21  ;;  %v9225_v34 = vsub.f32 %v9223_v24, %v9224_v26 }
 0xd8a   :  { %v29396_v12 = vand.u32 4294901760, %v29390_v23 }
 0xd8b   :  { %v8129_v54 = vsub.f32 %v29387_v21, %v29393_v0  ;;  %v9226_v13 = vand.u32 4294901760, %v9225_v34 }
 0xd8c   :  { %v8119_v18 = vsub.f32 %v29390_v23, %v29396_v12 }
 0xd8d   :  { %v29404_v39 = vand.u32 4294901760, %v8129_v54 }
 0xd8e   :  { %v29402_v32 = vand.u32 4294901760, %v8119_v18 }
 0xd90   :  { %24320 = vmatprep.mubr.f32.mxu0 %v29402_v32  ;;  %24584 = vmatprep.mubr.f32.mxu1 %v29402_v32 }
 0xd91   :  { %24321 = vmatmul.mubr.f32.vlgmr.msra.gmra.mrb[18].mxu0 %v29404_v39  ;;  %24585 = vmatmul.mubr.f32.vlgmr.msra.gmra.mrb[14].mxu1 %v29404_v39 }
 0xd92   :  { %26633 = vmatpush3.bf16.msra.mxu0 %v26630_v53  ;;  %24331 = vmatprep.mubr.f32.mxu0 %v29384_v52  ;;  %v8578_v53 = vld [vmem:[#allocation2 + $0x240] sm:$0xff] }
 0xd93   :  { %26825 = vmatpush3.bf16.msra.mxu1 %v26822_v17  ;;  %24595 = vmatprep.mubr.f32.mxu1 %v29384_v52  ;;  %v8589_v19 = vand.u32 4294901760, %v8578_v53  ;;  %v29451_v17 = vpack.c.bf16 %v8583_v36, %v8580_v2  ;;  %v9219_v36 = vand.u32 4294901760, %v9218_v30 }
 0xd94   :  { %26635 = vmatprep.subr.bf16.mxu0 %v26634_v58  ;;  %26827 = vmatprep.subr.bf16.mxu1 %v26826_v8 }
 0xd95   :  { %v8691_v57 = vsub.f32 %v8578_v53, %v8589_v19  ;;  %v26730_v53 = vpack.c.bf16 %v9226_v13, %v9219_v36 }
 0xd96   :  { %26637 = vmatpush3.bf16.msra.mxu0 %v26634_v58  ;;  %v8686_v58 = vsub.f32 %v8684_v7, %v8685_v49 }
 0xd97   :  { %26829 = vmatpush3.bf16.msra.mxu1 %v26826_v8  ;;  %26639 = vmatprep.subr.bf16.mxu0 %v26638_v37  ;;  %v8692_v61 = vand.u32 4294901760, %v8691_v57 }
 0xd98   :  { %26831 = vmatprep.subr.bf16.mxu1 %v26830_v60 }
 0xd99   :  { %24332 = vmatmul.mubr.f32.vlgmr.msra.gmra.mrb[18].mxu0 %v29381_v31  ;;  %v8693_v8 = vsub.f32 %v8691_v57, %v8692_v61 }
 0xd9a   :  { %26641 = vmatpush3.bf16.msra.mxu0 %v26638_v37  ;;  %24596 = vmatmul.mubr.f32.vlgmr.msra.gmra.mrb[14].mxu1 %v29381_v31  ;;  %v8687_v37 = vand.u32 4294901760, %v8686_v58 }
 0xd9b   :  { %24342 = vmatprep.mubr.f32.mxu0 %v29390_v23  ;;  %26833 = vmatpush3.bf16.msra.mxu1 %v26830_v60  ;;  %v8694_v60 = vand.u32 4294901760, %v8693_v8 }
 0xd9c   :  { %24606 = vmatprep.mubr.f32.mxu1 %v29390_v23  ;;  %26643 = vmatprep.subr.bf16.mxu0 %v26642_v38 }
 0xd9d   :  { %26835 = vmatprep.subr.bf16.mxu1 %v26834_v41 }
 0xd9e   :  { %26645 = vmatpush3.bf16.msra.mxu0 %v26642_v38  ;;  %v26686_v38 = vpack.c.bf16 %v29437_v9, %v29435_v29  ;;  %v9639_v9 = vld [vmem:[#allocation2 + $0x248] sm:$0xff] }
 0xd9f   :  { %26837 = vmatpush3.bf16.msra.mxu1 %v26834_v41  ;;  %26647 = vmatprep.subr.bf16.mxu0 %v29354_v56  ;;  %v26690_v41 = vpack.c.bf16 %v8691_v57, %v8684_v7  ;;  %v9644_v7 = vand.u32 4294901760, %v9639_v9 }
 0xda0   :  { %26839 = vmatprep.subr.bf16.mxu1 %v29356_v63 }
 0xda1   :  { %24343 = vmatmul.mubr.f32.vlgmr.msra.gmra.mrb[18].mxu0 %v29387_v21 }
 0xda2   :  { %26649 = vmatpush3.bf16.msra.mxu0 %v29354_v56  ;;  %24607 = vmatmul.mubr.f32.vlgmr.msra.gmra.mrb[14].mxu1 %v29387_v21 }
 0xda3   :  { %24353 = vmatprep.mubr.f32.mxu0 %v29396_v12  ;;  %26841 = vmatpush3.bf16.msra.mxu1 %v29356_v63 }
 0xda4   :  { %24617 = vmatprep.mubr.f32.mxu1 %v29396_v12  ;;  %26651 = vmatprep.subr.bf16.mxu0 %v29362_v6 }
 0xda5   :  { %26843 = vmatprep.subr.bf16.mxu1 %v29364_v10 }
 0xda6   :  { %26653 = vmatpush3.bf16.msra.mxu0 %v29362_v6 }
 0xda7   :  { %26845 = vmatpush3.bf16.msra.mxu1 %v29364_v10  ;;  %26655 = vmatprep.subr.bf16.mxu0 %v29370_v14 }
 0xda8   :  { %26847 = vmatprep.subr.bf16.mxu1 %v29372_v28 }
 0xda9   :  { %24354 = vmatmul.mubr.f32.vlgmr.msra.gmra.mrb[18].mxu0 %v29393_v0 }
 0xdaa   :  { %26657 = vmatpush3.bf16.msra.mxu0 %v29370_v14  ;;  %24618 = vmatmul.mubr.f32.vlgmr.msra.gmra.mrb[14].mxu1 %v29393_v0  ;;  %v26702_v14 = vpack.c.bf16 %v8678_v27, %v8671_v1  ;;  %v9640_v1 = vld [vmem:[#allocation2 + $0x250] sm:$0xff]  ;;  %v26754_v27 = vpack.c.bf16 %v9224_v26, %v9217_v20 }
 0xdab   :  { %24364 = vmatprep.mubr.f32.mxu0 %v29384_v52  ;;  %26849 = vmatpush3.bf16.msra.mxu1 %v29372_v28  ;;  %v9107_v28 = vld [vmem:[#allocation2 + $0x1d8] sm:$0xff]  ;;  %v9647_v57 = vand.u32 4294901760, %v9640_v1 }
 0xdac   :  { %24628 = vmatprep.mubr.f32.mxu1 %v29384_v52  ;;  %26659 = vmatprep.subr.bf16.mxu0 %v29374_v45  ;;  %v9112_v15 = vand.u32 4294901760, %v9107_v28 }
 0xdad   :  { %26851 = vmatprep.subr.bf16.mxu1 %v29376_v11 }
 0xdae   :  { %26661 = vmatpush3.bf16.msra.mxu0 %v29374_v45  ;;  %v9108_v45 = vld [vmem:[#allocation2 + $0x1e0] sm:$0xff]  ;;  %v9202_v44 = vsub.f32 %v9107_v28, %v9112_v15 }
 0xdaf   :  { %26853 = vmatpush3.bf16.msra.mxu1 %v29376_v11  ;;  %26663 = vmatprep.subr.bf16.mxu0 %v29354_v56  ;;  %v26706_v11 = vpack.c.bf16 %v8692_v61, %v8685_v49  ;;  %v9115_v47 = vand.u32 4294901760, %v9108_v45  ;;  %v9734_v61 = vsub.f32 %v9639_v9, %v9644_v7 }
 0xdb0   :  { %26855 = vmatprep.subr.bf16.mxu1 %v29356_v63  ;;  %v9203_v33 = vand.u32 4294901760, %v9202_v44 }
 0xdb1   :  { %24365 = vmatmul.mubr.f32.vlgmr.msra.gmra.mrb[18].mxu0 %v29381_v31  ;;  %v9209_v55 = vsub.f32 %v9108_v45, %v9115_v47  ;;  %v29489_v16 = vpack.c.bf16 %v9115_v47, %v9112_v15 }
 0xdb2   :  { %26665 = vmatpush3.bf16.msra.mxu0 %v29354_v56  ;;  %24629 = vmatmul.mubr.f32.vlgmr.msra.gmra.mrb[14].mxu1 %v29381_v31  ;;  %v29461_v56 = vpack.c.bf16 %v8589_v19, %v8586_v5  ;;  %v9204_v22 = vsub.f32 %v9202_v44, %v9203_v33  ;;  %v26738_v19 = vpack.c.bf16 %v9223_v24, %v9216_v62 }
 0xdb3   :  { %24375 = vmatprep.mubr.f32.mxu0 %v29384_v52  ;;  %26857 = vmatpush3.bf16.msra.mxu1 %v29356_v63  ;;  %v8673_v63 = vand.u32 4294901760, %v8672_v50  ;;  %v9210_v59 = vand.u32 4294901760, %v9209_v55  ;;  %v26734_v5 = vpack.c.bf16 %v9209_v55, %v9202_v44  ;;  %v9642_v50 = vld [vmem:[#allocation2 + $0x260] sm:$0xff] }
 0xdb4   :  { %24639 = vmatprep.mubr.f32.mxu1 %v29384_v52  ;;  %26667 = vmatprep.subr.bf16.mxu0 %v29362_v6  ;;  %v9205_v54 = vand.u32 4294901760, %v9204_v22  ;;  %v9653_v49 = vand.u32 4294901760, %v9642_v50  ;;  %v10706_v22 = vld [vmem:[#allocation2 + $0x280] sm:$0xff] }
 0xdb5   :  { %26859 = vmatprep.subr.bf16.mxu1 %v29364_v10  ;;  %v9211_v3 = vsub.f32 %v9209_v55, %v9210_v59  ;;  %v26750_v29 = vpack.c.bf16 %v9210_v59, %v9203_v33  ;;  %v10703_v55 = vld [vmem:[#allocation2 + $0x268] sm:$0xff]  ;;  %v10704_v33 = vld [vmem:[#allocation2 + $0x270] sm:$0xff]  ;;  %v10717_v20 = vand.u32 4294901760, %v10706_v22 }
 0xdb6   :  { %26669 = vmatpush3.bf16.msra.mxu0 %v29362_v6  ;;  %v26678_v6 = vpack.c.bf16 %v8680_v40, %v8673_v63  ;;  %v9735_v63 = vand.u32 4294901760, %v9734_v61  ;;  %v9755_v8 = vsub.f32 %v9642_v50, %v9653_v49  ;;  %v10708_v62 = vand.u32 4294901760, %v10703_v55 }
 0xdb7   :  { %26861 = vmatpush3.bf16.msra.mxu1 %v29364_v10  ;;  %26671 = vmatprep.subr.bf16.mxu0 %v29451_v17  ;;  %v26682_v10 = vpack.c.bf16 %v8694_v60, %v8687_v37  ;;  %v9212_v18 = vand.u32 4294901760, %v9211_v3  ;;  %v10711_v24 = vand.u32 4294901760, %v10704_v33  ;;  %v10819_v34 = vsub.f32 %v10706_v22, %v10717_v20 }
 0xdb8   :  { %v9736_v37 = vsub.f32 %v9734_v61, %v9735_v63  ;;  %v10798_v26 = vsub.f32 %v10703_v55, %v10708_v62 }
 0xdb9   :  { %24376 = vmatmul.mubr.f32.vlgmr.msra.gmra.mrb[18].mxu0 %v29381_v31  ;;  %v26726_v2 = vpack.c.bf16 %v9212_v18, %v9205_v54 }
 0xdba   :  { %26673 = vmatpush3.bf16.msra.mxu0 %v29451_v17  ;;  %24640 = vmatmul.mubr.f32.vlgmr.msra.gmra.mrb[14].mxu1 %v29381_v31  ;;  %v10799_v54 = vand.u32 4294901760, %v10798_v26 }
 0xdbb   :  { %24386 = vmatprep.mubr.f32.mxu0 %v29402_v32  ;;  %26675 = vmatprep.subr.bf16.mxu0 %v29461_v56 }
 0xdbc   :  { %v10800_v36 = vsub.f32 %v10798_v26, %v10799_v54 }
 0xdbe   :  { %26677 = vmatpush3.bf16.msra.mxu0 %v29461_v56 }
 0xdbf   :  { %26679 = vmatprep.subr.bf16.mxu0 %v26678_v6 }
 0xdc1   :  { %24387 = vmatmul.mubr.f32.vlgmr.msra.gmra.mrb[20].mxu0 %v29404_v39 }
 0xdc2   :  { %26681 = vmatpush3.bf16.msra.mxu0 %v26678_v6  ;;  %24397 = vmatprep.mubr.f32.mxu0 %v29384_v52  ;;  %v29517_v6 = vpack.c.bf16 %v9647_v57, %v9644_v7 }
 0xdc3   :  { %26683 = vmatprep.subr.bf16.mxu0 %v26682_v10 }
 0xdc6   :  { %26685 = vmatpush3.bf16.msra.mxu0 %v26682_v10 }
 0xdc7   :  { %26687 = vmatprep.subr.bf16.mxu0 %v26686_v38 }
 0xdc9   :  { %24398 = vmatmul.mubr.f32.vlgmr.msra.gmra.mrb[20].mxu0 %v29381_v31 }
 0xdca   :  { %26689 = vmatpush3.bf16.msra.mxu0 %v26686_v38  ;;  %24408 = vmatprep.mubr.f32.mxu0 %v29390_v23  ;;  %v9756_v38 = vand.u32 4294901760, %v9755_v8 }
 0xdcb   :  { %26691 = vmatprep.subr.bf16.mxu0 %v26690_v41 }
 0xdce   :  { %26693 = vmatpush3.bf16.msra.mxu0 %v26690_v41 }
 0xdcf   :  { %26695 = vmatprep.subr.bf16.mxu0 %v29451_v17 }
 0xdd1   :  { %24409 = vmatmul.mubr.f32.vlgmr.msra.gmra.mrb[20].mxu0 %v29387_v21 }
 0xdd2   :  { %26697 = vmatpush3.bf16.msra.mxu0 %v29451_v17  ;;  %24419 = vmatprep.mubr.f32.mxu0 %v29396_v12 }
 0xdd3   :  { %26699 = vmatprep.subr.bf16.mxu0 %v29461_v56 }
 0xdd6   :  { %26701 = vmatpush3.bf16.msra.mxu0 %v29461_v56 }
 0xdd7   :  { %26703 = vmatprep.subr.bf16.mxu0 %v26702_v14 }
 0xdd9   :  { %24420 = vmatmul.mubr.f32.vlgmr.msra.gmra.mrb[20].mxu0 %v29393_v0 }
 0xdda   :  { %26705 = vmatpush3.bf16.msra.mxu0 %v26702_v14  ;;  %24430 = vmatprep.mubr.f32.mxu0 %v29384_v52  ;;  %v9737_v14 = vand.u32 4294901760, %v9736_v37 }
 0xddb   :  { %26707 = vmatprep.subr.bf16.mxu0 %v26706_v11 }
 0xdde   :  { %26709 = vmatpush3.bf16.msra.mxu0 %v26706_v11  ;;  %v9757_v11 = vsub.f32 %v9755_v8, %v9756_v38 }
 0xddf   :  { %26711 = vmatprep.subr.bf16.mxu0 %v29451_v17 }
 0xde0   :  { %v9758_v4 = vand.u32 4294901760, %v9757_v11 }
 0xde1   :  { %24431 = vmatmul.mubr.f32.vlgmr.msra.gmra.mrb[20].mxu0 %v29381_v31 }
 0xde2   :  { %26713 = vmatpush3.bf16.msra.mxu0 %v29451_v17  ;;  %24441 = vmatprep.mubr.f32.mxu0 %v29384_v52  ;;  %v9641_v17 = vld [vmem:[#allocation2 + $0x258] sm:$0xff] }
 0xde3   :  { %26715 = vmatprep.subr.bf16.mxu0 %v29461_v56  ;;  %v9650_v48 = vand.u32 4294901760, %v9641_v17 }
 0xde5   :  { %v9748_v58 = vsub.f32 %v9641_v17, %v9650_v48  ;;  %v29521_v41 = vpack.c.bf16 %v9653_v49, %v9650_v48 }
 0xde6   :  { %26717 = vmatpush3.bf16.msra.mxu0 %v29461_v56  ;;  %v9741_v56 = vsub.f32 %v9640_v1, %v9647_v57 }
 0xde7   :  { %26719 = vmatprep.subr.bf16.mxu0 %v29489_v16  ;;  %v9749_v10 = vand.u32 4294901760, %v9748_v58  ;;  %v26786_v42 = vpack.c.bf16 %v9755_v8, %v9748_v58 }
 0xde8   :  { %v9742_v40 = vand.u32 4294901760, %v9741_v56  ;;  %v26782_v25 = vpack.c.bf16 %v9741_v56, %v9734_v61 }
 0xde9   :  { %24442 = vmatmul.mubr.f32.vlgmr.msra.gmra.mrb[20].mxu0 %v29381_v31  ;;  %v9750_v45 = vsub.f32 %v9748_v58, %v9749_v10  ;;  %v26802_v59 = vpack.c.bf16 %v9756_v38, %v9749_v10 }
 0xdea   :  { %26721 = vmatpush3.bf16.msra.mxu0 %v29489_v16  ;;  %24452 = vmatprep.mubr.f32.mxu0 %v29402_v32  ;;  %v9743_v60 = vsub.f32 %v9741_v56, %v9742_v40  ;;  %v26798_v44 = vpack.c.bf16 %v9742_v40, %v9735_v63 }
 0xdeb   :  { %26723 = vmatprep.subr.bf16.mxu0 %v29493_v51  ;;  %v9751_v47 = vand.u32 4294901760, %v9750_v45 }
 0xdec   :  { %v9744_v28 = vand.u32 4294901760, %v9743_v60 }
 0xded   :  { %v26778_v35 = vpack.c.bf16 %v9758_v4, %v9751_v47 }
 0xdee   :  { %26725 = vmatpush3.bf16.msra.mxu0 %v29493_v51  ;;  %v26774_v15 = vpack.c.bf16 %v9744_v28, %v9737_v14 }
 0xdef   :  { %26727 = vmatprep.subr.bf16.mxu0 %v26726_v2 }
 0xdf1   :  { %24453 = vmatmul.mubr.f32.vlgmr.msra.gmra.mrb[22].mxu0 %v29404_v39 }
 0xdf2   :  { %26729 = vmatpush3.bf16.msra.mxu0 %v26726_v2  ;;  %24463 = vmatprep.mubr.f32.mxu0 %v29384_v52  ;;  %v26862_v2 = vpack.c.bf16 %v10711_v24, %v10708_v62 }
 0xdf3   :  { %26731 = vmatprep.subr.bf16.mxu0 %v26730_v53 }
 0xdf6   :  { %26733 = vmatpush3.bf16.msra.mxu0 %v26730_v53 }
 0xdf7   :  { %26735 = vmatprep.subr.bf16.mxu0 %v26734_v5 }
 0xdf9   :  { %24464 = vmatmul.mubr.f32.vlgmr.msra.gmra.mrb[22].mxu0 %v29381_v31 }
 0xdfa   :  { %26737 = vmatpush3.bf16.msra.mxu0 %v26734_v5  ;;  %24474 = vmatprep.mubr.f32.mxu0 %v29390_v23  ;;  %v10820_v5 = vand.u32 4294901760, %v10819_v34 }
 0xdfb   :  { %26739 = vmatprep.subr.bf16.mxu0 %v26738_v19 }
 0xdfe   :  { %26741 = vmatpush3.bf16.msra.mxu0 %v26738_v19 }
 0xdff   :  { %26743 = vmatprep.subr.bf16.mxu0 %v29489_v16 }
 0xe01   :  { %24475 = vmatmul.mubr.f32.vlgmr.msra.gmra.mrb[22].mxu0 %v29387_v21 }
 0xe02   :  { %26745 = vmatpush3.bf16.msra.mxu0 %v29489_v16  ;;  %24485 = vmatprep.mubr.f32.mxu0 %v29396_v12 }
 0xe03   :  { %26747 = vmatprep.subr.bf16.mxu0 %v29493_v51 }
 0xe06   :  { %26749 = vmatpush3.bf16.msra.mxu0 %v29493_v51 }
 0xe07   :  { %26751 = vmatprep.subr.bf16.mxu0 %v26750_v29 }
 0xe09   :  { %24486 = vmatmul.mubr.f32.vlgmr.msra.gmra.mrb[22].mxu0 %v29393_v0 }
 0xe0a   :  { %26753 = vmatpush3.bf16.msra.mxu0 %v26750_v29  ;;  %24496 = vmatprep.mubr.f32.mxu0 %v29384_v52  ;;  %v10801_v29 = vand.u32 4294901760, %v10800_v36 }
 0xe0b   :  { %26755 = vmatprep.subr.bf16.mxu0 %v26754_v27 }
 0xe0e   :  { %26757 = vmatpush3.bf16.msra.mxu0 %v26754_v27  ;;  %v10821_v27 = vsub.f32 %v10819_v34, %v10820_v5 }
 0xe0f   :  { %26759 = vmatprep.subr.bf16.mxu0 %v29489_v16 }
 0xe10   :  { %v10822_v17 = vand.u32 4294901760, %v10821_v27 }
 0xe11   :  { %24497 = vmatmul.mubr.f32.vlgmr.msra.gmra.mrb[22].mxu0 %v29381_v31 }
 0xe12   :  { %26761 = vmatpush3.bf16.msra.mxu0 %v29489_v16  ;;  %24507 = vmatprep.mubr.f32.mxu0 %v29384_v52  ;;  %v10705_v16 = vld [vmem:[#allocation2 + $0x278] sm:$0xff] }
 0xe13   :  { %26763 = vmatprep.subr.bf16.mxu0 %v29493_v51  ;;  %v10714_v3 = vand.u32 4294901760, %v10705_v16 }
 0xe15   :  { %v10812_v30 = vsub.f32 %v10705_v16, %v10714_v3  ;;  %v26866_v19 = vpack.c.bf16 %v10717_v20, %v10714_v3 }
 0xe16   :  { %26765 = vmatpush3.bf16.msra.mxu0 %v29493_v51  ;;  %v10805_v51 = vsub.f32 %v10704_v33, %v10711_v24 }
 0xe17   :  { %26767 = vmatprep.subr.bf16.mxu0 %v29517_v6  ;;  %v10813_v53 = vand.u32 4294901760, %v10812_v30  ;;  %v26882_v49 = vpack.c.bf16 %v10819_v34, %v10812_v30 }
 0xe18   :  { %v10806_v18 = vand.u32 4294901760, %v10805_v51  ;;  %v26878_v48 = vpack.c.bf16 %v10805_v51, %v10798_v26 }
 0xe19   :  { %24508 = vmatmul.mubr.f32.vlgmr.msra.gmra.mrb[22].mxu0 %v29381_v31  ;;  %v10814_v1 = vsub.f32 %v10812_v30, %v10813_v53 }
 0xe1a   :  { %26769 = vmatpush3.bf16.msra.mxu0 %v29517_v6  ;;  %24518 = vmatprep.mubr.f32.mxu0 %v29402_v32  ;;  %v10807_v13 = vsub.f32 %v10805_v51, %v10806_v18 }
 0xe1b   :  { %26771 = vmatprep.subr.bf16.mxu0 %v29521_v41  ;;  %v10815_v57 = vand.u32 4294901760, %v10814_v1 }
 0xe1c   :  { %v10808_v9 = vand.u32 4294901760, %v10807_v13 }
 0xe1d   :  { %v26874_v50 = vpack.c.bf16 %v10822_v17, %v10815_v57 }
 0xe1e   :  { %26773 = vmatpush3.bf16.msra.mxu0 %v29521_v41  ;;  %v26870_v7 = vpack.c.bf16 %v10808_v9, %v10801_v29 }
 0xe1f   :  { %26775 = vmatprep.subr.bf16.mxu0 %v26774_v15 }
 0xe21   :  { %24519 = vmatmul.mubr.f32.vlgmr.msra.gmra.mrb[24].mxu0 %v29404_v39 }
 0xe22   :  { %26777 = vmatpush3.bf16.msra.mxu0 %v26774_v15  ;;  %24529 = vmatprep.mubr.f32.mxu0 %v29384_v52 }
 0xe23   :  { %26779 = vmatprep.subr.bf16.mxu0 %v26778_v35 }
 0xe26   :  { %26781 = vmatpush3.bf16.msra.mxu0 %v26778_v35 }
 0xe27   :  { %26783 = vmatprep.subr.bf16.mxu0 %v26782_v25 }
 0xe29   :  { %24530 = vmatmul.mubr.f32.vlgmr.msra.gmra.mrb[24].mxu0 %v29381_v31 }
 0xe2a   :  { %26785 = vmatpush3.bf16.msra.mxu0 %v26782_v25  ;;  %24540 = vmatprep.mubr.f32.mxu0 %v29390_v23 }
 0xe2b   :  { %26787 = vmatprep.subr.bf16.mxu0 %v26786_v42 }
 0xe2e   :  { %26789 = vmatpush3.bf16.msra.mxu0 %v26786_v42 }
 0xe2f   :  { %26791 = vmatprep.subr.bf16.mxu0 %v29517_v6 }
 0xe31   :  { %24541 = vmatmul.mubr.f32.vlgmr.msra.gmra.mrb[24].mxu0 %v29387_v21 }
 0xe32   :  { %26793 = vmatpush3.bf16.msra.mxu0 %v29517_v6  ;;  %24551 = vmatprep.mubr.f32.mxu0 %v29396_v12 }
 0xe33   :  { %26795 = vmatprep.subr.bf16.mxu0 %v29521_v41 }
 0xe36   :  { %26797 = vmatpush3.bf16.msra.mxu0 %v29521_v41 }
 0xe37   :  { %26799 = vmatprep.subr.bf16.mxu0 %v26798_v44 }
 0xe39   :  { %24552 = vmatmul.mubr.f32.vlgmr.msra.gmra.mrb[24].mxu0 %v29393_v0 }
 0xe3a   :  { %26801 = vmatpush3.bf16.msra.mxu0 %v26798_v44  ;;  %24562 = vmatprep.mubr.f32.mxu0 %v29384_v52 }
 0xe3b   :  { %26803 = vmatprep.subr.bf16.mxu0 %v26802_v59 }
 0xe3e   :  { %26805 = vmatpush3.bf16.msra.mxu0 %v26802_v59 }
 0xe3f   :  { %26807 = vmatprep.subr.bf16.mxu0 %v29517_v6 }
 0xe41   :  { %24563 = vmatmul.mubr.f32.vlgmr.msra.gmra.mrb[24].mxu0 %v29381_v31 }
 0xe42   :  { %26809 = vmatpush3.bf16.msra.mxu0 %v29517_v6  ;;  %24573 = vmatprep.mubr.f32.mxu0 %v29384_v52 }
 0xe43   :  { %26811 = vmatprep.subr.bf16.mxu0 %v29521_v41 }
 0xe46   :  { %26813 = vmatpush3.bf16.msra.mxu0 %v29521_v41 }
 0xe47   :  { %26863 = vmatprep.subr.bf16.mxu0 %v26862_v2 }
 0xe49   :  { %24574 = vmatmul.mubr.f32.vlgmr.msra.gmra.mrb[24].mxu0 %v29381_v31 }
 0xe4a   :  { %26865 = vmatpush3.bf16.msra.mxu0 %v26862_v2  ;;  %24650 = vmatprep.mubr.f32.mxu0 %v29402_v32  ;;  %v26894_v32 = vpack.c.bf16 %v10806_v18, %v10799_v54 }
 0xe4b   :  { %26867 = vmatprep.subr.bf16.mxu0 %v26866_v19 }
 0xe4e   :  { %26869 = vmatpush3.bf16.msra.mxu0 %v26866_v19 }
 0xe4f   :  { %26871 = vmatprep.subr.bf16.mxu0 %v26870_v7 }
 0xe51   :  { %24651 = vmatmul.mubr.f32.vlgmr.msra.gmra.mrb[26].mxu0 %v29404_v39  ;;  %v26898_v39 = vpack.c.bf16 %v10820_v5, %v10813_v53 }
 0xe52   :  { %26873 = vmatpush3.bf16.msra.mxu0 %v26870_v7  ;;  %24661 = vmatprep.mubr.f32.mxu0 %v29384_v52 }
 0xe53   :  { %26875 = vmatprep.subr.bf16.mxu0 %v26874_v50 }
 0xe56   :  { %26877 = vmatpush3.bf16.msra.mxu0 %v26874_v50 }
 0xe57   :  { %26879 = vmatprep.subr.bf16.mxu0 %v26878_v48 }
 0xe59   :  { %24662 = vmatmul.mubr.f32.vlgmr.msra.gmra.mrb[26].mxu0 %v29381_v31 }
 0xe5a   :  { %26881 = vmatpush3.bf16.msra.mxu0 %v26878_v48  ;;  %24672 = vmatprep.mubr.f32.mxu0 %v29390_v23 }
 0xe5b   :  { %26883 = vmatprep.subr.bf16.mxu0 %v26882_v49 }
 0xe5e   :  { %26885 = vmatpush3.bf16.msra.mxu0 %v26882_v49 }
 0xe5f   :  { %26887 = vmatprep.subr.bf16.mxu0 %v26862_v2 }
 0xe61   :  { %24673 = vmatmul.mubr.f32.vlgmr.msra.gmra.mrb[26].mxu0 %v29387_v21 }
 0xe62   :  { %26889 = vmatpush3.bf16.msra.mxu0 %v26862_v2  ;;  %24683 = vmatprep.mubr.f32.mxu0 %v29396_v12 }
 0xe63   :  { %26891 = vmatprep.subr.bf16.mxu0 %v26866_v19 }
 0xe66   :  { %26893 = vmatpush3.bf16.msra.mxu0 %v26866_v19 }
 0xe67   :  { %26895 = vmatprep.subr.bf16.mxu0 %v26894_v32 }
 0xe69   :  { %24684 = vmatmul.mubr.f32.vlgmr.msra.gmra.mrb[26].mxu0 %v29393_v0 }
 0xe6a   :  { %26897 = vmatpush3.bf16.msra.mxu0 %v26894_v32  ;;  %24694 = vmatprep.mubr.f32.mxu0 %v29384_v52 }
 0xe6b   :  { %26899 = vmatprep.subr.bf16.mxu0 %v26898_v39 }
 0xe6e   :  { %26901 = vmatpush3.bf16.msra.mxu0 %v26898_v39 }
 0xe6f   :  { %26903 = vmatprep.subr.bf16.mxu0 %v26862_v2 }
 0xe71   :  { %24695 = vmatmul.mubr.f32.vlgmr.msra.gmra.mrb[26].mxu0 %v29381_v31 }
 0xe72   :  { %26905 = vmatpush3.bf16.msra.mxu0 %v26862_v2  ;;  %24705 = vmatprep.mubr.f32.mxu0 %v29384_v52 }
 0xe73   :  { %26907 = vmatprep.subr.bf16.mxu0 %v26866_v19 }
 0xe76   :  { %26909 = vmatpush3.bf16.msra.mxu0 %v26866_v19 }
 0xe79   :  { %24706 = vmatmul.mubr.f32.vlgmr.msra.gmra.mrb[26].mxu0 %v29381_v31 }
 0xe8c   :  { %v24377_v21 = vpop.f32.mrb[18].mxu0 }
 0xe8d   :  { %v24641_v23 = vpop.f32.mrb[14].mxu1  ;;  %v8565_v12 = vpop.f32.mrb[19].mxu0  ;;  %v11236_v36 = vmul.f32 0.25, %v24377_v21 }
 0xe8e   :  { %v11937_v61 = vand.u32 4294901760, %v24641_v23  ;;  %v11235_v0 = vmul.f32 0.25, %v8565_v12  ;;  %v10693_v56 = vpop.f32.mrb[15].mxu1 }
 0xe8f   :  { %v11934_v63 = vand.u32 4294901760, %v10693_v56  ;;  %v11243_v53 = vsel %vm31312_vm0, %v11236_v36, 0  ;;  %v28212_v36 = vld [vmem:[#allocation2 + $0x418] sm:$0xff] }
 0xe90   :  { %v12051_v40 = vsub.f32 %v24641_v23, %v11937_v61  ;;  %v11240_v58 = vsel %vm31312_vm0, %v11235_v0, 0  ;;  %v29590_v29 = vand.u32 4294901760, %v11243_v53 }
 0xe91   :  { %v29561_v8 = vand.u32 4294901760, %v11240_v58  ;;  %v29563_v6 = vpack.c.bf16 %v11937_v61, %v11934_v63  ;;  %v12044_v37 = vsub.f32 %v10693_v56, %v11934_v63 }
 0xe92   :  { %v12052_v52 = vand.u32 4294901760, %v12051_v40  ;;  %v29596_v7 = vsub.f32 %v11243_v53, %v29590_v29 }
 0xe93   :  { %v29566_v60 = vsub.f32 %v11240_v58, %v29561_v8  ;;  %v12045_v31 = vand.u32 4294901760, %v12044_v37  ;;  %26959 = vmatprep.subr.bf16.mxu0 %v29563_v6  ;;  %v29569_v10 = vpack.c.bf16 %v12051_v40, %v12044_v37 }
 0xe94   :  { %v12053_v38 = vsub.f32 %v12051_v40, %v12052_v52  ;;  %26961 = vmatpush3.bf16.msra.mxu0 %v29563_v6  ;;  %v11344_v23 = vand.u32 4294901760, %v29596_v7 }
 0xe95   :  { %v12046_v41 = vsub.f32 %v12044_v37, %v12045_v31  ;;  %v11334_v14 = vand.u32 4294901760, %v29566_v60  ;;  %v29573_v28 = vpack.c.bf16 %v12052_v52, %v12045_v31 }
 0xe96   :  { %v12054_v45 = vand.u32 4294901760, %v12053_v38  ;;  %v11345_v31 = vsub.f32 %v29596_v7, %v11344_v23 }
 0xe97   :  { %v11335_v11 = vsub.f32 %v29566_v60, %v11334_v14  ;;  %v12047_v15 = vand.u32 4294901760, %v12046_v41 }
 0xe99   :  { %v11336_v47 = vand.u32 4294901760, %v11335_v11  ;;  %v29578_v4 = vpack.c.bf16 %v12054_v45, %v12047_v15 }
 0xe9b   :  { %24716 = vmatprep.mubr.f32.mxu1 %v11336_v47  ;;  %v11346_v47 = vand.u32 4294901760, %v11345_v31 }
 0xebc   :  { %v24443_v35 = vpop.f32.mrb[20].mxu0 }
 0xebd   :  { %v9097_v25 = vpop.f32.mrb[21].mxu0  ;;  %v11238_v5 = vmul.f32 0.25, %v24443_v35 }
 0xebe   :  { %v11237_v13 = vmul.f32 0.25, %v9097_v25 }
 0xebf   :  { %v11249_v9 = vsel %vm31312_vm0, %v11238_v5, 0  ;;  %v28213_v5 = vld [vmem:[#allocation2 + $0x410] sm:$0xff] }
 0xec0   :  { %v11246_v19 = vsel %vm31312_vm0, %v11237_v13, 0  ;;  %v29598_v57 = vand.u32 4294901760, %v11249_v9 }
 0xec1   :  { %v29593_v1 = vand.u32 4294901760, %v11246_v19 }
 0xec2   :  { %v29607_v12 = vsub.f32 %v11249_v9, %v29598_v57 }
 0xec3   :  { %v29602_v48 = vsub.f32 %v11246_v19, %v29593_v1 }
 0xec4   :  { %v11364_v38 = vand.u32 4294901760, %v29607_v12 }
 0xec5   :  { %v11354_v63 = vand.u32 4294901760, %v29602_v48 }
 0xec6   :  { %v11365_v25 = vsub.f32 %v29607_v12, %v11364_v38 }
 0xec7   :  { %v11355_v45 = vsub.f32 %v29602_v48, %v11354_v63 }
 0xeec   :  { %v24509_v42 = vpop.f32.mrb[22].mxu0 }
 0xeed   :  { %v11255_v44 = vsel %vm31312_vm0, %v24509_v42, 0  ;;  %v9629_v55 = vpop.f32.mrb[23].mxu0  ;;  %v11356_v42 = vand.u32 4294901760, %v11355_v45 }
 0xeee   :  { %v11267_v33 = vand.u32 4294901760, %v11255_v44  ;;  %v11252_v59 = vsel %vm31312_vm0, %v9629_v55, 0 }
 0xeef   :  { %v11264_v62 = vand.u32 4294901760, %v11252_v59 }
 0xef0   :  { %v11381_v24 = vsub.f32 %v11255_v44, %v11267_v33  ;;  %v11366_v44 = vand.u32 4294901760, %v11365_v25 }
 0xef1   :  { %v29582_v16 = vpack.c.bf16 %v11267_v33, %v11264_v62  ;;  %v11374_v22 = vsub.f32 %v11252_v59, %v11264_v62 }
 0xef2   :  { %v11382_v3 = vand.u32 4294901760, %v11381_v24 }
 0xef3   :  { %v11375_v20 = vand.u32 4294901760, %v11374_v22  ;;  %26911 = vmatprep.subr.bf16.mxu1 %v29582_v16  ;;  %v26926_v26 = vpack.c.bf16 %v11381_v24, %v11374_v22 }
 0xef4   :  { %v11383_v51 = vsub.f32 %v11381_v24, %v11382_v3  ;;  %26913 = vmatpush3.bf16.xpose.msra.mxu1 %v29582_v16 }
 0xef5   :  { %v11376_v54 = vsub.f32 %v11374_v22, %v11375_v20  ;;  %v29586_v18 = vpack.c.bf16 %v11382_v3, %v11375_v20 }
 0xef6   :  { %v11384_v30 = vand.u32 4294901760, %v11383_v51 }
 0xef7   :  { %v11377_v34 = vand.u32 4294901760, %v11376_v54 }
 0xef9   :  { %v26918_v2 = vpack.c.bf16 %v11384_v30, %v11377_v34 }
 0xf1c   :  { %v24575_v27 = vpop.f32.mrb[24].mxu0 }
 0xf1d   :  { %v11261_v17 = vsel %vm31312_vm0, %v24575_v27, 0  ;;  %v10161_v50 = vpop.f32.mrb[25].mxu0  ;;  %v28214_v27 = vld [vmem:[#allocation2 + $0x428] sm:$0xff] }
 0xf1e   :  { %v11273_v49 = vand.u32 4294901760, %v11261_v17  ;;  %v11258_v32 = vsel %vm31312_vm0, %v10161_v50, 0 }
 0xf1f   :  { %v11270_v39 = vand.u32 4294901760, %v11258_v32 }
 0xf20   :  { %v11395_v21 = vsub.f32 %v11261_v17, %v11273_v49 }
 0xf21   :  { %v29609_v61 = vpack.c.bf16 %v11273_v49, %v11270_v39  ;;  %v11388_v0 = vsub.f32 %v11258_v32, %v11270_v39 }
 0xf22   :  { %v11396_v56 = vand.u32 4294901760, %v11395_v21 }
 0xf23   :  { %v11389_v40 = vand.u32 4294901760, %v11388_v0  ;;  %26915 = vmatprep.subr.bf16.mxu1 %v29609_v61  ;;  %v26930_v58 = vpack.c.bf16 %v11395_v21, %v11388_v0 }
 0xf24   :  { %v11397_v37 = vsub.f32 %v11395_v21, %v11396_v56  ;;  %26917 = vmatpush3.bf16.xpose.msra.mxu1 %v29609_v61 }
 0xf25   :  { %v11390_v52 = vsub.f32 %v11388_v0, %v11389_v40  ;;  %26919 = vmatprep.subr.bf16.mxu1 %v26918_v2  ;;  %v26946_v41 = vpack.c.bf16 %v11396_v56, %v11389_v40 }
 0xf26   :  { %v11398_v11 = vand.u32 4294901760, %v11397_v37 }
 0xf27   :  { %v11391_v15 = vand.u32 4294901760, %v11390_v52 }
 0xf29   :  { %v26922_v35 = vpack.c.bf16 %v11398_v11, %v11391_v15 }
 0xf2b   :  { %24717 = vmatmul.mubr.f32.vlgmr.msra.gmra.mrb[16].mxu1 %v11346_v47 }
 0xf2c   :  { %24719 = vmatprep.mubr.f32.mxu1 %v11356_v42  ;;  %26921 = vmatpush3.bf16.xpose.msra.mxu1 %v26918_v2 }
 0xf2d   :  { %26923 = vmatprep.subr.bf16.mxu1 %v26922_v35 }
 0xf2f   :  { %24720 = vmatmul.mubr.f32.gmra.mrb[18].mxu1 %v11366_v44 }
 0xf30   :  { %24730 = vmatprep.mubr.f32.mxu1 %v29561_v8 }
 0xf34   :  { %26925 = vmatpush3.bf16.xpose.msra.mxu1 %v26922_v35 }
 0xf35   :  { %26927 = vmatprep.subr.bf16.mxu1 %v26926_v26 }
 0xf3b   :  { %24731 = vmatmul.mubr.f32.vlgmr.msra.gmra.mrb[16].mxu1 %v29590_v29 }
 0xf3c   :  { %24733 = vmatprep.mubr.f32.mxu1 %v29593_v1  ;;  %26929 = vmatpush3.bf16.xpose.msra.mxu1 %v26926_v26 }
 0xf3d   :  { %26931 = vmatprep.subr.bf16.mxu1 %v26930_v58 }
 0xf3f   :  { %24734 = vmatmul.mubr.f32.gmra.mrb[18].mxu1 %v29598_v57 }
 0xf40   :  { %24744 = vmatprep.mubr.f32.mxu1 %v29566_v60 }
 0xf44   :  { %26933 = vmatpush3.bf16.xpose.msra.mxu1 %v26930_v58 }
 0xf45   :  { %26935 = vmatprep.subr.bf16.mxu1 %v29582_v16 }
 0xf4b   :  { %24745 = vmatmul.mubr.f32.vlgmr.msra.gmra.mrb[16].mxu1 %v29596_v7 }
 0xf4c   :  { %v24707_v55 = vpop.f32.mrb[26].mxu0  ;;  %24747 = vmatprep.mubr.f32.mxu1 %v29602_v48  ;;  %26937 = vmatpush3.bf16.xpose.msra.mxu1 %v29582_v16 }
 0xf4d   :  { %v11943_v33 = vand.u32 4294901760, %v24707_v55  ;;  %v11225_v59 = vpop.f32.mrb[27].mxu0  ;;  %26939 = vmatprep.subr.bf16.mxu1 %v29609_v61 }
 0xf4e   :  { %v11940_v62 = vand.u32 4294901760, %v11225_v59 }
 0xf4f   :  { %v12065_v24 = vsub.f32 %v24707_v55, %v11943_v33  ;;  %24748 = vmatmul.mubr.f32.gmra.mrb[18].mxu1 %v29607_v12 }
 0xf50   :  { %v29631_v22 = vpack.c.bf16 %v11943_v33, %v11940_v62  ;;  %v12058_v3 = vsub.f32 %v11225_v59, %v11940_v62  ;;  %24758 = vmatprep.mubr.f32.mxu1 %v11334_v14 }
 0xf51   :  { %v12066_v20 = vand.u32 4294901760, %v12065_v24 }
 0xf52   :  { %v12059_v26 = vand.u32 4294901760, %v12058_v3  ;;  %26963 = vmatprep.subr.bf16.mxu0 %v29631_v22  ;;  %v29636_v51 = vpack.c.bf16 %v12065_v24, %v12058_v3 }
 0xf53   :  { %v12067_v54 = vsub.f32 %v12065_v24, %v12066_v20  ;;  %26965 = vmatpush3.bf16.msra.mxu0 %v29631_v22 }
 0xf54   :  { %v12060_v30 = vsub.f32 %v12058_v3, %v12059_v26  ;;  %26941 = vmatpush3.bf16.xpose.msra.mxu1 %v29609_v61  ;;  %26967 = vmatprep.subr.bf16.mxu0 %v29578_v4  ;;  %v29641_v34 = vpack.c.bf16 %v12066_v20, %v12059_v26 }
 0xf55   :  { %26943 = vmatprep.subr.bf16.mxu1 %v29586_v18  ;;  %v12068_v60 = vand.u32 4294901760, %v12067_v54 }
 0xf56   :  { %v12061_v14 = vand.u32 4294901760, %v12060_v30 }
 0xf58   :  { %v29644_v2 = vpack.c.bf16 %v12068_v60, %v12061_v14 }
 0xf5b   :  { %24759 = vmatmul.mubr.f32.vlgmr.msra.gmra.mrb[16].mxu1 %v11344_v23 }
 0xf5c   :  { %24761 = vmatprep.mubr.f32.mxu1 %v11354_v63  ;;  %26945 = vmatpush3.bf16.xpose.msra.mxu1 %v29586_v18 }
 0xf5d   :  { %26947 = vmatprep.subr.bf16.mxu1 %v26946_v41 }
 0xf5f   :  { %24762 = vmatmul.mubr.f32.gmra.mrb[18].mxu1 %v11364_v38 }
 0xf60   :  { %24772 = vmatprep.mubr.f32.mxu1 %v29561_v8 }
 0xf64   :  { %26949 = vmatpush3.bf16.xpose.msra.mxu1 %v26946_v41 }
 0xf65   :  { %26951 = vmatprep.subr.bf16.mxu1 %v29582_v16 }
 0xf6b   :  { %24773 = vmatmul.mubr.f32.vlgmr.msra.gmra.mrb[16].mxu1 %v29590_v29 }
 0xf6c   :  { %24775 = vmatprep.mubr.f32.mxu1 %v29593_v1  ;;  %26953 = vmatpush3.bf16.xpose.msra.mxu1 %v29582_v16 }
 0xf6d   :  { %26955 = vmatprep.subr.bf16.mxu1 %v29609_v61 }
 0xf6f   :  { %24776 = vmatmul.mubr.f32.gmra.mrb[18].mxu1 %v29598_v57 }
 0xf70   :  { %24786 = vmatprep.mubr.f32.mxu1 %v29561_v8 }
 0xf74   :  { %26957 = vmatpush3.bf16.xpose.msra.mxu1 %v29609_v61 }
 0xf7b   :  { %24787 = vmatmul.mubr.f32.vlgmr.msra.gmra.mrb[16].mxu1 %v29590_v29  ;;  %v28215_v29 = vld [vmem:[#allocation2 + $0x420] sm:$0xff] }
 0xf7c   :  { %24789 = vmatprep.mubr.f32.mxu1 %v29593_v1 }
 0xf7f   :  { %24790 = vmatmul.mubr.f32.gmra.mrb[18].mxu1 %v29598_v57 }
0x104e   :  { %v24788_v18 = vpop.f32.mrb[16].mxu1 }
0x104f   :  { %v27594_v13 = vadd.f32 %v28212_v36, %v24788_v18  ;;  %v11855_v53 = vpop.f32.mrb[17].mxu1 }
0x1050   :  { %v27595_v16 = vadd.f32 %v28213_v5, %v11855_v53 }
0x1051   :  { %v11880_v19 = vsel %vm31313_vm1, %v27594_v13, -inf }
0x1052   :  { %11881 = vmax.xlane.f32.xlu1 %v11880_v19  ;;  %v24791_v9 = vpop.f32.mrb[18].mxu1  ;;  %v11877_v8 = vsel %vm31313_vm1, %v27595_v16, -inf }
0x1053   :  { %v27596_v7 = vadd.f32 %v28214_v27, %v24791_v9  ;;  %v11867_v17 = vpop.f32.mrb[19].mxu1  ;;  %11878 = vmax.xlane.f32.xlu0 %v11877_v8 }
0x1054   :  { %v27597_v1 = vadd.f32 %v28215_v29, %v11867_v17 }
0x1055   :  { %v11886_v57 = vsel %vm31313_vm1, %v27596_v7, -inf }
0x1056   :  { %11887 = vmax.xlane.f32.xlu1 %v11886_v57  ;;  %v11883_v50 = vsel %vm31313_vm1, %v27597_v1, -inf }
0x1057   :  { %11884 = vmax.xlane.f32.xlu0 %v11883_v50 }
0x10df   :  { %v11882_v48 = vpop.xlane.xlu1 %11881 }
0x10e0   :  { %v11890_v49 = vsub.f32 %v27594_v13, %v11882_v48  ;;  %v11879_v32 = vpop.xlane.xlu0 %11878 }
0x10e1   :  { %v11889_v39 = vsub.f32 %v27595_v16, %v11879_v32 }
0x10e2   :  { %v11895_v21 = vmul.f32 1.442695, %v11890_v49 }
0x10e3   :  { %v11893_v23 = vmul.f32 1.442695, %v11889_v39  ;;  %v11888_v12 = vpop.xlane.xlu1 %11887 }
0x10e4   :  { %28144 = vpow2.f32 %v11895_v21  ;;  %v11892_v61 = vsub.f32 %v27596_v7, %v11888_v12  ;;  %v11885_v0 = vpop.xlane.xlu0 %11884 }
0x10e5   :  { %28146 = vpow2.f32 %v11893_v23  ;;  %v11891_v56 = vsub.f32 %v27597_v1, %v11885_v0 }
0x10e6   :  { %v11899_v63 = vmul.f32 1.442695, %v11892_v61 }
0x10e7   :  { %v11897_v40 = vmul.f32 1.442695, %v11891_v56 }
0x10e8   :  { %28148 = vpow2.f32 %v11899_v63 }
0x10e9   :  { %28150 = vpow2.f32 %v11897_v40 }
0x10ee   :  { %v28145_v58 = vpop.eup %28144 }
0x10ef   :  { %v28147_v37 = vpop.eup %28146  ;;  %v11904_v52 = vsel %vm31313_vm1, %v28145_v58, 0.0 }
0x10f0   :  { %11905 = vadd.xlane.f32.xlu1 %v11904_v52  ;;  %v11901_v31 = vsel %vm31313_vm1, %v28147_v37, 0.0 }
0x10f1   :  { %11902 = vadd.xlane.f32.xlu0 %v11901_v31 }
0x10f2   :  { %v28149_v38 = vpop.eup %28148 }
0x10f3   :  { %v28151_v41 = vpop.eup %28150  ;;  %v11910_v45 = vsel %vm31313_vm1, %v28149_v38, 0.0 }
0x10f4   :  { %11911 = vadd.xlane.f32.xlu1 %v11910_v45  ;;  %v11907_v11 = vsel %vm31313_vm1, %v28151_v41, 0.0 }
0x10f5   :  { %11908 = vadd.xlane.f32.xlu0 %v11907_v11 }
0x117d   :  { %v11906_v15 = vpop.xlane.xlu1 %11905 }
0x117e   :  { %28152 = vrcp.f32 %v11906_v15  ;;  %v11903_v47 = vpop.xlane.xlu0 %11902 }
0x117f   :  { %28154 = vrcp.f32 %v11903_v47 }
0x1181   :  { %v11912_v35 = vpop.xlane.xlu1 %11911 }
0x1182   :  { %28156 = vrcp.f32 %v11912_v35  ;;  %v11909_v25 = vpop.xlane.xlu0 %11908 }
0x1183   :  { %28158 = vrcp.f32 %v11909_v25 }
0x1188   :  { %v28153_v42 = vpop.eup %28152 }
0x1189   :  { %v28155_v44 = vpop.eup %28154  ;;  %v11918_v55 = vmul.f32 %v28153_v42, %v28145_v58 }
0x118a   :  { %v11917_v33 = vmul.f32 %v28155_v44, %v28147_v37 }
0x118b   :  { %v11925_v59 = vsel %vm31313_vm1, %v11918_v55, 0  ;;  %v12547_v55 = vld [vmem:[#allocation2 + $0x218] sm:$0xff] }
0x118c   :  { %v28157_v62 = vpop.eup %28156  ;;  %v11922_v24 = vsel %vm31313_vm1, %v11917_v33, 0  ;;  %v29671_v3 = vand.u32 4294901760, %v11925_v59  ;;  %v12548_v33 = vld [vmem:[#allocation2 + $0x220] sm:$0xff] }
0x118d   :  { %v28159_v20 = vpop.eup %28158  ;;  %v11920_v26 = vmul.f32 %v28157_v62, %v28149_v38  ;;  %v12002_v54 = vand.u32 4294901760, %v11922_v24  ;;  %v13069_v62 = vand.u32 4294901760, %v12548_v33 }
0x118e   :  { %v11919_v30 = vmul.f32 %v28159_v20, %v28151_v41  ;;  %v12013_v60 = vsub.f32 %v11925_v59, %v29671_v3  ;;  %v13066_v59 = vand.u32 4294901760, %v12547_v55 }
0x118f   :  { %v12003_v14 = vsub.f32 %v11922_v24, %v12002_v54  ;;  %v11931_v18 = vsel %vm31313_vm1, %v11920_v26, 0  ;;  %v13161_v20 = vsub.f32 %v12548_v33, %v13069_v62 }
0x1190   :  { %v12014_v36 = vand.u32 4294901760, %v12013_v60  ;;  %v11928_v13 = vsel %vm31313_vm1, %v11919_v30, 0  ;;  %v12032_v53 = vand.u32 4294901760, %v11931_v18 }
0x1191   :  { %v12004_v5 = vand.u32 4294901760, %v12003_v14  ;;  %v12022_v16 = vand.u32 4294901760, %v11928_v13  ;;  %v13162_v30 = vand.u32 4294901760, %v13161_v20 }
0x1192   :  { %v12015_v19 = vsub.f32 %v12013_v60, %v12014_v36  ;;  %v12033_v9 = vsub.f32 %v11931_v18, %v12032_v53 }
0x1193   :  { %v12005_v8 = vsub.f32 %v12003_v14, %v12004_v5  ;;  %v12023_v27 = vsub.f32 %v11928_v13, %v12022_v16 }
0x1194   :  { %v12034_v7 = vand.u32 4294901760, %v12033_v9  ;;  %v12016_v1 = vand.u32 4294901760, %v12015_v19 }
0x1195   :  { %v12006_v17 = vand.u32 4294901760, %v12005_v8  ;;  %v12024_v29 = vand.u32 4294901760, %v12023_v27 }
0x1196   :  { %v12035_v57 = vsub.f32 %v12033_v9, %v12034_v7 }
0x1197   :  { %24800 = vmatprep.mubr.f32.mxu0 %v12006_v17  ;;  %v12025_v50 = vsub.f32 %v12023_v27, %v12024_v29 }
0x1198   :  { %24801 = vmatmul.mubr.f32.vlgmr.msra.gmra.mrb[28].mxu0 %v12016_v1  ;;  %v12036_v49 = vand.u32 4294901760, %v12035_v57 }
0x1199   :  { %26969 = vmatpush3.bf16.msra.mxu0 %v29578_v4  ;;  %v12026_v48 = vand.u32 4294901760, %v12025_v50 }
0x119a   :  { %26971 = vmatprep.subr.bf16.mxu0 %v29644_v2 }
0x119b   :  { %24803 = vmatprep.mubr.f32.mxu0 %v12026_v48 }
0x119c   :  { %24804 = vmatmul.mubr.f32.gmra.mrb[30].mxu0 %v12036_v49  ;;  %v21795_v49 = vld [vmem:[#allocation2 + $0x298] ss:$0 sm:$0xff] }
0x119d   :  { %26973 = vmatpush3.bf16.msra.mxu0 %v29644_v2  ;;  %24814 = vmatprep.mubr.f32.mxu0 %v12002_v54 }
0x119e   :  { %26975 = vmatprep.subr.bf16.mxu0 %v29569_v10 }
0x11a0   :  { %24815 = vmatmul.mubr.f32.vlgmr.msra.gmra.mrb[28].mxu0 %v29671_v3 }
0x11a1   :  { %26977 = vmatpush3.bf16.msra.mxu0 %v29569_v10  ;;  %24817 = vmatprep.mubr.f32.mxu0 %v12022_v16  ;;  %v12549_v10 = vld [vmem:[#allocation2 + $0x288] sm:$0xff] }
0x11a2   :  { %26979 = vmatprep.subr.bf16.mxu0 %v29636_v51  ;;  %v12558_v4 = vand.u32 4294901760, %v12549_v10 }
0x11a4   :  { %24818 = vmatmul.mubr.f32.gmra.mrb[30].mxu0 %v12032_v53  ;;  %v12646_v2 = vsub.f32 %v12549_v10, %v12558_v4 }
0x11a5   :  { %26981 = vmatpush3.bf16.msra.mxu0 %v29636_v51  ;;  %24828 = vmatprep.mubr.f32.mxu0 %v12003_v14 }
0x11a6   :  { %26983 = vmatprep.subr.bf16.mxu0 %v29563_v6 }
0x11a8   :  { %24829 = vmatmul.mubr.f32.vlgmr.msra.gmra.mrb[28].mxu0 %v12013_v60 }
0x11a9   :  { %26985 = vmatpush3.bf16.msra.mxu0 %v29563_v6  ;;  %24831 = vmatprep.mubr.f32.mxu0 %v12023_v27 }
0x11aa   :  { %26987 = vmatprep.subr.bf16.mxu0 %v29631_v22 }
0x11ac   :  { %24832 = vmatmul.mubr.f32.gmra.mrb[30].mxu0 %v12033_v9 }
0x11ad   :  { %26989 = vmatpush3.bf16.msra.mxu0 %v29631_v22  ;;  %24842 = vmatprep.mubr.f32.mxu0 %v12004_v5 }
0x11ae   :  { %26991 = vmatprep.subr.bf16.mxu0 %v29573_v28 }
0x11b0   :  { %24843 = vmatmul.mubr.f32.vlgmr.msra.gmra.mrb[28].mxu0 %v12014_v36  ;;  %v27030_v36 = vpack.c.bf16 %v13069_v62, %v13066_v59 }
0x11b1   :  { %26993 = vmatpush3.bf16.msra.mxu0 %v29573_v28  ;;  %24845 = vmatprep.mubr.f32.mxu0 %v12024_v29  ;;  %v12550_v28 = vld [vmem:[#allocation2 + $0x290] sm:$0xff] }
0x11b2   :  { %26995 = vmatprep.subr.bf16.mxu0 %v29641_v34  ;;  %v12561_v51 = vand.u32 4294901760, %v12550_v28 }
0x11b4   :  { %24846 = vmatmul.mubr.f32.gmra.mrb[30].mxu0 %v12034_v7  ;;  %v12653_v32 = vsub.f32 %v12550_v28, %v12561_v51 }
0x11b5   :  { %26997 = vmatpush3.bf16.msra.mxu0 %v29641_v34  ;;  %24856 = vmatprep.mubr.f32.mxu0 %v12002_v54  ;;  %v29698_v34 = vpack.c.bf16 %v12561_v51, %v12558_v4 }
0x11b6   :  { %26999 = vmatprep.subr.bf16.mxu0 %v29563_v6  ;;  %v12654_v39 = vand.u32 4294901760, %v12653_v32  ;;  %v27014_v0 = vpack.c.bf16 %v12653_v32, %v12646_v2 }
0x11b8   :  { %24857 = vmatmul.mubr.f32.vlgmr.msra.gmra.mrb[28].mxu0 %v29671_v3  ;;  %v12655_v21 = vsub.f32 %v12653_v32, %v12654_v39 }
0x11b9   :  { %27001 = vmatpush3.bf16.msra.mxu0 %v29563_v6  ;;  %24859 = vmatprep.mubr.f32.mxu0 %v12022_v16  ;;  %v12647_v6 = vand.u32 4294901760, %v12646_v2 }
0x11ba   :  { %27003 = vmatprep.subr.bf16.mxu0 %v29631_v22  ;;  %v12656_v12 = vand.u32 4294901760, %v12655_v21 }
0x11bb   :  { %v27022_v56 = vpack.c.bf16 %v12654_v39, %v12647_v6 }
0x11bc   :  { %24860 = vmatmul.mubr.f32.gmra.mrb[30].mxu0 %v12032_v53 }
0x11bd   :  { %27005 = vmatpush3.bf16.msra.mxu0 %v29631_v22  ;;  %24870 = vmatprep.mubr.f32.mxu0 %v12002_v54  ;;  %v12648_v22 = vsub.f32 %v12646_v2, %v12647_v6 }
0x11be   :  { %27007 = vmatprep.subr.bf16.mxu0 %v29698_v34 }
0x11bf   :  { %v12649_v23 = vand.u32 4294901760, %v12648_v22 }
0x11c0   :  { %24871 = vmatmul.mubr.f32.vlgmr.msra.gmra.mrb[28].mxu0 %v29671_v3  ;;  %v13154_v3 = vsub.f32 %v12547_v55, %v13066_v59 }
0x11c1   :  { %24873 = vmatprep.mubr.f32.mxu0 %v12022_v16  ;;  %27009 = vmatpush3.bf16.msra.mxu0 %v29698_v34  ;;  %v27010_v61 = vpack.c.bf16 %v12656_v12, %v12649_v23 }
0x11c2   :  { %v13155_v54 = vand.u32 4294901760, %v13154_v3  ;;  %v27038_v57 = vpack.c.bf16 %v13161_v20, %v13154_v3 }
0x11c3   :  { %27011 = vmatprep.subr.bf16.mxu0 %v27010_v61 }
0x11c4   :  { %24874 = vmatmul.mubr.f32.gmra.mrb[30].mxu0 %v12032_v53  ;;  %v13156_v13 = vsub.f32 %v13154_v3, %v13155_v54  ;;  %v13163_v53 = vsub.f32 %v13161_v20, %v13162_v30  ;;  %v27046_v50 = vpack.c.bf16 %v13162_v30, %v13155_v54 }
0x11c6   :  { %v13157_v19 = vand.u32 4294901760, %v13156_v13  ;;  %v13164_v9 = vand.u32 4294901760, %v13163_v53 }
0x11c8   :  { %v27034_v7 = vpack.c.bf16 %v13164_v9, %v13157_v19 }
0x1293   :  { %v24872_v63 = vpop.f32.mrb[28].mxu0 }
0x1294   :  { %v12525_v40 = vpop.f32.mrb[29].mxu0  ;;  %v13063_v60 = vsel %vm31312_vm0, %v24872_v63, 0  ;;  %v13617_v63 = vld [vmem:[#allocation4 + $0x58] sm:$0xff] }
0x1295   :  { %v13060_v24 = vsel %vm31312_vm0, %v12525_v40, 0  ;;  %v13142_v18 = vand.u32 4294901760, %v13063_v60  ;;  %v14159_v40 = vld [vmem:[#allocation4 + $0x70] sm:$0xff] }
0x1296   :  { %v13132_v26 = vand.u32 4294901760, %v13060_v24 }
0x1297   :  { %v24875_v58 = vpop.f32.mrb[30].mxu0  ;;  %v13143_v16 = vsub.f32 %v13063_v60, %v13142_v18 }
0x1298   :  { %v12555_v37 = vsel %vm31312_vm0, %v24875_v58, 0  ;;  %v12537_v52 = vpop.f32.mrb[31].mxu0  ;;  %v13133_v14 = vsub.f32 %v13060_v24, %v13132_v26 }
0x1299   :  { %v12634_v31 = vand.u32 4294901760, %v12555_v37  ;;  %v12552_v38 = vsel %vm31312_vm0, %v12537_v52, 0  ;;  %v13144_v27 = vand.u32 4294901760, %v13143_v16  ;;  %v14160_v52 = vld [vmem:[#allocation4 + $0x78] sm:$0xff] }
0x129a   :  { %v12624_v41 = vand.u32 4294901760, %v12552_v38  ;;  %v13134_v5 = vand.u32 4294901760, %v13133_v14 }
0x129b   :  { %v12635_v45 = vsub.f32 %v12555_v37, %v12634_v31  ;;  %v13145_v29 = vsub.f32 %v13143_v16, %v13144_v27  ;;  %v13635_v37 = vand.u32 4294901760, %v13617_v63 }
0x129c   :  { %v12625_v11 = vsub.f32 %v12552_v38, %v12624_v41  ;;  %v13135_v8 = vsub.f32 %v13133_v14, %v13134_v5  ;;  %v14172_v38 = vand.u32 4294901760, %v14160_v52 }
0x129d   :  { %v12636_v15 = vand.u32 4294901760, %v12635_v45  ;;  %v13146_v1 = vand.u32 4294901760, %v13145_v29  ;;  %v13729_v59 = vsub.f32 %v13617_v63, %v13635_v37 }
0x129e   :  { %v12626_v47 = vand.u32 4294901760, %v12625_v11  ;;  %v13136_v17 = vand.u32 4294901760, %v13135_v8  ;;  %v14266_v3 = vsub.f32 %v14160_v52, %v14172_v38 }
0x129f   :  { %v12637_v35 = vsub.f32 %v12635_v45, %v12636_v15  ;;  %v13730_v54 = vand.u32 4294901760, %v13729_v59 }
0x12a0   :  { %v12627_v25 = vsub.f32 %v12625_v11, %v12626_v47  ;;  %v14267_v60 = vand.u32 4294901760, %v14266_v3 }
0x12a1   :  { %v12638_v44 = vand.u32 4294901760, %v12637_v35  ;;  %v13731_v13 = vsub.f32 %v13729_v59, %v13730_v54 }
0x12a2   :  { %v12628_v42 = vand.u32 4294901760, %v12627_v25  ;;  %v14162_v25 = vld [vmem:[#allocation4 + $0x88] sm:$0xff]  ;;  %v14268_v19 = vsub.f32 %v14266_v3, %v14267_v60 }
0x12a3   :  { %v14178_v55 = vand.u32 4294901760, %v14162_v25 }
0x12a4   :  { %24880 = vmatprep.mubr.f32.mxu0 %v12628_v42 }
0x12a5   :  { %24881 = vmatmul.mubr.f32.vlgmr.msra.gmra.mrb[32].mxu0 %v12638_v44 }
0x12a6   :  { %27013 = vmatpush3.bf16.msra.mxu0 %v27010_v61  ;;  %24887 = vmatprep.mubr.f32.mxu0 %v12624_v41 }
0x12a7   :  { %27015 = vmatprep.subr.bf16.mxu0 %v27014_v0 }
0x12ad   :  { %24888 = vmatmul.mubr.f32.vlgmr.msra.gmra.mrb[32].mxu0 %v12634_v31 }
0x12ae   :  { %27017 = vmatpush3.bf16.msra.mxu0 %v27014_v0  ;;  %24894 = vmatprep.mubr.f32.mxu0 %v12625_v11  ;;  %v14161_v11 = vld [vmem:[#allocation4 + $0x80] sm:$0xff] }
0x12af   :  { %27019 = vmatprep.subr.bf16.mxu0 %v29698_v34  ;;  %v14175_v42 = vand.u32 4294901760, %v14161_v11 }
0x12b1   :  { %v29741_v20 = vpack.c.bf16 %v14178_v55, %v14175_v42  ;;  %v14273_v53 = vsub.f32 %v14161_v11, %v14175_v42  ;;  %v21797_v42 = vld [vmem:[#allocation2 + $0x2a8] ss:$0 sm:$0xff] }
0x12b5   :  { %24895 = vmatmul.mubr.f32.vlgmr.msra.gmra.mrb[32].mxu0 %v12635_v45  ;;  %v13619_v45 = vld [vmem:[#allocation4 + $0x68] sm:$0xff] }
0x12b6   :  { %27021 = vmatpush3.bf16.msra.mxu0 %v29698_v34  ;;  %24901 = vmatprep.mubr.f32.mxu0 %v12626_v47  ;;  %v13641_v35 = vand.u32 4294901760, %v13619_v45 }
0x12b7   :  { %27023 = vmatprep.subr.bf16.mxu0 %v27022_v56 }
0x12bd   :  { %24902 = vmatmul.mubr.f32.vlgmr.msra.gmra.mrb[32].mxu0 %v12636_v15 }
0x12be   :  { %27025 = vmatpush3.bf16.msra.mxu0 %v27022_v56  ;;  %24908 = vmatprep.mubr.f32.mxu0 %v12624_v41  ;;  %v13616_v56 = vld [vmem:[#allocation4 + $0x50] sm:$0xff] }
0x12bf   :  { %27027 = vmatprep.subr.bf16.mxu0 %v29698_v34  ;;  %v13632_v58 = vand.u32 4294901760, %v13616_v56 }
0x12c1   :  { %v29732_v15 = vpack.c.bf16 %v13635_v37, %v13632_v58  ;;  %v13722_v33 = vsub.f32 %v13616_v56, %v13632_v58 }
0x12c3   :  { %27055 = vmatprep.subr.bf16.mxu1 %v29732_v15 }
0x12c4   :  { %27057 = vmatpush3.bf16.msra.mxu1 %v29732_v15 }
0x12c5   :  { %24909 = vmatmul.mubr.f32.vlgmr.msra.gmra.mrb[32].mxu0 %v12634_v31 }
0x12c6   :  { %27029 = vmatpush3.bf16.msra.mxu0 %v29698_v34  ;;  %24915 = vmatprep.mubr.f32.mxu0 %v12624_v41  ;;  %v13618_v41 = vld [vmem:[#allocation4 + $0x60] sm:$0xff] }
0x12c7   :  { %27031 = vmatprep.subr.bf16.mxu0 %v27030_v36  ;;  %v13638_v47 = vand.u32 4294901760, %v13618_v41 }
0x12c9   :  { %v29737_v62 = vpack.c.bf16 %v13641_v35, %v13638_v47 }
0x12cb   :  { %27059 = vmatprep.subr.bf16.mxu1 %v29737_v62 }
0x12cc   :  { %27061 = vmatpush3.bf16.msra.mxu1 %v29737_v62 }
0x12cd   :  { %24916 = vmatmul.mubr.f32.vlgmr.msra.gmra.mrb[32].mxu0 %v12634_v31  ;;  %v14169_v31 = vand.u32 4294901760, %v14159_v40 }
0x12ce   :  { %27033 = vmatpush3.bf16.msra.mxu0 %v27030_v36  ;;  %24922 = vmatprep.mubr.f32.mxu0 %v13136_v17  ;;  %v14274_v17 = vand.u32 4294901760, %v14273_v53 }
0x12cf   :  { %27035 = vmatprep.subr.bf16.mxu0 %v27034_v7  ;;  %v29734_v44 = vpack.c.bf16 %v14172_v38, %v14169_v31  ;;  %v14259_v24 = vsub.f32 %v14159_v40, %v14169_v31 }
0x12d1   :  { %v14260_v30 = vand.u32 4294901760, %v14259_v24 }
0x12d3   :  { %v29750_v63 = vpack.c.bf16 %v14267_v60, %v14260_v30 }
0x12d5   :  { %24923 = vmatmul.mubr.f32.vlgmr.msra.gmra.mrb[32].mxu0 %v13146_v1 }
0x12d6   :  { %27037 = vmatpush3.bf16.msra.mxu0 %v27034_v7  ;;  %24929 = vmatprep.mubr.f32.mxu0 %v13132_v26  ;;  %v13732_v7 = vand.u32 4294901760, %v13731_v13 }
0x12d7   :  { %27039 = vmatprep.subr.bf16.mxu0 %v27038_v57 }
0x12dd   :  { %24930 = vmatmul.mubr.f32.vlgmr.msra.gmra.mrb[32].mxu0 %v13142_v18 }
0x12de   :  { %27041 = vmatpush3.bf16.msra.mxu0 %v27038_v57  ;;  %24936 = vmatprep.mubr.f32.mxu0 %v13133_v14  ;;  %v13736_v14 = vsub.f32 %v13618_v41, %v13638_v47  ;;  %v14269_v57 = vand.u32 4294901760, %v14268_v19  ;;  %v21796_v47 = vld [vmem:[#allocation2 + $0x2a0] ss:$0 sm:$0xff]  ;;  %v15429_v19 = vld [vmem:[#allocation2 + $0x338] sm:$0x7] }
0x12df   :  { %27043 = vmatprep.subr.bf16.mxu0 %v27030_v36 }
0x12e0   :  { %v13737_v9 = vand.u32 4294901760, %v13736_v14 }
0x12e5   :  { %24937 = vmatmul.mubr.f32.vlgmr.msra.gmra.mrb[32].mxu0 %v13143_v16  ;;  %v14261_v16 = vsub.f32 %v14259_v24, %v14260_v30 }
0x12e6   :  { %27045 = vmatpush3.bf16.msra.mxu0 %v27030_v36  ;;  %24943 = vmatprep.mubr.f32.mxu0 %v13134_v5  ;;  %v14280_v5 = vsub.f32 %v14162_v25, %v14178_v55 }
0x12e7   :  { %27047 = vmatprep.subr.bf16.mxu0 %v27046_v50  ;;  %v14262_v1 = vand.u32 4294901760, %v14261_v16  ;;  %v15425_v16 = vld [vmem:[%s31215_s1] sm:$0xff] }
0x12e8   :  { %v14281_v29 = vand.u32 4294901760, %v14280_v5 }
0x12ea   :  { %v29754_v58 = vpack.c.bf16 %v14281_v29, %v14274_v17 }
0x12ed   :  { %24944 = vmatmul.mubr.f32.vlgmr.msra.gmra.mrb[32].mxu0 %v13144_v27 }
0x12ee   :  { %27049 = vmatpush3.bf16.msra.mxu0 %v27046_v50  ;;  %24950 = vmatprep.mubr.f32.mxu0 %v13132_v26  ;;  %v13738_v50 = vsub.f32 %v13736_v14, %v13737_v9 }
0x12ef   :  { %27051 = vmatprep.subr.bf16.mxu0 %v27030_v36 }
0x12f5   :  { %24951 = vmatmul.mubr.f32.vlgmr.msra.gmra.mrb[32].mxu0 %v13142_v18 }
0x12f6   :  { %27053 = vmatpush3.bf16.msra.mxu0 %v27030_v36  ;;  %24957 = vmatprep.mubr.f32.mxu0 %v13132_v26  ;;  %v13723_v26 = vand.u32 4294901760, %v13722_v33 }
0x12f7   :  { %27103 = vmatprep.subr.bf16.mxu0 %v29734_v44 }
0x12f8   :  { %v13724_v36 = vsub.f32 %v13722_v33, %v13723_v26  ;;  %v29748_v56 = vpack.c.bf16 %v13730_v54, %v13723_v26 }
0x12fa   :  { %v13725_v27 = vand.u32 4294901760, %v13724_v36 }
0x12fd   :  { %24958 = vmatmul.mubr.f32.vlgmr.msra.gmra.mrb[32].mxu0 %v13142_v18  ;;  %v13743_v18 = vsub.f32 %v13619_v45, %v13641_v35 }
0x12fe   :  { %27105 = vmatpush3.bf16.msra.mxu0 %v29734_v44 }
0x12ff   :  { %27107 = vmatprep.subr.bf16.mxu0 %v29741_v20  ;;  %v13744_v8 = vand.u32 4294901760, %v13743_v18 }
0x1301   :  { %v29752_v40 = vpack.c.bf16 %v13744_v8, %v13737_v9  ;;  %v15432_v9 = vsel %vm15430_vm2, %v15425_v16, 0 }
0x1302   :  { %27109 = vmatpush3.bf16.msra.mxu0 %v29741_v20 }
0x13d0   :  { %v24959_v48 = vpop.f32.mrb[32].mxu0 }
0x13d1   :  { %v13568_v10 = vadd.f32 %v24959_v48, %v29334_v43  ;;  %v13557_v28 = vpop.f32.mrb[33].mxu0  ;;  %v13745_v48 = vsub.f32 %v13743_v18, %v13744_v8  ;;  %v15426_v8 = vld [vmem:[%s31215_s1 + $0x8] sm:$0xff] }
0x13d2   :  { %v13567_v4 = vadd.f32 %v13557_v28, %v29336_v46  ;;  %v14282_v28 = vsub.f32 %v14280_v5, %v14281_v29  ;;  %v15435_v29 = vsel %vm15430_vm2, %v15426_v8, 0  ;;  %v29953_v8 = vld [vmem:[#allocation2 + $0x318] sm:$0xff] }
0x13d3   :  { %v29712_v51 = vadd.f32 %v21795_v49, %v13568_v10  ;;  %v14275_v10 = vsub.f32 %v14273_v53, %v14274_v17  ;;  %v29790_v17 = vand.u32 4294901760, %v15432_v9 }
0x13d4   :  { %v29714_v34 = vadd.f32 %v21795_v49, %v13567_v4  ;;  %v27062_v49 = vpack.c.bf16 %v13732_v7, %v13725_v27  ;;  %v27110_v4 = vpack.c.bf16 %v14269_v57, %v14262_v1  ;;  %v15445_v27 = vsel %vm31314_vm3, %v15429_v19, 0  ;;  %v15427_v7 = vld [vmem:[%s31215_s1 + $0x10] sm:$0xff] }
0x13d5   :  { %31335 = vst [vmem:[#allocation8_spill] sm:$0xff] %v29712_v51  ;;  %v13581_v2 = vsel %vm31313_vm1, %v29712_v51, 0.0  ;;  %31337 = vst [vmem:[#allocation10_spill] sm:$0xff] %v29790_v17  ;;  %v29794_v1 = vand.u32 4294901760, %v15445_v27  ;;  %v15438_v57 = vsel %vm15430_vm2, %v15427_v7, 0 }
0x13d6   :  { %31336 = vst [vmem:[#allocation9_spill] sm:$0xff] %v29714_v34  ;;  %13582 = vadd.xlane.f32.xlu1 %v13581_v2  ;;  %v13578_v32 = vsel %vm31313_vm1, %v29714_v34, 0.0  ;;  %v13739_v2 = vand.u32 4294901760, %v13738_v50  ;;  %27063 = vmatprep.subr.bf16.mxu1 %v27062_v49  ;;  %v15428_v50 = vld [vmem:[%s31215_s1 + $0x18] sm:$0xff] }
0x13d7   :  { %13579 = vadd.xlane.f32.xlu0 %v13578_v32  ;;  %v13746_v32 = vand.u32 4294901760, %v13745_v48  ;;  %27111 = vmatprep.subr.bf16.mxu0 %v27110_v4  ;;  %v29801_v48 = vand.u32 4294901760, %v15435_v29 }
0x13d9   :  { %31338 = vst [vmem:[#allocation11_spill] sm:$0xff] %v29801_v48 }
0x1463   :  { %v13583_v6 = vpop.xlane.xlu1 %13582 }
0x1464   :  { %v13585_v39 = vmul.f32 0.03125, %v13583_v6  ;;  %v13580_v22 = vpop.xlane.xlu0 %13579  ;;  %v14276_v6 = vand.u32 4294901760, %v14275_v10  ;;  %v29808_v10 = vand.u32 4294901760, %v15438_v57 }
0x1465   :  { %v13584_v21 = vmul.f32 0.03125, %v13580_v22  ;;  %v27066_v22 = vpack.c.bf16 %v13746_v32, %v13739_v2  ;;  %v29817_v2 = vsub.f32 %v15435_v29, %v29801_v48  ;;  %v31239_v29 = vand.u32 4294901760, %v29953_v8 }
0x1466   :  { %v29721_v43 = vsub.f32 %v29712_v51, %v13585_v39  ;;  %v14283_v39 = vand.u32 4294901760, %v14282_v28  ;;  %31340 = vst [vmem:[#allocation13_spill] sm:$0xff] %v29808_v10  ;;  %v15441_v28 = vsel %vm15430_vm2, %v15428_v50, 0 }
0x1467   :  { %v29724_v46 = vsub.f32 %v29714_v34, %v13584_v21  ;;  %31341 = vst [vmem:[#allocation14_spill] sm:$0xff] %v29817_v2  ;;  %v29819_v32 = vand.u32 4294901760, %v15441_v28 }
0x1468   :  { %v13589_v23 = vmul.f32 %v29721_v43, %v29721_v43  ;;  %v27114_v21 = vpack.c.bf16 %v14283_v39, %v14276_v6  ;;  %v29827_v39 = vsub.f32 %v15438_v57, %v29808_v10 }
0x1469   :  { %v13588_v12 = vmul.f32 %v29724_v46, %v29724_v46  ;;  %31342 = vst [vmem:[#allocation15_spill] sm:$0xff] %v29819_v32 }
0x146a   :  { %v13593_v61 = vsel %vm31313_vm1, %v13589_v23, 0.0  ;;  %v27070_v23 = vpack.c.bf16 %v13729_v59, %v13722_v33  ;;  %31344 = vst [vmem:[#allocation17_spill] sm:$0xff] %v29827_v39 }
0x146b   :  { %13594 = vadd.xlane.f32.xlu1 %v13593_v61  ;;  %v13590_v0 = vsel %vm31313_vm1, %v13588_v12, 0.0  ;;  %v27118_v12 = vpack.c.bf16 %v14266_v3, %v14259_v24  ;;  %v27074_v61 = vpack.c.bf16 %v13743_v18, %v13736_v14 }
0x146c   :  { %13591 = vadd.xlane.f32.xlu0 %v13590_v0  ;;  %v27122_v0 = vpack.c.bf16 %v14280_v5, %v14273_v53 }
0x14f8   :  { %v13595_v37 = vpop.xlane.xlu1 %13594 }
0x14f9   :  { %v13597_v52 = vmul.f32 0.03125, %v13595_v37  ;;  %v13592_v31 = vpop.xlane.xlu0 %13591 }
0x14fa   :  { %v13596_v38 = vmul.f32 0.03125, %v13592_v31  ;;  %v14717_v31 = vld [vmem:[#allocation2 + $0x2b8] sm:$0xff] }
0x14fb   :  { %v13599_v41 = vadd.f32 1e-05, %v13597_v52  ;;  %v14716_v52 = vld [vmem:[#allocation2 + $0x2b0] sm:$0xff] }
0x14fc   :  { %v13598_v45 = vadd.f32 1e-05, %v13596_v38  ;;  %v14733_v38 = vand.u32 4294901760, %v14716_v52 }
0x14fd   :  { %28160 = vrsqrt.f32 %v13599_v41  ;;  %v14736_v41 = vand.u32 4294901760, %v14717_v31 }
0x14fe   :  { %28162 = vrsqrt.f32 %v13598_v45 }
0x14ff   :  { %v29900_v45 = vpack.c.bf16 %v14736_v41, %v14733_v38 }
0x1507   :  { %v28161_v11 = vpop.eup %28160 }
0x1508   :  { %v28163_v35 = vpop.eup %28162  ;;  %v13603_v25 = vmul.f32 %v28161_v11, %v29721_v43  ;;  %v14718_v11 = vld [vmem:[#allocation2 + $0x2c0] sm:$0xff] }
0x1509   :  { %v13602_v55 = vmul.f32 %v28163_v35, %v29724_v46  ;;  %v14739_v35 = vand.u32 4294901760, %v14718_v11 }
0x150a   :  { %v13609_v33 = vmul.f32 %v21796_v47, %v13603_v25 }
0x150b   :  { %v13608_v59 = vmul.f32 %v21796_v47, %v13602_v55  ;;  %v14719_v47 = vld [vmem:[#allocation2 + $0x2c8] sm:$0xff]  ;;  %v29906_v55 = vld [vmem:[#allocation2 + $0x2d0] sm:$0xff] }
0x150c   :  { %v13615_v24 = vadd.f32 %v21797_v42, %v13609_v33  ;;  %v14742_v25 = vand.u32 4294901760, %v14719_v47  ;;  %v29908_v33 = vld [vmem:[#allocation2 + $0x2d8] sm:$0xff] }
0x150d   :  { %v13614_v3 = vadd.f32 %v21797_v42, %v13608_v59  ;;  %v14745_v59 = vand.u32 4294901760, %v29906_v55 }
0x150e   :  { %v13629_v26 = vsel %vm31313_vm1, %v13615_v24, 0  ;;  %v29904_v42 = vpack.c.bf16 %v14742_v25, %v14739_v35  ;;  %v14748_v24 = vand.u32 4294901760, %v29908_v33 }
0x150f   :  { %v29759_v54 = vand.u32 4294901760, %v13629_v26  ;;  %v13626_v30 = vsel %vm31313_vm1, %v13614_v3, 0 }
0x1510   :  { %v29762_v60 = vand.u32 4294901760, %v13626_v30  ;;  %v29914_v3 = vpack.c.bf16 %v14748_v24, %v14745_v59 }
0x1511   :  { %v13711_v14 = vsub.f32 %v13629_v26, %v29759_v54  ;;  %v29916_v26 = vld [vmem:[#allocation2 + $0x2e0] sm:$0xff] }
0x1512   :  { %v13701_v18 = vsub.f32 %v13626_v30, %v29762_v60  ;;  %v31251_v30 = vand.u32 4294901760, %v29916_v26 }
0x1513   :  { %v13712_v43 = vand.u32 4294901760, %v13711_v14 }
0x1514   :  { %v13702_v36 = vand.u32 4294901760, %v13701_v18 }
0x1515   :  { %v13713_v13 = vsub.f32 %v13711_v14, %v13712_v43 }
0x1516   :  { %v13703_v46 = vsub.f32 %v13701_v18, %v13702_v36 }
0x1517   :  { %v13714_v5 = vand.u32 4294901760, %v13713_v13 }
0x1518   :  { %v13704_v53 = vand.u32 4294901760, %v13703_v46 }
0x151a   :  { %24968 = vmatprep.mubr.f32.mxu1 %v13704_v53  ;;  %25034 = vmatprep.mubr.f32.mxu0 %v13704_v53  ;;  %v29944_v53 = vld [vmem:[#allocation2 + $0x300] sm:$0xff] }
0x151b   :  { %24969 = vmatmul.mubr.f32.vlgmr.msra.gmra.mrb[20].mxu1 %v13714_v5  ;;  %25035 = vmatmul.mubr.f32.vlgmr.msra.gmra.mrb[34].mxu0 %v13714_v5  ;;  %v29946_v5 = vld [vmem:[#allocation2 + $0x308] sm:$0xff]  ;;  %v31246_v16 = vand.u32 4294901760, %v29944_v53 }
0x151c   :  { %27065 = vmatpush3.bf16.msra.mxu1 %v27062_v49  ;;  %24979 = vmatprep.mubr.f32.mxu1 %v29762_v60  ;;  %v29806_v49 = vsub.f32 %v15432_v9, %v29790_v17  ;;  %v31245_v19 = vand.u32 4294901760, %v29946_v5  ;;  %v29951_v9 = vld [vmem:[#allocation2 + $0x310] sm:$0xff] }
0x151d   :  { %27113 = vmatpush3.bf16.msra.mxu0 %v27110_v4  ;;  %25045 = vmatprep.mubr.f32.mxu0 %v29762_v60  ;;  %v15555_v4 = vsub.f32 %v15445_v27, %v29794_v1  ;;  %v29955_v27 = vld [vmem:[#allocation2 + $0x320] sm:$0xff]  ;;  %v31244_v7 = vand.u32 4294901760, %v29951_v9 }
0x151e   :  { %27067 = vmatprep.subr.bf16.mxu1 %v27066_v22  ;;  %27115 = vmatprep.subr.bf16.mxu0 %v27114_v21  ;;  %31339 = vst [vmem:[#allocation12_spill] sm:$0xff] %v29806_v49  ;;  %v29824_v6 = vand.u32 4294901760, %v29806_v49  ;;  %v29966_v57 = vpack.c.bf16 %v31245_v19, %v31246_v16  ;;  %v31238_v50 = vand.u32 4294901760, %v29955_v27 }
0x1520   :  { %27069 = vmatpush3.bf16.msra.mxu1 %v27066_v22  ;;  %31343 = vst [vmem:[#allocation16_spill] sm:$0xff] %v29824_v6  ;;  %v15556_v22 = vand.u32 4294901760, %v15555_v4 }
0x1521   :  { %27117 = vmatpush3.bf16.msra.mxu0 %v27114_v21  ;;  %27071 = vmatprep.subr.bf16.mxu1 %v27070_v23  ;;  %v29834_v21 = vand.u32 4294901760, %v29817_v2 }
0x1522   :  { %27119 = vmatprep.subr.bf16.mxu0 %v27118_v12 }
0x1523   :  { %24980 = vmatmul.mubr.f32.vlgmr.msra.gmra.mrb[20].mxu1 %v29759_v54  ;;  %31345 = vst [vmem:[#allocation18_spill] sm:$0xff] %v29834_v21 }
0x1524   :  { %25046 = vmatmul.mubr.f32.vlgmr.msra.gmra.mrb[34].mxu0 %v29759_v54  ;;  %27073 = vmatpush3.bf16.msra.mxu1 %v27070_v23  ;;  %v29837_v23 = vsub.f32 %v15441_v28, %v29819_v32 }
0x1525   :  { %24990 = vmatprep.mubr.f32.mxu1 %v13701_v18  ;;  %27121 = vmatpush3.bf16.msra.mxu0 %v27118_v12  ;;  %v15516_v12 = vsub.f32 %v29806_v49, %v29824_v6 }
0x1526   :  { %25056 = vmatprep.mubr.f32.mxu0 %v13701_v18  ;;  %27075 = vmatprep.subr.bf16.mxu1 %v27074_v61  ;;  %31346 = vst [vmem:[#allocation19_spill] sm:$0xff] %v29837_v23  ;;  %v29930_v18 = vld [vmem:[#allocation2 + $0x2f0] sm:$0xff] }
0x1527   :  { %27123 = vmatprep.subr.bf16.mxu0 %v27122_v0 }
0x1528   :  { %27077 = vmatpush3.bf16.msra.mxu1 %v27074_v61  ;;  %v29844_v61 = vand.u32 4294901760, %v29827_v39 }
0x1529   :  { %27125 = vmatpush3.bf16.msra.mxu0 %v27122_v0  ;;  %27079 = vmatprep.subr.bf16.mxu1 %v29732_v15  ;;  %v15526_v0 = vsub.f32 %v29817_v2, %v29834_v21 }
0x152a   :  { %27127 = vmatprep.subr.bf16.mxu0 %v29734_v44  ;;  %31347 = vst [vmem:[#allocation20_spill] sm:$0xff] %v29844_v61 }
0x152b   :  { %24991 = vmatmul.mubr.f32.vlgmr.msra.gmra.mrb[20].mxu1 %v13711_v14 }
0x152c   :  { %25057 = vmatmul.mubr.f32.vlgmr.msra.gmra.mrb[34].mxu0 %v13711_v14  ;;  %27081 = vmatpush3.bf16.msra.mxu1 %v29732_v15 }
0x152d   :  { %25001 = vmatprep.mubr.f32.mxu1 %v13702_v36  ;;  %27129 = vmatpush3.bf16.msra.mxu0 %v29734_v44 }
0x152e   :  { %25067 = vmatprep.mubr.f32.mxu0 %v13702_v36  ;;  %27083 = vmatprep.subr.bf16.mxu1 %v29737_v62  ;;  %v31248_v36 = vand.u32 4294901760, %v29930_v18 }
0x152f   :  { %27131 = vmatprep.subr.bf16.mxu0 %v29741_v20 }
0x1530   :  { %27085 = vmatpush3.bf16.msra.mxu1 %v29737_v62 }
0x1531   :  { %27133 = vmatpush3.bf16.msra.mxu0 %v29741_v20  ;;  %27087 = vmatprep.subr.bf16.mxu1 %v29748_v56 }
0x1532   :  { %27135 = vmatprep.subr.bf16.mxu0 %v29750_v63 }
0x1533   :  { %25002 = vmatmul.mubr.f32.vlgmr.msra.gmra.mrb[20].mxu1 %v13712_v43 }
0x1534   :  { %25068 = vmatmul.mubr.f32.vlgmr.msra.gmra.mrb[34].mxu0 %v13712_v43  ;;  %27089 = vmatpush3.bf16.msra.mxu1 %v29748_v56  ;;  %v29856_v56 = vand.u32 4294901760, %v15516_v12  ;;  %v29932_v43 = vld [vmem:[#allocation2 + $0x2f8] sm:$0xff]  ;;  %v29985_v12 = vsub.f32 %v14716_v52, %v14733_v38 }
0x1535   :  { %25012 = vmatprep.mubr.f32.mxu1 %v29762_v60  ;;  %27137 = vmatpush3.bf16.msra.mxu0 %v29750_v63  ;;  %v15536_v63 = vsub.f32 %v29827_v39, %v29844_v61  ;;  %v31247_v13 = vand.u32 4294901760, %v29932_v43 }
0x1536   :  { %25078 = vmatprep.mubr.f32.mxu0 %v29762_v60  ;;  %27091 = vmatprep.subr.bf16.mxu1 %v29752_v40  ;;  %31349 = vst [vmem:[#allocation22_spill] sm:$0xff] %v29856_v56 }
0x1537   :  { %27139 = vmatprep.subr.bf16.mxu0 %v29754_v58  ;;  %v29942_v46 = vpack.c.bf16 %v31247_v13, %v31248_v36 }
0x1538   :  { %27093 = vmatpush3.bf16.msra.mxu1 %v29752_v40 }
0x1539   :  { %27141 = vmatpush3.bf16.msra.mxu0 %v29754_v58  ;;  %27095 = vmatprep.subr.bf16.mxu1 %v29732_v15 }
0x153a   :  { %27143 = vmatprep.subr.bf16.mxu0 %v29734_v44 }
0x153b   :  { %25013 = vmatmul.mubr.f32.vlgmr.msra.gmra.mrb[20].mxu1 %v29759_v54 }
0x153c   :  { %25079 = vmatmul.mubr.f32.vlgmr.msra.gmra.mrb[34].mxu0 %v29759_v54  ;;  %27097 = vmatpush3.bf16.msra.mxu1 %v29732_v15  ;;  %v15557_v15 = vsub.f32 %v15555_v4, %v15556_v22 }
0x153d   :  { %25023 = vmatprep.mubr.f32.mxu1 %v29762_v60  ;;  %27145 = vmatpush3.bf16.msra.mxu0 %v29734_v44  ;;  %v29853_v44 = vand.u32 4294901760, %v29837_v23 }
0x153e   :  { %25089 = vmatprep.mubr.f32.mxu0 %v29762_v60  ;;  %27099 = vmatprep.subr.bf16.mxu1 %v29737_v62  ;;  %v15558_v40 = vand.u32 4294901760, %v15557_v15  ;;  %v29987_v15 = vsub.f32 %v14717_v31, %v14736_v41  ;;  %v29999_v31 = vsub.f32 %v14718_v11, %v14739_v35  ;;  %v30001_v41 = vsub.f32 %v14719_v47, %v14742_v25 }
0x153f   :  { %27147 = vmatprep.subr.bf16.mxu0 %v29741_v20  ;;  %31348 = vst [vmem:[#allocation21_spill] sm:$0xff] %v29853_v44  ;;  %v15546_v58 = vsub.f32 %v29837_v23, %v29853_v44 }
0x1540   :  { %27101 = vmatpush3.bf16.msra.mxu1 %v29737_v62  ;;  %v29863_v62 = vand.u32 4294901760, %v15526_v0  ;;  %v31243_v0 = vand.u32 4294901760, %v29985_v12  ;;  %31353 = vst [vmem:[#allocation26_spill] sm:$0xff] %v30001_v41 }
0x1541   :  { %27149 = vmatpush3.bf16.msra.mxu0 %v29741_v20  ;;  %v29869_v20 = vand.u32 4294901760, %v15536_v63  ;;  %v29872_v37 = vand.u32 4294901760, %v15546_v58  ;;  %27151 = vmatprep.subr.bf16.mxu1 %v29900_v45  ;;  %v31240_v63 = vand.u32 4294901760, %v29987_v15 }
0x1542   :  { %25302 = vmatprep.subr.mxu0 %v29794_v1  ;;  %31350 = vst [vmem:[#allocation23_spill] sm:$0xff] %v29863_v62 }
0x1543   :  { %25024 = vmatmul.mubr.f32.vlgmr.msra.gmra.mrb[20].mxu1 %v29759_v54  ;;  %31351 = vst [vmem:[#allocation24_spill] sm:$0xff] %v29869_v20  ;;  %31352 = vst [vmem:[#allocation25_spill] sm:$0xff] %v29872_v37  ;;  %v14844_v58 = vsub.f32 %v29987_v15, %v31240_v63 }
0x1544   :  { %25090 = vmatmul.mubr.f32.vlgmr.msra.gmra.mrb[34].mxu0 %v29759_v54  ;;  %27153 = vmatpush3.bf16.msra.mxu1 %v29900_v45  ;;  %v29918_v54 = vld [vmem:[#allocation2 + $0x2e8] sm:$0xff] }
0x1545   :  { %25303 = vmatpush3.msra.mxu0 %v29794_v1  ;;  %25304 = vmatprep.mubr.f32.mxu0 %v29856_v56  ;;  %v31250_v60 = vand.u32 4294901760, %v29918_v54  ;;  %v14845_v38 = vand.u32 4294901760, %v14844_v58  ;;  %v30021_v58 = vsub.f32 %v29908_v33, %v14748_v24 }
0x1546   :  { %25310 = vmatprep.subr.mxu0 %v15558_v40  ;;  %27155 = vmatprep.subr.bf16.mxu1 %v29904_v42 }
0x1547   :  { %v29928_v14 = vpack.c.bf16 %v31250_v60, %v31251_v30  ;;  %31355 = vst [vmem:[#allocation28_spill] sm:$0xff] %v30021_v58 }
0x1548   :  { %25305 = vmatmul.mubr.f32.vlgmr.msra.gmra.mrb[36].mxu0 %v29863_v62  ;;  %27157 = vmatpush3.bf16.msra.mxu1 %v29904_v42 }
0x1549   :  { %25311 = vmatpush3.msra.mxu0 %v15558_v40  ;;  %25307 = vmatprep.mubr.f32.mxu0 %v29869_v20  ;;  %v14837_v40 = vsub.f32 %v29985_v12, %v31243_v0 }
0x154a   :  { %25318 = vmatprep.subr.mxu0 %v15555_v4  ;;  %27159 = vmatprep.subr.bf16.mxu1 %v29914_v3 }
0x154b   :  { %v14838_v52 = vand.u32 4294901760, %v14837_v40  ;;  %v30018_v40 = vsub.f32 %v29906_v55, %v14745_v59  ;;  %v21799_v55 = vld [vmem:[#allocation4 + $0x98] ss:$0 sm:$0xff] }
0x154c   :  { %25308 = vmatmul.mubr.f32.gmra.mrb[38].mxu0 %v29872_v37  ;;  %27161 = vmatpush3.bf16.msra.mxu1 %v29914_v3 }
0x154d   :  { %25312 = vmatprep.mubr.f32.mxu0 %v29790_v17  ;;  %27163 = vmatprep.subr.bf16.mxu1 %v29928_v14  ;;  %31354 = vst [vmem:[#allocation27_spill] sm:$0xff] %v30018_v40 }
0x1550   :  { %25313 = vmatmul.mubr.f32.vlgmr.msra.gmra.mrb[36].mxu0 %v29801_v48  ;;  %27165 = vmatpush3.bf16.msra.mxu1 %v29928_v14 }
0x1551   :  { %25319 = vmatpush3.msra.mxu0 %v15555_v4  ;;  %25315 = vmatprep.mubr.f32.mxu0 %v29808_v10  ;;  %v29974_v4 = vpack.c.bf16 %v31239_v29, %v31244_v7  ;;  %v31242_v29 = vand.u32 4294901760, %v30001_v41 }
0x1552   :  { %25326 = vmatprep.subr.mxu0 %v29794_v1  ;;  %27167 = vmatprep.subr.bf16.mxu1 %v29942_v46 }
0x1553   :  { %v14858_v11 = vsub.f32 %v30001_v41, %v31242_v29 }
0x1554   :  { %25316 = vmatmul.mubr.f32.gmra.mrb[38].mxu0 %v29819_v32  ;;  %27169 = vmatpush3.bf16.msra.mxu1 %v29942_v46 }
0x1555   :  { %25320 = vmatprep.mubr.f32.mxu0 %v29806_v49  ;;  %27171 = vmatprep.subr.bf16.mxu1 %v29966_v57  ;;  %v14859_v35 = vand.u32 4294901760, %v14858_v11 }
0x1558   :  { %25321 = vmatmul.mubr.f32.vlgmr.msra.gmra.mrb[36].mxu0 %v29817_v2  ;;  %27173 = vmatpush3.bf16.msra.mxu1 %v29966_v57 }
0x1559   :  { %25327 = vmatpush3.msra.mxu0 %v29794_v1  ;;  %25323 = vmatprep.mubr.f32.mxu0 %v29827_v39 }
0x155a   :  { %25334 = vmatprep.subr.mxu0 %v15556_v22  ;;  %27175 = vmatprep.subr.bf16.mxu1 %v29974_v4 }
0x155c   :  { %25324 = vmatmul.mubr.f32.gmra.mrb[38].mxu0 %v29837_v23  ;;  %27177 = vmatpush3.bf16.msra.mxu1 %v29974_v4 }
0x155d   :  { %25328 = vmatprep.mubr.f32.mxu0 %v29824_v6 }
0x1560   :  { %25329 = vmatmul.mubr.f32.vlgmr.msra.gmra.mrb[36].mxu0 %v29834_v21 }
0x1561   :  { %25335 = vmatpush3.msra.mxu0 %v15556_v22  ;;  %25331 = vmatprep.mubr.f32.mxu0 %v29844_v61  ;;  %v31358_v61 = vand.u32 4294901760, %v29916_v26 }
0x1562   :  { %25342 = vmatprep.subr.mxu0 %v29794_v1 }
0x1564   :  { %25332 = vmatmul.mubr.f32.gmra.mrb[38].mxu0 %v29853_v44 }
0x1565   :  { %25336 = vmatprep.mubr.f32.mxu0 %v29790_v17 }
0x1568   :  { %25337 = vmatmul.mubr.f32.vlgmr.msra.gmra.mrb[36].mxu0 %v29801_v48 }
0x1569   :  { %25343 = vmatpush3.msra.mxu0 %v29794_v1  ;;  %25339 = vmatprep.mubr.f32.mxu0 %v29808_v10  ;;  %v29960_v1 = vld [vmem:[#allocation2 + $0x328] sm:$0xff] }
0x156a   :  { %v31237_v28 = vand.u32 4294901760, %v29960_v1 }
0x156c   :  { %25340 = vmatmul.mubr.f32.gmra.mrb[38].mxu0 %v29819_v32  ;;  %v29983_v22 = vpack.c.bf16 %v31237_v28, %v31238_v50  ;;  %v30004_v28 = vpack.c.bf16 %v14845_v38, %v14838_v52  ;;  %v31241_v50 = vand.u32 4294901760, %v29999_v31  ;;  %v31249_v52 = vand.u32 4294901760, %v30018_v40 }
0x156d   :  { %25344 = vmatprep.mubr.f32.mxu0 %v29790_v17  ;;  %v31253_v38 = vand.u32 4294901760, %v30021_v58 }
0x156e   :  { %27179 = vmatprep.subr.bf16.mxu1 %v29983_v22  ;;  %v14851_v63 = vsub.f32 %v29999_v31, %v31241_v50  ;;  %v14865_v50 = vsub.f32 %v30018_v40, %v31249_v52 }
0x156f   :  { %27181 = vmatpush3.bf16.msra.mxu1 %v29983_v22 }
0x1570   :  { %25345 = vmatmul.mubr.f32.vlgmr.msra.gmra.mrb[36].mxu0 %v29801_v48  ;;  %27183 = vmatprep.subr.bf16.mxu1 %v30004_v28  ;;  %v14852_v47 = vand.u32 4294901760, %v14851_v63  ;;  %v14872_v63 = vsub.f32 %v30021_v58, %v31253_v38  ;;  %v14866_v11 = vand.u32 4294901760, %v14865_v50 }
0x1571   :  { %25347 = vmatprep.mubr.f32.mxu0 %v29808_v10 }
0x1572   :  { %v30015_v25 = vpack.c.bf16 %v14859_v35, %v14852_v47  ;;  %v14873_v47 = vand.u32 4294901760, %v14872_v63  ;;  %v30035_v63 = vpack.c.bf16 %v30001_v41, %v29999_v31 }
0x1574   :  { %25348 = vmatmul.mubr.f32.gmra.mrb[38].mxu0 %v29819_v32  ;;  %v30031_v35 = vpack.c.bf16 %v14873_v47, %v14866_v11  ;;  %v30039_v11 = vpack.c.bf16 %v30021_v58, %v30018_v40  ;;  %v21798_v47 = vld [vmem:[#allocation4 + $0x90] ss:$0 sm:$0xff] }
0x1616   :  { %v25025_v59 = vpop.f32.mrb[20].mxu1 }
0x1617   :  { %v25091_v33 = vpop.f32.mrb[34].mxu0  ;;  %v14149_v24 = vpop.f32.mrb[21].mxu1 }
0x1618   :  { %v27600_v29 = vadd.f32 %v25091_v33, %v21799_v55  ;;  %v14686_v0 = vpop.f32.mrb[35].mxu0 }
0x1619   :  { %v27601_v7 = vadd.f32 %v21799_v55, %v14686_v0 }
0x161a   :  { %v14699_v19 = vmul.f32 0.044715, %v27600_v29 }
0x161b   :  { %v14698_v16 = vmul.f32 0.044715, %v27601_v7 }
0x161c   :  { %v14701_v13 = vmul.f32 %v27600_v29, %v14699_v19 }
0x161d   :  { %v14700_v36 = vmul.f32 %v27601_v7, %v14698_v16  ;;  %v14697_v16 = vmul.f32 0.5, %v27600_v29 }
0x161e   :  { %v14703_v52 = vmul.f32 %v27600_v29, %v14701_v13 }
0x161f   :  { %v14702_v60 = vmul.f32 %v27601_v7, %v14700_v36  ;;  %v14696_v36 = vmul.f32 0.5, %v27601_v7 }
0x1620   :  { %v14705_v30 = vadd.f32 %v27600_v29, %v14703_v52  ;;  %v30051_v29 = vsub.f32 %v29916_v26, %v31358_v61  ;;  %v31361_v61 = vand.u32 4294901760, %v29932_v43 }
0x1621   :  { %v14704_v34 = vadd.f32 %v27601_v7, %v14702_v60  ;;  %v27598_v60 = vadd.f32 %v25025_v59, %v21798_v47  ;;  %v31359_v7 = vand.u32 4294901760, %v29918_v54 }
0x1622   :  { %v14707_v38 = vmul.f32 0.7978846, %v14705_v30  ;;  %v30071_v26 = vsub.f32 %v29932_v43, %v31361_v61 }
0x1623   :  { %v14706_v50 = vmul.f32 0.7978846, %v14704_v34  ;;  %v27599_v34 = vadd.f32 %v21798_v47, %v14149_v24  ;;  %v30056_v59 = vsub.f32 %v29918_v54, %v31359_v7  ;;  %v31363_v54 = vand.u32 4294901760, %v29944_v53 }
0x1624   :  { %28164 = vtanh.f32 %v14707_v38  ;;  %31362 = vst [vmem:[#allocation31_spill] sm:$0xff] %v30071_v26 }
0x1625   :  { %28166 = vtanh.f32 %v14706_v50 }
0x162e   :  { %v28165_v0 = vpop.eup %28164 }
0x162f   :  { %v28167_v19 = vpop.eup %28166  ;;  %v14711_v13 = vadd.f32 1.0, %v28165_v0 }
0x1630   :  { %v14710_v52 = vadd.f32 1.0, %v28167_v19  ;;  %v31360_v19 = vand.u32 4294901760, %v29930_v18 }
0x1631   :  { %v14713_v30 = vmul.f32 %v14711_v13, %v14697_v16  ;;  %v30076_v13 = vsub.f32 %v29944_v53, %v31363_v54  ;;  %v31367_v53 = vand.u32 4294901760, %v29951_v9 }
0x1632   :  { %v14712_v38 = vmul.f32 %v14710_v52, %v14696_v36  ;;  %v30066_v16 = vsub.f32 %v29930_v18, %v31360_v19  ;;  %v31258_v52 = vand.u32 4294901760, %v30051_v29  ;;  %v31365_v18 = vand.u32 4294901760, %v29946_v5 }
0x1633   :  { %v14715_v55 = vmul.f32 %v27598_v60, %v14713_v30  ;;  %31364 = vst [vmem:[#allocation32_spill] sm:$0xff] %v30076_v13  ;;  %v31257_v60 = vand.u32 4294901760, %v30056_v59 }
0x1634   :  { %v14714_v33 = vmul.f32 %v27599_v34, %v14712_v38  ;;  %v30086_v30 = vsub.f32 %v29946_v5, %v31365_v18  ;;  %v30094_v34 = vsub.f32 %v29951_v9, %v31367_v53  ;;  %v31369_v38 = vand.u32 4294901760, %v29953_v8 }
0x1635   :  { %v30041_v51 = vand.u32 4294901760, %v14715_v55  ;;  %v31373_v5 = vand.u32 4294901760, %v29960_v1  ;;  %v31260_v54 = vand.u32 4294901760, %v30066_v16  ;;  %v31263_v9 = vand.u32 4294901760, %v30071_v26 }
0x1636   :  { %v30043_v50 = vand.u32 4294901760, %v14714_v33  ;;  %31366 = vst [vmem:[#allocation33_spill] sm:$0xff] %v30086_v30  ;;  %31368 = vst [vmem:[#allocation34_spill] sm:$0xff] %v30094_v34  ;;  %v31262_v18 = vand.u32 4294901760, %v30076_v13 }
0x1637   :  { %31356 = vst [vmem:[#allocation29_spill] sm:$0xff] %v30041_v51  ;;  %v30046_v44 = vsub.f32 %v14715_v55, %v30041_v51  ;;  %v30099_v55 = vsub.f32 %v29953_v8, %v31369_v38  ;;  %v30109_v19 = vsub.f32 %v29960_v1, %v31373_v5  ;;  %v14879_v8 = vsub.f32 %v30051_v29, %v31258_v52 }
0x1638   :  { %31357 = vst [vmem:[#allocation30_spill] sm:$0xff] %v30043_v50  ;;  %v30059_v24 = vsub.f32 %v14714_v33, %v30043_v50  ;;  %v31371_v33 = vand.u32 4294901760, %v29955_v27  ;;  %v31264_v38 = vand.u32 4294901760, %v30086_v30  ;;  %v31267_v1 = vand.u32 4294901760, %v30094_v34 }
0x1639   :  { %v31259_v0 = vand.u32 4294901760, %v30046_v44  ;;  %31370 = vst [vmem:[#allocation35_spill] sm:$0xff] %v30099_v55  ;;  %31374 = vst [vmem:[#allocation37_spill] sm:$0xff] %v30109_v19  ;;  %v14893_v5 = vsub.f32 %v30066_v16, %v31260_v54  ;;  %v14880_v52 = vand.u32 4294901760, %v14879_v8  ;;  %v31375_v54 = vand.u32 4294901760, %v30109_v19 }
0x163a   :  { %v31261_v47 = vand.u32 4294901760, %v30059_v24  ;;  %v30104_v7 = vsub.f32 %v29955_v27, %v31371_v33  ;;  %v14886_v27 = vsub.f32 %v30056_v59, %v31257_v60 }
0x163b   :  { %v14826_v36 = vsub.f32 %v30046_v44, %v31259_v0  ;;  %v14914_v0 = vsub.f32 %v30086_v30, %v31264_v38  ;;  %v14942_v21 = vsub.f32 %v30109_v19, %v31375_v54 }
0x163c   :  { %v14816_v43 = vsub.f32 %v30059_v24, %v31261_v47  ;;  %31372 = vst [vmem:[#allocation36_spill] sm:$0xff] %v30104_v7  ;;  %v31277_v33 = vand.u32 4294901760, %v30104_v7 }
0x163d   :  { %v14827_v53 = vand.u32 4294901760, %v14826_v36 }
0x163e   :  { %v14817_v61 = vand.u32 4294901760, %v14816_v43  ;;  %v31270_v43 = vand.u32 4294901760, %v30099_v55  ;;  %v14935_v38 = vsub.f32 %v30104_v7, %v31277_v33 }
0x1640   :  { %25124 = vmatprep.mubr.f32.mxu1 %v14817_v61  ;;  %v14900_v61 = vsub.f32 %v30071_v26, %v31263_v9  ;;  %v14928_v9 = vsub.f32 %v30099_v55, %v31270_v43  ;;  %v14936_v17 = vand.u32 4294901760, %v14935_v38 }
0x1641   :  { %25125 = vmatmul.mubr.f32.vlgmr.msra.gmra.mrb[22].mxu1 %v14827_v53  ;;  %v14907_v53 = vsub.f32 %v30076_v13, %v31262_v18  ;;  %v14921_v18 = vsub.f32 %v30094_v34, %v31267_v1  ;;  %v14894_v1 = vand.u32 4294901760, %v14893_v5 }
0x1642   :  { %27185 = vmatpush3.bf16.msra.mxu1 %v30004_v28  ;;  %25159 = vmatprep.mubr.f32.mxu1 %v30043_v50  ;;  %v14887_v28 = vand.u32 4294901760, %v14886_v27  ;;  %v14901_v23 = vand.u32 4294901760, %v14900_v61  ;;  %v14929_v5 = vand.u32 4294901760, %v14928_v9 }
0x1643   :  { %v30136_v60 = vpop.f32.mrb[36].mxu0  ;;  %27187 = vmatprep.subr.bf16.mxu1 %v30015_v25  ;;  %v14908_v39 = vand.u32 4294901760, %v14907_v53 }
0x1644   :  { %v16129_v47 = vand.u32 2139095040, %v30136_v60  ;;  %v30144_v36 = vpop.f32.mrb[37].mxu0  ;;  %v31376_v43 = vand.u32 2147483647, %v30136_v60  ;;  %v27194_v33 = vpack.c.bf16 %v14887_v28, %v14880_v52  ;;  %vm16218_vm0 = vweird.f32 %v30136_v60 }
0x1645   :  { %v16025_v27 = vand.u32 2139095040, %v30144_v36  ;;  %v31377_v49 = vand.u32 2147483647, %v30144_v36 }
0x1646   :  { %v16130_v6 = vshrl.u32 %v16129_v47, 23  ;;  %27189 = vmatpush3.bf16.msra.mxu1 %v30015_v25  ;;  %v16133_v2 = vand.u32 8388607, %v31376_v43  ;;  %v14915_v47 = vand.u32 4294901760, %v14914_v0  ;;  %v14922_v25 = vand.u32 4294901760, %v14921_v18 }
0x1647   :  { %v16026_v8 = vshrl.u32 %v16025_v27, 23  ;;  %v16029_v32 = vand.u32 8388607, %v31377_v49  ;;  %v30165_v10 = vpop.f32.mrb[38].mxu0  ;;  %27191 = vmatprep.subr.bf16.mxu1 %v30031_v35  ;;  %v14943_v43 = vand.u32 4294901760, %v14942_v21  ;;  %v27198_v49 = vpack.c.bf16 %v14901_v23, %v14894_v1 }
0x1648   :  { %v21805_v48 = vadd.s32 4294967169, %v16130_v6  ;;  %v30168_v54 = vpop.f32.mrb[39].mxu0  ;;  %v16337_v53 = vand.u32 2139095040, %v30165_v10  ;;  %v16134_v37 = vor.u32 8388608, %v16133_v2  ;;  %v27202_v6 = vpack.c.bf16 %v14915_v47, %v14908_v39 }
0x1649   :  { %v21801_v61 = vadd.s32 4294967169, %v16026_v8  ;;  %v16030_v20 = vor.u32 8388608, %v16029_v32  ;;  %v30172_v52 = vpack.c.bf16 %v14929_v5, %v14922_v25  ;;  %v30174_v18 = vpack.c.bf16 %v14943_v43, %v14936_v17 }
0x164a   :  { %v16136_v27 = vadd.s32 1, %v21805_v48  ;;  %27193 = vmatpush3.bf16.msra.mxu1 %v30031_v35  ;;  %v16338_v56 = vshrl.u32 %v16337_v53, 23  ;;  %v30178_v2 = vpack.c.bf16 %v29987_v15, %v29985_v12  ;;  %v30180_v32 = vshll.u32 %v16134_v37, 8 }
0x164b   :  { %v16032_v62 = vadd.s32 1, %v21801_v61  ;;  %27195 = vmatprep.subr.bf16.mxu1 %v27194_v33  ;;  %v30184_v39 = vshll.u32 %v16030_v20, 8  ;;  %v31296_v17 = vmov 683565275   ;;  %v31292_v37 = vmov 2131351028  }
0x164c   :  { %vm16137_vm4 = vcmp.gt.s32.totalorder %v16136_v27, 0  ;;  %v21813_v9 = vadd.s32 4294967169, %v16338_v56  ;;  %v31294_v25 = vmov 2102212464   ;;  %v31298_v5 = vmov 920167782  }
0x164d   :  { %v16138_v0 = vsel %vm16137_vm4, %v16136_v27, 0  ;;  %vm16033_vm5 = vcmp.gt.s32.totalorder %v16032_v62, 0 }
0x164e   :  { %v16139_v38 = vshrl.u32 %v16138_v0, 5  ;;  %v16140_v21 = vand.u32 31, %v16138_v0  ;;  %v16034_v48 = vsel %vm16033_vm5, %v16032_v62, 0  ;;  %27197 = vmatpush3.bf16.msra.mxu1 %v27194_v33  ;;  %v30190_v62 = vadd.s32 1, %v21813_v9 }
0x164f   :  { %v30182_v23 = vshrl.u32 %v16034_v48, 5  ;;  %27199 = vmatprep.subr.bf16.mxu1 %v27198_v49  ;;  %v30188_v28 = vand.u32 31, %v16034_v48  ;;  %v31288_v33 = vmov 2475754826   ;;  %v31300_v48 = vmov 1326507024  }
0x1650   :  { %v16141_v56 = vsub.s32 32, %v16140_v21  ;;  %v16143_v1 = vshll.u32 %v31296_v17, %v16140_v21  ;;  %v16146_v8 = vshll.u32 %v31288_v33, %v16140_v21  ;;  %v16149_v47 = vshll.u32 %v31292_v37, %v16140_v21 }
0x1651   :  { %v16152_v20 = vshll.u32 %v31294_v25, %v16140_v21  ;;  %v16155_v61 = vshll.u32 %v31298_v5, %v16140_v21  ;;  %vm16158_vm6 = vcmp.lt.s32.totalorder %v16139_v38, 1  ;;  %vm16159_vm7 = vcmp.lt.s32.totalorder %v16139_v38, 2 }
0x1652   :  { %v16144_v53 = vshrl.u32 %v31288_v33, %v16141_v56  ;;  %v16147_v43 = vshrl.u32 %v31292_v37, %v16141_v56  ;;  %v16150_v27 = vshrl.u32 %v31294_v25, %v16141_v56  ;;  %27201 = vmatpush3.bf16.msra.mxu1 %v27198_v49  ;;  %v16142_v0 = vshrl.u32 %v31296_v17, %v16141_v56 }
0x1653   :  { %v16153_v9 = vshrl.u32 %v31298_v5, %v16141_v56  ;;  %v16156_v35 = vshrl.u32 %v31300_v48, %v16141_v56  ;;  %27203 = vmatprep.subr.bf16.mxu1 %v27202_v6  ;;  %v16037_v33 = vsub.s32 32, %v30188_v28  ;;  %vm16160_vm8 = vcmp.lt.s32.totalorder %v16139_v38, 3 }
0x1654   :  { %v16145_v58 = vor.u32 %v16144_v53, %v16143_v1  ;;  %v16148_v40 = vor.u32 %v16147_v43, %v16146_v8  ;;  %v16151_v21 = vor.u32 %v16150_v27, %v16149_v47  ;;  %vm16161_vm9 = vcmp.lt.s32.totalorder %v16139_v38, 4 }
0x1655   :  { %v16154_v50 = vor.u32 %v16153_v9, %v16152_v20  ;;  %v16157_v37 = vor.u32 %v16156_v35, %v16155_v61  ;;  %v31378_v1 = vmov 683565275   ;;  %v31379_v20 = vmov 2475754826  }
0x1656   :  { %v16162_v49 = vsel %vm16158_vm6, %v16142_v0, %v16145_v58  ;;  %v16163_v25 = vsel %vm16161_vm9, %v16151_v21, 2102212464  ;;  %v16166_v17 = vsel %vm16158_vm6, %v16145_v58, %v16148_v40  ;;  %v16170_v5 = vsel %vm16158_vm6, %v16148_v40, %v16151_v21  ;;  %27205 = vmatpush3.bf16.msra.mxu1 %v27202_v6 }
0x1657   :  { %v16164_v56 = vsel %vm16160_vm8, %v16148_v40, %v16163_v25  ;;  %v16167_v48 = vsel %vm16161_vm9, %v16154_v50, 920167782  ;;  %v16171_v41 = vsel %vm16161_vm9, %v16157_v37, 1326507024  ;;  %v16039_v8 = vshll.u32 %v31378_v1, %v30188_v28  ;;  %27207 = vmatprep.subr.bf16.mxu1 %v30172_v52 }
0x1658   :  { %v16168_v47 = vsel %vm16160_vm8, %v16151_v21, %v16167_v48  ;;  %v16172_v35 = vsel %vm16160_vm8, %v16154_v50, %v16171_v41  ;;  %v16040_v61 = vshrl.u32 %v31379_v20, %v16037_v33  ;;  %v16042_v53 = vshll.u32 %v31379_v20, %v30188_v28 }
0x1659   :  { %v16165_v58 = vsel %vm16159_vm7, %v16162_v49, %v16164_v56  ;;  %v16169_v43 = vsel %vm16159_vm7, %v16166_v17, %v16168_v47  ;;  %v16173_v40 = vsel %vm16159_vm7, %v16170_v5, %v16172_v35  ;;  %v31380_v6 = vmov 2131351028  }
0x165a   :  { %v16043_v37 = vshrl.u32 %v31380_v6, %v16037_v33  ;;  %v30217_v25 = vmul.u32.u64.low %v30180_v32, %v16173_v40  ;;  %v30218_v27 = vmul.u32.u64.high %v30180_v32, %v16173_v40, %v30217_v25  ;;  %27209 = vmatpush3.bf16.msra.mxu1 %v30172_v52  ;;  %v16041_v50 = vor.u32 %v16040_v61, %v16039_v8 }
0x165b   :  { %v30221_v0 = vmul.u32.u64.low %v30180_v32, %v16169_v43  ;;  %v30222_v41 = vmul.u32.u64.high %v30180_v32, %v16169_v43, %v30221_v0  ;;  %v16045_v17 = vshll.u32 %v31380_v6, %v30188_v28  ;;  %v31381_v38 = vmov 2102212464   ;;  %27211 = vmatprep.subr.bf16.mxu1 %v30174_v18 }
0x165c   :  { %v16044_v9 = vor.u32 %v16043_v37, %v16042_v53  ;;  %v16046_v5 = vshrl.u32 %v31381_v38, %v16037_v33  ;;  %v16038_v48 = vshrl.u32 %v31378_v1, %v16037_v33  ;;  %v16048_v21 = vshll.u32 %v31381_v38, %v30188_v28 }
0x165d   :  { %v31382_v49 = vmov 920167782   ;;  %v31383_v47 = vmov 1326507024   ;;  %v16181_v52 = vmul.u32 %v30180_v32, %v16165_v58  ;;  %vm16054_vm10 = vcmp.lt.s32.totalorder %v30182_v23, 1 }
0x165e   :  { %v16049_v56 = vshrl.u32 %v31382_v49, %v16037_v33  ;;  %v16052_v35 = vshrl.u32 %v31383_v47, %v16037_v33  ;;  %v16047_v8 = vor.u32 %v16046_v5, %v16045_v17  ;;  %v16051_v61 = vshll.u32 %v31382_v49, %v30188_v28  ;;  %27213 = vmatpush3.bf16.msra.mxu1 %v30174_v18 }
0x165f   :  { %vm16183_vm11 = vc.u32 %v30218_v27, %v30221_v0  ;;  %v16184_v53 = vadd.s32 1, %v30222_v41  ;;  %vm16055_vm12 = vcmp.lt.s32.totalorder %v30182_v23, 2  ;;  %vm16056_vm13 = vcmp.lt.s32.totalorder %v30182_v23, 3  ;;  %27215 = vmatprep.subr.bf16.mxu1 %v30178_v2 }
0x1660   :  { %v16050_v43 = vor.u32 %v16049_v56, %v16048_v21  ;;  %v16053_v40 = vor.u32 %v16052_v35, %v16051_v61  ;;  %vm16057_vm14 = vcmp.lt.s32.totalorder %v30182_v23, 4  ;;  %v16062_v32 = vsel %vm16054_vm10, %v16041_v50, %v16044_v9 }
0x1661   :  { %v16185_v28 = vsel %vm16183_vm11, %v16184_v53, %v30222_v41  ;;  %v16059_v33 = vsel %vm16057_vm14, %v16047_v8, 2102212464  ;;  %v16066_v37 = vsel %vm16054_vm10, %v16044_v9, %v16047_v8  ;;  %v16058_v18 = vsel %vm16054_vm10, %v16038_v48, %v16041_v50  ;;  %25160 = vmatmul.mubr.f32.vlgmr.msra.gmra.mrb[22].mxu1 %v30041_v51 }
0x1662   :  { %v16063_v58 = vsel %vm16057_vm14, %v16050_v43, 920167782  ;;  %v16186_v25 = vadd.s32 %v16185_v28, %v16181_v52  ;;  %v16067_v5 = vsel %vm16057_vm14, %v16053_v40, 1326507024  ;;  %v16060_v21 = vsel %vm16056_vm13, %v16044_v9, %v16059_v33  ;;  %27217 = vmatpush3.bf16.msra.mxu1 %v30178_v2  ;;  %25194 = vmatprep.mubr.f32.mxu1 %v30059_v24 }
0x1663   :  { %v16064_v17 = vsel %vm16056_vm13, %v16047_v8, %v16063_v58  ;;  %v16068_v35 = vsel %vm16056_vm13, %v16050_v43, %v16067_v5  ;;  %vm16345_vm15 = vcmp.gt.s32.totalorder %v30190_v62, 0  ;;  %27219 = vmatprep.subr.bf16.mxu1 %v30035_v63  ;;  %v16061_v2 = vsel %vm16055_vm12, %v16058_v18, %v16060_v21 }
0x1664   :  { %v16065_v56 = vsel %vm16055_vm12, %v16062_v32, %v16064_v17  ;;  %v16187_v41 = vadd.s32 536870912, %v16186_v25  ;;  %v16069_v52 = vsel %vm16055_vm12, %v16066_v37, %v16068_v35  ;;  %v16346_v61 = vsel %vm16345_vm15, %v30190_v62, 0 }
0x1665   :  { %v30263_v50 = vmul.u32.u64.low %v30184_v39, %v16065_v56  ;;  %v30264_v48 = vmul.u32.u64.high %v30184_v39, %v16065_v56, %v30263_v50  ;;  %v30268_v9 = vmul.u32.u64.low %v30184_v39, %v16069_v52  ;;  %v30269_v8 = vmul.u32.u64.high %v30184_v39, %v16069_v52, %v30268_v9 }
0x1666   :  { %v16188_v53 = vshrl.u32 %v16187_v41, 30  ;;  %v31384_v43 = vand.u32 2147483647, %v30165_v10  ;;  %v30276_v32 = vand.u32 31, %v16346_v61  ;;  %v16233_v28 = vand.u32 2139095040, %v30168_v54  ;;  %27221 = vmatpush3.bf16.msra.mxu1 %v30035_v63 }
0x1667   :  { %v16080_v58 = vadd.s32 1, %v30264_v48  ;;  %27223 = vmatprep.subr.bf16.mxu1 %v30039_v11  ;;  %v27226_v23 = vpack.c.bf16 %v30056_v59, %v30051_v29  ;;  %v16077_v62 = vmul.u32 %v30184_v39, %v16061_v2  ;;  %vm16079_vm2 = vc.u32 %v30269_v8, %v30263_v50 }
0x1668   :  { %v16341_v40 = vand.u32 8388607, %v31384_v43  ;;  %v16189_v33 = vshll.u32 %v16188_v53, 30  ;;  %v16349_v37 = vsub.s32 32, %v30276_v32  ;;  %v16234_v56 = vshrl.u32 %v16233_v28, 23 }
0x1669   :  { %v16081_v17 = vsel %vm16079_vm2, %v16080_v58, %v30264_v48  ;;  %v27230_v35 = vpack.c.bf16 %v30071_v26, %v30066_v16  ;;  %v27234_v41 = vpack.c.bf16 %v30086_v30, %v30076_v13  ;;  %v16212_v52 = vsub.s32 4, %v16188_v53 }
0x166a   :  { %v30287_v18 = vsub.s32 %v16186_v25, %v16189_v33  ;;  %v16342_v5 = vor.u32 8388608, %v16341_v40  ;;  %v16350_v63 = vshrl.u32 %v31378_v1, %v16349_v37  ;;  %v16082_v21 = vadd.s32 %v16081_v17, %v16077_v62  ;;  %27225 = vmatpush3.bf16.msra.mxu1 %v30039_v11  ;;  %v30319_v62 = vld [vmem:[#allocation2 + $0x358] sm:$0xff]  ;;  %v30321_v17 = vld [vmem:[#allocation2 + $0x360] sm:$0xff] }
0x166b   :  { %27227 = vmatprep.subr.bf16.mxu1 %v27226_v23  ;;  %v30299_v25 = vpack.c.bf16 %v30099_v55, %v30094_v34  ;;  %v30303_v48 = vpack.c.bf16 %v30109_v19, %v30104_v7  ;;  %v31385_v11 = vand.u32 2147483647, %v30136_v60  ;;  %vm16128_vm5 = vcmp.lt.s32.totalorder %v30136_v60, 0 }
0x166c   :  { %v16192_v39 = vsub.s32 0, %v30287_v18  ;;  %v16083_v2 = vadd.s32 536870912, %v16082_v21  ;;  %v16182_v40 = vadd.s32 %v30221_v0, %v30218_v27  ;;  %v16352_v33 = vshrl.u32 %v31379_v20, %v16349_v37 }
0x166d   :  { %vm30307_vm4 = vcmp.le.f32.partialorder %v31385_v11, 0.7853982  ;;  %v30317_v58 = vshll.u32 %v16342_v5, 8  ;;  %v30325_v51 = vshrl.u32 %v16346_v61, 5  ;;  %v16351_v43 = vshll.u32 %v31378_v1, %v30276_v32 }
0x166e   :  { %v21806_v28 = vmin.u32 %v16192_v39, %v30287_v18  ;;  %v30323_v11 = vshrl.u32 %v16083_v2, 30  ;;  %v30329_v19 = vadd.s32 4294967169, %v16234_v56  ;;  %27229 = vmatpush3.bf16.msra.mxu1 %v27226_v23  ;;  %v16213_v0 = vsel %vm16128_vm5, %v16212_v52, %v16188_v53 }
0x166f   :  { %v16355_v5 = vshrl.u32 %v31380_v6, %v16349_v37  ;;  %v16358_v39 = vshrl.u32 %v31381_v38, %v16349_v37  ;;  %27231 = vmatprep.subr.bf16.mxu1 %v27230_v35  ;;  %v30336_v2 = vadd.s32 %v30263_v50, %v30269_v8  ;;  %v16353_v23 = vor.u32 %v16352_v33, %v16351_v43 }
0x1670   :  { %v16194_v27 = vclz %v21806_v28  ;;  %v16085_v61 = vshll.u32 %v30323_v11, 30  ;;  %v16354_v28 = vshll.u32 %v31379_v20, %v30276_v32  ;;  %v16357_v53 = vshll.u32 %v31380_v6, %v30276_v32 }
0x1671   :  { %v30347_v52 = vsel %vm30307_vm4, 0, %v16213_v0  ;;  %vm16024_vm6 = vcmp.lt.s32.totalorder %v30144_v36, 0  ;;  %v16361_v8 = vshrl.u32 %v31382_v49, %v16349_v37  ;;  %v16364_v56 = vshrl.u32 %v31383_v47, %v16349_v37 }
0x1672   :  { %v21807_v55 = vadd.s32 4294967294, %v16194_v27  ;;  %v30350_v50 = vsub.s32 %v16082_v21, %v16085_v61  ;;  %27233 = vmatpush3.bf16.msra.mxu1 %v27230_v35  ;;  %v16356_v43 = vor.u32 %v16355_v5, %v16354_v28  ;;  %v16359_v33 = vor.u32 %v16358_v39, %v16357_v53 }
0x1673   :  { %v16360_v27 = vshll.u32 %v31381_v38, %v30276_v32  ;;  %27235 = vmatprep.subr.bf16.mxu1 %v27234_v41  ;;  %v16363_v34 = vshll.u32 %v31382_v49, %v30276_v32  ;;  %vm16366_vm8 = vcmp.lt.s32.totalorder %v30325_v51, 1  ;;  %v31388_v37 = vand.u32 2147483647, %v30144_v36 }
0x1674   :  { %vm21808_vm7 = vcmp.lt.s32.totalorder %v21807_v55, 0  ;;  %v16088_v0 = vsub.s32 0, %v30350_v50  ;;  %v16108_v5 = vsub.s32 4, %v30323_v11  ;;  %vm16369_vm10 = vcmp.lt.s32.totalorder %v30325_v51, 4 }
0x1675   :  { %v16197_v7 = vsel %vm21808_vm7, 0, %v21807_v55  ;;  %vm30362_vm9 = vcmp.le.f32.partialorder %v31388_v37, 0.7853982  ;;  %v16370_v55 = vsel %vm16366_vm8, %v16350_v63, %v16353_v23  ;;  %v16362_v28 = vor.u32 %v16361_v8, %v16360_v27 }
0x1676   :  { %v16198_v21 = vsub.s32 32, %v16197_v7  ;;  %v16202_v61 = vsub.s32 4294967266, %v16197_v7  ;;  %v21802_v39 = vmin.u32 %v16088_v0, %v30350_v50  ;;  %v16365_v53 = vor.u32 %v16364_v56, %v16363_v34  ;;  %27237 = vmatpush3.bf16.msra.mxu1 %v27234_v41 }
0x1677   :  { %v16199_v32 = vshll.u32 %v30287_v18, %v16197_v7  ;;  %v16371_v37 = vsel %vm16369_vm10, %v16359_v33, 2102212464  ;;  %27239 = vmatprep.subr.bf16.mxu1 %v30299_v25  ;;  %v30376_v26 = vadd.s32 3, %v30347_v52  ;;  %vm16367_vm11 = vcmp.lt.s32.totalorder %v30325_v51, 2 }
0x1678   :  { %v16200_v30 = vshrl.u32 %v16182_v40, %v16198_v21  ;;  %v16203_v13 = vadd.s32 127, %v16202_v61  ;;  %v16090_v63 = vclz %v21802_v39  ;;  %vm16368_vm12 = vcmp.lt.s32.totalorder %v30325_v51, 3 }
0x1679   :  { %v16372_v7 = vsel %vm16368_vm12, %v16356_v43, %v16371_v37  ;;  %v16374_v18 = vsel %vm16366_vm8, %v16353_v23, %v16356_v43  ;;  %v16375_v8 = vsel %vm16369_vm10, %v16362_v28, 920167782  ;;  %v16378_v27 = vsel %vm16366_vm8, %v16356_v43, %v16359_v33 }
0x167a   :  { %v16201_v34 = vor.u32 %v16200_v30, %v16199_v32  ;;  %v16204_v56 = vshll.u32 %v16203_v13, 23  ;;  %v21803_v41 = vadd.s32 4294967294, %v16090_v63  ;;  %v30386_v40 = vsel %vm16367_vm11, %v16370_v55, %v16372_v7  ;;  %27241 = vmatpush3.bf16.msra.mxu1 %v30299_v25 }
0x167b   :  { %v16109_v30 = vsel %vm16024_vm6, %v16108_v5, %v30323_v11  ;;  %v16376_v23 = vsel %vm16368_vm12, %v16359_v33, %v16375_v8  ;;  %v16379_v0 = vsel %vm16369_vm10, %v16365_v53, 1326507024  ;;  %27243 = vmatprep.subr.bf16.mxu1 %v30303_v48  ;;  %v16389_v25 = vmul.u32 %v30317_v58, %v30386_v40 }
0x167c   :  { %v16205_v13 = vor.u32 4788187, %v16204_v56  ;;  %v16208_v21 = vcvt.s32.f32 %v16201_v34  ;;  %vm21804_vm13 = vcmp.lt.s32.totalorder %v21803_v41, 0  ;;  %v16380_v43 = vsel %vm16368_vm12, %v16362_v28, %v16379_v0  ;;  %v30413_v28 = vld [vmem:[#allocation2 + $0x368] sm:$0xff] }
0x167d   :  { %v16093_v55 = vsel %vm21804_vm13, 0, %v21803_v41  ;;  %v16377_v11 = vsel %vm16367_vm11, %v16374_v18, %v16376_v23  ;;  %v16381_v33 = vsel %vm16367_vm11, %v16378_v27, %v16380_v43  ;;  %v16111_v53 = vsel %vm30362_vm9, 0, %v16109_v30 }
0x167e   :  { %v16206_v61 = vand.u32 2147483647, %v16205_v13  ;;  %v16094_v5 = vsub.s32 32, %v16093_v55  ;;  %v16098_v39 = vsub.s32 4294967266, %v16093_v55  ;;  %v16240_v32 = vadd.s32 1, %v30329_v19  ;;  %27245 = vmatpush3.bf16.msra.mxu1 %v30303_v48 }
0x167f   :  { %v16095_v63 = vshll.u32 %v30350_v50, %v16093_v55  ;;  %v30417_v34 = vmul.u32.u64.low %v30317_v58, %v16381_v33  ;;  %v30418_v56 = vmul.u32.u64.high %v30317_v58, %v16381_v33, %v30417_v34  ;;  %27247 = vmatprep.subr.bf16.mxu1 %v29900_v45  ;;  %v31391_v48 = vand.u32 4294901760, %v30319_v62 }
0x1680   :  { %v16209_v37 = vmul.f32 %v16208_v21, %v16206_v61  ;;  %v16096_v51 = vshrl.u32 %v30336_v2, %v16094_v5  ;;  %v16099_v7 = vadd.s32 127, %v16098_v39  ;;  %vm16241_vm14 = vcmp.gt.s32.totalorder %v16240_v32, 0 }
0x1681   :  { %v30423_v18 = vmul.u32.u64.low %v30317_v58, %v16377_v11  ;;  %v30424_v41 = vmul.u32.u64.high %v30317_v58, %v16377_v11, %v30423_v18  ;;  %25195 = vmatmul.mubr.f32.vlgmr.msra.gmra.mrb[22].mxu1 %v30046_v44  ;;  %v31392_v50 = vand.u32 4294901760, %v30321_v17  ;;  %v30435_v8 = vand.u32 4294901760, %v30413_v28 }
0x1682   :  { %v16210_v19 = vxor.u32 2147483648, %v16209_v37  ;;  %v16097_v2 = vor.u32 %v16096_v51, %v16095_v63  ;;  %v16100_v27 = vshll.u32 %v16099_v7, 23  ;;  %v31393_v13 = vand.u32 2147483647, %v30168_v54  ;;  %27249 = vmatpush3.bf16.msra.mxu1 %v29900_v45 }
0x1683   :  { %v30432_v40 = vpack.c.bf16 %v31392_v50, %v31391_v48  ;;  %v16242_v30 = vsel %vm16241_vm14, %v16240_v32, 0  ;;  %v31394_v23 = vand.u32 4294901760, %v30059_v24  ;;  %v16115_v21 = vadd.s32 3, %v16111_v53  ;;  %27251 = vmatprep.subr.bf16.mxu1 %v29904_v42 }
0x1684   :  { %v30439_v58 = vand.u32 8388607, %v31393_v13  ;;  %v16211_v0 = vsel %vm16128_vm5, %v16210_v19, %v16209_v37  ;;  %vm16391_vm15 = vc.u32 %v30418_v56, %v30423_v18  ;;  %v30448_v43 = vshrl.u32 %v16242_v30, 5 }
0x1685   :  { %25229 = vmatprep.mubr.f32.mxu1 %v31394_v23  ;;  %27343 = vmatprep.subr.bf16.mxu0 %v30432_v40  ;;  %v16214_v61 = vsel %vm30307_vm4, %v30136_v60, %v16211_v0  ;;  %v30456_v24 = vand.u32 3, %v30347_v52  ;;  %v16101_v55 = vor.u32 4788187, %v16100_v27  ;;  %v16392_v11 = vadd.s32 1, %v30424_v41 }
0x1686   :  { %27345 = vmatpush3.bf16.msra.mxu0 %v30432_v40  ;;  %28168 = vcosq.f32 %v16214_v61  ;;  %v30461_v33 = vand.u32 3, %v30376_v26  ;;  %v30463_v5 = vand.u32 3, %v16111_v53  ;;  %v30465_v39 = vand.u32 31, %v16242_v30  ;;  %27253 = vmatpush3.bf16.msra.mxu1 %v29904_v42 }
0x1687   :  { %25354 = vmatprep.subr.mxu0 %v30435_v8  ;;  %28170 = vsinq.f32 %v16214_v61  ;;  %v16102_v9 = vand.u32 2147483647, %v16101_v55  ;;  %v16104_v32 = vcvt.s32.f32 %v16097_v2  ;;  %vm16336_vm2 = vcmp.lt.s32.totalorder %v30165_v10, 0  ;;  %27255 = vmatprep.subr.bf16.mxu1 %v29914_v3 }
0x1688   :  { %v16393_v52 = vsel %vm16391_vm15, %v16392_v11, %v30424_v41  ;;  %v30474_v26 = vand.u32 3, %v16115_v21  ;;  %v31395_v53 = vand.u32 2147483647, %v30165_v10  ;;  %v16245_v34 = vsub.s32 32, %v30465_v39 }
0x1689   :  { %v16394_v63 = vadd.s32 %v16393_v52, %v16389_v25  ;;  %vm16262_vm5 = vcmp.lt.s32.totalorder %v30448_v43, 1  ;;  %v16105_v51 = vmul.f32 %v16104_v32, %v16102_v9  ;;  %v16247_v7 = vshll.u32 %v31378_v1, %v30465_v39 }
0x168a   :  { %vm30478_vm4 = vcmp.le.f32.partialorder %v31395_v53, 0.7853982  ;;  %v16250_v41 = vshll.u32 %v31379_v20, %v30465_v39  ;;  %v16253_v19 = vshll.u32 %v31380_v6, %v30465_v39  ;;  %25355 = vmatpush3.msra.mxu0 %v30435_v8  ;;  %vm16225_vm7 = vcmp.eq.s32.totalorder %v30461_v33, 2  ;;  %27257 = vmatpush3.bf16.msra.mxu1 %v29914_v3 }
0x168b   :  { %vm16642_vm8 = vcmp.eq.s32.totalorder %v30456_v24, 2  ;;  %v16395_v25 = vadd.s32 536870912, %v16394_v63  ;;  %v16246_v48 = vshrl.u32 %v31378_v1, %v16245_v34  ;;  %v16248_v50 = vshrl.u32 %v31379_v20, %v16245_v34  ;;  %27259 = vmatprep.subr.bf16.mxu1 %v29928_v14 }
0x168c   :  { %v16251_v2 = vshrl.u32 %v31380_v6, %v16245_v34  ;;  %vm16222_vm10 = vcmp.eq.s32.totalorder %v30461_v33, 0  ;;  %vm16639_vm11 = vcmp.eq.s32.totalorder %v30456_v24, 0  ;;  %v16106_v27 = vxor.u32 2147483648, %v16105_v51 }
0x168d   :  { %v16254_v13 = vshrl.u32 %v31381_v38, %v16245_v34  ;;  %v16256_v30 = vshll.u32 %v31381_v38, %v30465_v39  ;;  %v16257_v23 = vshrl.u32 %v31382_v49, %v16245_v34  ;;  %vm16221_vm12 = vcmp.lt.s32.totalorder %v30461_v33, 2 }
0x168e   :  { %vm16638_vm13 = vcmp.lt.s32.totalorder %v30456_v24, 2  ;;  %vm16856_vm14 = vcmask 195584   ;;  %v16396_v1 = vshrl.u32 %v16395_v25, 30  ;;  %v16249_v20 = vor.u32 %v16248_v50, %v16247_v7  ;;  %27261 = vmatpush3.bf16.msra.mxu1 %v29928_v14 }
0x168f   :  { %v30506_v6 = vor.u32 %v16251_v2, %v16250_v41  ;;  %vm16263_vm15 = vcmp.lt.s32.totalorder %v30448_v43, 2  ;;  %v16107_v38 = vsel %vm16024_vm6, %v16106_v27, %v16105_v51  ;;  %v30513_v0 = vor.u32 %v16254_v13, %v16253_v19  ;;  %27263 = vmatprep.subr.bf16.mxu1 %v29942_v46 }
0x1690   :  { %v30515_v21 = vor.u32 %v16257_v23, %v16256_v30  ;;  %vm16265_vm1 = vcmp.lt.s32.totalorder %v30448_v43, 4  ;;  %v16110_v61 = vsel %vm30362_vm9, %v30144_v36, %v16107_v38  ;;  %v16397_v55 = vshll.u32 %v16396_v1, 30  ;;  %v28169_v35 = vpop.eup %28168 }
0x1691   :  { %v16420_v11 = vsub.s32 4, %v16396_v1  ;;  %v16266_v9 = vsel %vm16262_vm5, %v16246_v48, %v16249_v20  ;;  %28172 = vcosq.f32 %v16110_v61  ;;  %vm16264_vm3 = vcmp.lt.s32.totalorder %v30448_v43, 3  ;;  %v28171_v41 = vpop.eup %28170 }
0x1692   :  { %v16267_v32 = vsel %vm16265_vm1, %v30513_v0, 2102212464  ;;  %v16271_v52 = vsel %vm16265_vm1, %v30515_v21, 920167782  ;;  %28174 = vsinq.f32 %v16110_v61  ;;  %v30531_v53 = vsub.s32 %v16394_v63, %v16397_v55  ;;  %27265 = vmatpush3.bf16.msra.mxu1 %v29942_v46 }
0x1693   :  { %v16421_v51 = vsel %vm16336_vm2, %v16420_v11, %v16396_v1  ;;  %v16268_v7 = vsel %vm16264_vm3, %v30506_v6, %v16267_v32  ;;  %v16226_v19 = vxor.u32 2147483648, %v28169_v35  ;;  %v16260_v48 = vshrl.u32 %v31383_v47, %v16245_v34  ;;  %27267 = vmatprep.subr.bf16.mxu1 %v29966_v57 }
0x1694   :  { %v30541_v25 = vsel %vm30478_vm4, 0, %v16421_v51  ;;  %v30546_v63 = vsel %vm16263_vm15, %v16266_v9, %v16268_v7  ;;  %v16223_v50 = vxor.u32 2147483648, %v28171_v41  ;;  %v16400_v2 = vsub.s32 0, %v30531_v53 }
0x1695   :  { %v16238_v27 = vor.u32 8388608, %v30439_v58  ;;  %v16259_v13 = vshll.u32 %v31382_v49, %v30465_v39  ;;  %v16227_v30 = vsel %vm16225_vm7, %v16226_v19, %v28171_v41  ;;  %v16644_v23 = vsel %vm16642_vm8, %v16226_v19, %v28171_v41 }
0x1696   :  { %v16270_v47 = vsel %vm16262_vm5, %v16249_v20, %v30506_v6  ;;  %v16272_v34 = vsel %vm16264_vm3, %v30513_v0, %v16271_v52  ;;  %v16224_v58 = vsel %vm16222_vm10, %v28169_v35, %v16223_v50  ;;  %v16641_v49 = vsel %vm16639_vm11, %v28169_v35, %v16223_v50  ;;  %27269 = vmatpush3.bf16.msra.mxu1 %v29966_v57 }
0x1697   :  { %vm16536_vm6 = vcmp.eq.s32.totalorder %v30463_v5, 0  ;;  %v21814_v39 = vmin.u32 %v16400_v2, %v30531_v53  ;;  %v16228_v1 = vsel %vm16221_vm12, %v16224_v58, %v16227_v30  ;;  %v16645_v20 = vsel %vm16638_vm13, %v16641_v49, %v16644_v23  ;;  %27271 = vmatprep.subr.bf16.mxu1 %v29974_v4 }
0x1698   :  { %vm16535_vm9 = vcmp.lt.s32.totalorder %v30463_v5, 2  ;;  %vm16539_vm7 = vcmp.eq.s32.totalorder %v30463_v5, 2  ;;  %v16261_v38 = vor.u32 %v16260_v48, %v16259_v13  ;;  %v30578_v61 = vsel %vm16218_vm0, nan, %v16228_v1 }
0x1699   :  { %v16646_v55 = vsel %vm16218_vm0, nan, %v16645_v20  ;;  %vm16114_vm8 = vweird.f32 %v30144_v36  ;;  %v16402_v11 = vclz %v21814_v39  ;;  %v16273_v33 = vsel %vm16263_vm15, %v16270_v47, %v16272_v34 }
0x169a   :  { %v16861_v24 = vsel %vm16856_vm14, %v16646_v55, 0  ;;  %vm16117_vm10 = vcmp.lt.s32.totalorder %v30474_v26, 2  ;;  %vm16118_vm11 = vcmp.eq.s32.totalorder %v30474_v26, 0  ;;  %v30588_v9 = vshll.u32 %v16238_v27, 8  ;;  %27273 = vmatpush3.bf16.msra.mxu1 %v29974_v4 }
0x169b   :  { %v30591_v32 = vand.u32 4294901760, %v16861_v24  ;;  %vm16121_vm0 = vcmp.eq.s32.totalorder %v30474_v26, 2  ;;  %v21815_v60 = vadd.s32 4294967294, %v16402_v11  ;;  %v31398_v52 = vand.u32 4294901760, %v29985_v12  ;;  %v28173_v7 = vpop.eup %28172  ;;  %27275 = vmatprep.subr.bf16.mxu1 %v29983_v22 }
0x169c   :  { %v31399_v35 = vand.u32 4294901760, %v29987_v15  ;;  %v16275_v41 = vsel %vm16265_vm1, %v16261_v38, 1326507024  ;;  %v30602_v19 = vmul.u32.u64.low %v30588_v9, %v16273_v33  ;;  %v30603_v48 = vmul.u32.u64.high %v30588_v9, %v16273_v33, %v30602_v19  ;;  %v28175_v2 = vpop.eup %28174 }
0x169d   :  { %v16285_v50 = vmul.u32 %v30588_v9, %v30546_v63  ;;  %v16122_v27 = vxor.u32 2147483648, %v28173_v7  ;;  %v16390_v12 = vadd.s32 %v30423_v18, %v30418_v56  ;;  %vm21816_vm12 = vcmp.lt.s32.totalorder %v21815_v60, 0 }
0x169e   :  { %v27278_v51 = vpack.c.bf16 %v31399_v35, %v31398_v52  ;;  %v16274_v15 = vsel %vm16262_vm5, %v30506_v6, %v30513_v0  ;;  %v30615_v13 = vsub.f32 %v16861_v24, %v30591_v32  ;;  %v16119_v30 = vxor.u32 2147483648, %v28175_v2  ;;  %27277 = vmatpush3.bf16.msra.mxu1 %v29983_v22 }
0x169f   :  { %v16405_v23 = vsel %vm21816_vm12, 0, %v21815_v60  ;;  %v16276_v63 = vsel %vm16264_vm3, %v30515_v21, %v16275_v41  ;;  %v16123_v56 = vsel %vm16121_vm0, %v16122_v27, %v28175_v2  ;;  %v16541_v18 = vsel %vm16539_vm7, %v16122_v27, %v28175_v2  ;;  %v31404_v2 = vld [vmem:[#allocation26_spill] sm:$0xff] }
0x16a0   :  { %v16406_v47 = vsub.s32 32, %v16405_v23  ;;  %v31400_v6 = vand.u32 4294901760, %v30319_v62  ;;  %v16120_v34 = vsel %vm16118_vm11, %v28173_v7, %v16119_v30  ;;  %v16538_v21 = vsel %vm16536_vm6, %v28173_v7, %v16119_v30  ;;  %27279 = vmatprep.subr.bf16.mxu1 %v27278_v51 }
0x16a1   :  { %v16410_v58 = vsub.s32 4294967266, %v16405_v23  ;;  %v16277_v49 = vsel %vm16263_vm15, %v16274_v15, %v16276_v63  ;;  %v16124_v39 = vsel %vm16117_vm10, %v16120_v34, %v16123_v56  ;;  %v16542_v1 = vsel %vm16535_vm9, %v16538_v21, %v16541_v18 }
0x16a2   :  { %v30629_v0 = vsub.f32 %v30319_v62, %v31400_v6  ;;  %v16407_v20 = vshll.u32 %v30531_v53, %v16405_v23  ;;  %v16408_v62 = vshrl.u32 %v16390_v12, %v16406_v47  ;;  %v30644_v38 = vsel %vm16114_vm8, nan, %v16124_v39 }
0x16a3   :  { %v16543_v55 = vsel %vm16114_vm8, nan, %v16542_v1  ;;  %v16411_v11 = vadd.s32 127, %v16410_v58  ;;  %v16949_v43 = vand.u32 4294901760, %v30615_v13  ;;  %v16288_v60 = vadd.s32 1, %v30603_v48  ;;  %v31409_v1 = vld [vmem:[#allocation28_spill] sm:$0xff] }
0x16a4   :  { %v16409_v26 = vor.u32 %v16408_v62, %v16407_v20  ;;  %v30651_v33 = vmul.u32.u64.low %v30588_v9, %v16277_v49  ;;  %v30652_v5 = vmul.u32.u64.high %v30588_v9, %v16277_v49, %v30651_v33  ;;  %v16858_v53 = vsel %vm16856_vm14, %v16543_v55, 0  ;;  %v31407_v49 = vld [vmem:[#allocation27_spill] sm:$0xff] }
0x16a5   :  { %v16412_v24 = vshll.u32 %v16411_v11, 23  ;;  %v30656_v52 = vand.u32 4294901760, %v16858_v53  ;;  %v16980_v36 = vand.u32 4294901760, %v30629_v0  ;;  %v31401_v35 = vand.u32 4294901760, %v30046_v44  ;;  %v31406_v44 = vld [vmem:[#allocation30_spill] sm:$0xff] }
0x16a6   :  { %v31402_v7 = vand.u32 4294901760, %v30321_v17  ;;  %v31403_v9 = vand.u32 4294901760, %v29999_v31  ;;  %v31405_v27 = vand.u32 4294901760, %v31404_v2  ;;  %v30670_v15 = vsub.f32 %v30413_v28, %v30435_v8 }
0x16a7   :  { %25230 = vmatmul.mubr.f32.vlgmr.msra.gmra.mrb[22].mxu1 %v31401_v35  ;;  %v16413_v30 = vor.u32 4788187, %v16412_v24  ;;  %v30673_v23 = vsub.f32 %v16858_v53, %v30656_v52  ;;  %v16981_v31 = vsub.f32 %v30629_v0, %v16980_v36  ;;  %v16416_v63 = vcvt.s32.f32 %v16409_v26 }
0x16a8   :  { %v16986_v41 = vsub.f32 %v30321_v17, %v31402_v7  ;;  %v27282_v12 = vpack.c.bf16 %v31405_v27, %v31403_v9  ;;  %27281 = vmatpush3.bf16.msra.mxu1 %v27278_v51  ;;  %25264 = vmatprep.mubr.f32.mxu1 %v31406_v44  ;;  %v16950_v17 = vsub.f32 %v30615_v13, %v16949_v43  ;;  %v30683_v28 = vand.u32 4294901760, %v30670_v15 }
0x16a9   :  { %vm16287_vm1 = vc.u32 %v30652_v5, %v30602_v19  ;;  %v16414_v18 = vand.u32 2147483647, %v16413_v30  ;;  %v16939_v47 = vand.u32 4294901760, %v30673_v23  ;;  %v16982_v6 = vand.u32 4294901760, %v16981_v31 }
0x16aa   :  { %v16987_v56 = vand.u32 4294901760, %v16986_v41  ;;  %27283 = vmatprep.subr.bf16.mxu1 %v27282_v12  ;;  %v16289_v51 = vsel %vm16287_vm1, %v16288_v60, %v30603_v48  ;;  %v16995_v58 = vsub.f32 %v30670_v15, %v30683_v28  ;;  %v31408_v39 = vand.u32 4294901760, %v31407_v49  ;;  %v31419_v49 = vld [vmem:[#allocation32_spill] sm:$0xff] }
0x16ab   :  { %v16290_v34 = vadd.s32 %v16289_v51, %v16285_v50  ;;  %v31410_v20 = vand.u32 4294901760, %v31409_v1  ;;  %v16417_v55 = vmul.f32 %v16416_v63, %v16414_v18  ;;  %v16940_v11 = vsub.f32 %v30673_v23, %v16939_v47  ;;  %v31421_v1 = vld [vmem:[#allocation33_spill] sm:$0xff] }
0x16ac   :  { %v16988_v21 = vsub.f32 %v16986_v41, %v16987_v56  ;;  %27285 = vmatpush3.bf16.msra.mxu1 %v27282_v12  ;;  %v16951_v53 = vand.u32 4294901760, %v16950_v17  ;;  %v31411_v24 = vand.u32 4294901760, %v30051_v29  ;;  %v31412_v60 = vand.u32 4294901760, %v30056_v59  ;;  %v31414_v59 = vld [vmem:[#allocation31_spill] sm:$0xff] }
0x16ad   :  { %v27286_v62 = vpack.c.bf16 %v31410_v20, %v31408_v39  ;;  %v16291_v48 = vadd.s32 536870912, %v16290_v34  ;;  %v16418_v33 = vxor.u32 2147483648, %v16417_v55  ;;  %v16941_v50 = vand.u32 4294901760, %v16940_v11  ;;  %v31423_v11 = vld [vmem:[#allocation34_spill] sm:$0xff] }
0x16ae   :  { %v16989_v26 = vand.u32 4294901760, %v16988_v21  ;;  %v27290_v35 = vpack.c.bf16 %v31412_v60, %v31411_v24  ;;  %v16996_v2 = vand.u32 4294901760, %v16995_v58  ;;  %v30700_v27 = vpack.c.bf16 %v16987_v56, %v16980_v36 }
0x16af   :  { %27287 = vmatprep.subr.bf16.mxu1 %v27286_v62  ;;  %v16292_v7 = vshrl.u32 %v16291_v48, 30  ;;  %v16419_v30 = vsel %vm16336_vm2, %v16418_v33, %v16417_v55  ;;  %25356 = vmatprep.mubr.f32.mxu0 %v16941_v50  ;;  %v31413_v29 = vand.u32 4294901760, %v30066_v16  ;;  %v31415_v63 = vand.u32 4294901760, %v31414_v59 }
0x16b0   :  { %v27346_v9 = vpack.c.bf16 %v16989_v26, %v16982_v6  ;;  %27289 = vmatpush3.bf16.msra.mxu1 %v27286_v62  ;;  %v16422_v12 = vsel %vm30478_vm4, %v30165_v10, %v16419_v30  ;;  %25357 = vmatmul.mubr.f32.vlgmr.msra.gmra.mrb[40].mxu0 %v16951_v53  ;;  %v31416_v36 = vand.u32 2147483647, %v30168_v54  ;;  %vm16232_vm2 = vcmp.lt.s32.totalorder %v30168_v54, 0  ;;  %v31425_v26 = vld [vmem:[#allocation35_spill] sm:$0xff] }
0x16b1   :  { %v16293_v17 = vshll.u32 %v16292_v7, 30  ;;  %v16316_v31 = vsub.s32 4, %v16292_v7  ;;  %v27294_v18 = vpack.c.bf16 %v31415_v63, %v31413_v29  ;;  %28176 = vcosq.f32 %v16422_v12  ;;  %27291 = vmatprep.subr.bf16.mxu1 %v27290_v35 }
0x16b2   :  { %27347 = vmatprep.subr.bf16.mxu0 %v27346_v9  ;;  %vm30713_vm3 = vcmp.le.f32.partialorder %v31416_v36, 0.7853982  ;;  %28178 = vsinq.f32 %v16422_v12  ;;  %v30721_v16 = vpack.c.bf16 %v16986_v41, %v30629_v0  ;;  %v16427_v21 = vadd.s32 3, %v30541_v25 }
0x16b3   :  { %27349 = vmatpush3.bf16.msra.mxu0 %v27346_v9  ;;  %v16294_v37 = vsub.s32 %v16290_v34, %v16293_v17  ;;  %v16317_v51 = vsel %vm16232_vm2, %v16316_v31, %v16292_v7  ;;  %v31420_v39 = vand.u32 4294901760, %v31419_v49  ;;  %v31422_v34 = vand.u32 4294901760, %v31421_v1  ;;  %v31429_v9 = vld [vmem:[#allocation37_spill] sm:$0xff] }
0x16b4   :  { %25366 = vmatprep.subr.mxu0 %v16996_v2  ;;  %v30725_v6 = vsel %vm30713_vm3, 0, %v16317_v51  ;;  %27293 = vmatpush3.bf16.msra.mxu1 %v27290_v35  ;;  %v16843_v0 = vand.u32 3, %v30541_v25  ;;  %v16428_v41 = vand.u32 3, %v16427_v21  ;;  %v31424_v48 = vand.u32 4294901760, %v31423_v11  ;;  %v31427_v25 = vld [vmem:[#allocation36_spill] sm:$0xff] }
0x16b5   :  { %v16296_v58 = vsub.s32 0, %v16294_v37  ;;  %27295 = vmatprep.subr.bf16.mxu1 %v27294_v18  ;;  %v27298_v20 = vpack.c.bf16 %v31422_v34, %v31420_v39  ;;  %v31426_v33 = vand.u32 4294901760, %v31425_v26  ;;  %vm16426_vm4 = vweird.f32 %v30165_v10 }
0x16b6   :  { %vm16844_vm5 = vcmp.lt.s32.totalorder %v16843_v0, 2  ;;  %vm16845_vm13 = vcmp.eq.s32.totalorder %v16843_v0, 0  ;;  %vm16430_vm15 = vcmp.eq.s32.totalorder %v16428_v41, 0  ;;  %v31428_v7 = vand.u32 4294901760, %v31427_v25 }
0x16b7   :  { %25367 = vmatpush3.msra.mxu0 %v16996_v2  ;;  %v21810_v62 = vmin.u32 %v16296_v58, %v16294_v37  ;;  %v27302_v50 = vpack.c.bf16 %v31426_v33, %v31424_v48  ;;  %v31430_v2 = vand.u32 4294901760, %v31429_v9  ;;  %vm16433_vm9 = vcmp.eq.s32.totalorder %v16428_v41, 2 }
0x16b8   :  { %27351 = vmatprep.subr.bf16.mxu0 %v30721_v16  ;;  %27297 = vmatpush3.bf16.msra.mxu1 %v27294_v18  ;;  %vm16848_vm7 = vcmp.eq.s32.totalorder %v16843_v0, 2  ;;  %v16286_v59 = vadd.s32 %v30602_v19, %v30652_v5  ;;  %vm16429_vm8 = vcmp.lt.s32.totalorder %v16428_v41, 2  ;;  %v31431_v41 = vld [vmem:[#allocation29_spill] sm:$0xff] }
0x16b9   :  { %v16298_v55 = vclz %v21810_v62  ;;  %27299 = vmatprep.subr.bf16.mxu1 %v27298_v20  ;;  %v27306_v30 = vpack.c.bf16 %v31430_v2, %v31428_v7 }
0x16bb   :  { %v21811_v53 = vadd.s32 4294967294, %v16298_v55  ;;  %v28177_v24 = vpop.eup %28176 }
0x16bc   :  { %27301 = vmatpush3.bf16.msra.mxu1 %v27298_v20  ;;  %v28179_v60 = vpop.eup %28178  ;;  %v16434_v35 = vxor.u32 2147483648, %v28177_v24 }
0x16bd   :  { %vm21812_vm6 = vcmp.lt.s32.totalorder %v21811_v53, 0  ;;  %27303 = vmatprep.subr.bf16.mxu1 %v27302_v50  ;;  %v16431_v12 = vxor.u32 2147483648, %v28179_v60 }
0x16be   :  { %v16301_v17 = vsel %vm21812_vm6, 0, %v21811_v53  ;;  %v16435_v31 = vsel %vm16433_vm9, %v16434_v35, %v28179_v60  ;;  %v16850_v29 = vsel %vm16848_vm7, %v16434_v35, %v28179_v60 }
0x16bf   :  { %v16302_v63 = vsub.s32 32, %v16301_v17  ;;  %v16432_v18 = vsel %vm16430_vm15, %v28177_v24, %v16431_v12  ;;  %v16847_v36 = vsel %vm16845_vm13, %v28177_v24, %v16431_v12  ;;  %v16306_v51 = vsub.s32 4294967266, %v16301_v17 }
0x16c0   :  { %27305 = vmatpush3.bf16.msra.mxu1 %v27302_v50  ;;  %v16436_v21 = vsel %vm16429_vm8, %v16432_v18, %v16435_v31  ;;  %v16851_v58 = vsel %vm16844_vm5, %v16847_v36, %v16850_v29  ;;  %v16303_v49 = vshll.u32 %v16294_v37, %v16301_v17  ;;  %v17474_v18 = vsel %vm16856_vm14, %v30578_v61, 0  ;;  %v16440_v36 = vld [vmem:[#allocation2 + $0x350] sm:$0xff] }
0x16c1   :  { %v16304_v39 = vshrl.u32 %v16286_v59, %v16302_v63  ;;  %27307 = vmatprep.subr.bf16.mxu1 %v27306_v30  ;;  %v30749_v1 = vsel %vm16426_vm4, nan, %v16436_v21  ;;  %v16852_v19 = vsel %vm16426_vm4, nan, %v16851_v58  ;;  %v16307_v5 = vadd.s32 127, %v16306_v51 }
0x16c2   :  { %v16867_v26 = vsel %vm16856_vm14, %v16852_v19, 0  ;;  %v17471_v63 = vsel %vm16856_vm14, %v30644_v38, 0  ;;  %v30824_v61 = vand.u32 4294901760, %v16440_v36  ;;  %vm31451_vm4 = vcmask 261120  }
0x16c3   :  { %v16305_v34 = vor.u32 %v16304_v39, %v16303_v49  ;;  %v16308_v20 = vshll.u32 %v16307_v5, 23  ;;  %v30774_v50 = vand.u32 4294901760, %v16867_v26  ;;  %v30816_v51 = vand.u32 4294901760, %v17471_v63  ;;  %vm31452_vm5 = vmmov %vm31451_vm4 }
0x16c4   :  { %27309 = vmatpush3.bf16.msra.mxu1 %v27306_v30  ;;  %v17480_v49 = vsel %vm16856_vm14, %v30749_v1, 0  ;;  %vm31453_vm13 = vmmov %vm31451_vm4 }
0x16c5   :  { %27311 = vmatprep.subr.bf16.mxu1 %v29900_v45  ;;  %v16309_v62 = vor.u32 4788187, %v16308_v20  ;;  %v16312_v37 = vcvt.s32.f32 %v16305_v34  ;;  %v16968_v25 = vsub.f32 %v16867_v26, %v30774_v50  ;;  %v30829_v21 = vsub.f32 %v17471_v63, %v30816_v51  ;;  %v31448_v63 = vld [vmem:[#allocation21_spill] sm:$0xff]  ;;  %vm31454_vm15 = vmmov %vm31451_vm4 }
0x16c6   :  { %v30850_v5 = vand.u32 4294901760, %v17480_v49  ;;  %v17606_v34 = vsub.f32 %v16440_v36, %v30824_v61  ;;  %vm31455_vm6 = vmmov %vm31451_vm4 }
0x16c7   :  { %25265 = vmatmul.mubr.f32.vlgmr.msra.gmra.mrb[22].mxu1 %v31431_v41  ;;  %v16310_v0 = vand.u32 2147483647, %v16309_v62  ;;  %v16969_v30 = vand.u32 4294901760, %v16968_v25  ;;  %v17552_v20 = vand.u32 4294901760, %v30829_v21  ;;  %vm31456_vm9 = vmmov %vm31451_vm4 }
0x16c8   :  { %27313 = vmatpush3.bf16.msra.mxu1 %v29900_v45  ;;  %25299 = vmatprep.mubr.f32.mxu1 %v31406_v44  ;;  %v16323_v45 = vadd.s32 3, %v30725_v6  ;;  %v16740_v44 = vand.u32 3, %v30725_v6  ;;  %vm31457_vm7 = vmmov %vm31451_vm4 }
0x16c9   :  { %27315 = vmatprep.subr.bf16.mxu1 %v29904_v42  ;;  %v16313_v55 = vmul.f32 %v16312_v37, %v16310_v0  ;;  %v16970_v17 = vsub.f32 %v16968_v25, %v16969_v30  ;;  %v17581_v37 = vsub.f32 %v17480_v49, %v30850_v5  ;;  %vm31458_vm8 = vmmov %vm31451_vm4 }
0x16ca   :  { %vm16745_vm11 = vcmp.eq.s32.totalorder %v16740_v44, 2  ;;  %vm16742_vm12 = vcmp.eq.s32.totalorder %v16740_v44, 0 }
0x16cb   :  { %v16314_v10 = vxor.u32 2147483648, %v16313_v55  ;;  %v16971_v59 = vand.u32 4294901760, %v16970_v17  ;;  %v31440_v17 = vld [vmem:[#allocation15_spill] sm:$0xff] }
0x16cc   :  { %27317 = vmatpush3.bf16.msra.mxu1 %v29904_v42  ;;  %v16324_v42 = vand.u32 3, %v16323_v45 }
0x16cd   :  { %27319 = vmatprep.subr.bf16.mxu1 %v29914_v3  ;;  %v16315_v11 = vsel %vm16232_vm2, %v16314_v10, %v16313_v55  ;;  %vm16322_vm2 = vweird.f32 %v30168_v54  ;;  %v17607_v55 = vand.u32 4294901760, %v17606_v34  ;;  %v17553_v10 = vsub.f32 %v30829_v21, %v17552_v20 }
0x16ce   :  { %v16318_v48 = vsel %vm30713_vm3, %v30168_v54, %v16315_v11  ;;  %vm16329_vm10 = vcmp.eq.s32.totalorder %v16324_v42, 2  ;;  %vm16326_vm0 = vcmp.eq.s32.totalorder %v16324_v42, 0  ;;  %vm16325_vm1 = vcmp.lt.s32.totalorder %v16324_v42, 2 }
0x16cf   :  { %28180 = vcosq.f32 %v16318_v48  ;;  %vm16741_vm3 = vcmp.lt.s32.totalorder %v16740_v44, 2  ;;  %v17608_v45 = vsub.f32 %v17606_v34, %v17607_v55  ;;  %v17554_v42 = vand.u32 4294901760, %v17553_v10 }
0x16d0   :  { %27321 = vmatpush3.bf16.msra.mxu1 %v29914_v3  ;;  %28182 = vsinq.f32 %v16318_v48  ;;  %v17582_v48 = vand.u32 4294901760, %v17581_v37 }
0x16d1   :  { %27323 = vmatprep.subr.bf16.mxu1 %v29928_v14 }
0x16d4   :  { %27325 = vmatpush3.bf16.msra.mxu1 %v29928_v14 }
0x16d5   :  { %27327 = vmatprep.subr.bf16.mxu1 %v29942_v46 }
0x16d8   :  { %27329 = vmatpush3.bf16.msra.mxu1 %v29942_v46 }
0x16d9   :  { %27331 = vmatprep.subr.bf16.mxu1 %v29966_v57  ;;  %v28181_v56 = vpop.eup %28180 }
0x16da   :  { %v28183_v3 = vpop.eup %28182  ;;  %v16330_v33 = vxor.u32 2147483648, %v28181_v56 }
0x16db   :  { %v16327_v53 = vxor.u32 2147483648, %v28183_v3 }
0x16dc   :  { %27333 = vmatpush3.bf16.msra.mxu1 %v29966_v57  ;;  %v16331_v14 = vsel %vm16329_vm10, %v16330_v33, %v28183_v3  ;;  %v16747_v6 = vsel %vm16745_vm11, %v16330_v33, %v28183_v3  ;;  %vm31459_vm10 = vmmov %vm31451_vm4 }
0x16dd   :  { %27335 = vmatprep.subr.bf16.mxu1 %v29974_v4  ;;  %v16328_v46 = vsel %vm16326_vm0, %v28181_v56, %v16327_v53  ;;  %v16744_v24 = vsel %vm16742_vm12, %v28181_v56, %v16327_v53  ;;  %v17609_v56 = vand.u32 4294901760, %v17608_v45  ;;  %vm31460_vm11 = vmmov %vm31451_vm4 }
0x16de   :  { %v16332_v60 = vsel %vm16325_vm1, %v16328_v46, %v16331_v14  ;;  %v16748_v35 = vsel %vm16741_vm3, %v16744_v24, %v16747_v6  ;;  %vm31461_vm0 = vmmov %vm31451_vm4 }
0x16df   :  { %v16333_v7 = vsel %vm16322_vm2, nan, %v16332_v60  ;;  %v16749_v9 = vsel %vm16322_vm2, nan, %v16748_v35  ;;  %vm31462_vm12 = vmmov %vm31461_vm0 }
0x16e0   :  { %27337 = vmatpush3.bf16.msra.mxu1 %v29974_v4  ;;  %v16864_v57 = vsel %vm16856_vm14, %v16749_v9, 0  ;;  %v16438_v4 = vld [vmem:[#allocation2 + $0x340] sm:$0xff]  ;;  %v31434_v9 = vld [vmem:[#allocation23_spill] sm:$0xff]  ;;  %vm31463_vm1 = vmmov %vm31461_vm0 }
0x16e1   :  { %27339 = vmatprep.subr.bf16.mxu1 %v29983_v22  ;;  %v30783_v2 = vand.u32 4294901760, %v16864_v57  ;;  %vm31464_vm3 = vmmov %vm31461_vm0 }
0x16e2   :  { %vm31465_vm2 = vmmov %vm31461_vm0 }
0x16e3   :  { %v16958_v12 = vsub.f32 %v16864_v57, %v30783_v2  ;;  %v31435_v57 = vld [vmem:[#allocation24_spill] sm:$0xff] }
0x16e4   :  { %27341 = vmatpush3.bf16.msra.mxu1 %v29983_v22  ;;  %v16439_v22 = vld [vmem:[#allocation2 + $0x348] sm:$0xff] }
0x16e5   :  { %v16959_v54 = vand.u32 4294901760, %v16958_v12 }
0x16e7   :  { %25300 = vmatmul.mubr.f32.vlgmr.msra.gmra.mrb[22].mxu1 %v31431_v41  ;;  %v16960_v31 = vsub.f32 %v16958_v12, %v16959_v54 }
0x16e9   :  { %v16961_v29 = vand.u32 4294901760, %v16960_v31  ;;  %v31441_v31 = vld [vmem:[#allocation12_spill] sm:$0xff] }
0x16eb   :  { %25359 = vmatprep.mubr.f32.mxu0 %v16961_v29  ;;  %v31442_v29 = vld [vmem:[#allocation14_spill] sm:$0xff] }
0x16ec   :  { %25360 = vmatmul.mubr.f32.gmra.mrb[42].mxu0 %v16971_v59  ;;  %v31443_v59 = vld [vmem:[#allocation17_spill] sm:$0xff] }
0x16ed   :  { %25368 = vmatprep.mubr.f32.mxu0 %v30656_v52 }
0x16f0   :  { %25369 = vmatmul.mubr.f32.vlgmr.msra.gmra.mrb[40].mxu0 %v30591_v32 }
0x16f1   :  { %25371 = vmatprep.mubr.f32.mxu0 %v30783_v2  ;;  %27353 = vmatpush3.bf16.msra.mxu0 %v30721_v16  ;;  %v17486_v16 = vand.u32 4294901760, %v16439_v22 }
0x16f2   :  { %25378 = vmatprep.subr.mxu0 %v30670_v15 }
0x16f4   :  { %25372 = vmatmul.mubr.f32.gmra.mrb[42].mxu0 %v30774_v50 }
0x16f5   :  { %25379 = vmatpush3.msra.mxu0 %v30670_v15  ;;  %25380 = vmatprep.mubr.f32.mxu0 %v30673_v23  ;;  %v17483_v15 = vand.u32 4294901760, %v16438_v4 }
0x16f6   :  { %27355 = vmatprep.subr.bf16.mxu0 %v30432_v40 }
0x16f7   :  { %v30812_v23 = vsub.f32 %v16438_v4, %v17483_v15  ;;  %v30841_v39 = vpack.c.bf16 %v17486_v16, %v17483_v15  ;;  %v31444_v4 = vld [vmem:[#allocation19_spill] sm:$0xff]  ;;  %v31446_v15 = vld [vmem:[#allocation18_spill] sm:$0xff] }
0x16f8   :  { %25381 = vmatmul.mubr.f32.vlgmr.msra.gmra.mrb[40].mxu0 %v30615_v13  ;;  %v17477_v13 = vsel %vm16856_vm14, %v16333_v7, 0  ;;  %vm31432_vm14 = vcmask 1042432   ;;  %v31433_v7 = vld [vmem:[#allocation22_spill] sm:$0xff] }
0x16f9   :  { %25383 = vmatprep.mubr.f32.mxu0 %v16958_v12  ;;  %27357 = vmatpush3.bf16.msra.mxu0 %v30432_v40  ;;  %v17593_v38 = vand.u32 4294901760, %v30812_v23  ;;  %v30831_v58 = vand.u32 4294901760, %v17477_v13  ;;  %v31438_v12 = vld [vmem:[#allocation11_spill] sm:$0xff] }
0x16fa   :  { %25390 = vmatprep.subr.mxu0 %v30435_v8 }
0x16fb   :  { %v17594_v19 = vsub.f32 %v30812_v23, %v17593_v38 }
0x16fc   :  { %25384 = vmatmul.mubr.f32.gmra.mrb[42].mxu0 %v16968_v25 }
0x16fd   :  { %25391 = vmatpush3.msra.mxu0 %v30435_v8  ;;  %25392 = vmatprep.mubr.f32.mxu0 %v16939_v47  ;;  %v30814_v47 = vsub.f32 %v16439_v22, %v17486_v16  ;;  %v17595_v41 = vand.u32 4294901760, %v17594_v19  ;;  %v31445_v22 = vld [vmem:[#allocation16_spill] sm:$0xff] }
0x16fe   :  { %27359 = vmatprep.subr.bf16.mxu0 %v30700_v27  ;;  %v31447_v16 = vld [vmem:[#allocation20_spill] sm:$0xff] }
0x16ff   :  { %v27374_v53 = vpack.c.bf16 %v30814_v47, %v30812_v23  ;;  %v21800_v23 = vld [vmem:[#allocation2 + $0x330] ss:$0 sm:$0xff] }
0x1700   :  { %25393 = vmatmul.mubr.f32.vlgmr.msra.gmra.mrb[40].mxu0 %v16949_v43  ;;  %v30819_v43 = vand.u32 4294901760, %v17474_v18 }
0x1701   :  { %25395 = vmatprep.mubr.f32.mxu0 %v16959_v54  ;;  %27361 = vmatpush3.bf16.msra.mxu0 %v30700_v27  ;;  %v17600_v27 = vand.u32 4294901760, %v30814_v47  ;;  %v31439_v54 = vld [vmem:[#allocation13_spill] sm:$0xff] }
0x1702   :  { %25402 = vmatprep.subr.mxu0 %v30683_v28 }
0x1703   :  { %v17601_v1 = vsub.f32 %v30814_v47, %v17600_v27  ;;  %v27382_v14 = vpack.c.bf16 %v17600_v27, %v17593_v38  ;;  %v31449_v47 = vld [vmem:[#allocation8_spill] sm:$0xff] }
0x1704   :  { %25396 = vmatmul.mubr.f32.gmra.mrb[42].mxu0 %v16969_v30  ;;  %v31437_v30 = vld [vmem:[#allocation10_spill] sm:$0xff] }
0x1705   :  { %25403 = vmatpush3.msra.mxu0 %v30683_v28  ;;  %25404 = vmatprep.mubr.f32.mxu0 %v30656_v52  ;;  %v30837_v28 = vsub.f32 %v17474_v18, %v30819_v43  ;;  %v17602_v0 = vand.u32 4294901760, %v17601_v1 }
0x1706   :  { %27363 = vmatprep.subr.bf16.mxu0 %v30432_v40 }
0x1707   :  { %v17562_v62 = vand.u32 4294901760, %v30837_v28 }
0x1708   :  { %25405 = vmatmul.mubr.f32.vlgmr.msra.gmra.mrb[40].mxu0 %v30591_v32 }
0x1709   :  { %25407 = vmatprep.mubr.f32.mxu0 %v30783_v2  ;;  %27365 = vmatpush3.bf16.msra.mxu0 %v30432_v40  ;;  %v17571_v40 = vsub.f32 %v17477_v13, %v30831_v58  ;;  %v31450_v13 = vld [vmem:[#allocation9_spill] sm:$0xff] }
0x170a   :  { %25414 = vmatprep.subr.mxu0 %v30435_v8 }
0x170b   :  { %v17572_v11 = vand.u32 4294901760, %v17571_v40 }
0x170c   :  { %25408 = vmatmul.mubr.f32.gmra.mrb[42].mxu0 %v30774_v50 }
0x170d   :  { %25415 = vmatpush3.msra.mxu0 %v30435_v8  ;;  %25416 = vmatprep.mubr.f32.mxu0 %v30656_v52  ;;  %v17563_v8 = vsub.f32 %v30837_v28, %v17562_v62  ;;  %v27370_v52 = vpack.c.bf16 %v17602_v0, %v17595_v41  ;;  %v17573_v44 = vsub.f32 %v17571_v40, %v17572_v11 }
0x170e   :  { %27367 = vmatprep.subr.bf16.mxu0 %v30841_v39 }
0x170f   :  { %v17564_v26 = vand.u32 4294901760, %v17563_v8  ;;  %v17574_v3 = vand.u32 4294901760, %v17573_v44 }
0x1710   :  { %25417 = vmatmul.mubr.f32.vlgmr.msra.gmra.mrb[40].mxu0 %v30591_v32  ;;  %v17583_v32 = vsub.f32 %v17581_v37, %v17582_v48 }
0x1711   :  { %25419 = vmatprep.mubr.f32.mxu0 %v30783_v2  ;;  %27369 = vmatpush3.bf16.msra.mxu0 %v30841_v39  ;;  %v31436_v2 = vld [vmem:[#allocation25_spill] sm:$0xff] }
0x1712   :  { %25426 = vmatprep.subr.mxu0 %v30824_v61  ;;  %v17584_v33 = vand.u32 4294901760, %v17583_v32  ;;  %v19420_v32 = vld [vmem:[#allocation2 + $0x3c8] sm:$0xff] }
0x1714   :  { %25420 = vmatmul.mubr.f32.gmra.mrb[42].mxu0 %v30774_v50  ;;  %v18083_v50 = vld [vmem:[#allocation2 + $0x370] sm:$0x7] }
0x1715   :  { %25427 = vmatpush3.msra.mxu0 %v30824_v61  ;;  %25428 = vmatprep.mubr.f32.mxu0 %v17554_v42  ;;  %v18085_v6 = vsel %vm31432_vm14, %v18083_v50, 0  ;;  %vm31466_vm14 = vmmov %vm31461_vm0 }
0x1716   :  { %27371 = vmatprep.subr.bf16.mxu0 %v27370_v52  ;;  %v18088_v46 = vand.u32 4294901760, %v18085_v6 }
0x1718   :  { %25429 = vmatmul.mubr.f32.vlgmr.msra.gmra.mrb[40].mxu0 %v17564_v26  ;;  %v18195_v24 = vsub.f32 %v18085_v6, %v18088_v46  ;;  %v19419_v26 = vld [vmem:[#allocation2 + $0x3c0] sm:$0xff] }
0x1719   :  { %25431 = vmatprep.mubr.f32.mxu0 %v17574_v3  ;;  %27373 = vmatpush3.bf16.msra.mxu0 %v27370_v52  ;;  %v19430_v3 = vand.u32 4294901760, %v19419_v26 }
0x171a   :  { %25438 = vmatprep.subr.mxu0 %v17609_v56  ;;  %v18196_v60 = vand.u32 4294901760, %v18195_v24 }
0x171c   :  { %25432 = vmatmul.mubr.f32.gmra.mrb[42].mxu0 %v17584_v33  ;;  %v18197_v35 = vsub.f32 %v18195_v24, %v18196_v60  ;;  %v19433_v33 = vand.u32 4294901760, %v19420_v32 }
0x171d   :  { %25439 = vmatpush3.msra.mxu0 %v17609_v56  ;;  %25440 = vmatprep.mubr.f32.mxu0 %v30816_v51  ;;  %v19421_v56 = vld [vmem:[#allocation2 + $0x3d0] sm:$0xff] }
0x171e   :  { %27375 = vmatprep.subr.bf16.mxu0 %v27374_v53  ;;  %v18198_v25 = vand.u32 4294901760, %v18197_v35  ;;  %v19436_v50 = vand.u32 4294901760, %v19421_v56  ;;  %v30952_v6 = vpack.c.bf16 %v19433_v33, %v19430_v3 }
0x1720   :  { %25441 = vmatmul.mubr.f32.vlgmr.msra.gmra.mrb[40].mxu0 %v30819_v43  ;;  %v19534_v35 = vsub.f32 %v19421_v56, %v19436_v50 }
0x1721   :  { %25443 = vmatprep.mubr.f32.mxu0 %v30831_v58  ;;  %27377 = vmatpush3.bf16.msra.mxu0 %v27374_v53  ;;  %v19422_v53 = vld [vmem:[#allocation2 + $0x3d8] sm:$0xff] }
0x1722   :  { %25450 = vmatprep.subr.mxu0 %v17606_v34 }
0x1724   :  { %25444 = vmatmul.mubr.f32.gmra.mrb[42].mxu0 %v30850_v5 }
0x1725   :  { %25451 = vmatpush3.msra.mxu0 %v17606_v34  ;;  %25452 = vmatprep.mubr.f32.mxu0 %v30829_v21 }
0x1726   :  { %27379 = vmatprep.subr.bf16.mxu0 %v30841_v39 }
0x1728   :  { %25453 = vmatmul.mubr.f32.vlgmr.msra.gmra.mrb[40].mxu0 %v30837_v28 }
0x1729   :  { %25455 = vmatprep.mubr.f32.mxu0 %v17571_v40  ;;  %27381 = vmatpush3.bf16.msra.mxu0 %v30841_v39 }
0x172a   :  { %25462 = vmatprep.subr.mxu0 %v30824_v61 }
0x172c   :  { %25456 = vmatmul.mubr.f32.gmra.mrb[42].mxu0 %v17581_v37 }
0x172d   :  { %25463 = vmatpush3.msra.mxu0 %v30824_v61  ;;  %25464 = vmatprep.mubr.f32.mxu0 %v17552_v20 }
0x172e   :  { %27383 = vmatprep.subr.bf16.mxu0 %v27382_v14 }
0x1730   :  { %25465 = vmatmul.mubr.f32.vlgmr.msra.gmra.mrb[40].mxu0 %v17562_v62 }
0x1731   :  { %25467 = vmatprep.mubr.f32.mxu0 %v17572_v11  ;;  %27385 = vmatpush3.bf16.msra.mxu0 %v27382_v14  ;;  %v19439_v14 = vand.u32 4294901760, %v19422_v53 }
0x1732   :  { %25474 = vmatprep.subr.mxu0 %v17607_v55 }
0x1734   :  { %25468 = vmatmul.mubr.f32.gmra.mrb[42].mxu0 %v17582_v48 }
0x1735   :  { %25475 = vmatpush3.msra.mxu0 %v17607_v55  ;;  %25476 = vmatprep.mubr.f32.mxu0 %v30816_v51 }
0x1736   :  { %27387 = vmatprep.subr.bf16.mxu0 %v30841_v39 }
0x1738   :  { %25477 = vmatmul.mubr.f32.vlgmr.msra.gmra.mrb[40].mxu0 %v30819_v43 }
0x1739   :  { %25479 = vmatprep.mubr.f32.mxu0 %v30831_v58  ;;  %27389 = vmatpush3.bf16.msra.mxu0 %v30841_v39 }
0x173a   :  { %25486 = vmatprep.subr.mxu0 %v30824_v61 }
0x173c   :  { %25480 = vmatmul.mubr.f32.gmra.mrb[42].mxu0 %v30850_v5 }
0x173d   :  { %25487 = vmatpush3.msra.mxu0 %v30824_v61  ;;  %25488 = vmatprep.mubr.f32.mxu0 %v30816_v51 }
0x173e   :  { %25494 = vmatprep.subr.mxu0 %v18088_v46 }
0x1740   :  { %25489 = vmatmul.mubr.f32.vlgmr.msra.gmra.mrb[40].mxu0 %v30819_v43 }
0x1741   :  { %25491 = vmatprep.mubr.f32.mxu0 %v30831_v58  ;;  %25495 = vmatpush3.msra.mxu0 %v18088_v46  ;;  %v21833_v58 = vld [vmem:[#allocation2 + $0x378] ss:$0 sm:$0xff] }
0x1742   :  { %25502 = vmatprep.subr.mxu0 %v18198_v25 }
0x1744   :  { %25492 = vmatmul.mubr.f32.gmra.mrb[42].mxu0 %v30850_v5 }
0x1745   :  { %25496 = vmatprep.mubr.f32.mxu0 %v31433_v7 }
0x1748   :  { %25497 = vmatmul.mubr.f32.vlgmr.msra.gmra.mrb[40].mxu0 %v31434_v9 }
0x1749   :  { %25503 = vmatpush3.msra.mxu0 %v18198_v25  ;;  %25499 = vmatprep.mubr.f32.mxu0 %v31435_v57  ;;  %v19541_v25 = vsub.f32 %v19422_v53, %v19439_v14  ;;  %v19535_v57 = vand.u32 4294901760, %v19534_v35 }
0x174a   :  { %25510 = vmatprep.subr.mxu0 %v18195_v24 }
0x174c   :  { %25500 = vmatmul.mubr.f32.gmra.mrb[42].mxu0 %v31436_v2  ;;  %v19542_v2 = vand.u32 4294901760, %v19541_v25 }
0x174d   :  { %25504 = vmatprep.mubr.f32.mxu0 %v31437_v30 }
0x1750   :  { %25505 = vmatmul.mubr.f32.vlgmr.msra.gmra.mrb[40].mxu0 %v31438_v12 }
0x1751   :  { %25511 = vmatpush3.msra.mxu0 %v18195_v24  ;;  %25507 = vmatprep.mubr.f32.mxu0 %v31439_v54  ;;  %v19520_v24 = vsub.f32 %v19419_v26, %v19430_v3  ;;  %v21837_v26 = vld [vmem:[#allocation2 + $0x398] ss:$0 sm:$0xff] }
0x1752   :  { %25518 = vmatprep.subr.mxu0 %v18088_v46 }
0x1753   :  { %v19521_v7 = vand.u32 4294901760, %v19520_v24 }
0x1754   :  { %25508 = vmatmul.mubr.f32.gmra.mrb[42].mxu0 %v31440_v17 }
0x1755   :  { %25512 = vmatprep.mubr.f32.mxu0 %v31441_v31 }
0x1758   :  { %25513 = vmatmul.mubr.f32.vlgmr.msra.gmra.mrb[40].mxu0 %v31442_v29 }
0x1759   :  { %25519 = vmatpush3.msra.mxu0 %v18088_v46  ;;  %25515 = vmatprep.mubr.f32.mxu0 %v31443_v59 }
0x175a   :  { %25526 = vmatprep.subr.mxu0 %v18196_v60 }
0x175c   :  { %25516 = vmatmul.mubr.f32.gmra.mrb[42].mxu0 %v31444_v4 }
0x175d   :  { %25520 = vmatprep.mubr.f32.mxu0 %v31445_v22 }
0x1760   :  { %25521 = vmatmul.mubr.f32.vlgmr.msra.gmra.mrb[40].mxu0 %v31446_v15 }
0x1761   :  { %25527 = vmatpush3.msra.mxu0 %v18196_v60  ;;  %25523 = vmatprep.mubr.f32.mxu0 %v31447_v16  ;;  %v19527_v60 = vsub.f32 %v19420_v32, %v19433_v33 }
0x1762   :  { %25534 = vmatprep.subr.mxu0 %v18088_v46 }
0x1763   :  { %v19528_v9 = vand.u32 4294901760, %v19527_v60  ;;  %v30962_v15 = vpack.c.bf16 %v19527_v60, %v19520_v24 }
0x1764   :  { %25524 = vmatmul.mubr.f32.gmra.mrb[42].mxu0 %v31448_v63  ;;  %v30966_v63 = vpack.c.bf16 %v19541_v25, %v19534_v35 }
0x1765   :  { %25528 = vmatprep.mubr.f32.mxu0 %v31437_v30 }
0x1768   :  { %25529 = vmatmul.mubr.f32.vlgmr.msra.gmra.mrb[40].mxu0 %v31438_v12 }
0x1769   :  { %25535 = vmatpush3.msra.mxu0 %v18088_v46  ;;  %25531 = vmatprep.mubr.f32.mxu0 %v31439_v54  ;;  %v30954_v46 = vpack.c.bf16 %v19439_v14, %v19436_v50 }
0x176a   :  { %27439 = vmatprep.subr.bf16.mxu0 %v30952_v6 }
0x176c   :  { %25532 = vmatmul.mubr.f32.gmra.mrb[42].mxu0 %v31440_v17 }
0x176d   :  { %25536 = vmatprep.mubr.f32.mxu0 %v31437_v30  ;;  %v19522_v30 = vsub.f32 %v19520_v24, %v19521_v7 }
0x176f   :  { %v19523_v31 = vand.u32 4294901760, %v19522_v30 }
0x1770   :  { %25537 = vmatmul.mubr.f32.vlgmr.msra.gmra.mrb[40].mxu0 %v31438_v12  ;;  %v19529_v12 = vsub.f32 %v19527_v60, %v19528_v9 }
0x1771   :  { %25539 = vmatprep.mubr.f32.mxu0 %v31439_v54  ;;  %27441 = vmatpush3.bf16.msra.mxu0 %v30952_v6  ;;  %v19536_v54 = vsub.f32 %v19534_v35, %v19535_v57 }
0x1772   :  { %27443 = vmatprep.subr.bf16.mxu0 %v30954_v46  ;;  %v19530_v29 = vand.u32 4294901760, %v19529_v12 }
0x1773   :  { %v19537_v59 = vand.u32 4294901760, %v19536_v54 }
0x1774   :  { %25540 = vmatmul.mubr.f32.gmra.mrb[42].mxu0 %v31440_v17  ;;  %v19543_v17 = vsub.f32 %v19541_v25, %v19542_v2  ;;  %v30960_v22 = vpack.c.bf16 %v19530_v29, %v19523_v31 }
0x1775   :  { %27445 = vmatpush3.bf16.msra.mxu0 %v30954_v46 }
0x1776   :  { %v19544_v4 = vand.u32 4294901760, %v19543_v17  ;;  %27447 = vmatprep.subr.bf16.mxu0 %v30960_v22  ;;  %v18788_v17 = vld [vmem:[#allocation2 + $0x3b8] sm:$0xff] }
0x1777   :  { %v18811_v29 = vand.u32 4294901760, %v18788_v17 }
0x1778   :  { %v30964_v16 = vpack.c.bf16 %v19544_v4, %v19537_v59 }
0x17ba   :  { %v25301_v18 = vpop.f32.mrb[22].mxu1 }
0x17bb   :  { %v15417_v36 = vadd.f32 %v25301_v18, %v31449_v47  ;;  %v15406_v51 = vpop.f32.mrb[23].mxu1  ;;  %v30969_v18 = vpack.c.bf16 %v19528_v9, %v19521_v7  ;;  %v18785_v9 = vld [vmem:[#allocation2 + $0x3a0] sm:$0xff] }
0x17bc   :  { %v15416_v43 = vadd.f32 %v15406_v51, %v31450_v13  ;;  %v18802_v12 = vand.u32 4294901760, %v18785_v9 }
0x17bd   :  { %v15424_v61 = vadd.f32 %v21800_v23, %v15417_v36 }
0x17be   :  { %v15423_v38 = vadd.f32 %v21800_v23, %v15416_v43  ;;  %v30971_v23 = vpack.c.bf16 %v19542_v2, %v19535_v57  ;;  %v18786_v57 = vld [vmem:[#allocation2 + $0x3a8] sm:$0xff]  ;;  %v18787_v2 = vld [vmem:[#allocation2 + $0x3b0] sm:$0xff] }
0x17bf   :  { %v18750_v27 = vsel %vm31451_vm4, %v15424_v61, 0.0  ;;  %v18805_v54 = vand.u32 4294901760, %v18786_v57  ;;  %v18808_v31 = vand.u32 4294901760, %v18787_v2  ;;  %vm31467_vm4 = vmmov %vm31461_vm0 }
0x17c0   :  { %18751 = vadd.xlane.f32.xlu1 %v18750_v27  ;;  %v18747_v21 = vsel %vm31452_vm5, %v15423_v38, 0.0  ;;  %vm31468_vm5 = vmmov %vm31461_vm0 }
0x17c1   :  { %18748 = vadd.xlane.f32.xlu0 %v18747_v21  ;;  %v31023_v4 = vpack.c.bf16 %v18805_v54, %v18802_v12 }
0x17c3   :  { %27391 = vmatprep.subr.bf16.mxu1 %v31023_v4 }
0x17c4   :  { %27393 = vmatpush3.bf16.msra.mxu1 %v31023_v4 }
0x1843   :  { %v25538_v49 = vpop.f32.mrb[40].mxu0 }
0x1844   :  { %v30926_v28 = vadd.f32 %v25538_v49, %v21833_v58  ;;  %v18640_v39 = vpop.f32.mrb[41].mxu0 }
0x1845   :  { %v30928_v19 = vadd.f32 %v21833_v58, %v18640_v39 }
0x1846   :  { %v18680_v1 = vsel %vm31453_vm13, %v30926_v28, 0.0  ;;  %vm31469_vm13 = vmmov %vm31461_vm0 }
0x1847   :  { %v25541_v5 = vpop.f32.mrb[42].mxu0  ;;  %18681 = vadd.xlane.f32.xlu1 %v18680_v1  ;;  %v18677_v34 = vsel %vm31454_vm15, %v30928_v19, 0.0  ;;  %vm31470_vm15 = vmmov %vm31461_vm0 }
0x1848   :  { %v30934_v20 = vadd.f32 %v25541_v5, %v21833_v58  ;;  %v18652_v40 = vpop.f32.mrb[43].mxu0  ;;  %18678 = vadd.xlane.f32.xlu0 %v18677_v34 }
0x1849   :  { %v30936_v62 = vadd.f32 %v21833_v58, %v18652_v40 }
0x184a   :  { %v18686_v41 = vsel %vm31455_vm6, %v30934_v20, 0.0  ;;  %vm31471_vm6 = vmmov %vm31461_vm0 }
0x184b   :  { %18687 = vadd.xlane.f32.xlu1 %v18686_v41  ;;  %v18683_v0 = vsel %vm31456_vm9, %v30936_v62, 0.0  ;;  %vm31472_vm9 = vmmov %vm31461_vm0 }
0x184c   :  { %18684 = vadd.xlane.f32.xlu0 %v18683_v0 }
0x184d   :  { %v18752_v37 = vpop.xlane.xlu1 %18751 }
0x184e   :  { %v18754_v55 = vmul.f32 0.03125, %v18752_v37  ;;  %v18749_v10 = vpop.xlane.xlu0 %18748 }
0x184f   :  { %v18753_v11 = vmul.f32 0.03125, %v18749_v10 }
0x1850   :  { %v30942_v8 = vsub.f32 %v15424_v61, %v18754_v55 }
0x1851   :  { %v30944_v52 = vsub.f32 %v15423_v38, %v18753_v11 }
0x1852   :  { %v18758_v48 = vmul.f32 %v30942_v8, %v30942_v8 }
0x1853   :  { %v18757_v45 = vmul.f32 %v30944_v52, %v30944_v52 }
0x1854   :  { %v18762_v42 = vsel %vm31457_vm7, %v18758_v48, 0.0  ;;  %vm31473_vm7 = vmmov %vm31461_vm0 }
0x1855   :  { %18763 = vadd.xlane.f32.xlu1 %v18762_v42  ;;  %v18759_v44 = vsel %vm31458_vm8, %v18757_v45, 0.0  ;;  %v21836_v45 = vld [vmem:[#allocation2 + $0x390] ss:$0 sm:$0xff]  ;;  %vm31474_vm8 = vmmov %vm31461_vm0 }
0x1856   :  { %18760 = vadd.xlane.f32.xlu0 %v18759_v44 }
0x18d4   :  { %v18682_v47 = vpop.xlane.xlu1 %18681 }
0x18d5   :  { %v18690_v36 = vmul.f32 0.03125, %v18682_v47  ;;  %v18679_v51 = vpop.xlane.xlu0 %18678 }
0x18d6   :  { %v18689_v13 = vmul.f32 0.03125, %v18679_v51  ;;  %v18912_v51 = vsub.f32 %v18785_v9, %v18802_v12 }
0x18d7   :  { %v30974_v43 = vsub.f32 %v30926_v28, %v18690_v36  ;;  %v31027_v36 = vpack.c.bf16 %v18811_v29, %v18808_v31 }
0x18d8   :  { %v30977_v61 = vsub.f32 %v30928_v19, %v18689_v13  ;;  %v18688_v38 = vpop.xlane.xlu1 %18687  ;;  %v18919_v13 = vsub.f32 %v18786_v57, %v18805_v54 }
0x18d9   :  { %v18692_v27 = vmul.f32 0.03125, %v18688_v38  ;;  %v18685_v21 = vpop.xlane.xlu0 %18684  ;;  %v18698_v58 = vmul.f32 %v30974_v43, %v30974_v43  ;;  %v18913_v38 = vand.u32 4294901760, %v18912_v51  ;;  %27395 = vmatprep.subr.bf16.mxu1 %v31027_v36 }
0x18da   :  { %v18691_v49 = vmul.f32 0.03125, %v18685_v21  ;;  %v18697_v39 = vmul.f32 %v30977_v61, %v30977_v61  ;;  %27397 = vmatpush3.bf16.msra.mxu1 %v31027_v36 }
0x18db   :  { %v30984_v1 = vsub.f32 %v30934_v20, %v18692_v27  ;;  %v18704_v5 = vsel %vm31459_vm10, %v18698_v58, 0.0  ;;  %v18920_v27 = vand.u32 4294901760, %v18919_v13  ;;  %v18914_v21 = vsub.f32 %v18912_v51, %v18913_v38 }
0x18dc   :  { %v30988_v28 = vsub.f32 %v30936_v62, %v18691_v49  ;;  %18705 = vadd.xlane.f32.xlu1 %v18704_v5  ;;  %v18701_v19 = vsel %vm31460_vm11, %v18697_v39, 0.0  ;;  %v18926_v49 = vsub.f32 %v18787_v2, %v18808_v31  ;;  %v18933_v39 = vsub.f32 %v18788_v17, %v18811_v29 }
0x18dd   :  { %18702 = vadd.xlane.f32.xlu0 %v18701_v19  ;;  %v18700_v34 = vmul.f32 %v30984_v1, %v30984_v1  ;;  %v18921_v58 = vsub.f32 %v18919_v13, %v18920_v27  ;;  %v18915_v5 = vand.u32 4294901760, %v18914_v21  ;;  %vm31475_vm10 = vcmask 130048  }
0x18de   :  { %v18699_v40 = vmul.f32 %v30988_v28, %v30988_v28  ;;  %vm31476_vm11 = vmmov %vm31475_vm10 }
0x18df   :  { %v18710_v41 = vsel %vm31461_vm0, %v18700_v34, 0.0  ;;  %v18922_v19 = vand.u32 4294901760, %v18921_v58  ;;  %v18927_v34 = vand.u32 4294901760, %v18926_v49  ;;  %vm31477_vm0 = vmmov %vm31475_vm10 }
0x18e0   :  { %18711 = vadd.xlane.f32.xlu1 %v18710_v41  ;;  %v18707_v20 = vsel %vm31462_vm12, %v18699_v40, 0.0  ;;  %v18934_v40 = vand.u32 4294901760, %v18933_v39  ;;  %vm31478_vm12 = vmmov %vm31477_vm0 }
0x18e1   :  { %18708 = vadd.xlane.f32.xlu0 %v18707_v20  ;;  %v18928_v41 = vsub.f32 %v18926_v49, %v18927_v34 }
0x18e2   :  { %v18764_v0 = vpop.xlane.xlu1 %18763  ;;  %v18935_v20 = vsub.f32 %v18933_v39, %v18934_v40 }
0x18e3   :  { %v18766_v37 = vmul.f32 0.03125, %v18764_v0  ;;  %v18761_v62 = vpop.xlane.xlu0 %18760  ;;  %v18929_v0 = vand.u32 4294901760, %v18928_v41 }
0x18e4   :  { %v18765_v55 = vmul.f32 0.03125, %v18761_v62  ;;  %v31051_v62 = vpack.c.bf16 %v18919_v13, %v18912_v51 }
0x18e5   :  { %v18768_v10 = vadd.f32 1e-05, %v18766_v37  ;;  %v18936_v37 = vand.u32 4294901760, %v18935_v20 }
0x18e6   :  { %v18767_v11 = vadd.f32 1e-05, %v18765_v55  ;;  %v31073_v55 = vpack.c.bf16 %v18934_v40, %v18927_v34 }
0x18e7   :  { %28184 = vrsqrt.f32 %v18768_v10 }
0x18e8   :  { %28186 = vrsqrt.f32 %v18767_v11 }
0x18f1   :  { %v28185_v48 = vpop.eup %28184 }
0x18f2   :  { %v28187_v42 = vpop.eup %28186  ;;  %v18772_v44 = vmul.f32 %v28185_v48, %v30942_v8 }
0x18f3   :  { %v18771_v32 = vmul.f32 %v28187_v42, %v30944_v52 }
0x18f4   :  { %v18778_v56 = vmul.f32 %v21836_v45, %v18772_v44 }
0x18f5   :  { %v18777_v3 = vmul.f32 %v21836_v45, %v18771_v32 }
0x18f6   :  { %v18784_v33 = vadd.f32 %v21837_v26, %v18778_v56 }
0x18f7   :  { %v18783_v53 = vadd.f32 %v21837_v26, %v18777_v3 }
0x18f8   :  { %v19427_v50 = vsel %vm31463_vm1, %v18784_v33, 0  ;;  %vm31479_vm1 = vmmov %vm31477_vm0 }
0x18f9   :  { %v31000_v14 = vand.u32 4294901760, %v19427_v50  ;;  %v19424_v24 = vsel %vm31464_vm3, %v18783_v53, 0  ;;  %vm31480_vm3 = vmmov %vm31477_vm0 }
0x18fa   :  { %v31003_v60 = vand.u32 4294901760, %v19424_v24 }
0x18fb   :  { %v31006_v35 = vsub.f32 %v19427_v50, %v31000_v14 }
0x18fc   :  { %v31009_v8 = vsub.f32 %v19424_v24, %v31003_v60  ;;  %v21835_v24 = vld [vmem:[#allocation2 + $0x388] ss:$0 sm:$0xff] }
0x18fd   :  { %v31012_v52 = vand.u32 4294901760, %v31006_v35 }
0x18fe   :  { %v31015_v25 = vand.u32 4294901760, %v31009_v8 }
0x18ff   :  { %v19511_v7 = vsub.f32 %v31006_v35, %v31012_v52 }
0x1900   :  { %v19501_v30 = vsub.f32 %v31009_v8, %v31015_v25 }
0x1901   :  { %v31025_v47 = vand.u32 4294901760, %v19511_v7 }
0x1902   :  { %v31021_v59 = vand.u32 4294901760, %v19501_v30 }
0x1904   :  { %25634 = vmatprep.mubr.f32.mxu0 %v31021_v59 }
0x1905   :  { %25635 = vmatmul.mubr.f32.vlgmr.msra.gmra.mrb[44].mxu0 %v31025_v47 }
0x1906   :  { %27449 = vmatpush3.bf16.msra.mxu0 %v30960_v22  ;;  %25645 = vmatprep.mubr.f32.mxu0 %v31003_v60  ;;  %v31040_v22 = vpack.c.bf16 %v18922_v19, %v18915_v5 }
0x1907   :  { %27451 = vmatprep.subr.bf16.mxu0 %v30964_v16 }
0x1908   :  { %27399 = vmatprep.subr.bf16.mxu1 %v31040_v22 }
0x190a   :  { %27453 = vmatpush3.bf16.msra.mxu0 %v30964_v16  ;;  %v31047_v16 = vpack.c.bf16 %v18936_v37, %v18929_v0 }
0x190b   :  { %27455 = vmatprep.subr.bf16.mxu0 %v30962_v15 }
0x190d   :  { %25646 = vmatmul.mubr.f32.vlgmr.msra.gmra.mrb[44].mxu0 %v31000_v14 }
0x190e   :  { %27457 = vmatpush3.bf16.msra.mxu0 %v30962_v15  ;;  %25656 = vmatprep.mubr.f32.mxu0 %v31009_v8  ;;  %v31057_v15 = vpack.c.bf16 %v18933_v39, %v18926_v49 }
0x190f   :  { %27459 = vmatprep.subr.bf16.mxu0 %v30966_v63 }
0x1912   :  { %27461 = vmatpush3.bf16.msra.mxu0 %v30966_v63  ;;  %v31067_v63 = vpack.c.bf16 %v18920_v27, %v18913_v38 }
0x1913   :  { %27463 = vmatprep.subr.bf16.mxu0 %v30952_v6 }
0x1915   :  { %25657 = vmatmul.mubr.f32.vlgmr.msra.gmra.mrb[44].mxu0 %v31006_v35 }
0x1916   :  { %27465 = vmatpush3.bf16.msra.mxu0 %v30952_v6  ;;  %25667 = vmatprep.mubr.f32.mxu0 %v31015_v25 }
0x1917   :  { %27467 = vmatprep.subr.bf16.mxu0 %v30954_v46 }
0x191a   :  { %27469 = vmatpush3.bf16.msra.mxu0 %v30954_v46 }
0x191b   :  { %27471 = vmatprep.subr.bf16.mxu0 %v30969_v18 }
0x191d   :  { %25668 = vmatmul.mubr.f32.vlgmr.msra.gmra.mrb[44].mxu0 %v31012_v52 }
0x191e   :  { %27473 = vmatpush3.bf16.msra.mxu0 %v30969_v18  ;;  %25678 = vmatprep.mubr.f32.mxu0 %v31003_v60 }
0x191f   :  { %27475 = vmatprep.subr.bf16.mxu0 %v30971_v23 }
0x1922   :  { %27477 = vmatpush3.bf16.msra.mxu0 %v30971_v23 }
0x1923   :  { %27479 = vmatprep.subr.bf16.mxu0 %v30952_v6 }
0x1925   :  { %25679 = vmatmul.mubr.f32.vlgmr.msra.gmra.mrb[44].mxu0 %v31000_v14 }
0x1926   :  { %27481 = vmatpush3.bf16.msra.mxu0 %v30952_v6  ;;  %25689 = vmatprep.mubr.f32.mxu0 %v31003_v60 }
0x1927   :  { %27483 = vmatprep.subr.bf16.mxu0 %v30954_v46 }
0x192a   :  { %27485 = vmatpush3.bf16.msra.mxu0 %v30954_v46  ;;  %v21834_v46 = vld [vmem:[#allocation2 + $0x380] ss:$0 sm:$0xff] }
0x192d   :  { %25690 = vmatmul.mubr.f32.vlgmr.msra.gmra.mrb[44].mxu0 %v31000_v14 }
0x1969   :  { %v18706_v18 = vpop.xlane.xlu1 %18705 }
0x196a   :  { %v18714_v23 = vmul.f32 0.03125, %v18706_v18  ;;  %v18703_v10 = vpop.xlane.xlu0 %18702 }
0x196b   :  { %v18713_v11 = vmul.f32 0.03125, %v18703_v10 }
0x196c   :  { %v18718_v48 = vadd.f32 1e-05, %v18714_v23 }
0x196d   :  { %v18717_v45 = vadd.f32 1e-05, %v18713_v11  ;;  %v18712_v42 = vpop.xlane.xlu1 %18711 }
0x196e   :  { %28188 = vrsqrt.f32 %v18718_v48  ;;  %v18716_v44 = vmul.f32 0.03125, %v18712_v42  ;;  %v18709_v6 = vpop.xlane.xlu0 %18708 }
0x196f   :  { %28190 = vrsqrt.f32 %v18717_v45  ;;  %v18715_v26 = vmul.f32 0.03125, %v18709_v6 }
0x1970   :  { %v18720_v32 = vadd.f32 1e-05, %v18716_v44  ;;  %v19960_v44 = vld [vmem:[#allocation2 + $0x3f8] sm:$0xff] }
0x1971   :  { %v18719_v56 = vadd.f32 1e-05, %v18715_v26  ;;  %v19971_v26 = vand.u32 4294901760, %v19960_v44 }
0x1972   :  { %28192 = vrsqrt.f32 %v18720_v32 }
0x1973   :  { %28194 = vrsqrt.f32 %v18719_v56 }
0x1978   :  { %v28189_v3 = vpop.eup %28188 }
0x1979   :  { %v28191_v33 = vpop.eup %28190  ;;  %v18726_v53 = vmul.f32 %v28189_v3, %v30974_v43 }
0x197a   :  { %v18725_v50 = vmul.f32 %v28191_v33, %v30977_v61 }
0x197b   :  { %v18734_v7 = vmul.f32 %v21834_v46, %v18726_v53  ;;  %v20073_v53 = vsub.f32 %v19960_v44, %v19971_v26 }
0x197c   :  { %v28193_v9 = vpop.eup %28192  ;;  %v18733_v57 = vmul.f32 %v21834_v46, %v18725_v50 }
0x197d   :  { %v28195_v2 = vpop.eup %28194  ;;  %v18728_v30 = vmul.f32 %v28193_v9, %v30984_v1  ;;  %v18742_v12 = vadd.f32 %v21835_v24, %v18734_v7  ;;  %v20074_v7 = vand.u32 4294901760, %v20073_v53 }
0x197e   :  { %v18727_v54 = vmul.f32 %v28195_v2, %v30988_v28  ;;  %v18741_v17 = vadd.f32 %v21835_v24, %v18733_v57 }
0x197f   :  { %v18793_v31 = vsel %vm31465_vm2, %v18742_v12, 0  ;;  %v18736_v29 = vmul.f32 %v21834_v46, %v18728_v30  ;;  %v20075_v12 = vsub.f32 %v20073_v53, %v20074_v7  ;;  %vm31481_vm2 = vmmov %vm31477_vm0 }
0x1980   :  { %v18790_v51 = vsel %vm31466_vm14, %v18741_v17, 0  ;;  %v31083_v13 = vand.u32 4294901760, %v18793_v31  ;;  %v18735_v43 = vmul.f32 %v21834_v46, %v18727_v54  ;;  %vm31482_vm14 = vmmov %vm31477_vm0 }
0x1981   :  { %v31085_v61 = vand.u32 4294901760, %v18790_v51  ;;  %v18744_v38 = vadd.f32 %v21835_v24, %v18736_v29  ;;  %v20076_v17 = vand.u32 4294901760, %v20075_v12 }
0x1982   :  { %v18881_v27 = vsub.f32 %v18793_v31, %v31083_v13  ;;  %v18743_v21 = vadd.f32 %v21835_v24, %v18735_v43 }
0x1983   :  { %v18871_v1 = vsub.f32 %v18790_v51, %v31085_v61  ;;  %v18799_v58 = vsel %vm31467_vm4, %v18744_v38, 0  ;;  %vm31483_vm4 = vmmov %vm31477_vm0 }
0x1984   :  { %v18882_v28 = vand.u32 4294901760, %v18881_v27  ;;  %v18796_v49 = vsel %vm31468_vm5, %v18743_v21, 0  ;;  %v31091_v39 = vand.u32 4294901760, %v18799_v58  ;;  %vm31484_vm5 = vmmov %vm31477_vm0 }
0x1985   :  { %v18872_v5 = vand.u32 4294901760, %v18871_v1  ;;  %v31093_v19 = vand.u32 4294901760, %v18796_v49 }
0x1986   :  { %v18883_v34 = vsub.f32 %v18881_v27, %v18882_v28  ;;  %v18901_v40 = vsub.f32 %v18799_v58, %v31091_v39 }
0x1987   :  { %v18873_v41 = vsub.f32 %v18871_v1, %v18872_v5  ;;  %v18891_v20 = vsub.f32 %v18796_v49, %v31093_v19 }
0x1988   :  { %v18902_v0 = vand.u32 4294901760, %v18901_v40  ;;  %v18884_v23 = vand.u32 4294901760, %v18883_v34 }
0x1989   :  { %v18874_v37 = vand.u32 4294901760, %v18873_v41  ;;  %v18892_v18 = vand.u32 4294901760, %v18891_v20 }
0x198a   :  { %v18903_v10 = vsub.f32 %v18901_v40, %v18902_v0 }
0x198b   :  { %25550 = vmatprep.mubr.f32.mxu1 %v18874_v37  ;;  %v18893_v11 = vsub.f32 %v18891_v20, %v18892_v18 }
0x198c   :  { %25551 = vmatmul.mubr.f32.vlgmr.msra.gmra.mrb[24].mxu1 %v18884_v23  ;;  %v18904_v45 = vand.u32 4294901760, %v18903_v10 }
0x198d   :  { %27401 = vmatpush3.bf16.msra.mxu1 %v31040_v22  ;;  %v18894_v48 = vand.u32 4294901760, %v18893_v11  ;;  %v19957_v22 = vld [vmem:[#allocation2 + $0x3e0] sm:$0xff] }
0x198e   :  { %27403 = vmatprep.subr.bf16.mxu1 %v31047_v16 }
0x198f   :  { %25553 = vmatprep.mubr.f32.mxu1 %v18894_v48 }
0x1990   :  { %25554 = vmatmul.mubr.f32.gmra.mrb[26].mxu1 %v18904_v45 }
0x1991   :  { %27405 = vmatpush3.bf16.msra.mxu1 %v31047_v16  ;;  %25564 = vmatprep.mubr.f32.mxu1 %v31085_v61  ;;  %v19958_v16 = vld [vmem:[#allocation2 + $0x3e8] sm:$0xff] }
0x1992   :  { %27407 = vmatprep.subr.bf16.mxu1 %v31051_v62  ;;  %v19965_v42 = vand.u32 4294901760, %v19958_v16 }
0x1994   :  { %25565 = vmatmul.mubr.f32.vlgmr.msra.gmra.mrb[24].mxu1 %v31083_v13  ;;  %v20059_v56 = vsub.f32 %v19958_v16, %v19965_v42 }
0x1995   :  { %25567 = vmatprep.mubr.f32.mxu1 %v31093_v19  ;;  %27409 = vmatpush3.bf16.msra.mxu1 %v31051_v62  ;;  %v19962_v62 = vand.u32 4294901760, %v19957_v22 }
0x1996   :  { %27411 = vmatprep.subr.bf16.mxu1 %v31057_v15  ;;  %v20060_v46 = vand.u32 4294901760, %v20059_v56 }
0x1997   :  { %v20052_v32 = vsub.f32 %v19957_v22, %v19962_v62 }
0x1998   :  { %25568 = vmatmul.mubr.f32.gmra.mrb[26].mxu1 %v31091_v39  ;;  %v20061_v24 = vsub.f32 %v20059_v56, %v20060_v46 }
0x1999   :  { %27413 = vmatpush3.bf16.msra.mxu1 %v31057_v15  ;;  %25578 = vmatprep.mubr.f32.mxu1 %v18871_v1  ;;  %v19959_v15 = vld [vmem:[#allocation2 + $0x3f0] sm:$0xff]  ;;  %v20053_v3 = vand.u32 4294901760, %v20052_v32  ;;  %v27502_v31 = vpack.c.bf16 %v20059_v56, %v20052_v32 }
0x199a   :  { %27415 = vmatprep.subr.bf16.mxu1 %v31023_v4  ;;  %v19968_v6 = vand.u32 4294901760, %v19959_v15  ;;  %v20062_v2 = vand.u32 4294901760, %v20061_v24 }
0x199b   :  { %v20054_v50 = vsub.f32 %v20052_v32, %v20053_v3 }
0x199c   :  { %25579 = vmatmul.mubr.f32.vlgmr.msra.gmra.mrb[24].mxu1 %v18881_v27  ;;  %v20066_v33 = vsub.f32 %v19959_v15, %v19968_v6  ;;  %v27490_v9 = vpack.c.bf16 %v19971_v26, %v19968_v6 }
0x199d   :  { %25581 = vmatprep.mubr.f32.mxu1 %v18891_v20  ;;  %27417 = vmatpush3.bf16.msra.mxu1 %v31023_v4  ;;  %v20055_v57 = vand.u32 4294901760, %v20054_v50 }
0x199e   :  { %27419 = vmatprep.subr.bf16.mxu1 %v31027_v36  ;;  %v27506_v29 = vpack.c.bf16 %v20073_v53, %v20066_v33 }
0x19a0   :  { %25582 = vmatmul.mubr.f32.gmra.mrb[26].mxu1 %v18901_v40 }
0x19a1   :  { %27421 = vmatpush3.bf16.msra.mxu1 %v31027_v36  ;;  %25592 = vmatprep.mubr.f32.mxu1 %v18872_v5 }
0x19a2   :  { %27423 = vmatprep.subr.bf16.mxu1 %v31067_v63 }
0x19a4   :  { %25593 = vmatmul.mubr.f32.vlgmr.msra.gmra.mrb[24].mxu1 %v18882_v28 }
0x19a5   :  { %25595 = vmatprep.mubr.f32.mxu1 %v18892_v18  ;;  %27425 = vmatpush3.bf16.msra.mxu1 %v31067_v63  ;;  %v27486_v63 = vpack.c.bf16 %v19965_v42, %v19962_v62 }
0x19a6   :  { %27427 = vmatprep.subr.bf16.mxu1 %v31073_v55 }
0x19a8   :  { %25596 = vmatmul.mubr.f32.gmra.mrb[26].mxu1 %v18902_v0 }
0x19a9   :  { %27429 = vmatpush3.bf16.msra.mxu1 %v31073_v55  ;;  %25606 = vmatprep.mubr.f32.mxu1 %v31085_v61  ;;  %v20067_v55 = vand.u32 4294901760, %v20066_v33 }
0x19aa   :  { %27431 = vmatprep.subr.bf16.mxu1 %v31023_v4 }
0x19ab   :  { %v20068_v30 = vsub.f32 %v20066_v33, %v20067_v55 }
0x19ac   :  { %25607 = vmatmul.mubr.f32.vlgmr.msra.gmra.mrb[24].mxu1 %v31083_v13 }
0x19ad   :  { %25609 = vmatprep.mubr.f32.mxu1 %v31093_v19  ;;  %27433 = vmatpush3.bf16.msra.mxu1 %v31023_v4  ;;  %v27494_v4 = vpack.c.bf16 %v20062_v2, %v20055_v57  ;;  %v20069_v54 = vand.u32 4294901760, %v20068_v30 }
0x19ae   :  { %27435 = vmatprep.subr.bf16.mxu1 %v31027_v36 }
0x19b0   :  { %25610 = vmatmul.mubr.f32.gmra.mrb[26].mxu1 %v31091_v39 }
0x19b1   :  { %27437 = vmatpush3.bf16.msra.mxu1 %v31027_v36  ;;  %25620 = vmatprep.mubr.f32.mxu1 %v31085_v61  ;;  %v27498_v36 = vpack.c.bf16 %v20076_v17, %v20069_v54 }
0x19b2   :  { %27487 = vmatprep.subr.bf16.mxu1 %v27486_v63 }
0x19b4   :  { %25621 = vmatmul.mubr.f32.vlgmr.msra.gmra.mrb[24].mxu1 %v31083_v13 }
0x19b5   :  { %25623 = vmatprep.mubr.f32.mxu1 %v31093_v19  ;;  %27489 = vmatpush3.bf16.msra.mxu1 %v27486_v63 }
0x19b6   :  { %27491 = vmatprep.subr.bf16.mxu1 %v27490_v9 }
0x19b8   :  { %25624 = vmatmul.mubr.f32.gmra.mrb[26].mxu1 %v31091_v39 }
0x19b9   :  { %27493 = vmatpush3.bf16.msra.mxu1 %v27490_v9  ;;  %25700 = vmatprep.mubr.f32.mxu1 %v31021_v59  ;;  %v27518_v59 = vpack.c.bf16 %v20060_v46, %v20053_v3 }
0x19ba   :  { %27495 = vmatprep.subr.bf16.mxu1 %v27494_v4 }
0x19bc   :  { %25701 = vmatmul.mubr.f32.vlgmr.msra.gmra.mrb[28].mxu1 %v31025_v47  ;;  %v27522_v47 = vpack.c.bf16 %v20074_v7, %v20067_v55 }
0x19bd   :  { %27497 = vmatpush3.bf16.msra.mxu1 %v27494_v4  ;;  %25711 = vmatprep.mubr.f32.mxu1 %v31003_v60 }
0x19be   :  { %27499 = vmatprep.subr.bf16.mxu1 %v27498_v36 }
0x19c1   :  { %27501 = vmatpush3.bf16.msra.mxu1 %v27498_v36 }
0x19c2   :  { %27503 = vmatprep.subr.bf16.mxu1 %v27502_v31 }
0x19c4   :  { %25712 = vmatmul.mubr.f32.vlgmr.msra.gmra.mrb[28].mxu1 %v31000_v14 }
0x19c5   :  { %27505 = vmatpush3.bf16.msra.mxu1 %v27502_v31  ;;  %25722 = vmatprep.mubr.f32.mxu1 %v31009_v8 }
0x19c6   :  { %27507 = vmatprep.subr.bf16.mxu1 %v27506_v29 }
0x19c9   :  { %27509 = vmatpush3.bf16.msra.mxu1 %v27506_v29 }
0x19ca   :  { %27511 = vmatprep.subr.bf16.mxu1 %v27486_v63 }
0x19cc   :  { %25723 = vmatmul.mubr.f32.vlgmr.msra.gmra.mrb[28].mxu1 %v31006_v35 }
0x19cd   :  { %27513 = vmatpush3.bf16.msra.mxu1 %v27486_v63  ;;  %25733 = vmatprep.mubr.f32.mxu1 %v31015_v25 }
0x19ce   :  { %27515 = vmatprep.subr.bf16.mxu1 %v27490_v9 }
0x19d1   :  { %27517 = vmatpush3.bf16.msra.mxu1 %v27490_v9 }
0x19d2   :  { %27519 = vmatprep.subr.bf16.mxu1 %v27518_v59 }
0x19d4   :  { %25734 = vmatmul.mubr.f32.vlgmr.msra.gmra.mrb[28].mxu1 %v31012_v52 }
0x19d5   :  { %27521 = vmatpush3.bf16.msra.mxu1 %v27518_v59  ;;  %25744 = vmatprep.mubr.f32.mxu1 %v31003_v60 }
0x19d6   :  { %27523 = vmatprep.subr.bf16.mxu1 %v27522_v47 }
0x19d9   :  { %27525 = vmatpush3.bf16.msra.mxu1 %v27522_v47 }
0x19da   :  { %27527 = vmatprep.subr.bf16.mxu1 %v27486_v63 }
0x19dc   :  { %25745 = vmatmul.mubr.f32.vlgmr.msra.gmra.mrb[28].mxu1 %v31000_v14 }
0x19dd   :  { %27529 = vmatpush3.bf16.msra.mxu1 %v27486_v63  ;;  %25755 = vmatprep.mubr.f32.mxu1 %v31003_v60 }
0x19de   :  { %27531 = vmatprep.subr.bf16.mxu1 %v27490_v9 }
0x19e1   :  { %27533 = vmatpush3.bf16.msra.mxu1 %v27490_v9 }
0x19e4   :  { %25756 = vmatmul.mubr.f32.vlgmr.msra.gmra.mrb[28].mxu1 %v31000_v14 }
0x1a00   :  { %v25691_v35 = vpop.f32.mrb[44].mxu0 }
0x1a01   :  { %v20509_v8 = vsel %vm31469_vm13, %v25691_v35, 0  ;;  %v19947_v25 = vpop.f32.mrb[45].mxu0  ;;  %vm31485_vm13 = vmmov %vm31477_vm0 }
0x1a02   :  { %v20515_v52 = vand.u32 4294901760, %v20509_v8  ;;  %v20506_v51 = vsel %vm31470_vm15, %v19947_v25, 0  ;;  %v20490_v25 = vld [vmem:[#allocation2 + $0x438] sm:$0xff]  ;;  %vm31486_vm15 = vmmov %vm31477_vm0 }
0x1a03   :  { %v20512_v13 = vand.u32 4294901760, %v20506_v51 }
0x1a04   :  { %v20627_v43 = vsub.f32 %v20509_v8, %v20515_v52 }
0x1a05   :  { %v31142_v61 = vpack.c.bf16 %v20515_v52, %v20512_v13  ;;  %v20620_v38 = vsub.f32 %v20506_v51, %v20512_v13  ;;  %v20489_v52 = vld [vmem:[#allocation2 + $0x430] sm:$0xff] }
0x1a06   :  { %v20628_v27 = vand.u32 4294901760, %v20627_v43 }
0x1a07   :  { %v20621_v21 = vand.u32 4294901760, %v20620_v38  ;;  %27535 = vmatprep.subr.bf16.mxu0 %v31142_v61  ;;  %v27542_v60 = vpack.c.bf16 %v20627_v43, %v20620_v38 }
0x1a08   :  { %v20629_v1 = vsub.f32 %v20627_v43, %v20628_v27  ;;  %27537 = vmatpush3.bf16.xpose.msra.mxu0 %v31142_v61 }
0x1a09   :  { %v20622_v14 = vsub.f32 %v20620_v38, %v20621_v21  ;;  %v27550_v58 = vpack.c.bf16 %v20628_v27, %v20621_v21  ;;  %v20492_v38 = vld [vmem:[#allocation2 + $0x448] sm:$0xff]  ;;  %v20491_v21 = vld [vmem:[#allocation2 + $0x440] sm:$0xff] }
0x1a0a   :  { %v20630_v28 = vand.u32 4294901760, %v20629_v1 }
0x1a0b   :  { %v20623_v49 = vand.u32 4294901760, %v20622_v14 }
0x1a0d   :  { %v27538_v39 = vpack.c.bf16 %v20630_v28, %v20623_v49 }
0x1a0f   :  { %27539 = vmatprep.subr.bf16.mxu0 %v27538_v39 }
0x1a87   :  { %v25622_v5 = vpop.f32.mrb[24].mxu1 }
0x1a88   :  { %v19416_v19 = vmul.f32 0.17677669, %v25622_v5  ;;  %v19393_v34 = vpop.f32.mrb[25].mxu1 }
0x1a89   :  { %v19415_v40 = vmul.f32 0.17677669, %v19393_v34 }
0x1a8a   :  { %v20497_v41 = vsel %vm31471_vm6, %v19416_v19, 0 }
0x1a8b   :  { %v31147_v20 = vand.u32 4294901760, %v20497_v41  ;;  %v20494_v0 = vsel %vm31472_vm9, %v19415_v40, 0  ;;  %v25625_v37 = vpop.f32.mrb[26].mxu1  ;;  %vm31487_vm9 = vmmov %vm31471_vm6 }
0x1a8c   :  { %v20578_v18 = vand.u32 4294901760, %v20494_v0  ;;  %v19418_v23 = vmul.f32 0.17677669, %v25625_v37  ;;  %v19405_v10 = vpop.f32.mrb[27].mxu1 }
0x1a8d   :  { %v20589_v11 = vsub.f32 %v20497_v41, %v31147_v20  ;;  %v19417_v48 = vmul.f32 0.17677669, %v19405_v10 }
0x1a8e   :  { %v20579_v45 = vsub.f32 %v20494_v0, %v20578_v18  ;;  %v20503_v22 = vsel %vm31473_vm7, %v19418_v23, 0  ;;  %vm31488_vm7 = vmmov %vm31471_vm6 }
0x1a8f   :  { %v20590_v16 = vand.u32 4294901760, %v20589_v11  ;;  %v31152_v62 = vand.u32 4294901760, %v20503_v22  ;;  %v20500_v42 = vsel %vm31474_vm8, %v19417_v48, 0  ;;  %vm31489_vm8 = vmmov %vm31471_vm6 }
0x1a90   :  { %v20598_v15 = vand.u32 4294901760, %v20500_v42  ;;  %v20580_v44 = vand.u32 4294901760, %v20579_v45 }
0x1a91   :  { %v20609_v6 = vsub.f32 %v20503_v22, %v31152_v62  ;;  %v20591_v26 = vsub.f32 %v20589_v11, %v20590_v16 }
0x1a92   :  { %v20599_v32 = vsub.f32 %v20500_v42, %v20598_v15  ;;  %v20581_v56 = vsub.f32 %v20579_v45, %v20580_v44 }
0x1a93   :  { %v20610_v3 = vand.u32 4294901760, %v20609_v6  ;;  %v20592_v53 = vand.u32 4294901760, %v20591_v26 }
0x1a94   :  { %v20582_v46 = vand.u32 4294901760, %v20581_v56  ;;  %v20600_v33 = vand.u32 4294901760, %v20599_v32 }
0x1a95   :  { %v20611_v63 = vsub.f32 %v20609_v6, %v20610_v3 }
0x1a96   :  { %25762 = vmatprep.mubr.f32.mxu0 %v20582_v46  ;;  %v20601_v50 = vsub.f32 %v20599_v32, %v20600_v33 }
0x1a97   :  { %25763 = vmatmul.mubr.f32.vlgmr.msra.gmra.mrb[46].mxu0 %v20592_v53  ;;  %v20612_v55 = vand.u32 4294901760, %v20611_v63 }
0x1a98   :  { %27541 = vmatpush3.bf16.xpose.msra.mxu0 %v27538_v39  ;;  %v20602_v24 = vand.u32 4294901760, %v20601_v50 }
0x1a99   :  { %27543 = vmatprep.subr.bf16.mxu0 %v27542_v60 }
0x1a9a   :  { %25765 = vmatprep.mubr.f32.mxu0 %v20602_v24 }
0x1a9b   :  { %25766 = vmatmul.mubr.f32.gmra.mrb[48].mxu0 %v20612_v55 }
0x1a9c   :  { %25772 = vmatprep.mubr.f32.mxu0 %v20578_v18 }
0x1a9f   :  { %25773 = vmatmul.mubr.f32.vlgmr.msra.gmra.mrb[46].mxu0 %v31147_v20 }
0x1aa0   :  { %27545 = vmatpush3.bf16.xpose.msra.mxu0 %v27542_v60  ;;  %25775 = vmatprep.mubr.f32.mxu0 %v20598_v15 }
0x1aa1   :  { %27547 = vmatprep.subr.bf16.mxu0 %v31142_v61 }
0x1aa3   :  { %25776 = vmatmul.mubr.f32.gmra.mrb[48].mxu0 %v31152_v62 }
0x1aa4   :  { %25782 = vmatprep.mubr.f32.mxu0 %v20579_v45 }
0x1aa7   :  { %25783 = vmatmul.mubr.f32.vlgmr.msra.gmra.mrb[46].mxu0 %v20589_v11 }
0x1aa8   :  { %27549 = vmatpush3.bf16.xpose.msra.mxu0 %v31142_v61  ;;  %25785 = vmatprep.mubr.f32.mxu0 %v20599_v32 }
0x1aa9   :  { %27551 = vmatprep.subr.bf16.mxu0 %v27550_v58 }
0x1aab   :  { %25786 = vmatmul.mubr.f32.gmra.mrb[48].mxu0 %v20609_v6 }
0x1aac   :  { %25792 = vmatprep.mubr.f32.mxu0 %v20580_v44 }
0x1aaf   :  { %25793 = vmatmul.mubr.f32.vlgmr.msra.gmra.mrb[46].mxu0 %v20590_v16 }
0x1ab0   :  { %27553 = vmatpush3.bf16.xpose.msra.mxu0 %v27550_v58  ;;  %25795 = vmatprep.mubr.f32.mxu0 %v20600_v33 }
0x1ab1   :  { %27555 = vmatprep.subr.bf16.mxu0 %v31142_v61 }
0x1ab3   :  { %25796 = vmatmul.mubr.f32.gmra.mrb[48].mxu0 %v20610_v3 }
0x1ab4   :  { %25802 = vmatprep.mubr.f32.mxu0 %v20578_v18 }
0x1ab7   :  { %v25757_v7 = vpop.f32.mrb[28].mxu1  ;;  %25803 = vmatmul.mubr.f32.vlgmr.msra.gmra.mrb[46].mxu0 %v31147_v20 }
0x1ab8   :  { %v21159_v9 = vand.u32 4294901760, %v25757_v7  ;;  %27557 = vmatpush3.bf16.xpose.msra.mxu0 %v31142_v61  ;;  %v20479_v57 = vpop.f32.mrb[29].mxu1  ;;  %25805 = vmatprep.mubr.f32.mxu0 %v20598_v15 }
0x1ab9   :  { %v21156_v2 = vand.u32 4294901760, %v20479_v57 }
0x1aba   :  { %v21271_v30 = vsub.f32 %v25757_v7, %v21159_v9 }
0x1abb   :  { %v31163_v12 = vpack.c.bf16 %v21159_v9, %v21156_v2  ;;  %v21264_v4 = vsub.f32 %v20479_v57, %v21156_v2  ;;  %25806 = vmatmul.mubr.f32.gmra.mrb[48].mxu0 %v31152_v62 }
0x1abc   :  { %v21272_v54 = vand.u32 4294901760, %v21271_v30  ;;  %25812 = vmatprep.mubr.f32.mxu0 %v20578_v18 }
0x1abd   :  { %v21265_v17 = vand.u32 4294901760, %v21264_v4  ;;  %27559 = vmatprep.subr.bf16.mxu1 %v31163_v12  ;;  %v31167_v36 = vpack.c.bf16 %v21271_v30, %v21264_v4 }
0x1abe   :  { %v21273_v31 = vsub.f32 %v21271_v30, %v21272_v54  ;;  %27561 = vmatpush3.bf16.msra.mxu1 %v31163_v12 }
0x1abf   :  { %v21266_v29 = vsub.f32 %v21264_v4, %v21265_v17  ;;  %25813 = vmatmul.mubr.f32.vlgmr.msra.gmra.mrb[46].mxu0 %v31147_v20  ;;  %v31171_v59 = vpack.c.bf16 %v21272_v54, %v21265_v17 }
0x1ac0   :  { %25815 = vmatprep.mubr.f32.mxu0 %v20598_v15  ;;  %v21274_v47 = vand.u32 4294901760, %v21273_v31 }
0x1ac1   :  { %v21267_v35 = vand.u32 4294901760, %v21266_v29 }
0x1ac3   :  { %25816 = vmatmul.mubr.f32.gmra.mrb[48].mxu0 %v31152_v62  ;;  %v31174_v8 = vpack.c.bf16 %v21274_v47, %v21267_v35 }
0x1ac5   :  { %27563 = vmatprep.subr.bf16.mxu1 %v31174_v8 }
0x1b92   :  { %v25814_v51 = vpop.f32.mrb[46].mxu0 }
0x1b93   :  { %v27602_v13 = vadd.f32 %v25814_v51, %v20490_v25  ;;  %v21077_v43 = vpop.f32.mrb[47].mxu0 }
0x1b94   :  { %v27603_v61 = vadd.f32 %v21077_v43, %v20489_v52 }
0x1b95   :  { %v21102_v27 = vsel %vm31475_vm10, %v27602_v13, -inf  ;;  %vm21773_vm10 = vcmask 7168  }
0x1b96   :  { %21103 = vmax.xlane.f32.xlu1 %v21102_v27  ;;  %v25817_v60 = vpop.f32.mrb[48].mxu0  ;;  %v21099_v1 = vsel %vm31476_vm11, %v27603_v61, -inf }
0x1b97   :  { %v27604_v14 = vadd.f32 %v25817_v60, %v20492_v38  ;;  %v21089_v58 = vpop.f32.mrb[49].mxu0  ;;  %21100 = vmax.xlane.f32.xlu0 %v21099_v1 }
0x1b98   :  { %v27605_v28 = vadd.f32 %v21089_v58, %v20491_v21 }
0x1b99   :  { %v21108_v49 = vsel %vm31477_vm0, %v27604_v14, -inf }
0x1b9a   :  { %21109 = vmax.xlane.f32.xlu1 %v21108_v49  ;;  %v21105_v39 = vsel %vm31478_vm12, %v27605_v28, -inf }
0x1b9b   :  { %21106 = vmax.xlane.f32.xlu0 %v21105_v39 }
0x1c23   :  { %v21104_v5 = vpop.xlane.xlu1 %21103 }
0x1c24   :  { %v21112_v19 = vsub.f32 %v27602_v13, %v21104_v5  ;;  %v21101_v34 = vpop.xlane.xlu0 %21100 }
0x1c25   :  { %v21111_v40 = vsub.f32 %v27603_v61, %v21101_v34 }
0x1c26   :  { %v21117_v41 = vmul.f32 1.442695, %v21112_v19 }
0x1c27   :  { %v21115_v20 = vmul.f32 1.442695, %v21111_v40  ;;  %v21110_v0 = vpop.xlane.xlu1 %21109 }
0x1c28   :  { %28196 = vpow2.f32 %v21117_v41  ;;  %v21114_v37 = vsub.f32 %v27604_v14, %v21110_v0  ;;  %v21107_v18 = vpop.xlane.xlu0 %21106 }
0x1c29   :  { %28198 = vpow2.f32 %v21115_v20  ;;  %v21113_v23 = vsub.f32 %v27605_v28, %v21107_v18  ;;  %v21839_v20 = vld [vmem:[#allocation2 + $0x408] ss:$0 sm:$0xff] }
0x1c2a   :  { %v21121_v10 = vmul.f32 1.442695, %v21114_v37 }
0x1c2b   :  { %v21119_v11 = vmul.f32 1.442695, %v21113_v23 }
0x1c2c   :  { %28200 = vpow2.f32 %v21121_v10 }
0x1c2d   :  { %28202 = vpow2.f32 %v21119_v11 }
0x1c32   :  { %v28197_v48 = vpop.eup %28196 }
0x1c33   :  { %v28199_v45 = vpop.eup %28198  ;;  %v21126_v22 = vsel %vm31479_vm1, %v28197_v48, 0.0 }
0x1c34   :  { %21127 = vadd.xlane.f32.xlu1 %v21126_v22  ;;  %v21123_v16 = vsel %vm31480_vm3, %v28199_v45, 0.0 }
0x1c35   :  { %21124 = vadd.xlane.f32.xlu0 %v21123_v16 }
0x1c36   :  { %v28201_v62 = vpop.eup %28200 }
0x1c37   :  { %v28203_v42 = vpop.eup %28202  ;;  %v21132_v15 = vsel %vm31481_vm2, %v28201_v62, 0.0 }
0x1c38   :  { %21133 = vadd.xlane.f32.xlu1 %v21132_v15  ;;  %v21129_v44 = vsel %vm31482_vm14, %v28203_v42, 0.0 }
0x1c39   :  { %21130 = vadd.xlane.f32.xlu0 %v21129_v44 }
0x1cc1   :  { %v21128_v6 = vpop.xlane.xlu1 %21127 }
0x1cc2   :  { %28204 = vrcp.f32 %v21128_v6  ;;  %v21125_v26 = vpop.xlane.xlu0 %21124 }
0x1cc3   :  { %28206 = vrcp.f32 %v21125_v26 }
0x1cc5   :  { %v21134_v32 = vpop.xlane.xlu1 %21133 }
0x1cc6   :  { %28208 = vrcp.f32 %v21134_v32  ;;  %v21131_v56 = vpop.xlane.xlu0 %21130 }
0x1cc7   :  { %28210 = vrcp.f32 %v21131_v56 }
0x1ccc   :  { %v28205_v3 = vpop.eup %28204 }
0x1ccd   :  { %v28207_v46 = vpop.eup %28206  ;;  %v21140_v33 = vmul.f32 %v28205_v3, %v28197_v48 }
0x1cce   :  { %v21139_v53 = vmul.f32 %v28207_v46, %v28199_v45 }
0x1ccf   :  { %v21147_v63 = vsel %vm31483_vm4, %v21140_v33, 0 }
0x1cd0   :  { %v28209_v50 = vpop.eup %28208  ;;  %v21144_v24 = vsel %vm31484_vm5, %v21139_v53, 0  ;;  %v21232_v55 = vand.u32 4294901760, %v21147_v63 }
0x1cd1   :  { %v28211_v7 = vpop.eup %28210  ;;  %v21142_v9 = vmul.f32 %v28209_v50, %v28201_v62  ;;  %v21222_v57 = vand.u32 4294901760, %v21144_v24 }
0x1cd2   :  { %v21141_v2 = vmul.f32 %v28211_v7, %v28203_v42  ;;  %v21233_v30 = vsub.f32 %v21147_v63, %v21232_v55 }
0x1cd3   :  { %v21223_v4 = vsub.f32 %v21144_v24, %v21222_v57  ;;  %v21153_v54 = vsel %vm31485_vm13, %v21142_v9, 0 }
0x1cd4   :  { %v21234_v17 = vand.u32 4294901760, %v21233_v30  ;;  %v21150_v31 = vsel %vm31486_vm15, %v21141_v2, 0  ;;  %v21252_v29 = vand.u32 4294901760, %v21153_v54 }
0x1cd5   :  { %v21224_v47 = vand.u32 4294901760, %v21223_v4  ;;  %v21242_v35 = vand.u32 4294901760, %v21150_v31 }
0x1cd6   :  { %v21235_v25 = vsub.f32 %v21233_v30, %v21234_v17  ;;  %v21253_v52 = vsub.f32 %v21153_v54, %v21252_v29 }
0x1cd7   :  { %v21225_v51 = vsub.f32 %v21223_v4, %v21224_v47  ;;  %v21243_v13 = vsub.f32 %v21150_v31, %v21242_v35 }
0x1cd8   :  { %v21254_v43 = vand.u32 4294901760, %v21253_v52  ;;  %v21236_v27 = vand.u32 4294901760, %v21235_v25 }
0x1cd9   :  { %v21226_v61 = vand.u32 4294901760, %v21225_v51  ;;  %v21244_v38 = vand.u32 4294901760, %v21243_v13 }
0x1cda   :  { %v21255_v21 = vsub.f32 %v21253_v52, %v21254_v43 }
0x1cdb   :  { %25822 = vmatprep.mubr.f32.mxu1 %v21226_v61  ;;  %v21245_v60 = vsub.f32 %v21243_v13, %v21244_v38 }
0x1cdc   :  { %25823 = vmatmul.mubr.f32.vlgmr.msra.gmra.mrb[30].mxu1 %v21236_v27  ;;  %v21256_v14 = vand.u32 4294901760, %v21255_v21 }
0x1cdd   :  { %27565 = vmatpush3.bf16.msra.mxu1 %v31174_v8  ;;  %v21246_v1 = vand.u32 4294901760, %v21245_v60 }
0x1cde   :  { %27567 = vmatprep.subr.bf16.mxu1 %v31167_v36 }
0x1cdf   :  { %25825 = vmatprep.mubr.f32.mxu1 %v21246_v1 }
0x1ce0   :  { %25826 = vmatmul.mubr.f32.gmra.mrb[32].mxu1 %v21256_v14 }
0x1ce1   :  { %25832 = vmatprep.mubr.f32.mxu1 %v21222_v57 }
0x1ce4   :  { %25833 = vmatmul.mubr.f32.vlgmr.msra.gmra.mrb[30].mxu1 %v21232_v55 }
0x1ce5   :  { %27569 = vmatpush3.bf16.msra.mxu1 %v31167_v36  ;;  %25835 = vmatprep.mubr.f32.mxu1 %v21242_v35  ;;  %v21838_v36 = vld [vmem:[#allocation2 + $0x400] ss:$0 sm:$0xff] }
0x1ce6   :  { %27571 = vmatprep.subr.bf16.mxu1 %v31163_v12 }
0x1ce8   :  { %25836 = vmatmul.mubr.f32.gmra.mrb[32].mxu1 %v21252_v29 }
0x1ce9   :  { %25842 = vmatprep.mubr.f32.mxu1 %v21223_v4 }
0x1cec   :  { %25843 = vmatmul.mubr.f32.vlgmr.msra.gmra.mrb[30].mxu1 %v21233_v30 }
0x1ced   :  { %27573 = vmatpush3.bf16.msra.mxu1 %v31163_v12  ;;  %25845 = vmatprep.mubr.f32.mxu1 %v21243_v13 }
0x1cee   :  { %27575 = vmatprep.subr.bf16.mxu1 %v31171_v59 }
0x1cf0   :  { %25846 = vmatmul.mubr.f32.gmra.mrb[32].mxu1 %v21253_v52 }
0x1cf1   :  { %25852 = vmatprep.mubr.f32.mxu1 %v21224_v47 }
0x1cf4   :  { %25853 = vmatmul.mubr.f32.vlgmr.msra.gmra.mrb[30].mxu1 %v21234_v17 }
0x1cf5   :  { %27577 = vmatpush3.bf16.msra.mxu1 %v31171_v59  ;;  %25855 = vmatprep.mubr.f32.mxu1 %v21244_v38 }
0x1cf6   :  { %27579 = vmatprep.subr.bf16.mxu1 %v31163_v12 }
0x1cf8   :  { %25856 = vmatmul.mubr.f32.gmra.mrb[32].mxu1 %v21254_v43 }
0x1cf9   :  { %25862 = vmatprep.mubr.f32.mxu1 %v21222_v57 }
0x1cfc   :  { %25863 = vmatmul.mubr.f32.vlgmr.msra.gmra.mrb[30].mxu1 %v21232_v55 }
0x1cfd   :  { %27581 = vmatpush3.bf16.msra.mxu1 %v31163_v12  ;;  %25865 = vmatprep.mubr.f32.mxu1 %v21242_v35 }
0x1d00   :  { %25866 = vmatmul.mubr.f32.gmra.mrb[32].mxu1 %v21252_v29 }
0x1d01   :  { %25872 = vmatprep.mubr.f32.mxu1 %v21222_v57 }
0x1d04   :  { %25873 = vmatmul.mubr.f32.vlgmr.msra.gmra.mrb[30].mxu1 %v21232_v55 }
0x1d05   :  { %25875 = vmatprep.mubr.f32.mxu1 %v21242_v35 }
0x1d08   :  { %25876 = vmatmul.mubr.f32.gmra.mrb[32].mxu1 %v21252_v29 }
0x1dd7   :  { %v25874_v8 = vpop.f32.mrb[30].mxu1 }
0x1dd8   :  { %v21749_v58 = vmul.f32 %v25874_v8, %v21838_v36  ;;  %v21721_v28 = vpop.f32.mrb[31].mxu1 }
0x1dd9   :  { %v21748_v49 = vmul.f32 %v21838_v36, %v21721_v28 }
0x1dda   :  { %v21755_v59 = vsel %vm31471_vm6, %v21749_v58, 0.0 }
0x1ddb   :  { %21756 = vadd.xlane.f32.xlu1 %v21755_v59  ;;  %v25877_v39 = vpop.f32.mrb[32].mxu1  ;;  %v21752_v5 = vsel %vm31487_vm9, %v21748_v49, 0.0 }
0x1ddc   :  { %v21751_v19 = vmul.f32 %v25877_v39, %v21838_v36  ;;  %21753 = vadd.xlane.f32.xlu0 %v21752_v5  ;;  %v21733_v12 = vpop.f32.mrb[33].mxu1 }
0x1ddd   :  { %v21750_v34 = vmul.f32 %v21838_v36, %v21733_v12 }
0x1dde   :  { %v21761_v40 = vsel %vm31488_vm7, %v21751_v19, 0.0 }
0x1ddf   :  { %21762 = vadd.xlane.f32.xlu1 %v21761_v40  ;;  %v21758_v41 = vsel %vm31489_vm8, %v21750_v34, 0.0 }
0x1de0   :  { %21759 = vadd.xlane.f32.xlu0 %v21758_v41 }
0x1e68   :  { %v21757_v0 = vpop.xlane.xlu1 %21756 }
0x1e69   :  { %v21770_v37 = vadd.f32 %v21839_v20, %v21757_v0  ;;  %v21754_v18 = vpop.xlane.xlu0 %21753 }
0x1e6a   :  { %v21769_v23 = vadd.f32 %v21839_v20, %v21754_v18 }
0x1e6b   :  { %21775 = vst.msk [vmem:[%s31218_s4 + $0x8] sm:$0xff] %vm21773_vm10, %v21770_v37 }
0x1e6c   :  { %21774 = vst.msk [vmem:[%s31218_s4] sm:$0xff] %vm21773_vm10, %v21769_v23  ;;  %v21763_v10 = vpop.xlane.xlu1 %21762 }
0x1e6d   :  { %v21772_v11 = vadd.f32 %v21839_v20, %v21763_v10  ;;  %v21760_v48 = vpop.xlane.xlu0 %21759 }
0x1e6e   :  { %v21771_v45 = vadd.f32 %v21839_v20, %v21760_v48 }
0x1e6f   :  { %21777 = vst.msk [vmem:[%s31218_s4 + $0x18] sm:$0xff] %vm21773_vm10, %v21772_v11 }
0x1e70   :  { %21776 = vst.msk [vmem:[%s31218_s4 + $0x10] sm:$0xff] %vm21773_vm10, %v21771_v45 }
0x1e71   :  { %21782 = vsyncpa [#allocation3], 1 }
0x1e72   :  { %21783 = vsyncpa [#allocation5], 1 }

</bundles_post_ra>
